<compile_context>
chip_gen: v7x
topology: tpu7x:2x2x1
jax: 0.10.0
libtpu: 0.0.40
codegen_flags: <defaults>
</compile_context>

<pallas_src>
import functools

import jax
import jax.numpy as jnp
from jax import lax
from jax.experimental import pallas as pl
from jax.experimental.pallas import tpu as pltpu

NEG_BIG = -1e30


def _leaky(x, slope=0.01):
    return jnp.maximum(x, slope * x)


def _elu(x):
    # exp on a clamped argument so the unselected branch never overflows.
    return jnp.where(x > 0, x, jnp.exp(jnp.minimum(x, 0.0)) - 1.0)


def _attn_gru_kernel(
    # per-edge-tile inputs
    idx_ref,      # (TE, 2) int32  [:,0]=src, [:,1]=dst (padding rows hold N)
    e_ref,        # (TE, D) bf16   edge features
    # resident inputs (constant index map)
    h_ref,        # (N, D)   f32   node features
    hw1_ref,      # (2N, D)  f32   [nfeats @ W1a ; nfeats @ W1b] stacked
    w1c_ref,      # (D, D)   W1 block acting on edge features
    w2_ref,       # (1, D)   attention weight, row layout
    w3_ref,       # (D, D)   message transform
    wi_ref,       # (D, 3D)  GRU input weights  [r | z | n]
    bi_ref,       # (1, 3D)  GRU input bias
    gh_ref,       # (N, 3D)  precomputed nfeats @ Wh + bh
    # outputs
    h_out_ref,    # (N, D)
    e_out_ref,    # (TE, D)
    # VMEM scratch, persistent across the edge grid
    nmax_ref,     # (1, N) running per-node max logit
    nsum_ref,     # (1, N) running per-node sum of exp(logit - max)
    nmsgT_ref,    # (D, N) running per-node message accumulator (transposed)
):
    f32 = jnp.float32
    t = pl.program_id(0)
    n_tiles = pl.num_programs(0)
    N, D = h_ref.shape
    TE = e_ref.shape[0]

    @pl.when(t == 0)
    def _init():
        nmax_ref[...] = jnp.full((1, N), NEG_BIG, f32)
        nsum_ref[...] = jnp.zeros((1, N), f32)
        nmsgT_ref[...] = jnp.zeros((D, N), f32)

    idx = idx_ref[...]
    src = idx[:, 0:1]                                     # (TE, 1)
    dst = idx[:, 1:2]                                     # (TE, 1)

    # Combined (TE, 2N) one-hot generated in vregs: a single gather matmul
    # yields hW1a[src] + hW1b[dst] directly (no (E, anything) HBM operand).
    lane2 = lax.broadcasted_iota(jnp.int32, (TE, 2 * N), 1)
    target = jnp.where(lane2 < N, src, dst + N)           # padded rows match nothing
    comb_oh = (lane2 == target).astype(f32)               # (TE, 2N)
    h_sum = jnp.dot(comb_oh, hw1_ref[...], preferred_element_type=f32)   # (TE, D)

    # Edge update: e' = LReLU(LReLU(h_src@W1a + h_dst@W1b + e@W1c)).
    e_in = e_ref[...].astype(f32)                         # bf16 stream -> f32 math
    z1 = h_sum + jnp.dot(e_in, w1c_ref[...], preferred_element_type=f32)
    e_new = _leaky(_leaky(z1))
    e_out_ref[...] = e_new.astype(e_out_ref.dtype)

    # Attention logits: VPU multiply + lane reduce instead of (TE,D)@(D,1).
    logits = _leaky(_leaky(
        jnp.sum(e_new * w2_ref[...], axis=1, keepdims=True)))           # (TE, 1)

    # Unnormalised message.
    msg = _leaky(jnp.dot(e_new, w3_ref[...], preferred_element_type=f32))  # (TE, D)

    # ---- online (flash-style) edge softmax grouped by destination node ------
    dst_hit = dst == lax.broadcasted_iota(jnp.int32, (TE, N), 1)        # (TE, N)
    dst_oh = dst_hit.astype(f32)

    masked = jnp.where(dst_hit, logits, NEG_BIG)          # (TE, N)
    tile_max = jnp.max(masked, axis=0, keepdims=True)     # (1, N)
    old_max = nmax_ref[...]
    new_max = jnp.maximum(old_max, tile_max)
    alpha = jnp.exp(old_max - new_max)                    # (1, N) rescale factor

    edge_max = jnp.sum(dst_oh * new_max, axis=1, keepdims=True)         # (TE, 1)
    exp_l = jnp.exp(logits - edge_max)                    # (TE, 1), <= 1
    p = dst_oh * exp_l                                    # (TE, N)

    nmax_ref[...] = new_max
    nsum_ref[...] = alpha * nsum_ref[...] + jnp.sum(p, axis=0, keepdims=True)

    # Segment sum of messages in (D, N) layout: alpha broadcasts along lanes
    # on the VPU (no eye / diagonal matmul on the serial cross-tile chain).
    contrib = lax.dot_general(msg, p, (((0,), (0,)), ((), ())),
                              preferred_element_type=f32)               # (D, N)
    nmsgT_ref[...] = alpha * nmsgT_ref[...] + contrib

    # ---- final node update (after the last edge tile) ------------------------
    @pl.when(t == n_tiles - 1)
    def _finalize():
        nsum = nsum_ref[...]                              # (1, N)
        inv = jnp.where(nsum > 0,
                        pl.reciprocal(nsum, approx=True),
                        jnp.zeros_like(nsum))
        mT = _elu(inv * nmsgT_ref[...])                   # (D, N) normalised msg

        # GRU input matmul in transposed orientation (contract dim 0) so the
        # (D,N) accumulator never needs an explicit transpose.
        gi = lax.dot_general(mT, wi_ref[...], (((0,), (0,)), ((), ())),
                             preferred_element_type=f32) + bi_ref[...]  # (N, 3D)
        gh = gh_ref[...]                                  # (N, 3D) precomputed
        r = jax.nn.sigmoid(gi[:, 0:D] + gh[:, 0:D])
        zg = jax.nn.sigmoid(gi[:, D:2 * D] + gh[:, D:2 * D])
        n_gate = jnp.tanh(gi[:, 2 * D:3 * D] + r * gh[:, 2 * D:3 * D])
        h = h_ref[...]
        h_new = (1.0 - zg) * n_gate + zg * h
        h_out_ref[...] = jnp.maximum(h_new, 0.0).astype(h_out_ref.dtype)


def init_params(key, dim):
    """Deterministic parameter init mirroring the module's shapes.

    Weight matrices are stored pre-transposed as (in_features, out_features).
    """
    ks = jax.random.split(key, 15)
    b_w1 = 1.0 / jnp.sqrt(3.0 * dim)
    b_d = 1.0 / jnp.sqrt(float(dim))
    u = lambda k, shape, b: jax.random.uniform(k, shape, jnp.float32, -b, b)
    return dict(
        w1=u(ks[0], (3 * dim, dim), b_w1),   # Linear(3*dim, dim, bias=False)
        w2=u(ks[1], (dim, 1), b_d),          # Linear(dim, 1, bias=False)
        w3=u(ks[2], (dim, dim), b_d),        # Linear(dim, dim, bias=False)
        wir=u(ks[3], (dim, dim), b_d), wiz=u(ks[4], (dim, dim), b_d), win=u(ks[5], (dim, dim), b_d),
        whr=u(ks[6], (dim, dim), b_d), whz=u(ks[7], (dim, dim), b_d), whn=u(ks[8], (dim, dim), b_d),
        bir=u(ks[9], (1, dim), b_d), biz=u(ks[10], (1, dim), b_d), bin=u(ks[11], (1, dim), b_d),
        bhr=u(ks[12], (1, dim), b_d), bhz=u(ks[13], (1, dim), b_d), bhn=u(ks[14], (1, dim), b_d),
    )


@functools.partial(jax.jit, static_argnames=("tile_e",))
def dti_attn_gru_forward(nfeats, efeats, src, dst, params, *, tile_e=512):
    """Tiled Pallas forward.  tile_e must be a multiple of 8."""
    N, D = nfeats.shape
    E = efeats.shape[0]
    f32 = jnp.float32
    hi = lax.Precision.HIGHEST

    hfp = nfeats.astype(f32)
    w1 = params["w1"]

    # Fold W1a/W1b into the node features (tiny (N,D)@(D,D) ops), stack so the
    # kernel does one combined gather matmul.  Also precompute the GRU hidden
    # gates gh = h @ Wh + bh (N,3D).
    hw1 = jnp.concatenate(
        [jnp.dot(hfp, w1[:D], precision=hi),
         jnp.dot(hfp, w1[D:2 * D], precision=hi)], axis=0)          # (2N, D)
    w1c = w1[2 * D:]
    w2_row = params["w2"].reshape(1, D)
    wi = jnp.concatenate([params["wir"], params["wiz"], params["win"]], axis=1)
    wh = jnp.concatenate([params["whr"], params["whz"], params["whn"]], axis=1)
    bi = jnp.concatenate([params["bir"], params["biz"], params["bin"]], axis=1)
    bh = jnp.concatenate([params["bhr"], params["bhz"], params["bhn"]], axis=1)
    gh = jnp.dot(hfp, wh, precision=hi) + bh                         # (N, 3D)

    # Pad the edge axis to a tile multiple; padded edges use node id == N so
    # their masks are all-zero and they contribute nothing.
    e_pad = ((E + tile_e - 1) // tile_e) * tile_e
    pad = e_pad - E
    # bf16 input stream (upcast in-kernel; all math stays f32).
    e_feats = jnp.pad(efeats.astype(f32), ((0, pad), (0, 0))).astype(jnp.bfloat16)
    idx = jnp.stack([src.astype(jnp.int32), dst.astype(jnp.int32)], axis=1)
    idx = jnp.pad(idx, ((0, pad), (0, 0)), constant_values=N)        # (e_pad, 2)

    n_tiles = e_pad // tile_e
    edge_idx = lambda t: (t, 0)
    const_idx = lambda t: (0, 0)

    grid_spec = pltpu.PrefetchScalarGridSpec(
        num_scalar_prefetch=0,
        grid=(n_tiles,),
        in_specs=[
            pl.BlockSpec((tile_e, 2), edge_idx),      # packed src/dst ids
            pl.BlockSpec((tile_e, D), edge_idx),      # edge features (bf16)
            pl.BlockSpec((N, D), const_idx),          # h (resident)
            pl.BlockSpec((2 * N, D), const_idx),      # stacked hW1a/hW1b
            pl.BlockSpec((D, D), const_idx),          # W1c
            pl.BlockSpec((1, D), const_idx),          # W2 row
            pl.BlockSpec((D, D), const_idx),          # W3
            pl.BlockSpec((D, 3 * D), const_idx),      # GRU W_i (fused)
            pl.BlockSpec((1, 3 * D), const_idx),      # GRU b_i
            pl.BlockSpec((N, 3 * D), const_idx),      # precomputed gh
        ],
        out_specs=(
            pl.BlockSpec((N, D), const_idx),          # h_out (written at last tile)
            pl.BlockSpec((tile_e, D), edge_idx),      # e_out
        ),
        scratch_shapes=[
            pltpu.VMEM((1, N), f32),    # per-node running max
            pltpu.VMEM((1, N), f32),    # per-node running sum
            pltpu.VMEM((D, N), f32),    # per-node message accumulator (D, N)
        ],
    )

    h_out, e_out = pl.pallas_call(
        _attn_gru_kernel,
        grid_spec=grid_spec,
        out_shape=(
            jax.ShapeDtypeStruct((N, D), f32),
            jax.ShapeDtypeStruct((e_pad, D), f32),
        ),
        compiler_params=pltpu.CompilerParams(
            # edge axis carries the per-node online-softmax state -> sequential
            dimension_semantics=("arbitrary",),
            vmem_limit_bytes=32 * 1024 * 1024,
        ),
    )(idx, e_feats, hfp, hw1, w1c, w2_row, params["w3"], wi, bi, gh)
    return h_out, e_out[:E]


def reference_forward(nfeats, efeats, src, dst, params):
    """Pure-JAX reference (exact two-pass segment softmax)."""
    hi = lax.Precision.HIGHEST
    N, D = nfeats.shape
    leaky = lambda x: jnp.maximum(x, 0.01 * x)
    h_src = nfeats[src]
    h_dst = nfeats[dst]
    cat = jnp.concatenate([h_src, h_dst, efeats], axis=-1)
    e_new = leaky(leaky(jnp.dot(cat, params["w1"], precision=hi)))
    logits = leaky(leaky(jnp.dot(e_new, params["w2"], precision=hi)))[:, 0]
    node_max = jax.ops.segment_max(logits, dst, num_segments=N)
    exp_l = jnp.exp(logits - node_max[dst])
    node_sum = jax.ops.segment_sum(exp_l, dst, num_segments=N)
    a = exp_l / node_sum[dst]
    msg = a[:, None] * leaky(jnp.dot(e_new, params["w3"], precision=hi))
    m = jax.ops.segment_sum(msg, dst, num_segments=N)
    m = jnp.where(m > 0, m, jnp.exp(jnp.minimum(m, 0.0)) - 1.0)   # ELU
    r = jax.nn.sigmoid(jnp.dot(m, params["wir"], precision=hi) + params["bir"]
                       + jnp.dot(nfeats, params["whr"], precision=hi) + params["bhr"])
    z = jax.nn.sigmoid(jnp.dot(m, params["wiz"], precision=hi) + params["biz"]
                       + jnp.dot(nfeats, params["whz"], precision=hi) + params["bhz"])
    n = jnp.tanh(jnp.dot(m, params["win"], precision=hi) + params["bin"]
                 + r * (jnp.dot(nfeats, params["whn"], precision=hi) + params["bhn"]))
    h_new = (1.0 - z) * n + z * nfeats
    return jnp.maximum(h_new, 0.0), e_new


if __name__ == "__main__":
    key = jax.random.PRNGKey(0)
    k_param, k_n, k_e, k_src, k_dst = jax.random.split(key, 5)

    dim = 32      # hidden feature dim
    N = 16        # number of nodes
    E = 2048      # number of edges -> 4 edge tiles of 512 (exercises the grid)

    params = init_params(k_param, dim)
    nfeats = jax.random.normal(k_n, (N, dim), dtype=jnp.float32)
    efeats = jax.random.normal(k_e, (E, dim), dtype=jnp.float32)
    src = jax.random.randint(k_src, (E,), 0, N)
    dst = jax.random.randint(k_dst, (E,), 0, N)

    h_out, e_out = dti_attn_gru_forward(nfeats, efeats, src, dst, params, tile_e=512)
    jax.block_until_ready((h_out, e_out))

    h_ref, e_ref = reference_forward(nfeats, efeats, src, dst, params)

    assert h_out.shape == (N, dim) and e_out.shape == (E, dim)
    assert bool(jnp.all(jnp.isfinite(h_out))) and bool(jnp.all(jnp.isfinite(e_out)))
    assert float(jnp.max(jnp.abs(e_out - e_ref))) < 2e-2
    assert float(jnp.max(jnp.abs(h_out - h_ref))) < 2e-2
    print("KERNEL_OK")
</pallas_src>

<mosaic_0001>
module attributes {stable_mosaic.version = 11 : i64} {
  func.func @_attn_gru_kernel(%arg0: i32, %arg1: memref<512x2xi32, #tpu.memory_space<vmem>>, %arg2: memref<512x32xbf16, #tpu.memory_space<vmem>>, %arg3: memref<16x32xf32, #tpu.memory_space<vmem>>, %arg4: memref<32x32xf32, #tpu.memory_space<vmem>>, %arg5: memref<32x32xf32, #tpu.memory_space<vmem>>, %arg6: memref<1x32xf32, #tpu.memory_space<vmem>>, %arg7: memref<32x32xf32, #tpu.memory_space<vmem>>, %arg8: memref<32x96xf32, #tpu.memory_space<vmem>>, %arg9: memref<1x96xf32, #tpu.memory_space<vmem>>, %arg10: memref<16x96xf32, #tpu.memory_space<vmem>>, %arg11: memref<16x32xf32, #tpu.memory_space<vmem>>, %arg12: memref<512x32xf32, #tpu.memory_space<vmem>>, %arg13: memref<1x16xf32, #tpu.memory_space<vmem>>, %arg14: memref<1x16xf32, #tpu.memory_space<vmem>>, %arg15: memref<32x16xf32, #tpu.memory_space<vmem>>) attributes {dimension_semantics = [#tpu.dimension_semantics<arbitrary>], iteration_bounds = array<i64: 4>, scalar_prefetch = 0 : i64, scratch_operands = 3 : i64, tpu.core_type = #tpu.core_type<tc>, window_params = [{transform_indices = @transform_0, window_bounds = array<i64: 512, 2>}, {transform_indices = @transform_1, window_bounds = array<i64: 512, 32>}, {pipeline_mode = #tpu.pipeline_mode<synchronous>, transform_indices = @transform_2, window_bounds = array<i64: 16, 32>}, {pipeline_mode = #tpu.pipeline_mode<synchronous>, transform_indices = @transform_3, window_bounds = array<i64: 32, 32>}, {pipeline_mode = #tpu.pipeline_mode<synchronous>, transform_indices = @transform_4, window_bounds = array<i64: 32, 32>}, {pipeline_mode = #tpu.pipeline_mode<synchronous>, transform_indices = @transform_5, window_bounds = array<i64: 1, 32>}, {pipeline_mode = #tpu.pipeline_mode<synchronous>, transform_indices = @transform_6, window_bounds = array<i64: 32, 32>}, {pipeline_mode = #tpu.pipeline_mode<synchronous>, transform_indices = @transform_7, window_bounds = array<i64: 32, 96>}, {pipeline_mode = #tpu.pipeline_mode<synchronous>, transform_indices = @transform_8, window_bounds = array<i64: 1, 96>}, {pipeline_mode = #tpu.pipeline_mode<synchronous>, transform_indices = @transform_9, window_bounds = array<i64: 16, 96>}, {pipeline_mode = #tpu.pipeline_mode<synchronous>, transform_indices = @transform_10, window_bounds = array<i64: 16, 32>}, {transform_indices = @transform_11, window_bounds = array<i64: 512, 32>}]} {
    %c0_i32 = arith.constant 0 : i32
    %0 = arith.cmpi eq, %arg0, %c0_i32 : i32
    %1 = arith.extui %0 : i1 to i32
    %c0_i32_0 = arith.constant 0 : i32
    %2 = arith.cmpi ne, %1, %c0_i32_0 : i32
    scf.if %2 {
      %cst_41 = arith.constant -1.000000e+30 : f32
      %88 = vector.broadcast %cst_41 : f32 to vector<1x16xf32>
      %c0_42 = arith.constant 0 : index
      %c0_43 = arith.constant 0 : index
      %89 = vector.load %arg13[%c0_42, %c0_43] : memref<1x16xf32, #tpu.memory_space<vmem>>, vector<1x16xf32>
      tpu.vector_store %arg13[%c0_42, %c0_43], %88 {strides = array<i32>} : memref<1x16xf32, #tpu.memory_space<vmem>>, vector<1x16xf32>,
      %cst_44 = arith.constant 0.000000e+00 : f32
      %90 = vector.broadcast %cst_44 : f32 to vector<1x16xf32>
      %c0_45 = arith.constant 0 : index
      %c0_46 = arith.constant 0 : index
      %91 = vector.load %arg14[%c0_45, %c0_46] : memref<1x16xf32, #tpu.memory_space<vmem>>, vector<1x16xf32>
      tpu.vector_store %arg14[%c0_45, %c0_46], %90 {strides = array<i32>} : memref<1x16xf32, #tpu.memory_space<vmem>>, vector<1x16xf32>,
      %cst_47 = arith.constant 0.000000e+00 : f32
      %92 = vector.broadcast %cst_47 : f32 to vector<32x16xf32>
      %c0_48 = arith.constant 0 : index
      %c0_49 = arith.constant 0 : index
      %93 = vector.load %arg15[%c0_48, %c0_49] : memref<32x16xf32, #tpu.memory_space<vmem>>, vector<32x16xf32>
      tpu.vector_store %arg15[%c0_48, %c0_49], %92 {strides = array<i32>} : memref<32x16xf32, #tpu.memory_space<vmem>>, vector<32x16xf32>,
    } else {
    }
    %c0 = arith.constant 0 : index
    %c0_1 = arith.constant 0 : index
    %3 = vector.load %arg1[%c0, %c0_1] : memref<512x2xi32, #tpu.memory_space<vmem>>, vector<512x2xi32>
    %4 = vector.extract_strided_slice %3 {offsets = [0, 0], sizes = [512, 1], strides = [1, 1]} : vector<512x2xi32> to vector<512x1xi32>
    %5 = vector.extract_strided_slice %3 {offsets = [0, 1], sizes = [512, 1], strides = [1, 1]} : vector<512x2xi32> to vector<512x1xi32>
    %6 = tpu.iota {dimensions = array<i32: 1>} : vector<512x32xi32>
    %c16_i32 = arith.constant 16 : i32
    %7 = vector.broadcast %c16_i32 : i32 to vector<512x32xi32>
    %8 = arith.cmpi slt, %6, %7 : vector<512x32xi32>
    %c16_i32_2 = arith.constant 16 : i32
    %9 = vector.broadcast %c16_i32_2 : i32 to vector<512x1xi32>
    %10 = arith.addi %5, %9 : vector<512x1xi32>
    %11 = vector.shape_cast %4 : vector<512x1xi32> to vector<512x1xi32>
    %12 = vector.broadcast %11 : vector<512x1xi32> to vector<512x32xi32>
    %13 = vector.shape_cast %10 : vector<512x1xi32> to vector<512x1xi32>
    %14 = vector.broadcast %13 : vector<512x1xi32> to vector<512x32xi32>
    %15 = arith.select %8, %12, %14 : vector<512x32xi1>, vector<512x32xi32>
    %16 = arith.cmpi eq, %6, %15 : vector<512x32xi32>
    %17 = arith.extui %16 : vector<512x32xi1> to vector<512x32xi32>
    %18 = arith.sitofp %17 : vector<512x32xi32> to vector<512x32xf32>
    %c0_3 = arith.constant 0 : index
    %c0_4 = arith.constant 0 : index
    %19 = vector.load %arg4[%c0_3, %c0_4] : memref<32x32xf32, #tpu.memory_space<vmem>>, vector<32x32xf32>
    %cst = arith.constant dense<0.000000e+00> : vector<512x32xf32>
    %20 = tpu.matmul %18, %19, %cst {dimension_numbers = #tpu.dot_dimension_numbers<[1], [0], [0], [1], [0, 0, 1, 1], [], []>} : vector<512x32xf32>, vector<32x32xf32>, vector<512x32xf32> -> vector<512x32xf32>
    %c0_5 = arith.constant 0 : index
    %c0_6 = arith.constant 0 : index
    %21 = vector.load %arg2[%c0_5, %c0_6] : memref<512x32xbf16, #tpu.memory_space<vmem>>, vector<512x32xbf16>
    %22 = arith.extf %21 : vector<512x32xbf16> to vector<512x32xf32>
    %c0_7 = arith.constant 0 : index
    %c0_8 = arith.constant 0 : index
    %23 = vector.load %arg5[%c0_7, %c0_8] : memref<32x32xf32, #tpu.memory_space<vmem>>, vector<32x32xf32>
    %cst_9 = arith.constant dense<0.000000e+00> : vector<512x32xf32>
    %24 = tpu.matmul %22, %23, %cst_9 {dimension_numbers = #tpu.dot_dimension_numbers<[1], [0], [0], [1], [0, 0, 1, 1], [], []>} : vector<512x32xf32>, vector<32x32xf32>, vector<512x32xf32> -> vector<512x32xf32>
    %25 = arith.addf %20, %24 : vector<512x32xf32>
    %cst_10 = arith.constant 0.00999999977 : f32
    %26 = vector.broadcast %cst_10 : f32 to vector<512x32xf32>
    %27 = arith.mulf %26, %25 : vector<512x32xf32>
    %28 = arith.maximumf %25, %27 : vector<512x32xf32>
    %cst_11 = arith.constant 0.00999999977 : f32
    %29 = vector.broadcast %cst_11 : f32 to vector<512x32xf32>
    %30 = arith.mulf %29, %28 : vector<512x32xf32>
    %31 = arith.maximumf %28, %30 : vector<512x32xf32>
    %c0_12 = arith.constant 0 : index
    %c0_13 = arith.constant 0 : index
    %32 = vector.load %arg12[%c0_12, %c0_13] : memref<512x32xf32, #tpu.memory_space<vmem>>, vector<512x32xf32>
    tpu.vector_store %arg12[%c0_12, %c0_13], %31 {strides = array<i32>} : memref<512x32xf32, #tpu.memory_space<vmem>>, vector<512x32xf32>,
    %c0_14 = arith.constant 0 : index
    %c0_15 = arith.constant 0 : index
    %33 = vector.load %arg6[%c0_14, %c0_15] : memref<1x32xf32, #tpu.memory_space<vmem>>, vector<1x32xf32>
    %34 = vector.broadcast %33 : vector<1x32xf32> to vector<512x32xf32>
    %35 = arith.mulf %31, %34 : vector<512x32xf32>
    %cst_16 = arith.constant dense<0.000000e+00> : vector<512xf32>
    %36 = vector.multi_reduction <add>, %35, %cst_16 [1] : vector<512x32xf32> to vector<512xf32>
    %37 = vector.shape_cast %36 : vector<512xf32> to vector<512x1xf32>
    %cst_17 = arith.constant 0.00999999977 : f32
    %38 = vector.broadcast %cst_17 : f32 to vector<512x1xf32>
    %39 = arith.mulf %38, %37 : vector<512x1xf32>
    %40 = arith.maximumf %37, %39 : vector<512x1xf32>
    %cst_18 = arith.constant 0.00999999977 : f32
    %41 = vector.broadcast %cst_18 : f32 to vector<512x1xf32>
    %42 = arith.mulf %41, %40 : vector<512x1xf32>
    %43 = arith.maximumf %40, %42 : vector<512x1xf32>
    %c0_19 = arith.constant 0 : index
    %c0_20 = arith.constant 0 : index
    %44 = vector.load %arg7[%c0_19, %c0_20] : memref<32x32xf32, #tpu.memory_space<vmem>>, vector<32x32xf32>
    %cst_21 = arith.constant dense<0.000000e+00> : vector<512x32xf32>
    %45 = tpu.matmul %31, %44, %cst_21 {dimension_numbers = #tpu.dot_dimension_numbers<[1], [0], [0], [1], [0, 0, 1, 1], [], []>} : vector<512x32xf32>, vector<32x32xf32>, vector<512x32xf32> -> vector<512x32xf32>
    %cst_22 = arith.constant 0.00999999977 : f32
    %46 = vector.broadcast %cst_22 : f32 to vector<512x32xf32>
    %47 = arith.mulf %46, %45 : vector<512x32xf32>
    %48 = arith.maximumf %45, %47 : vector<512x32xf32>
    %49 = tpu.iota {dimensions = array<i32: 1>} : vector<512x16xi32>
    %50 = vector.broadcast %5 : vector<512x1xi32> to vector<512x16xi32>
    %51 = arith.cmpi eq, %50, %49 : vector<512x16xi32>
    %52 = arith.extui %51 : vector<512x16xi1> to vector<512x16xi32>
    %53 = arith.sitofp %52 : vector<512x16xi32> to vector<512x16xf32>
    %cst_23 = arith.constant -1.000000e+30 : f32
    %54 = vector.shape_cast %43 : vector<512x1xf32> to vector<512x1xf32>
    %55 = vector.broadcast %54 : vector<512x1xf32> to vector<512x16xf32>
    %56 = vector.broadcast %cst_23 : f32 to vector<512x16xf32>
    %57 = arith.select %51, %55, %56 : vector<512x16xi1>, vector<512x16xf32>
    %cst_24 = arith.constant dense<0xFF800000> : vector<16xf32>
    %58 = vector.multi_reduction <maximumf>, %57, %cst_24 [0] : vector<512x16xf32> to vector<16xf32>
    %59 = vector.shape_cast %58 : vector<16xf32> to vector<1x16xf32>
    %c0_25 = arith.constant 0 : index
    %c0_26 = arith.constant 0 : index
    %60 = vector.load %arg13[%c0_25, %c0_26] : memref<1x16xf32, #tpu.memory_space<vmem>>, vector<1x16xf32>
    %61 = arith.maximumf %60, %59 : vector<1x16xf32>
    %62 = arith.subf %60, %61 : vector<1x16xf32>
    %63 = math.exp %62 : vector<1x16xf32>
    %64 = vector.broadcast %61 : vector<1x16xf32> to vector<512x16xf32>
    %65 = arith.mulf %53, %64 : vector<512x16xf32>
    %cst_27 = arith.constant dense<0.000000e+00> : vector<512xf32>
    %66 = vector.multi_reduction <add>, %65, %cst_27 [1] : vector<512x16xf32> to vector<512xf32>
    %67 = vector.shape_cast %66 : vector<512xf32> to vector<512x1xf32>
    %68 = arith.subf %43, %67 : vector<512x1xf32>
    %69 = math.exp %68 : vector<512x1xf32>
    %70 = vector.broadcast %69 : vector<512x1xf32> to vector<512x16xf32>
    %71 = arith.mulf %53, %70 : vector<512x16xf32>
    %c0_28 = arith.constant 0 : index
    %c0_29 = arith.constant 0 : index
    %72 = vector.load %arg13[%c0_28, %c0_29] : memref<1x16xf32, #tpu.memory_space<vmem>>, vector<1x16xf32>
    tpu.vector_store %arg13[%c0_28, %c0_29], %61 {strides = array<i32>} : memref<1x16xf32, #tpu.memory_space<vmem>>, vector<1x16xf32>,
    %c0_30 = arith.constant 0 : index
    %c0_31 = arith.constant 0 : index
    %73 = vector.load %arg14[%c0_30, %c0_31] : memref<1x16xf32, #tpu.memory_space<vmem>>, vector<1x16xf32>
    %74 = arith.mulf %63, %73 : vector<1x16xf32>
    %cst_32 = arith.constant dense<0.000000e+00> : vector<16xf32>
    %75 = vector.multi_reduction <add>, %71, %cst_32 [0] : vector<512x16xf32> to vector<16xf32>
    %76 = vector.shape_cast %75 : vector<16xf32> to vector<1x16xf32>
    %77 = arith.addf %74, %76 : vector<1x16xf32>
    %c0_33 = arith.constant 0 : index
    %c0_34 = arith.constant 0 : index
    %78 = vector.load %arg14[%c0_33, %c0_34] : memref<1x16xf32, #tpu.memory_space<vmem>>, vector<1x16xf32>
    tpu.vector_store %arg14[%c0_33, %c0_34], %77 {strides = array<i32>} : memref<1x16xf32, #tpu.memory_space<vmem>>, vector<1x16xf32>,
    %cst_35 = arith.constant dense<0.000000e+00> : vector<32x16xf32>
    %79 = tpu.matmul %48, %71, %cst_35 {dimension_numbers = #tpu.dot_dimension_numbers<[0], [0], [1], [1], [0, 1, 1, 1], [], []>} : vector<512x32xf32>, vector<512x16xf32>, vector<32x16xf32> -> vector<32x16xf32>
    %c0_36 = arith.constant 0 : index
    %c0_37 = arith.constant 0 : index
    %80 = vector.load %arg15[%c0_36, %c0_37] : memref<32x16xf32, #tpu.memory_space<vmem>>, vector<32x16xf32>
    %81 = vector.broadcast %63 : vector<1x16xf32> to vector<32x16xf32>
    %82 = arith.mulf %81, %80 : vector<32x16xf32>
    %83 = arith.addf %82, %79 : vector<32x16xf32>
    %c0_38 = arith.constant 0 : index
    %c0_39 = arith.constant 0 : index
    %84 = vector.load %arg15[%c0_38, %c0_39] : memref<32x16xf32, #tpu.memory_space<vmem>>, vector<32x16xf32>
    tpu.vector_store %arg15[%c0_38, %c0_39], %83 {strides = array<i32>} : memref<32x16xf32, #tpu.memory_space<vmem>>, vector<32x16xf32>,
    %c3_i32 = arith.constant 3 : i32
    %85 = arith.cmpi eq, %arg0, %c3_i32 : i32
    %86 = arith.extui %85 : i1 to i32
    %c0_i32_40 = arith.constant 0 : i32
    %87 = arith.cmpi ne, %86, %c0_i32_40 : i32
    scf.if %87 {
      %c0_41 = arith.constant 0 : index
      %c0_42 = arith.constant 0 : index
      %88 = vector.load %arg14[%c0_41, %c0_42] : memref<1x16xf32, #tpu.memory_space<vmem>>, vector<1x16xf32>
      %cst_43 = arith.constant 0.000000e+00 : f32
      %89 = vector.broadcast %cst_43 : f32 to vector<1x16xf32>
      %90 = arith.cmpf ogt, %88, %89 : vector<1x16xf32>
      %91 = tpu.reciprocal %88 {approx = true} : vector<1x16xf32> -> vector<1x16xf32>
      %cst_44 = arith.constant 0.000000e+00 : f32
      %92 = vector.broadcast %cst_44 : f32 to vector<1x16xf32>
      %93 = arith.select %90, %91, %92 : vector<1x16xi1>, vector<1x16xf32>
      %c0_45 = arith.constant 0 : index
      %c0_46 = arith.constant 0 : index
      %94 = vector.load %arg15[%c0_45, %c0_46] : memref<32x16xf32, #tpu.memory_space<vmem>>, vector<32x16xf32>
      %95 = vector.broadcast %93 : vector<1x16xf32> to vector<32x16xf32>
      %96 = arith.mulf %95, %94 : vector<32x16xf32>
      %cst_47 = arith.constant 0.000000e+00 : f32
      %97 = vector.broadcast %cst_47 : f32 to vector<32x16xf32>
      %98 = arith.cmpf ogt, %96, %97 : vector<32x16xf32>
      %cst_48 = arith.constant 0.000000e+00 : f32
      %99 = vector.broadcast %cst_48 : f32 to vector<32x16xf32>
      %100 = arith.minimumf %96, %99 : vector<32x16xf32>
      %101 = math.exp %100 : vector<32x16xf32>
      %cst_49 = arith.constant 1.000000e+00 : f32
      %102 = vector.broadcast %cst_49 : f32 to vector<32x16xf32>
      %103 = arith.subf %101, %102 : vector<32x16xf32>
      %104 = arith.select %98, %96, %103 : vector<32x16xi1>, vector<32x16xf32>
      %c0_50 = arith.constant 0 : index
      %c0_51 = arith.constant 0 : index
      %105 = vector.load %arg8[%c0_50, %c0_51] : memref<32x96xf32, #tpu.memory_space<vmem>>, vector<32x96xf32>
      %cst_52 = arith.constant dense<0.000000e+00> : vector<16x96xf32>
      %106 = tpu.matmul %104, %105, %cst_52 {dimension_numbers = #tpu.dot_dimension_numbers<[0], [0], [1], [1], [0, 1, 1, 1], [], []>} : vector<32x16xf32>, vector<32x96xf32>, vector<16x96xf32> -> vector<16x96xf32>
      %c0_53 = arith.constant 0 : index
      %c0_54 = arith.constant 0 : index
      %107 = vector.load %arg9[%c0_53, %c0_54] : memref<1x96xf32, #tpu.memory_space<vmem>>, vector<1x96xf32>
      %108 = vector.broadcast %107 : vector<1x96xf32> to vector<16x96xf32>
      %109 = arith.addf %106, %108 : vector<16x96xf32>
      %c0_55 = arith.constant 0 : index
      %c0_56 = arith.constant 0 : index
      %110 = vector.load %arg10[%c0_55, %c0_56] : memref<16x96xf32, #tpu.memory_space<vmem>>, vector<16x96xf32>
      %111 = vector.extract_strided_slice %109 {offsets = [0, 0], sizes = [16, 32], strides = [1, 1]} : vector<16x96xf32> to vector<16x32xf32>
      %112 = vector.extract_strided_slice %110 {offsets = [0, 0], sizes = [16, 32], strides = [1, 1]} : vector<16x96xf32> to vector<16x32xf32>
      %113 = arith.addf %111, %112 : vector<16x32xf32>
      %114 = arith.negf %113 : vector<16x32xf32>
      %115 = math.exp %114 : vector<16x32xf32>
      %cst_57 = arith.constant 1.000000e+00 : f32
      %116 = vector.broadcast %cst_57 : f32 to vector<16x32xf32>
      %117 = arith.addf %116, %115 : vector<16x32xf32>
      %118 = arith.divf %116, %117 : vector<16x32xf32>
      %119 = vector.extract_strided_slice %109 {offsets = [0, 32], sizes = [16, 32], strides = [1, 1]} : vector<16x96xf32> to vector<16x32xf32>
      %120 = vector.extract_strided_slice %110 {offsets = [0, 32], sizes = [16, 32], strides = [1, 1]} : vector<16x96xf32> to vector<16x32xf32>
      %121 = arith.addf %119, %120 : vector<16x32xf32>
      %122 = arith.negf %121 : vector<16x32xf32>
      %123 = math.exp %122 : vector<16x32xf32>
      %cst_58 = arith.constant 1.000000e+00 : f32
      %124 = vector.broadcast %cst_58 : f32 to vector<16x32xf32>
      %125 = arith.addf %124, %123 : vector<16x32xf32>
      %126 = arith.divf %124, %125 : vector<16x32xf32>
      %127 = vector.extract_strided_slice %109 {offsets = [0, 64], sizes = [16, 32], strides = [1, 1]} : vector<16x96xf32> to vector<16x32xf32>
      %128 = vector.extract_strided_slice %110 {offsets = [0, 64], sizes = [16, 32], strides = [1, 1]} : vector<16x96xf32> to vector<16x32xf32>
      %129 = arith.mulf %118, %128 : vector<16x32xf32>
      %130 = arith.addf %127, %129 : vector<16x32xf32>
      %131 = math.tanh %130 : vector<16x32xf32>
      %c0_59 = arith.constant 0 : index
      %c0_60 = arith.constant 0 : index
      %132 = vector.load %arg3[%c0_59, %c0_60] : memref<16x32xf32, #tpu.memory_space<vmem>>, vector<16x32xf32>
      %cst_61 = arith.constant 1.000000e+00 : f32
      %133 = vector.broadcast %cst_61 : f32 to vector<16x32xf32>
      %134 = arith.subf %133, %126 : vector<16x32xf32>
      %135 = arith.mulf %134, %131 : vector<16x32xf32>
      %136 = arith.mulf %126, %132 : vector<16x32xf32>
      %137 = arith.addf %135, %136 : vector<16x32xf32>
      %cst_62 = arith.constant 0.000000e+00 : f32
      %138 = vector.broadcast %cst_62 : f32 to vector<16x32xf32>
      %139 = arith.maximumf %137, %138 : vector<16x32xf32>
      %c0_63 = arith.constant 0 : index
      %c0_64 = arith.constant 0 : index
      %140 = vector.load %arg11[%c0_63, %c0_64] : memref<16x32xf32, #tpu.memory_space<vmem>>, vector<16x32xf32>
      tpu.vector_store %arg11[%c0_63, %c0_64], %139 {strides = array<i32>} : memref<16x32xf32, #tpu.memory_space<vmem>>, vector<16x32xf32>,
    } else {
    }
    return
  }
  func.func @transform_0(%arg0: i32) -> (i32, i32) {
    %c0_i32 = arith.constant 0 : i32
    %c0_i32_0 = arith.constant 0 : i32
    return %arg0, %c0_i32 : i32, i32
  }
  func.func @transform_1(%arg0: i32) -> (i32, i32) {
    %c0_i32 = arith.constant 0 : i32
    %c0_i32_0 = arith.constant 0 : i32
    return %arg0, %c0_i32 : i32, i32
  }
  func.func @transform_2(%arg0: i32) -> (i32, i32) {
    %c0_i32 = arith.constant 0 : i32
    %c0_i32_0 = arith.constant 0 : i32
    %c0_i32_1 = arith.constant 0 : i32
    return %c0_i32, %c0_i32_0 : i32, i32
  }
  func.func @transform_3(%arg0: i32) -> (i32, i32) {
    %c0_i32 = arith.constant 0 : i32
    %c0_i32_0 = arith.constant 0 : i32
    %c0_i32_1 = arith.constant 0 : i32
    return %c0_i32, %c0_i32_0 : i32, i32
  }
  func.func @transform_4(%arg0: i32) -> (i32, i32) {
    %c0_i32 = arith.constant 0 : i32
    %c0_i32_0 = arith.constant 0 : i32
    %c0_i32_1 = arith.constant 0 : i32
    return %c0_i32, %c0_i32_0 : i32, i32
  }
  func.func @transform_5(%arg0: i32) -> (i32, i32) {
    %c0_i32 = arith.constant 0 : i32
    %c0_i32_0 = arith.constant 0 : i32
    %c0_i32_1 = arith.constant 0 : i32
    return %c0_i32, %c0_i32_0 : i32, i32
  }
  func.func @transform_6(%arg0: i32) -> (i32, i32) {
    %c0_i32 = arith.constant 0 : i32
    %c0_i32_0 = arith.constant 0 : i32
    %c0_i32_1 = arith.constant 0 : i32
    return %c0_i32, %c0_i32_0 : i32, i32
  }
  func.func @transform_7(%arg0: i32) -> (i32, i32) {
    %c0_i32 = arith.constant 0 : i32
    %c0_i32_0 = arith.constant 0 : i32
    %c0_i32_1 = arith.constant 0 : i32
    return %c0_i32, %c0_i32_0 : i32, i32
  }
  func.func @transform_8(%arg0: i32) -> (i32, i32) {
    %c0_i32 = arith.constant 0 : i32
    %c0_i32_0 = arith.constant 0 : i32
    %c0_i32_1 = arith.constant 0 : i32
    return %c0_i32, %c0_i32_0 : i32, i32
  }
  func.func @transform_9(%arg0: i32) -> (i32, i32) {
    %c0_i32 = arith.constant 0 : i32
    %c0_i32_0 = arith.constant 0 : i32
    %c0_i32_1 = arith.constant 0 : i32
    return %c0_i32, %c0_i32_0 : i32, i32
  }
  func.func @transform_10(%arg0: i32) -> (i32, i32) {
    %c0_i32 = arith.constant 0 : i32
    %c0_i32_0 = arith.constant 0 : i32
    %c0_i32_1 = arith.constant 0 : i32
    return %c0_i32, %c0_i32_0 : i32, i32
  }
  func.func @transform_11(%arg0: i32) -> (i32, i32) {
    %c0_i32 = arith.constant 0 : i32
    %c0_i32_0 = arith.constant 0 : i32
    return %arg0, %c0_i32 : i32, i32
  }
}

</mosaic_0001>

<bundles_post_ra>
// kernel: dti_attn_gru_forward.1
= control target key start
LH: loop header
LB: loop body
LE: loop exit
PB: predicated region body
PF: predicated region fallthrough
CT: control target
= control target key end

     0   :  { %17 = vsyncpa [#allocation6], 0  ;;  %s7687_s17 = smov 0   ;;  %s11547_s0 = inlined_call_operand.vmem [shape: s32[2048,2], index: 0, kind: input, shape index: {}]   ;;  %s11548_s1 = inlined_call_operand.vmem [shape: bf16[2048,32], index: 1, kind: input, shape index: {}]   ;;  %s11549_s2 = inlined_call_operand.vmem [shape: f32[16,32], index: 2, kind: input, shape index: {}]   ;;  %s11550_s3 = inlined_call_operand.vmem [shape: f32[32,32], index: 3, kind: input, shape index: {}]   ;;  %s11551_s4 = inlined_call_operand.vmem [shape: f32[32,32], index: 4, kind: input, shape index: {}]   ;;  %s11552_s5 = inlined_call_operand.vmem [shape: f32[1,32], index: 5, kind: input, shape index: {}]   ;;  %s11553_s6 = inlined_call_operand.vmem [shape: f32[32,32], index: 6, kind: input, shape index: {}]   ;;  %s11554_s7 = inlined_call_operand.vmem [shape: f32[32,96], index: 7, kind: input, shape index: {}]   ;;  %s11555_s8 = inlined_call_operand.vmem [shape: f32[1,96], index: 8, kind: input, shape index: {}]   ;;  %s11556_s9 = inlined_call_operand.vmem [shape: f32[16,96], index: 9, kind: input, shape index: {}]   ;;  %s11557_s10 = inlined_call_operand.hbm [shape: f32[16,32], index: 10, kind: output, shape index: {0}]   ;;  %s11558_s11 = inlined_call_operand.vmem [shape: f32[2048,32], index: 11, kind: output, shape index: {1}]  }
   0x1 LB: > { %s7693_s18 = sadd.s32 4294967295, %s7614_s17   ;;  %p5941_p0 = scmp.ge.s32.totalorder %s7614_s17, 1  ;;  %s7614_s17 = sphi %s7687_s17, %s23_s17  }
   0x2   : > { %p348_p1 = scmp.lt.s32.totalorder %s7614_s17, 5 }
   0x4   : > { %p349_p2 = pnand %p5941_p0, %p348_p1 }
   0x6   : > { %352 = sbr.rel (%p349_p2) target bundleno = 2293 (0x8f5), region = 60 }
   0xd   : > { %s5942_s19 = sshll.u32 %s7693_s18, 6  ;;  %p5948_p4 = scmp.ne.s32.totalorder %s7693_s18, 0 }
   0xe   : > { %p394_p3 = scmp.lt.s32.totalorder %s5942_s19, 255  ;;  %vm415_vm0 = vcmask (!%p5948_p4), 122880   ;;  %vm418_vm1 = vcmask (!%p5948_p4), 130048   ;;  %v7616_v0 = vmov (!%p5948_p4), -1e+30   ;;  %v7617_v1 = vmov (!%p5948_p4), 0.0  }
   0xf   : > { %414 = sbr.rel (%p5948_p4) target bundleno = 22 (0x16), region = 64  ;;  %416 = vst.msk [vmem:[#allocation2] sm:$0x1] (!%p5948_p4), %vm415_vm0, %v7616_v0  ;;  %417 = vst.msk [vmem:[#allocation3] sm:$0x1] (!%p5948_p4), %vm415_vm0, %v7617_v1 }
  0x10   : > { %s12307_s19 = smov (!%p394_p3, %s5942_s19), 255  ;;  %419 = vst.msk [vmem:[#allocation4] sm:$0xff] (!%p5948_p4), %vm418_vm1, %v7617_v1  ;;  %420 = vst.msk [vmem:[#allocation4 + $0x8] sm:$0xff] (!%p5948_p4), %vm418_vm1, %v7617_v1 }
  0x11   : > { %s5943_s20 = sshll.u32 %s12307_s19, 3  ;;  %s5945_s21 = sshll.u32 %s12307_s19, 2  ;;  %421 = vst.msk [vmem:[#allocation4 + $0x10] sm:$0xff] (!%p5948_p4), %vm418_vm1, %v7617_v1  ;;  %422 = vst.msk [vmem:[#allocation4 + $0x18] sm:$0xff] (!%p5948_p4), %vm418_vm1, %v7617_v1 }
  0x12   : > { %s7701_s24 = scalar_lea.vmem %s11547_s0, %s5943_s20  ;;  %s7706_s27 = scalar_lea.vmem %s11548_s1, %s5945_s21 }
  0x13   : > { %s7711_s30 = scalar_lea.vmem %s11558_s11, %s5943_s20 }
  0x16 PF: > { %v7715_v2 = vld [vmem:[%s7701_s24 + $0x10] sm:$0xff]  ;;  %v7718_v3 = vld [vmem:[%s7701_s24] sm:$0xff]  ;;  %v7618_v4 = vmov 0   ;;  %v7723_v5 = vld [vmem:[%s7701_s24 + $0x18] sm:$0xff]  ;;  %vm11626_vm2 = vcmask 261120   ;;  %p6270_p5 = scmp.ne.s32.totalorder %s7693_s18, 3 }
  0x17   : > { %7255 = vset.pattern.permute.xlu1 %v7618_v4  ;;  %7254 = vset.pattern.permute.xlu0 %v7618_v4  ;;  %v7726_v6 = vld [vmem:[%s7701_s24 + $0x8] sm:$0xff]  ;;  %v7734_v8 = vld [vmem:[%s7701_s24 + $0x20] sm:$0xff]  ;;  %v7739_v9 = vld [vmem:[%s7701_s24 + $0x38] sm:$0xff]  ;;  %s7621_s20 = smov (!%p6270_p5), 64   ;;  %s7622_s26 = smov (!%p6270_p5), 96  }
  0x18   : > { %561 = vperm.xlu1 %7255, %v7715_v2   ;;  %555 = vperm.xlu0 %7254, %v7718_v3   ;;  %11795 = vst [vmem:[#allocation8_spill] sm:$0xff] %v7726_v6  ;;  %v7731_v7 = vld [vmem:[%s7701_s24 + $0x28] sm:$0xff]  ;;  %v7742_v10 = vld [vmem:[%s7701_s24 + $0x30] sm:$0xff]  ;;  %v7750_v12 = vld [vmem:[%s7701_s24 + $0x40] sm:$0xff] }
  0x19   : > { %v7747_v11 = vld [vmem:[%s7701_s24 + $0x48] sm:$0xff]  ;;  %v7755_v13 = vld [vmem:[%s7701_s24 + $0x58] sm:$0xff]  ;;  %v7758_v14 = vld [vmem:[%s7701_s24 + $0x50] sm:$0xff] }
  0x1a   : > { %v7763_v15 = vld [vmem:[%s7701_s24 + $0x68] sm:$0xff]  ;;  %v7766_v16 = vld [vmem:[%s7701_s24 + $0x60] sm:$0xff]  ;;  %v7771_v17 = vld [vmem:[%s7701_s24 + $0x78] sm:$0xff] }
  0x1b   : > { %v7774_v18 = vld [vmem:[%s7701_s24 + $0x70] sm:$0xff]  ;;  %v7779_v19 = vld [vmem:[%s7701_s24 + $0x88] sm:$0xff]  ;;  %v7782_v20 = vld [vmem:[%s7701_s24 + $0x80] sm:$0xff] }
  0x1c   : > { %564 = vperm.xlu1 %7255, %v7723_v5   ;;  %558 = vperm.xlu0 %7254, %v7726_v6   ;;  %v7787_v21 = vld [vmem:[%s7701_s24 + $0x98] sm:$0xff]  ;;  %v7790_v22 = vld [vmem:[%s7701_s24 + $0x90] sm:$0xff]  ;;  %v1326_v23 = vld [vmem:[%s11551_s4] sm:$0xff] }
  0x1d   : > { %v1327_v24 = vld [vmem:[%s11551_s4 + $0x8] sm:$0xff]  ;;  %v7804_v27 = vld [vmem:[%s7701_s24 + $0xa0] sm:$0xff]  ;;  %v1328_v28 = vld [vmem:[%s11551_s4 + $0x10] sm:$0xff] }
  0x1e   : > { %v7064_v25 = vpack.c.bf16 %v1327_v24, %v1326_v23  ;;  %v7801_v26 = vld [vmem:[%s7701_s24 + $0xa8] sm:$0xff]  ;;  %v1329_v29 = vld [vmem:[%s11551_s4 + $0x18] sm:$0xff]  ;;  %v7818_v32 = vld [vmem:[%s7701_s24 + $0xb0] sm:$0xff] }
  0x1f   : > { %v7068_v30 = vpack.c.bf16 %v1329_v29, %v1328_v28  ;;  %v7815_v31 = vld [vmem:[%s7701_s24 + $0xb8] sm:$0xff]  ;;  %v6285_v33 = vld [vmem:[%s7706_s27] sm:$0xff]   ;;  %v1195_v37 = vld [vmem:[%s11550_s3 + $0x8] sm:$0xff] }
  0x20   : > { %570 = vperm.xlu1 %7255, %v7731_v7   ;;  %567 = vperm.xlu0 %7254, %v7734_v8   ;;  %v6286_v34 = vunpack.c.l.bf16 %v6285_v33  ;;  %v6287_v35 = vunpack.c.h.bf16 %v6285_v33  ;;  %v1194_v36 = vld [vmem:[%s11550_s3] sm:$0xff]  ;;  %v7830_v39 = vld [vmem:[%s7701_s24 + $0xc8] sm:$0xff]  ;;  %v7841_v44 = vld [vmem:[%s7701_s24 + $0xd8] sm:$0xff] }
  0x21   : > { %7065 = vmatprep.subr.bf16.mxu0 %v7064_v25  ;;  %7160 = vmatprep.subr.bf16.mxu1 %v7064_v25  ;;  %v7072_v38 = vpack.c.bf16 %v1195_v37, %v1194_v36  ;;  %v7833_v40 = vld [vmem:[%s7701_s24 + $0xc0] sm:$0xff]  ;;  %v6412_v41 = vld [vmem:[%s7706_s27 + $0x8] sm:$0xff]   ;;  %v7844_v45 = vld [vmem:[%s7701_s24 + $0xd0] sm:$0xff] }
  0x22   : > { %7067 = vmatpush3.bf16.msra.mxu0 %v7064_v25  ;;  %7162 = vmatpush3.bf16.msra.mxu1 %v7064_v25  ;;  %v6290_v42 = vunpack.c.l.bf16 %v6412_v41  ;;  %v6291_v43 = vunpack.c.h.bf16 %v6412_v41  ;;  %v6413_v46 = vld [vmem:[%s7706_s27 + $0x10] sm:$0xff]   ;;  %v7852_v49 = vld [vmem:[%s7701_s24 + $0xe8] sm:$0xff]  ;;  %v7855_v50 = vld [vmem:[%s7701_s24 + $0xe0] sm:$0xff] }
  0x23   : > { %7069 = vmatprep.subr.bf16.mxu0 %v7068_v30  ;;  %7161 = vmatprep.subr.bf16.mxu1 %v7068_v30  ;;  %v6294_v47 = vunpack.c.l.bf16 %v6413_v46  ;;  %v6295_v48 = vunpack.c.h.bf16 %v6413_v46  ;;  %v6414_v51 = vld [vmem:[%s7706_s27 + $0x18] sm:$0xff]   ;;  %v7866_v55 = vld [vmem:[%s7701_s24 + $0xf0] sm:$0xff]  ;;  %v6415_v56 = vld [vmem:[%s7706_s27 + $0x20] sm:$0xff]  }
  0x24   : > { %576 = vperm.xlu1 %7255, %v7739_v9   ;;  %573 = vperm.xlu0 %7254, %v7742_v10   ;;  %v6298_v52 = vunpack.c.l.bf16 %v6414_v51  ;;  %v6299_v53 = vunpack.c.h.bf16 %v6414_v51  ;;  %v7863_v54 = vld [vmem:[%s7701_s24 + $0xf8] sm:$0xff]  ;;  %v6302_v57 = vunpack.c.l.bf16 %v6415_v56  ;;  %v6303_v58 = vunpack.c.h.bf16 %v6415_v56  ;;  %v7874_v59 = vld [vmem:[%s7701_s24 + $0x108] sm:$0xff]  ;;  %v7877_v60 = vld [vmem:[%s7701_s24 + $0x100] sm:$0xff] }
  0x25   : > { %6749 = vmatprep.mubr.msk.f32.mxu0 %vm11626_vm2, %v6286_v34  ;;  %v6416_v61 = vld [vmem:[%s7706_s27 + $0x28] sm:$0xff]   ;;  %v7885_v0 = vld [vmem:[%s7701_s24 + $0x118] sm:$0xff]  ;;  %v7888_v1 = vld [vmem:[%s7701_s24 + $0x110] sm:$0xff] }
  0x26   : > { %7071 = vmatpush3.bf16.msra.mxu0 %v7068_v30  ;;  %7163 = vmatpush3.bf16.msra.mxu1 %v7068_v30  ;;  %v6306_v62 = vunpack.c.l.bf16 %v6416_v61  ;;  %v6307_v63 = vunpack.c.h.bf16 %v6416_v61  ;;  %v6417_v4 = vld [vmem:[%s7706_s27 + $0x30] sm:$0xff]   ;;  %v7896_v25 = vld [vmem:[%s7701_s24 + $0x128] sm:$0xff]  ;;  %v7899_v28 = vld [vmem:[%s7701_s24 + $0x120] sm:$0xff] }
  0x27   : > { %7073 = vmatprep.subr.bf16.mxu0 %v7072_v38  ;;  %v6310_v23 = vunpack.c.l.bf16 %v6417_v4  ;;  %v6311_v24 = vunpack.c.h.bf16 %v6417_v4  ;;  %v6418_v29 = vld [vmem:[%s7706_s27 + $0x38] sm:$0xff]   ;;  %v6419_v36 = vld [vmem:[%s7706_s27 + $0x40] sm:$0xff]   ;;  %v7918_v41 = vld [vmem:[%s7701_s24 + $0x148] sm:$0xff] }
  0x28   : > { %582 = vperm.xlu1 %7255, %v7747_v11   ;;  %579 = vperm.xlu0 %7254, %v7750_v12   ;;  %v6314_v30 = vunpack.c.l.bf16 %v6418_v29  ;;  %v6315_v33 = vunpack.c.h.bf16 %v6418_v29  ;;  %v7907_v34 = vld [vmem:[%s7701_s24 + $0x138] sm:$0xff]  ;;  %v6318_v37 = vunpack.c.l.bf16 %v6419_v36  ;;  %v7932_v51 = vld [vmem:[%s7701_s24 + $0x150] sm:$0xff] }
  0x29   : > { %6750 = vmatmul.mubr.msk.f32.vlgmr.msra.gmra.mrb[0].mxu0 %vm11626_vm2, %v6287_v35  ;;  %v7910_v35 = vld [vmem:[%s7701_s24 + $0x130] sm:$0xff]  ;;  %v6422_v61 = vld [vmem:[%s7706_s27 + $0x58] sm:$0xff]  }
  0x2a   : > { %7075 = vmatpush3.bf16.msra.mxu0 %v7072_v38  ;;  %6752 = vmatprep.mubr.msk.f32.mxu0 %vm11626_vm2, %v6290_v42  ;;  %v6319_v38 = vunpack.c.h.bf16 %v6419_v36  ;;  %v7921_v42 = vld [vmem:[%s7701_s24 + $0x140] sm:$0xff]  ;;  %v1197_v4 = vld [vmem:[%s11550_s3 + $0x18] sm:$0xff] }
  0x2b   : > { %v7957_v29 = vld [vmem:[%s7701_s24 + $0x178] sm:$0xff] }
  0x2c   : > { %588 = vperm.xlu1 %7255, %v7755_v13   ;;  %585 = vperm.xlu0 %7254, %v7758_v14  }
  0x2d   : > { %6753 = vmatmul.mubr.msk.f32.gmra.mrb[2].mxu0 %vm11626_vm2, %v6291_v43  ;;  %v6420_v43 = vld [vmem:[%s7706_s27 + $0x48] sm:$0xff]  }
  0x2e   : > { %6755 = vmatprep.mubr.msk.f32.mxu0 %vm11626_vm2, %v6294_v47  ;;  %v6322_v46 = vunpack.c.l.bf16 %v6420_v43  ;;  %v6323_v47 = vunpack.c.h.bf16 %v6420_v43  ;;  %v7971_v43 = vld [vmem:[%s7701_s24 + $0x180] sm:$0xff] }
  0x30   : > { %594 = vperm.xlu1 %7255, %v7763_v15   ;;  %591 = vperm.xlu0 %7254, %v7766_v16  }
  0x31   : > { %6756 = vmatmul.mubr.msk.f32.gmra.mrb[4].mxu0 %vm11626_vm2, %v6295_v48  ;;  %v7929_v48 = vld [vmem:[%s7701_s24 + $0x158] sm:$0xff] }
  0x32   : > { %6758 = vmatprep.mubr.msk.f32.mxu0 %vm11626_vm2, %v6298_v52  ;;  %v6421_v52 = vld [vmem:[%s7706_s27 + $0x50] sm:$0xff]  }
  0x33   : > { %v6327_v56 = vunpack.c.h.bf16 %v6421_v52 }
  0x34   : > { %600 = vperm.xlu1 %7255, %v7771_v17   ;;  %597 = vperm.xlu0 %7254, %v7774_v18  }
  0x35   : > { %6759 = vmatmul.mubr.msk.f32.gmra.mrb[6].mxu0 %vm11626_vm2, %v6299_v53  ;;  %v6326_v53 = vunpack.c.l.bf16 %v6421_v52 }
  0x36   : > { %6761 = vmatprep.mubr.msk.f32.mxu0 %vm11626_vm2, %v6302_v57  ;;  %v7940_v57 = vld [vmem:[%s7701_s24 + $0x168] sm:$0xff] }
  0x38   : > { %606 = vperm.xlu1 %7255, %v7779_v19   ;;  %603 = vperm.xlu0 %7254, %v7782_v20  }
  0x39   : > { %6762 = vmatmul.mubr.msk.f32.gmra.mrb[8].mxu0 %vm11626_vm2, %v6303_v58  ;;  %v7943_v58 = vld [vmem:[%s7701_s24 + $0x160] sm:$0xff] }
  0x3a   : > { %6764 = vmatprep.mubr.msk.f32.mxu0 %vm11626_vm2, %v6306_v62  ;;  %v6330_v62 = vunpack.c.l.bf16 %v6422_v61 }
  0x3c   : > { %612 = vperm.xlu1 %7255, %v7787_v21   ;;  %609 = vperm.xlu0 %7254, %v7790_v22  }
  0x3d   : > { %6765 = vmatmul.mubr.msk.f32.gmra.mrb[10].mxu0 %vm11626_vm2, %v6307_v63  ;;  %v1196_v63 = vld [vmem:[%s11550_s3 + $0x10] sm:$0xff] }
  0x3e   : > { %6767 = vmatprep.mubr.msk.f32.mxu0 %vm11626_vm2, %v6310_v23  ;;  %v6331_v23 = vunpack.c.h.bf16 %v6422_v61  ;;  %v6425_v61 = vld [vmem:[%s7706_s27 + $0x70] sm:$0xff]  }
  0x40   : > { %618 = vperm.xlu1 %7255, %v7801_v26   ;;  %615 = vperm.xlu0 %7254, %v7804_v27  }
  0x41   : > { %6768 = vmatmul.mubr.msk.f32.gmra.mrb[12].mxu0 %vm11626_vm2, %v6311_v24  ;;  %v7076_v24 = vpack.c.bf16 %v1197_v4, %v1196_v63  ;;  %v6343_v63 = vunpack.c.h.bf16 %v6425_v61  ;;  %v7990_v4 = vld [vmem:[%s7701_s24 + $0x1a8] sm:$0xff] }
  0x42   : > { %6770 = vmatprep.mubr.msk.f32.mxu0 %vm11626_vm2, %v6314_v30  ;;  %v7960_v30 = vld [vmem:[%s7701_s24 + $0x170] sm:$0xff]  ;;  %11796 = vst [vmem:[#allocation9_spill] sm:$0xff] %v7990_v4 }
  0x43   : > { %7077 = vmatprep.subr.bf16.mxu0 %v7076_v24 }
  0x44   : > { %624 = vperm.xlu1 %7255, %v7815_v31   ;;  %621 = vperm.xlu0 %7254, %v7818_v32  }
  0x45   : > { %6771 = vmatmul.mubr.msk.f32.gmra.mrb[14].mxu0 %vm11626_vm2, %v6315_v33  ;;  %v6423_v33 = vld [vmem:[%s7706_s27 + $0x60] sm:$0xff]  }
  0x46   : > { %6773 = vmatprep.mubr.msk.f32.mxu0 %vm11626_vm2, %v6318_v37  ;;  %v6334_v36 = vunpack.c.l.bf16 %v6423_v33  ;;  %7079 = vmatpush3.bf16.msra.mxu0 %v7076_v24  ;;  %v6335_v37 = vunpack.c.h.bf16 %v6423_v33  ;;  %v6426_v24 = vld [vmem:[%s7706_s27 + $0x78] sm:$0xff]  }
  0x47   : > { %v6346_v33 = vunpack.c.l.bf16 %v6426_v24 }
  0x48   : > { %630 = vperm.xlu1 %7255, %v7830_v39   ;;  %627 = vperm.xlu0 %7254, %v7833_v40  }
  0x49   : > { %6774 = vmatmul.mubr.msk.f32.gmra.mrb[16].mxu0 %vm11626_vm2, %v6319_v38  ;;  %v7968_v38 = vld [vmem:[%s7701_s24 + $0x188] sm:$0xff] }
  0x4a   : > { %6776 = vmatprep.mubr.msk.f32.mxu0 %vm11626_vm2, %v6322_v46  ;;  %v6424_v46 = vld [vmem:[%s7706_s27 + $0x68] sm:$0xff]  }
  0x4b   : > { %v6339_v52 = vunpack.c.h.bf16 %v6424_v46 }
  0x4c   : > { %636 = vperm.xlu1 %7255, %v7841_v44   ;;  %633 = vperm.xlu0 %7254, %v7844_v45  }
  0x4d   : > { %6777 = vmatmul.mubr.msk.f32.gmra.mrb[18].mxu0 %vm11626_vm2, %v6323_v47  ;;  %v6338_v47 = vunpack.c.l.bf16 %v6424_v46  ;;  %v8004_v46 = vld [vmem:[%s7701_s24 + $0x1b0] sm:$0xff] }
  0x4e   : > { %6779 = vmatprep.mubr.msk.f32.mxu0 %vm11626_vm2, %v6326_v53  ;;  %v7979_v53 = vld [vmem:[%s7701_s24 + $0x198] sm:$0xff]  ;;  %11799 = vst [vmem:[#allocation12_spill] sm:$0xff] %v8004_v46 }
  0x50   : > { %642 = vperm.xlu1 %7255, %v7852_v49   ;;  %639 = vperm.xlu0 %7254, %v7855_v50  }
  0x51   : > { %6780 = vmatmul.mubr.msk.f32.gmra.mrb[20].mxu0 %vm11626_vm2, %v6327_v56  ;;  %v7982_v56 = vld [vmem:[%s7701_s24 + $0x190] sm:$0xff] }
  0x52   : > { %6782 = vmatprep.mubr.msk.f32.mxu0 %vm11626_vm2, %v6330_v62  ;;  %v6342_v62 = vunpack.c.l.bf16 %v6425_v61 }
  0x54   : > { %648 = vperm.xlu1 %7255, %v7863_v54   ;;  %645 = vperm.xlu0 %7254, %v7866_v55  }
  0x55   : > { %6783 = vmatmul.mubr.msk.f32.gmra.mrb[22].mxu0 %vm11626_vm2, %v6331_v23  ;;  %v7993_v23 = vld [vmem:[%s7701_s24 + $0x1a0] sm:$0xff] }
  0x56   : > { %6785 = vmatprep.mubr.msk.f32.mxu0 %vm11626_vm2, %v6334_v36  ;;  %11797 = vst [vmem:[#allocation10_spill] sm:$0xff] %v7993_v23  ;;  %v6347_v36 = vunpack.c.h.bf16 %v6426_v24  ;;  %v6428_v24 = vld [vmem:[%s7706_s27 + $0x88] sm:$0xff]  }
  0x58   : > { %654 = vperm.xlu1 %7255, %v7874_v59   ;;  %651 = vperm.xlu0 %7254, %v7877_v60  }
  0x59   : > { %6786 = vmatmul.mubr.msk.f32.gmra.mrb[24].mxu0 %vm11626_vm2, %v6335_v37  ;;  %v8001_v37 = vld [vmem:[%s7701_s24 + $0x1b8] sm:$0xff] }
  0x5a   : > { %6788 = vmatprep.mubr.msk.f32.mxu0 %vm11626_vm2, %v6338_v47  ;;  %11798 = vst [vmem:[#allocation11_spill] sm:$0xff] %v8001_v37  ;;  %v6427_v47 = vld [vmem:[%s7706_s27 + $0x80] sm:$0xff]  }
  0x5b   : > { %v6351_v61 = vunpack.c.h.bf16 %v6427_v47 }
  0x5c   : > { %660 = vperm.xlu1 %7255, %v7885_v0   ;;  %657 = vperm.xlu0 %7254, %v7888_v1  }
  0x5d   : > { %6789 = vmatmul.mubr.msk.f32.gmra.mrb[26].mxu0 %vm11626_vm2, %v6339_v52  ;;  %v6350_v52 = vunpack.c.l.bf16 %v6427_v47  ;;  %v8023_v47 = vld [vmem:[%s7701_s24 + $0x1d8] sm:$0xff] }
  0x5e   : > { %6791 = vmatprep.mubr.msk.f32.mxu0 %vm11626_vm2, %v6342_v62  ;;  %v8012_v62 = vld [vmem:[%s7701_s24 + $0x1c8] sm:$0xff]  ;;  %11802 = vst [vmem:[#allocation15_spill] sm:$0xff] %v8023_v47 }
  0x5f   : > { %11800 = vst [vmem:[#allocation13_spill] sm:$0xff] %v8012_v62 }
  0x60   : > { %666 = vperm.xlu1 %7255, %v7896_v25   ;;  %663 = vperm.xlu0 %7254, %v7899_v28  }
  0x61   : > { %6792 = vmatmul.mubr.msk.f32.gmra.mrb[28].mxu0 %vm11626_vm2, %v6343_v63  ;;  %v8015_v63 = vld [vmem:[%s7701_s24 + $0x1c0] sm:$0xff] }
  0x62   : > { %6794 = vmatprep.mubr.msk.f32.mxu0 %vm11626_vm2, %v6346_v33  ;;  %11801 = vst [vmem:[#allocation14_spill] sm:$0xff] %v8015_v63  ;;  %v6354_v33 = vunpack.c.l.bf16 %v6428_v24 }
  0x64   : > { %672 = vperm.xlu1 %7255, %v7907_v34   ;;  %669 = vperm.xlu0 %7254, %v7910_v35  }
  0x65   : > { %6795 = vmatmul.mubr.msk.f32.gmra.mrb[30].mxu0 %vm11626_vm2, %v6347_v36  ;;  %v6355_v36 = vunpack.c.h.bf16 %v6428_v24  ;;  %v8034_v24 = vld [vmem:[%s7701_s24 + $0x1e8] sm:$0xff] }
  0x66   : > { %6797 = vmatprep.mubr.msk.f32.mxu0 %vm11626_vm2, %v6350_v52  ;;  %v6429_v52 = vld [vmem:[%s7706_s27 + $0x90] sm:$0xff]   ;;  %11804 = vst [vmem:[#allocation17_spill] sm:$0xff] %v8034_v24 }
  0x68   : > { %678 = vperm.xlu1 %7255, %v7918_v41   ;;  %675 = vperm.xlu0 %7254, %v7921_v42  }
  0x69   : > { %6798 = vmatmul.mubr.msk.f32.gmra.mrb[32].mxu0 %vm11626_vm2, %v6351_v61  ;;  %v6359_v61 = vunpack.c.h.bf16 %v6429_v52 }
  0x6a   : > { %6800 = vmatprep.mubr.msk.f32.mxu0 %vm11626_vm2, %v6354_v33 }
  0x6c   : > { %684 = vperm.xlu1 %7255, %v7929_v48   ;;  %681 = vperm.xlu0 %7254, %v7932_v51  }
  0x6d   : > { %6801 = vmatmul.mubr.msk.f32.gmra.mrb[34].mxu0 %vm11626_vm2, %v6355_v36  ;;  %v8045_v36 = vld [vmem:[%s7701_s24 + $0x1f8] sm:$0xff] }
  0x70   : > { %690 = vperm.xlu1 %7255, %v7940_v57   ;;  %687 = vperm.xlu0 %7254, %v7943_v58  }
  0x74   : > { %696 = vperm.xlu1 %7255, %v7957_v29   ;;  %693 = vperm.xlu0 %7254, %v7960_v30  }
  0x78   : > { %702 = vperm.xlu1 %7255, %v7968_v38   ;;  %699 = vperm.xlu0 %7254, %v7971_v43  }
  0x7c   : > { %708 = vperm.xlu1 %7255, %v7979_v53   ;;  %705 = vperm.xlu0 %7254, %v7982_v56  }
  0x80   : > { %714 = vperm.xlu1 %7255, %v7990_v4   ;;  %711 = vperm.xlu0 %7254, %v7993_v23  }
  0x84   : > { %720 = vperm.xlu1 %7255, %v8001_v37   ;;  %717 = vperm.xlu0 %7254, %v8004_v46   ;;  %v8026_v46 = vld [vmem:[%s7701_s24 + $0x1d0] sm:$0xff]  ;;  %v6358_v37 = vunpack.c.l.bf16 %v6429_v52 }
  0x85   : > { %11803 = vst [vmem:[#allocation16_spill] sm:$0xff] %v8026_v46  ;;  %v8048_v52 = vld [vmem:[%s7701_s24 + $0x1f0] sm:$0xff] }
  0x86   : > { %6803 = vmatprep.mubr.msk.f32.mxu0 %vm11626_vm2, %v6358_v37 }
  0x87   : > { %6804 = vmatmul.mubr.msk.f32.gmra.mrb[36].mxu0 %vm11626_vm2, %v6359_v61  ;;  %v490_v61 = vadd.s32 16, %v7718_v3  ;;  %v493_v3 = vadd.s32 16, %v7723_v5  ;;  %v497_v5 = vadd.s32 16, %v7739_v9  ;;  %v501_v9 = vadd.s32 16, %v7755_v13 }
  0x88   : > { %726 = vperm.xlu1 %7255, %v8012_v62   ;;  %723 = vperm.xlu0 %7254, %v8015_v63   ;;  %v8037_v63 = vld [vmem:[%s7701_s24 + $0x1e0] sm:$0xff]  ;;  %v6430_v62 = vld [vmem:[%s7706_s27 + $0x98] sm:$0xff]   ;;  %v505_v13 = vadd.s32 16, %v7771_v17  ;;  %v509_v17 = vadd.s32 16, %v7787_v21  ;;  %v513_v21 = vadd.s32 16, %v7815_v31  ;;  %v517_v31 = vadd.s32 16, %v7841_v44 }
  0x89   : > { %11805 = vst [vmem:[#allocation18_spill] sm:$0xff] %v8037_v63  ;;  %v6362_v33 = vunpack.c.l.bf16 %v6430_v62  ;;  %v6363_v23 = vunpack.c.h.bf16 %v6430_v62  ;;  %v491_v62 = vadd.s32 16, %v7726_v6  ;;  %v492_v6 = vadd.s32 16, %v7715_v2 }
  0x8a   : > { %v496_v2 = vadd.s32 16, %v7742_v10  ;;  %v500_v10 = vadd.s32 16, %v7758_v14  ;;  %v504_v14 = vadd.s32 16, %v7774_v18  ;;  %v508_v18 = vadd.s32 16, %v7790_v22 }
  0x8b   : > { %6806 = vmatprep.mubr.msk.f32.mxu0 %vm11626_vm2, %v6362_v33  ;;  %v512_v22 = vadd.s32 16, %v7818_v32  ;;  %v516_v32 = vadd.s32 16, %v7844_v45  ;;  %v520_v45 = vadd.s32 16, %v7866_v55  ;;  %v521_v44 = vadd.s32 16, %v7863_v54 }
  0x8c   : > { %732 = vperm.xlu1 %7255, %v8023_v47   ;;  %729 = vperm.xlu0 %7254, %v8026_v46   ;;  %v6431_v46 = vld [vmem:[%s7706_s27 + $0xa0] sm:$0xff]   ;;  %v524_v55 = vadd.s32 16, %v7888_v1  ;;  %v528_v1 = vadd.s32 16, %v7910_v35  ;;  %v532_v35 = vadd.s32 16, %v7932_v51  ;;  %v536_v51 = vadd.s32 16, %v7960_v30 }
  0x8d   : > { %6807 = vmatmul.mubr.msk.f32.gmra.mrb[38].mxu0 %vm11626_vm2, %v6363_v23  ;;  %v6366_v37 = vunpack.c.l.bf16 %v6431_v46  ;;  %v6367_v47 = vunpack.c.h.bf16 %v6431_v46  ;;  %v7619_v46 = vmov 1  }
  0x8f   : > { %6809 = vmatprep.mubr.msk.f32.mxu0 %vm11626_vm2, %v6366_v37 }
  0x90   : > { %738 = vperm.xlu1 %7255, %v8034_v24   ;;  %735 = vperm.xlu0 %7254, %v8037_v63   ;;  %v6432_v63 = vld [vmem:[%s7706_s27 + $0xa8] sm:$0xff]  }
  0x91   : > { %6810 = vmatmul.mubr.msk.f32.gmra.mrb[40].mxu0 %vm11626_vm2, %v6367_v47  ;;  %v6370_v24 = vunpack.c.l.bf16 %v6432_v63  ;;  %v6371_v23 = vunpack.c.h.bf16 %v6432_v63  ;;  %v494_v63 = vadd.s32 16, %v7734_v8 }
  0x93   : > { %6812 = vmatprep.mubr.msk.f32.mxu0 %vm11626_vm2, %v6370_v24 }
  0x94   : > { %744 = vperm.xlu1 %7255, %v8045_v36   ;;  %741 = vperm.xlu0 %7254, %v8048_v52  }
  0x95   : > { %6813 = vmatmul.mubr.msk.f32.gmra.mrb[42].mxu0 %vm11626_vm2, %v6371_v23 }
  0x97   : > { %v8060_v33 = vpop.permute.xlu1 %561  ;;  %v8062_v4 = vpop.permute.xlu0 %555 }
  0x98   : > { %7257 = vset.pattern.permute.xlu1 %v7619_v46  ;;  %7256 = vset.pattern.permute.xlu0 %v7619_v46  ;;  %v495_v46 = vadd.s32 16, %v7731_v7  ;;  %v499_v7 = vadd.s32 16, %v7747_v11  ;;  %v503_v11 = vadd.s32 16, %v7763_v15  ;;  %v507_v15 = vadd.s32 16, %v7779_v19 }
  0x99   : > { %750 = vperm.xlu1 %7257, %v491_v62   ;;  %747 = vperm.xlu0 %7256, %v490_v61   ;;  %v511_v19 = vadd.s32 16, %v7801_v26  ;;  %v515_v26 = vadd.s32 16, %v7830_v39  ;;  %v519_v39 = vadd.s32 16, %v7852_v49  ;;  %v523_v49 = vadd.s32 16, %v7874_v59 }
  0x9b   : > { %v8067_v37 = vpop.permute.xlu1 %564  ;;  %v8069_v47 = vpop.permute.xlu0 %558 }
  0x9c   : > { %11806 = vst [vmem:[#allocation19_spill] sm:$0xff] %v8067_v37 }
  0x9d   : > { %753 = vperm.xlu1 %7257, %v492_v6   ;;  %756 = vperm.xlu0 %7256, %v493_v3   ;;  %v498_v6 = vadd.s32 16, %v7750_v12  ;;  %v502_v12 = vadd.s32 16, %v7766_v16  ;;  %v506_v16 = vadd.s32 16, %v7782_v20  ;;  %v510_v20 = vadd.s32 16, %v7804_v27 }
  0x9e   : > { %v514_v27 = vadd.s32 16, %v7833_v40  ;;  %v518_v40 = vadd.s32 16, %v7855_v50  ;;  %v522_v50 = vadd.s32 16, %v7877_v60  ;;  %v526_v60 = vadd.s32 16, %v7899_v28 }
  0x9f   : > { %v8074_v62 = vpop.permute.xlu1 %570  ;;  %v8076_v61 = vpop.permute.xlu0 %567  ;;  %v530_v28 = vadd.s32 16, %v7921_v42  ;;  %v534_v42 = vadd.s32 16, %v7943_v58 }
  0xa1   : > { %759 = vperm.xlu1 %7257, %v494_v63   ;;  %762 = vperm.xlu0 %7256, %v495_v46  }
  0xa3   : > { %v8080_v24 = vpop.permute.xlu1 %576  ;;  %v8082_v37 = vpop.permute.xlu0 %573 }
  0xa5   : > { %765 = vperm.xlu1 %7257, %v496_v2   ;;  %768 = vperm.xlu0 %7256, %v497_v5  }
  0xa7   : > { %v8086_v8 = vpop.permute.xlu1 %582  ;;  %v8088_v23 = vpop.permute.xlu0 %579 }
  0xa9   : > { %771 = vperm.xlu1 %7257, %v498_v6   ;;  %774 = vperm.xlu0 %7256, %v499_v7  }
  0xab   : > { %v8092_v3 = vpop.permute.xlu1 %588  ;;  %v8094_v63 = vpop.permute.xlu0 %585 }
  0xad   : > { %777 = vperm.xlu1 %7257, %v500_v10   ;;  %780 = vperm.xlu0 %7256, %v501_v9  }
  0xaf   : > { %v8098_v46 = vpop.permute.xlu1 %594  ;;  %v8100_v2 = vpop.permute.xlu0 %591 }
  0xb1   : > { %783 = vperm.xlu1 %7257, %v502_v12   ;;  %786 = vperm.xlu0 %7256, %v503_v11  }
  0xb3   : > { %v8104_v5 = vpop.permute.xlu1 %600  ;;  %v8106_v6 = vpop.permute.xlu0 %597 }
  0xb5   : > { %789 = vperm.xlu1 %7257, %v504_v14   ;;  %792 = vperm.xlu0 %7256, %v505_v13  }
  0xb7   : > { %v8110_v7 = vpop.permute.xlu1 %606  ;;  %v8112_v10 = vpop.permute.xlu0 %603 }
  0xb9   : > { %795 = vperm.xlu1 %7257, %v506_v16   ;;  %798 = vperm.xlu0 %7256, %v507_v15  }
  0xbb   : > { %v8116_v9 = vpop.permute.xlu1 %612  ;;  %v8118_v12 = vpop.permute.xlu0 %609 }
  0xbd   : > { %801 = vperm.xlu1 %7257, %v508_v18   ;;  %804 = vperm.xlu0 %7256, %v509_v17  }
  0xbf   : > { %v8122_v11 = vpop.permute.xlu1 %618  ;;  %v8124_v14 = vpop.permute.xlu0 %615 }
  0xc1   : > { %807 = vperm.xlu1 %7257, %v510_v20   ;;  %810 = vperm.xlu0 %7256, %v511_v19  }
  0xc3   : > { %v8128_v13 = vpop.permute.xlu1 %624  ;;  %v8130_v16 = vpop.permute.xlu0 %621 }
  0xc5   : > { %813 = vperm.xlu1 %7257, %v512_v22   ;;  %816 = vperm.xlu0 %7256, %v513_v21  }
  0xc7   : > { %v8134_v15 = vpop.permute.xlu1 %630  ;;  %v8136_v18 = vpop.permute.xlu0 %627 }
  0xc9   : > { %819 = vperm.xlu1 %7257, %v514_v27   ;;  %822 = vperm.xlu0 %7256, %v515_v26  }
  0xcb   : > { %v8140_v17 = vpop.permute.xlu1 %636  ;;  %v8142_v20 = vpop.permute.xlu0 %633 }
  0xcd   : > { %825 = vperm.xlu1 %7257, %v516_v32   ;;  %828 = vperm.xlu0 %7256, %v517_v31   ;;  %v525_v31 = vadd.s32 16, %v7885_v0  ;;  %v529_v0 = vadd.s32 16, %v7907_v34  ;;  %v533_v34 = vadd.s32 16, %v7929_v48  ;;  %v537_v48 = vadd.s32 16, %v7957_v29  ;;  %v6434_v29 = vld [vmem:[%s7706_s27 + $0xb8] sm:$0xff]  }
  0xcf   : > { %v8146_v19 = vpop.permute.xlu1 %642  ;;  %v8148_v22 = vpop.permute.xlu0 %639 }
  0xd1   : > { %831 = vperm.xlu1 %7257, %v518_v40   ;;  %834 = vperm.xlu0 %7256, %v519_v39   ;;  %v527_v39 = vadd.s32 16, %v7896_v25  ;;  %v531_v25 = vadd.s32 16, %v7918_v41  ;;  %v535_v41 = vadd.s32 16, %v7940_v57 }
  0xd3   : > { %v8152_v21 = vpop.permute.xlu1 %648  ;;  %v8154_v27 = vpop.permute.xlu0 %645 }
  0xd5   : > { %837 = vperm.xlu1 %7257, %v520_v45   ;;  %840 = vperm.xlu0 %7256, %v521_v44  }
  0xd7   : > { %v8158_v26 = vpop.permute.xlu1 %654  ;;  %v8160_v32 = vpop.permute.xlu0 %651 }
  0xd9   : > { %843 = vperm.xlu1 %7257, %v522_v50   ;;  %846 = vperm.xlu0 %7256, %v523_v49  }
  0xdb   : > { %v8164_v54 = vpop.permute.xlu1 %660  ;;  %v8166_v40 = vpop.permute.xlu0 %657 }
  0xdd   : > { %849 = vperm.xlu1 %7257, %v524_v55   ;;  %852 = vperm.xlu0 %7256, %v525_v31  }
  0xdf   : > { %v8170_v59 = vpop.permute.xlu1 %666  ;;  %v8172_v45 = vpop.permute.xlu0 %663 }
  0xe1   : > { %855 = vperm.xlu1 %7257, %v526_v60   ;;  %858 = vperm.xlu0 %7256, %v527_v39  }
  0xe3   : > { %v8176_v44 = vpop.permute.xlu1 %672  ;;  %v8178_v50 = vpop.permute.xlu0 %669 }
  0xe5   : > { %861 = vperm.xlu1 %7257, %v528_v1   ;;  %864 = vperm.xlu0 %7256, %v529_v0   ;;  %v6433_v1 = vld [vmem:[%s7706_s27 + $0xb0] sm:$0xff]  }
  0xe6   : > { %v6374_v57 = vunpack.c.l.bf16 %v6433_v1  ;;  %v6375_v58 = vunpack.c.h.bf16 %v6433_v1  ;;  %v541_v1 = vadd.s32 16, %v7979_v53 }
  0xe7   : > { %v8182_v49 = vpop.permute.xlu1 %678  ;;  %v8184_v31 = vpop.permute.xlu0 %675 }
  0xe8   : > { %6815 = vmatprep.mubr.msk.f32.mxu1 %vm11626_vm2, %v6374_v57 }
  0xe9   : > { %867 = vperm.xlu1 %7257, %v530_v28   ;;  %870 = vperm.xlu0 %7256, %v531_v25  }
  0xea   : > { %6816 = vmatmul.mubr.msk.f32.vlgmr.msra.gmra.mrb[0].mxu1 %vm11626_vm2, %v6375_v58 }
  0xeb   : > { %v8188_v55 = vpop.permute.xlu1 %684  ;;  %v8190_v39 = vpop.permute.xlu0 %681 }
  0xed   : > { %873 = vperm.xlu1 %7257, %v532_v35   ;;  %876 = vperm.xlu0 %7256, %v533_v34   ;;  %v539_v34 = vadd.s32 16, %v7968_v38  ;;  %v538_v35 = vadd.s32 16, %v7971_v43  ;;  %v540_v38 = vadd.s32 16, %v7982_v56  ;;  %v6435_v43 = vld [vmem:[%s7706_s27 + $0xc0] sm:$0xff]   ;;  %v6436_v56 = vld [vmem:[%s7706_s27 + $0xc8] sm:$0xff]  }
  0xee   : > { %v6382_v57 = vunpack.c.l.bf16 %v6435_v43  ;;  %v6383_v58 = vunpack.c.h.bf16 %v6435_v43 }
  0xef   : > { %v8194_v60 = vpop.permute.xlu1 %690  ;;  %v8196_v0 = vpop.permute.xlu0 %687 }
  0xf1   : > { %879 = vperm.xlu1 %7257, %v534_v42   ;;  %882 = vperm.xlu0 %7256, %v535_v41   ;;  %v6378_v42 = vunpack.c.l.bf16 %v6434_v29 }
  0xf3   : > { %v8201_v25 = vpop.permute.xlu1 %696  ;;  %v8203_v28 = vpop.permute.xlu0 %693  ;;  %6818 = vmatprep.mubr.msk.f32.mxu1 %vm11626_vm2, %v6378_v42  ;;  %v6386_v42 = vunpack.c.l.bf16 %v6436_v56 }
  0xf4   : > { %11807 = vst [vmem:[#allocation20_spill] sm:$0xff] %v8201_v25  ;;  %v6379_v25 = vunpack.c.h.bf16 %v6434_v29 }
  0xf5   : > { %885 = vperm.xlu1 %7257, %v536_v51   ;;  %888 = vperm.xlu0 %7256, %v537_v48  }
  0xf6   : > { %6819 = vmatmul.mubr.msk.f32.gmra.mrb[2].mxu1 %vm11626_vm2, %v6379_v25  ;;  %v6387_v25 = vunpack.c.h.bf16 %v6436_v56 }
  0xf7   : > { %v8209_v30 = vpop.permute.xlu1 %702  ;;  %v8211_v41 = vpop.permute.xlu0 %699  ;;  %6821 = vmatprep.mubr.msk.f32.mxu1 %vm11626_vm2, %v6382_v57 }
  0xf8   : > { %11808 = vst [vmem:[#allocation21_spill] sm:$0xff] %v8209_v30  ;;  %11809 = vst [vmem:[#allocation22_spill] sm:$0xff] %v8211_v41  ;;  %v11812_v30 = vld [vmem:[#allocation9_spill] sm:$0xff]  ;;  %v11813_v41 = vld [vmem:[#allocation10_spill] sm:$0xff] }
  0xf9   : > { %891 = vperm.xlu1 %7257, %v538_v35   ;;  %894 = vperm.xlu0 %7256, %v539_v34   ;;  %v543_v29 = vadd.s32 16, %v11812_v30  ;;  %v542_v53 = vadd.s32 16, %v11813_v41  ;;  %v6437_v41 = vld [vmem:[%s7706_s27 + $0xd0] sm:$0xff]  }
  0xfa   : > { %6822 = vmatmul.mubr.msk.f32.gmra.mrb[4].mxu1 %vm11626_vm2, %v6383_v58  ;;  %v6390_v57 = vunpack.c.l.bf16 %v6437_v41  ;;  %v6391_v58 = vunpack.c.h.bf16 %v6437_v41 }
  0xfb   : > { %v8218_v48 = vpop.permute.xlu1 %708  ;;  %v8220_v51 = vpop.permute.xlu0 %705  ;;  %6824 = vmatprep.mubr.msk.f32.mxu1 %vm11626_vm2, %v6386_v42 }
  0xfc   : > { %11810 = vst [vmem:[#allocation23_spill] sm:$0xff] %v8218_v48  ;;  %11811 = vst [vmem:[#allocation24_spill] sm:$0xff] %v8220_v51  ;;  %v11816_v48 = vld [vmem:[#allocation11_spill] sm:$0xff]  ;;  %v11817_v51 = vld [vmem:[#allocation12_spill] sm:$0xff] }
  0xfd   : > { %897 = vperm.xlu1 %7257, %v540_v38   ;;  %900 = vperm.xlu0 %7256, %v541_v1   ;;  %v545_v43 = vadd.s32 16, %v11816_v48  ;;  %v544_v30 = vadd.s32 16, %v11817_v51  ;;  %v6438_v51 = vld [vmem:[%s7706_s27 + $0xd8] sm:$0xff]  }
  0xfe   : > { %6825 = vmatmul.mubr.msk.f32.gmra.mrb[6].mxu1 %vm11626_vm2, %v6387_v25  ;;  %v6394_v42 = vunpack.c.l.bf16 %v6438_v51  ;;  %v6395_v25 = vunpack.c.h.bf16 %v6438_v51 }
  0xff   : > { %v8227_v34 = vpop.permute.xlu1 %714  ;;  %v8229_v35 = vpop.permute.xlu0 %711  ;;  %6827 = vmatprep.mubr.msk.f32.mxu1 %vm11626_vm2, %v6390_v57 }
 0x100   : > { %11814 = vst [vmem:[#allocation9_spill] sm:$0xff] %v8227_v34  ;;  %11815 = vst [vmem:[#allocation10_spill] sm:$0xff] %v8229_v35  ;;  %v11820_v34 = vld [vmem:[#allocation13_spill] sm:$0xff]  ;;  %v11821_v35 = vld [vmem:[#allocation14_spill] sm:$0xff] }
 0x101   : > { %903 = vperm.xlu1 %7257, %v542_v53   ;;  %906 = vperm.xlu0 %7256, %v543_v29   ;;  %v547_v56 = vadd.s32 16, %v11820_v34  ;;  %v546_v48 = vadd.s32 16, %v11821_v35  ;;  %v6439_v35 = vld [vmem:[%s7706_s27 + $0xe0] sm:$0xff]  }
 0x102   : > { %6828 = vmatmul.mubr.msk.f32.gmra.mrb[8].mxu1 %vm11626_vm2, %v6391_v58  ;;  %v6398_v57 = vunpack.c.l.bf16 %v6439_v35  ;;  %v6399_v58 = vunpack.c.h.bf16 %v6439_v35  ;;  %v553_v35 = vadd.s32 16, %v8045_v36 }
 0x103   : > { %v8236_v1 = vpop.permute.xlu1 %720  ;;  %v8238_v38 = vpop.permute.xlu0 %717  ;;  %6830 = vmatprep.mubr.msk.f32.mxu1 %vm11626_vm2, %v6394_v42 }
 0x104   : > { %11818 = vst [vmem:[#allocation11_spill] sm:$0xff] %v8236_v1  ;;  %11819 = vst [vmem:[#allocation12_spill] sm:$0xff] %v8238_v38  ;;  %v11824_v1 = vld [vmem:[#allocation15_spill] sm:$0xff]  ;;  %v11825_v38 = vld [vmem:[#allocation16_spill] sm:$0xff] }
 0x105   : > { %909 = vperm.xlu1 %7257, %v544_v30   ;;  %912 = vperm.xlu0 %7256, %v545_v43   ;;  %v549_v41 = vadd.s32 16, %v11824_v1  ;;  %v548_v34 = vadd.s32 16, %v11825_v38  ;;  %v11572_v38 = vlaneseq }
 0x106   : > { %6831 = vmatmul.mubr.msk.f32.gmra.mrb[10].mxu1 %vm11626_vm2, %v6395_v25 }
 0x107   : > { %v8245_v29 = vpop.permute.xlu1 %726  ;;  %v8247_v53 = vpop.permute.xlu0 %723  ;;  %6833 = vmatprep.mubr.msk.f32.mxu1 %vm11626_vm2, %v6398_v57 }
 0x108   : > { %11822 = vst [vmem:[#allocation13_spill] sm:$0xff] %v8245_v29  ;;  %11823 = vst [vmem:[#allocation14_spill] sm:$0xff] %v8247_v53  ;;  %v11827_v29 = vld [vmem:[#allocation17_spill] sm:$0xff]  ;;  %v11828_v53 = vld [vmem:[#allocation18_spill] sm:$0xff] }
 0x109   : > { %915 = vperm.xlu1 %7257, %v546_v48   ;;  %918 = vperm.xlu0 %7256, %v547_v56   ;;  %v551_v51 = vadd.s32 16, %v11827_v29  ;;  %v550_v1 = vadd.s32 16, %v11828_v53  ;;  %v6440_v56 = vld [vmem:[%s7706_s27 + $0xe8] sm:$0xff]   ;;  %v552_v29 = vadd.s32 16, %v8048_v52  ;;  %v8271_v53 = vand.u32 127, %v11572_v38  ;;  %v6442_v52 = vld [vmem:[%s7706_s27 + $0xf8] sm:$0xff]  }
 0x10a   : > { %6834 = vmatmul.mubr.msk.f32.gmra.mrb[12].mxu1 %vm11626_vm2, %v6399_v58  ;;  %v6402_v25 = vunpack.c.l.bf16 %v6440_v56 }
 0x10b   : > { %v8254_v43 = vpop.permute.xlu1 %732  ;;  %v8256_v30 = vpop.permute.xlu0 %729  ;;  %vm489_vm3 = vcmp.lt.s32.totalorder %v8271_v53, 16 }
 0x10c   : > { %11826 = vst [vmem:[#allocation15_spill] sm:$0xff] %v8254_v43  ;;  %v6403_v43 = vunpack.c.h.bf16 %v6440_v56  ;;  %6836 = vmatprep.mubr.msk.f32.mxu1 %vm11626_vm2, %v6402_v25  ;;  %v6411_v25 = vunpack.c.h.bf16 %v6442_v52 }
 0x10d   : > { %921 = vperm.xlu1 %7257, %v548_v34   ;;  %924 = vperm.xlu0 %7256, %v549_v41   ;;  %v6441_v41 = vld [vmem:[%s7706_s27 + $0xf0] sm:$0xff]  }
 0x10e   : > { %6837 = vmatmul.mubr.msk.f32.gmra.mrb[14].mxu1 %vm11626_vm2, %v6403_v43  ;;  %v6406_v58 = vunpack.c.l.bf16 %v6441_v41  ;;  %v6407_v36 = vunpack.c.h.bf16 %v6441_v41  ;;  %v7492_v41 = vld [vmem:[%s7701_s24] sm:$0xff] }
 0x10f   : > { %v8263_v48 = vpop.permute.xlu1 %738  ;;  %v8265_v42 = vpop.permute.xlu0 %735 }
 0x110   : > { %6839 = vmatprep.mubr.msk.f32.mxu1 %vm11626_vm2, %v6406_v58  ;;  %v11570_v58 = vmov 0.0  }
 0x111   : > { %927 = vperm.xlu1 %7257, %v550_v1   ;;  %930 = vperm.xlu0 %7256, %v551_v51   ;;  %v6410_v51 = vunpack.c.l.bf16 %v6442_v52 }
 0x112   : > { %6840 = vmatmul.mubr.msk.f32.gmra.mrb[16].mxu1 %vm11626_vm2, %v6407_v36 }
 0x113   : > { %v8275_v34 = vpop.permute.xlu1 %744  ;;  %v8277_v57 = vpop.permute.xlu0 %741  ;;  %6842 = vmatprep.mubr.msk.f32.mxu1 %vm11626_vm2, %v6410_v51 }
 0x115   : > { %933 = vperm.xlu1 %7257, %v552_v29   ;;  %936 = vperm.xlu0 %7256, %v553_v35   ;;  %v11829_v35 = vld [vmem:[#allocation8_spill] sm:$0xff] }
 0x116   : > { %6843 = vmatmul.mubr.msk.f32.gmra.mrb[18].mxu1 %vm11626_vm2, %v6411_v25 }
 0x118   : > { %v751_v1 = vpop.permute.xlu1 %750  ;;  %v748_v56 = vpop.permute.xlu0 %747 }
 0x119   : > { %v939_v43 = vsel %vm489_vm3, %v8069_v47, %v751_v1  ;;  %v938_v29 = vsel %vm489_vm3, %v8062_v4, %v748_v56  ;;  %4037 = vperm.xlu1 %7257, %v11829_v35   ;;  %4034 = vperm.xlu0 %7256, %v7492_v41   ;;  %v11830_v56 = vld [vmem:[#allocation19_spill] sm:$0xff] }
 0x11a   : > { %vm1003_vm4 = vcmp.eq.s32.totalorder %v8271_v53, %v939_v43  ;;  %vm1002_vm5 = vcmp.eq.s32.totalorder %v8271_v53, %v938_v29  ;;  %v7493_v43 = vld [vmem:[%s7701_s24 + $0x10] sm:$0xff]  ;;  %v7494_v29 = vld [vmem:[%s7701_s24 + $0x18] sm:$0xff] }
 0x11b   : > { %v5950_v36 = vsel %vm1003_vm4, 1.0, %v11570_v58  ;;  %v5949_v47 = vsel %vm1002_vm5, 1.0, %v11570_v58 }
 0x11c   : > { %v754_v4 = vpop.permute.xlu1 %753  ;;  %6853 = vmatprep.mubr.msk.f32.mxu0 %vm11626_vm2, %v5949_v47  ;;  %v757_v52 = vpop.permute.xlu0 %756 }
 0x11d   : > { %v940_v1 = vsel %vm489_vm3, %v8060_v33, %v754_v4  ;;  %v941_v51 = vsel %vm489_vm3, %v11830_v56, %v757_v52  ;;  %4040 = vperm.xlu1 %7257, %v7493_v43   ;;  %4043 = vperm.xlu0 %7256, %v7494_v29   ;;  %v7495_v52 = vld [vmem:[%s7701_s24 + $0x20] sm:$0xff]  ;;  %v7497_v29 = vld [vmem:[%s7701_s24 + $0x30] sm:$0xff] }
 0x11e   : > { %vm1004_vm6 = vcmp.eq.s32.totalorder %v8271_v53, %v940_v1  ;;  %vm1005_vm7 = vcmp.eq.s32.totalorder %v8271_v53, %v941_v51  ;;  %6854 = vmatmul.mubr.msk.f32.vlgmr.msra.gmra.mrb[0].mxu0 %vm11626_vm2, %v5950_v36  ;;  %v7496_v36 = vld [vmem:[%s7701_s24 + $0x28] sm:$0xff] }
 0x11f   : > { %v5951_v25 = vsel %vm1004_vm6, 1.0, %v11570_v58  ;;  %v5952_v33 = vsel %vm1005_vm7, 1.0, %v11570_v58 }
 0x120   : > { %v760_v35 = vpop.permute.xlu1 %759  ;;  %6856 = vmatprep.mubr.msk.f32.mxu0 %vm11626_vm2, %v5951_v25  ;;  %v763_v41 = vpop.permute.xlu0 %762  ;;  %v7498_v25 = vld [vmem:[%s7701_s24 + $0x38] sm:$0xff] }
 0x121   : > { %v942_v47 = vsel %vm489_vm3, %v8076_v61, %v760_v35  ;;  %v943_v4 = vsel %vm489_vm3, %v8074_v62, %v763_v41  ;;  %4046 = vperm.xlu1 %7257, %v7495_v52   ;;  %4049 = vperm.xlu0 %7256, %v7496_v36   ;;  %v7500_v52 = vld [vmem:[%s7701_s24 + $0x48] sm:$0xff] }
 0x122   : > { %vm1006_vm8 = vcmp.eq.s32.totalorder %v8271_v53, %v942_v47  ;;  %vm1007_vm9 = vcmp.eq.s32.totalorder %v8271_v53, %v943_v4  ;;  %6857 = vmatmul.mubr.msk.f32.gmra.mrb[2].mxu0 %vm11626_vm2, %v5952_v33  ;;  %v7499_v4 = vld [vmem:[%s7701_s24 + $0x40] sm:$0xff] }
 0x123   : > { %v5953_v1 = vsel %vm1006_vm8, 1.0, %v11570_v58  ;;  %v5954_v61 = vsel %vm1007_vm9, 1.0, %v11570_v58 }
 0x124   : > { %v766_v56 = vpop.permute.xlu1 %765  ;;  %6859 = vmatprep.mubr.msk.f32.mxu0 %vm11626_vm2, %v5953_v1  ;;  %v769_v51 = vpop.permute.xlu0 %768 }
 0x125   : > { %v944_v62 = vsel %vm489_vm3, %v8082_v37, %v766_v56  ;;  %v945_v43 = vsel %vm489_vm3, %v8080_v24, %v769_v51  ;;  %4052 = vperm.xlu1 %7257, %v7497_v29   ;;  %4055 = vperm.xlu0 %7256, %v7498_v25   ;;  %v7501_v51 = vld [vmem:[%s7701_s24 + $0x50] sm:$0xff] }
 0x126   : > { %vm1008_vm10 = vcmp.eq.s32.totalorder %v8271_v53, %v944_v62  ;;  %vm1009_vm11 = vcmp.eq.s32.totalorder %v8271_v53, %v945_v43  ;;  %6860 = vmatmul.mubr.msk.f32.gmra.mrb[4].mxu0 %vm11626_vm2, %v5954_v61  ;;  %v7502_v62 = vld [vmem:[%s7701_s24 + $0x58] sm:$0xff] }
 0x127   : > { %v5955_v33 = vsel %vm1008_vm10, 1.0, %v11570_v58  ;;  %v5956_v37 = vsel %vm1009_vm11, 1.0, %v11570_v58 }
 0x128   : > { %v772_v35 = vpop.permute.xlu1 %771  ;;  %6862 = vmatprep.mubr.msk.f32.mxu0 %vm11626_vm2, %v5955_v33  ;;  %v775_v41 = vpop.permute.xlu0 %774 }
 0x129   : > { %v946_v24 = vsel %vm489_vm3, %v8088_v23, %v772_v35  ;;  %v947_v47 = vsel %vm489_vm3, %v8086_v8, %v775_v41  ;;  %4058 = vperm.xlu1 %7257, %v7499_v4   ;;  %4061 = vperm.xlu0 %7256, %v7500_v52   ;;  %v7504_v35 = vld [vmem:[%s7701_s24 + $0x68] sm:$0xff]  ;;  %v7505_v52 = vld [vmem:[%s7701_s24 + $0x70] sm:$0xff] }
 0x12a   : > { %vm1010_vm12 = vcmp.eq.s32.totalorder %v8271_v53, %v946_v24  ;;  %vm1011_vm13 = vcmp.eq.s32.totalorder %v8271_v53, %v947_v47  ;;  %6863 = vmatmul.mubr.msk.f32.gmra.mrb[6].mxu0 %vm11626_vm2, %v5956_v37  ;;  %v7503_v37 = vld [vmem:[%s7701_s24 + $0x60] sm:$0xff] }
 0x12b   : > { %v5957_v36 = vsel %vm1010_vm12, 1.0, %v11570_v58  ;;  %v5958_v23 = vsel %vm1011_vm13, 1.0, %v11570_v58 }
 0x12c   : > { %v778_v1 = vpop.permute.xlu1 %777  ;;  %6865 = vmatprep.mubr.msk.f32.mxu0 %vm11626_vm2, %v5957_v36  ;;  %v781_v61 = vpop.permute.xlu0 %780  ;;  %v7506_v36 = vld [vmem:[%s7701_s24 + $0x78] sm:$0xff] }
 0x12d   : > { %v948_v8 = vsel %vm489_vm3, %v8094_v63, %v778_v1  ;;  %v949_v56 = vsel %vm489_vm3, %v8092_v3, %v781_v61  ;;  %4064 = vperm.xlu1 %7257, %v7501_v51   ;;  %4067 = vperm.xlu0 %7256, %v7502_v62   ;;  %v7508_v51 = vld [vmem:[%s7701_s24 + $0x88] sm:$0xff] }
 0x12e   : > { %vm1012_vm14 = vcmp.eq.s32.totalorder %v8271_v53, %v948_v8  ;;  %vm1013_vm15 = vcmp.eq.s32.totalorder %v8271_v53, %v949_v56  ;;  %6866 = vmatmul.mubr.msk.f32.gmra.mrb[8].mxu0 %vm11626_vm2, %v5958_v23  ;;  %v7507_v56 = vld [vmem:[%s7701_s24 + $0x80] sm:$0xff] }
 0x12f   : > { %v5959_v43 = vsel %vm1012_vm14, 1.0, %v11570_v58  ;;  %v5960_v63 = vsel %vm1013_vm15, 1.0, %v11570_v58 }
 0x130   : > { %v784_v29 = vpop.permute.xlu1 %783  ;;  %6868 = vmatprep.mubr.msk.f32.mxu0 %vm11626_vm2, %v5959_v43  ;;  %v787_v25 = vpop.permute.xlu0 %786 }
 0x131   : > { %v950_v3 = vsel %vm489_vm3, %v8100_v2, %v784_v29  ;;  %v951_v33 = vsel %vm489_vm3, %v8098_v46, %v787_v25  ;;  %4070 = vperm.xlu1 %7257, %v7503_v37   ;;  %4073 = vperm.xlu0 %7256, %v7504_v35   ;;  %v7509_v25 = vld [vmem:[%s7701_s24 + $0x90] sm:$0xff] }
 0x132   : > { %vm1014_vm0 = vcmp.eq.s32.totalorder %v8271_v53, %v950_v3  ;;  %vm1015_vm1 = vcmp.eq.s32.totalorder %v8271_v53, %v951_v33  ;;  %6869 = vmatmul.mubr.msk.f32.gmra.mrb[10].mxu0 %vm11626_vm2, %v5960_v63  ;;  %v7510_v3 = vld [vmem:[%s7701_s24 + $0x98] sm:$0xff] }
 0x133   : > { %v5961_v41 = vsel %vm1014_vm0, 1.0, %v11570_v58  ;;  %v5962_v2 = vsel %vm1015_vm1, 1.0, %v11570_v58 }
 0x134   : > { %v790_v24 = vpop.permute.xlu1 %789  ;;  %6871 = vmatprep.mubr.msk.f32.mxu0 %vm11626_vm2, %v5961_v41  ;;  %v793_v47 = vpop.permute.xlu0 %792 }
 0x135   : > { %v952_v46 = vsel %vm489_vm3, %v8106_v6, %v790_v24  ;;  %v953_v4 = vsel %vm489_vm3, %v8104_v5, %v793_v47  ;;  %4076 = vperm.xlu1 %7257, %v7505_v52   ;;  %4079 = vperm.xlu0 %7256, %v7506_v36   ;;  %v7512_v24 = vld [vmem:[%s7701_s24 + $0xa8] sm:$0xff]  ;;  %v7513_v36 = vld [vmem:[%s7701_s24 + $0xb0] sm:$0xff] }
 0x136   : > { %vm1016_vm4 = vcmp.eq.s32.totalorder %v8271_v53, %v952_v46  ;;  %vm1017_vm5 = vcmp.eq.s32.totalorder %v8271_v53, %v953_v4  ;;  %6872 = vmatmul.mubr.msk.f32.gmra.mrb[12].mxu0 %vm11626_vm2, %v5962_v2  ;;  %v7511_v2 = vld [vmem:[%s7701_s24 + $0xa0] sm:$0xff] }
 0x137   : > { %v5963_v23 = vsel %vm1016_vm4, 1.0, %v11570_v58  ;;  %v5964_v6 = vsel %vm1017_vm5, 1.0, %v11570_v58 }
 0x138   : > { %v796_v1 = vpop.permute.xlu1 %795  ;;  %6874 = vmatprep.mubr.msk.f32.mxu0 %vm11626_vm2, %v5963_v23  ;;  %v799_v61 = vpop.permute.xlu0 %798  ;;  %v7514_v23 = vld [vmem:[%s7701_s24 + $0xb8] sm:$0xff] }
 0x139   : > { %v954_v5 = vsel %vm489_vm3, %v8112_v10, %v796_v1  ;;  %v955_v8 = vsel %vm489_vm3, %v8110_v7, %v799_v61  ;;  %4082 = vperm.xlu1 %7257, %v7507_v56   ;;  %4085 = vperm.xlu0 %7256, %v7508_v51   ;;  %v7516_v56 = vld [vmem:[%s7701_s24 + $0xc8] sm:$0xff] }
 0x13a   : > { %vm1018_vm6 = vcmp.eq.s32.totalorder %v8271_v53, %v954_v5  ;;  %vm1019_vm7 = vcmp.eq.s32.totalorder %v8271_v53, %v955_v8  ;;  %6875 = vmatmul.mubr.msk.f32.gmra.mrb[14].mxu0 %vm11626_vm2, %v5964_v6  ;;  %v7515_v8 = vld [vmem:[%s7701_s24 + $0xc0] sm:$0xff] }
 0x13b   : > { %v5965_v62 = vsel %vm1018_vm6, 1.0, %v11570_v58  ;;  %v5966_v10 = vsel %vm1019_vm7, 1.0, %v11570_v58 }
 0x13c   : > { %v802_v43 = vpop.permute.xlu1 %801  ;;  %6877 = vmatprep.mubr.msk.f32.mxu0 %vm11626_vm2, %v5965_v62  ;;  %v805_v63 = vpop.permute.xlu0 %804 }
 0x13d   : > { %v956_v7 = vsel %vm489_vm3, %v8118_v12, %v802_v43  ;;  %v957_v29 = vsel %vm489_vm3, %v8116_v9, %v805_v63  ;;  %4088 = vperm.xlu1 %7257, %v7509_v25   ;;  %4091 = vperm.xlu0 %7256, %v7510_v3   ;;  %v7517_v63 = vld [vmem:[%s7701_s24 + $0xd0] sm:$0xff] }
 0x13e   : > { %vm1020_vm8 = vcmp.eq.s32.totalorder %v8271_v53, %v956_v7  ;;  %vm1021_vm9 = vcmp.eq.s32.totalorder %v8271_v53, %v957_v29  ;;  %6878 = vmatmul.mubr.msk.f32.gmra.mrb[16].mxu0 %vm11626_vm2, %v5966_v10 }
 0x13f   : > { %v5967_v33 = vsel %vm1020_vm8, 1.0, %v11570_v58  ;;  %v5968_v12 = vsel %vm1021_vm9, 1.0, %v11570_v58 }
 0x140   : > { %v808_v37 = vpop.permute.xlu1 %807  ;;  %6880 = vmatprep.mubr.msk.f32.mxu0 %vm11626_vm2, %v5967_v33  ;;  %v811_v35 = vpop.permute.xlu0 %810 }
 0x141   : > { %v958_v9 = vsel %vm489_vm3, %v8124_v14, %v808_v37  ;;  %v959_v41 = vsel %vm489_vm3, %v8122_v11, %v811_v35  ;;  %4094 = vperm.xlu1 %7257, %v7511_v2   ;;  %4097 = vperm.xlu0 %7256, %v7512_v24  }
 0x142   : > { %vm1022_vm10 = vcmp.eq.s32.totalorder %v8271_v53, %v958_v9  ;;  %vm1023_vm11 = vcmp.eq.s32.totalorder %v8271_v53, %v959_v41  ;;  %6881 = vmatmul.mubr.msk.f32.gmra.mrb[18].mxu0 %vm11626_vm2, %v5968_v12 }
 0x143   : > { %v5969_v47 = vsel %vm1022_vm10, 1.0, %v11570_v58  ;;  %v5970_v14 = vsel %vm1023_vm11, 1.0, %v11570_v58 }
 0x144   : > { %v814_v46 = vpop.permute.xlu1 %813  ;;  %6883 = vmatprep.mubr.msk.f32.mxu0 %vm11626_vm2, %v5969_v47  ;;  %v817_v4 = vpop.permute.xlu0 %816 }
 0x145   : > { %v960_v11 = vsel %vm489_vm3, %v8130_v16, %v814_v46  ;;  %v961_v52 = vsel %vm489_vm3, %v8128_v13, %v817_v4  ;;  %4100 = vperm.xlu1 %7257, %v7513_v36   ;;  %4103 = vperm.xlu0 %7256, %v7514_v23  }
 0x146   : > { %vm1024_vm12 = vcmp.eq.s32.totalorder %v8271_v53, %v960_v11  ;;  %vm1025_vm13 = vcmp.eq.s32.totalorder %v8271_v53, %v961_v52  ;;  %6884 = vmatmul.mubr.msk.f32.gmra.mrb[20].mxu0 %vm11626_vm2, %v5970_v14 }
 0x147   : > { %v5971_v6 = vsel %vm1024_vm12, 1.0, %v11570_v58  ;;  %v5972_v16 = vsel %vm1025_vm13, 1.0, %v11570_v58 }
 0x148   : > { %v820_v1 = vpop.permute.xlu1 %819  ;;  %6886 = vmatprep.mubr.msk.f32.mxu0 %vm11626_vm2, %v5971_v6  ;;  %v823_v61 = vpop.permute.xlu0 %822 }
 0x149   : > { %v962_v13 = vsel %vm489_vm3, %v8136_v18, %v820_v1  ;;  %v963_v5 = vsel %vm489_vm3, %v8134_v15, %v823_v61  ;;  %4106 = vperm.xlu1 %7257, %v7515_v8   ;;  %4109 = vperm.xlu0 %7256, %v7516_v56  }
 0x14a   : > { %vm1026_vm14 = vcmp.eq.s32.totalorder %v8271_v53, %v962_v13  ;;  %vm1027_vm15 = vcmp.eq.s32.totalorder %v8271_v53, %v963_v5  ;;  %6887 = vmatmul.mubr.msk.f32.gmra.mrb[22].mxu0 %vm11626_vm2, %v5972_v16 }
 0x14b   : > { %v5973_v51 = vsel %vm1026_vm14, 1.0, %v11570_v58  ;;  %v5974_v62 = vsel %vm1027_vm15, 1.0, %v11570_v58 }
 0x14c   : > { %v826_v18 = vpop.permute.xlu1 %825  ;;  %6889 = vmatprep.mubr.msk.f32.mxu0 %vm11626_vm2, %v5973_v51  ;;  %v829_v10 = vpop.permute.xlu0 %828 }
 0x14d   : > { %v964_v15 = vsel %vm489_vm3, %v8142_v20, %v826_v18  ;;  %v965_v43 = vsel %vm489_vm3, %v8140_v17, %v829_v10  ;;  %4112 = vperm.xlu1 %7257, %v7517_v63  }
 0x14e   : > { %vm1028_vm0 = vcmp.eq.s32.totalorder %v8271_v53, %v964_v15  ;;  %vm1029_vm1 = vcmp.eq.s32.totalorder %v8271_v53, %v965_v43  ;;  %6890 = vmatmul.mubr.msk.f32.gmra.mrb[24].mxu0 %vm11626_vm2, %v5974_v62 }
 0x14f   : > { %v5975_v7 = vsel %vm1028_vm0, 1.0, %v11570_v58  ;;  %v5976_v29 = vsel %vm1029_vm1, 1.0, %v11570_v58 }
 0x150   : > { %v832_v25 = vpop.permute.xlu1 %831  ;;  %6892 = vmatprep.mubr.msk.f32.mxu0 %vm11626_vm2, %v5975_v7  ;;  %v835_v20 = vpop.permute.xlu0 %834 }
 0x151   : > { %v966_v17 = vsel %vm489_vm3, %v8148_v22, %v832_v25  ;;  %v967_v3 = vsel %vm489_vm3, %v8146_v19, %v835_v20  ;;  %v3325_v25 = vld [vmem:[%s11553_s6 + $0x8] sm:$0xff] }
 0x152   : > { %vm1030_vm4 = vcmp.eq.s32.totalorder %v8271_v53, %v966_v17  ;;  %vm1031_vm5 = vcmp.eq.s32.totalorder %v8271_v53, %v967_v3  ;;  %6893 = vmatmul.mubr.msk.f32.gmra.mrb[26].mxu0 %vm11626_vm2, %v5976_v29  ;;  %v3324_v29 = vld [vmem:[%s11553_s6] sm:$0xff] }
 0x153   : > { %v5977_v33 = vsel %vm1030_vm4, 1.0, %v11570_v58  ;;  %v5978_v12 = vsel %vm1031_vm5, 1.0, %v11570_v58  ;;  %v7080_v20 = vpack.c.bf16 %v3325_v25, %v3324_v29 }
 0x154   : > { %v838_v37 = vpop.permute.xlu1 %837  ;;  %6895 = vmatprep.mubr.msk.f32.mxu0 %vm11626_vm2, %v5977_v33  ;;  %v841_v35 = vpop.permute.xlu0 %840 }
 0x155   : > { %v968_v22 = vsel %vm489_vm3, %v8154_v27, %v838_v37  ;;  %v969_v19 = vsel %vm489_vm3, %v8152_v21, %v841_v35  ;;  %7081 = vmatprep.subr.bf16.mxu1 %v7080_v20  ;;  %v3326_v35 = vld [vmem:[%s11553_s6 + $0x10] sm:$0xff] }
 0x156   : > { %vm1032_vm6 = vcmp.eq.s32.totalorder %v8271_v53, %v968_v22  ;;  %vm1033_vm7 = vcmp.eq.s32.totalorder %v8271_v53, %v969_v19  ;;  %6896 = vmatmul.mubr.msk.f32.gmra.mrb[28].mxu0 %vm11626_vm2, %v5978_v12  ;;  %v11831_v12 = vld [vmem:[#allocation20_spill] sm:$0xff]  ;;  %7083 = vmatpush3.bf16.msra.mxu1 %v7080_v20  ;;  %v11842_v20 = vld [vmem:[#allocation15_spill] sm:$0xff] }
 0x157   : > { %v5979_v9 = vsel %vm1032_vm6, 1.0, %v11570_v58  ;;  %v5980_v41 = vsel %vm1033_vm7, 1.0, %v11570_v58  ;;  %v3327_v22 = vld [vmem:[%s11553_s6 + $0x18] sm:$0xff] }
 0x158   : > { %v844_v2 = vpop.permute.xlu1 %843  ;;  %6898 = vmatprep.mubr.msk.f32.mxu0 %vm11626_vm2, %v5979_v9  ;;  %v847_v24 = vpop.permute.xlu0 %846 }
 0x159   : > { %v970_v27 = vsel %vm489_vm3, %v8160_v32, %v844_v2  ;;  %v971_v21 = vsel %vm489_vm3, %v8158_v26, %v847_v24  ;;  %v11832_v24 = vld [vmem:[#allocation22_spill] sm:$0xff] }
 0x15a   : > { %vm1034_vm8 = vcmp.eq.s32.totalorder %v8271_v53, %v970_v27  ;;  %vm1035_vm9 = vcmp.eq.s32.totalorder %v8271_v53, %v971_v21  ;;  %6899 = vmatmul.mubr.msk.f32.gmra.mrb[30].mxu0 %vm11626_vm2, %v5980_v41  ;;  %v11833_v21 = vld [vmem:[#allocation21_spill] sm:$0xff] }
 0x15b   : > { %v5981_v47 = vsel %vm1034_vm8, 1.0, %v11570_v58  ;;  %v5982_v14 = vsel %vm1035_vm9, 1.0, %v11570_v58 }
 0x15c   : > { %v850_v46 = vpop.permute.xlu1 %849  ;;  %6901 = vmatprep.mubr.msk.f32.mxu0 %vm11626_vm2, %v5981_v47  ;;  %v853_v4 = vpop.permute.xlu0 %852 }
 0x15d   : > { %v972_v32 = vsel %vm489_vm3, %v8166_v40, %v850_v46  ;;  %v973_v26 = vsel %vm489_vm3, %v8164_v54, %v853_v4 }
 0x15e   : > { %vm1036_vm10 = vcmp.eq.s32.totalorder %v8271_v53, %v972_v32  ;;  %vm1037_vm11 = vcmp.eq.s32.totalorder %v8271_v53, %v973_v26  ;;  %6902 = vmatmul.mubr.msk.f32.gmra.mrb[32].mxu0 %vm11626_vm2, %v5982_v14  ;;  %v11834_v26 = vld [vmem:[#allocation24_spill] sm:$0xff] }
 0x15f   : > { %v5983_v11 = vsel %vm1036_vm10, 1.0, %v11570_v58  ;;  %v5984_v52 = vsel %vm1037_vm11, 1.0, %v11570_v58 }
 0x160   : > { %v856_v36 = vpop.permute.xlu1 %855  ;;  %6904 = vmatprep.mubr.msk.f32.mxu0 %vm11626_vm2, %v5983_v11  ;;  %v859_v23 = vpop.permute.xlu0 %858 }
 0x161   : > { %v974_v40 = vsel %vm489_vm3, %v8172_v45, %v856_v36  ;;  %v975_v54 = vsel %vm489_vm3, %v8170_v59, %v859_v23 }
 0x162   : > { %vm1038_vm12 = vcmp.eq.s32.totalorder %v8271_v53, %v974_v40  ;;  %vm1039_vm13 = vcmp.eq.s32.totalorder %v8271_v53, %v975_v54  ;;  %6905 = vmatmul.mubr.msk.f32.gmra.mrb[34].mxu0 %vm11626_vm2, %v5984_v52  ;;  %v11835_v52 = vld [vmem:[#allocation23_spill] sm:$0xff] }
 0x163   : > { %v5985_v6 = vsel %vm1038_vm12, 1.0, %v11570_v58  ;;  %v5986_v16 = vsel %vm1039_vm13, 1.0, %v11570_v58 }
 0x164   : > { %v862_v1 = vpop.permute.xlu1 %861  ;;  %6907 = vmatprep.mubr.msk.f32.mxu0 %vm11626_vm2, %v5985_v6  ;;  %v865_v61 = vpop.permute.xlu0 %864 }
 0x165   : > { %v976_v45 = vsel %vm489_vm3, %v8178_v50, %v862_v1  ;;  %v977_v59 = vsel %vm489_vm3, %v8176_v44, %v865_v61  ;;  %v11837_v61 = vld [vmem:[#allocation9_spill] sm:$0xff] }
 0x166   : > { %vm1040_vm14 = vcmp.eq.s32.totalorder %v8271_v53, %v976_v45  ;;  %vm1041_vm15 = vcmp.eq.s32.totalorder %v8271_v53, %v977_v59  ;;  %6908 = vmatmul.mubr.msk.f32.gmra.mrb[36].mxu0 %vm11626_vm2, %v5986_v16  ;;  %v11836_v16 = vld [vmem:[#allocation10_spill] sm:$0xff] }
 0x167   : > { %v5987_v13 = vsel %vm1040_vm14, 1.0, %v11570_v58  ;;  %v5988_v5 = vsel %vm1041_vm15, 1.0, %v11570_v58 }
 0x168   : > { %v868_v8 = vpop.permute.xlu1 %867  ;;  %6910 = vmatprep.mubr.msk.f32.mxu0 %vm11626_vm2, %v5987_v13  ;;  %v871_v56 = vpop.permute.xlu0 %870 }
 0x169   : > { %v978_v50 = vsel %vm489_vm3, %v8184_v31, %v868_v8  ;;  %v979_v44 = vsel %vm489_vm3, %v8182_v49, %v871_v56  ;;  %v11838_v56 = vld [vmem:[#allocation12_spill] sm:$0xff] }
 0x16a   : > { %vm1042_vm0 = vcmp.eq.s32.totalorder %v8271_v53, %v978_v50  ;;  %vm1043_vm1 = vcmp.eq.s32.totalorder %v8271_v53, %v979_v44  ;;  %6911 = vmatmul.mubr.msk.f32.gmra.mrb[38].mxu0 %vm11626_vm2, %v5988_v5  ;;  %v11839_v44 = vld [vmem:[#allocation11_spill] sm:$0xff] }
 0x16b   : > { %v5989_v51 = vsel %vm1042_vm0, 1.0, %v11570_v58  ;;  %v5990_v62 = vsel %vm1043_vm1, 1.0, %v11570_v58 }
 0x16c   : > { %v874_v18 = vpop.permute.xlu1 %873  ;;  %6913 = vmatprep.mubr.msk.f32.mxu0 %vm11626_vm2, %v5989_v51  ;;  %v877_v10 = vpop.permute.xlu0 %876 }
 0x16d   : > { %v980_v31 = vsel %vm489_vm3, %v8190_v39, %v874_v18  ;;  %v981_v49 = vsel %vm489_vm3, %v8188_v55, %v877_v10 }
 0x16e   : > { %vm1044_vm4 = vcmp.eq.s32.totalorder %v8271_v53, %v980_v31  ;;  %vm1045_vm5 = vcmp.eq.s32.totalorder %v8271_v53, %v981_v49  ;;  %6914 = vmatmul.mubr.msk.f32.gmra.mrb[40].mxu0 %vm11626_vm2, %v5990_v62  ;;  %v11840_v49 = vld [vmem:[#allocation14_spill] sm:$0xff] }
 0x16f   : > { %v5991_v15 = vsel %vm1044_vm4, 1.0, %v11570_v58  ;;  %v5992_v43 = vsel %vm1045_vm5, 1.0, %v11570_v58 }
 0x170   : > { %v880_v63 = vpop.permute.xlu1 %879  ;;  %6916 = vmatprep.mubr.msk.f32.mxu0 %vm11626_vm2, %v5991_v15  ;;  %v883_v7 = vpop.permute.xlu0 %882 }
 0x171   : > { %v982_v39 = vsel %vm489_vm3, %v8196_v0, %v880_v63  ;;  %v983_v55 = vsel %vm489_vm3, %v8194_v60, %v883_v7 }
 0x172   : > { %vm1046_vm6 = vcmp.eq.s32.totalorder %v8271_v53, %v982_v39  ;;  %vm1047_vm7 = vcmp.eq.s32.totalorder %v8271_v53, %v983_v55  ;;  %6917 = vmatmul.mubr.msk.f32.gmra.mrb[42].mxu0 %vm11626_vm2, %v5992_v43  ;;  %v11841_v43 = vld [vmem:[#allocation13_spill] sm:$0xff] }
 0x173   : > { %v5993_v0 = vsel %vm1046_vm6, 1.0, %v11570_v58  ;;  %v5994_v17 = vsel %vm1047_vm7, 1.0, %v11570_v58 }
 0x174   : > { %v886_v60 = vpop.permute.xlu1 %885  ;;  %6919 = vmatprep.mubr.msk.f32.mxu0 %vm11626_vm2, %v5993_v0  ;;  %v889_v3 = vpop.permute.xlu0 %888 }
 0x175   : > { %v984_v33 = vsel %vm489_vm3, %v8203_v28, %v886_v60  ;;  %v985_v37 = vsel %vm489_vm3, %v11831_v12, %v889_v3  ;;  %v7084_v28 = vpack.c.bf16 %v3327_v22, %v3326_v35 }
 0x176   : > { %vm1048_vm8 = vcmp.eq.s32.totalorder %v8271_v53, %v984_v33  ;;  %vm1049_vm9 = vcmp.eq.s32.totalorder %v8271_v53, %v985_v37  ;;  %6920 = vmatmul.mubr.msk.f32.gmra.mrb[44].mxu0 %vm11626_vm2, %v5994_v17 }
 0x177   : > { %v5995_v19 = vsel %vm1048_vm8, 1.0, %v11570_v58  ;;  %v5996_v9 = vsel %vm1049_vm9, 1.0, %v11570_v58  ;;  %7085 = vmatprep.subr.bf16.mxu1 %v7084_v28 }
 0x178   : > { %v892_v41 = vpop.permute.xlu1 %891  ;;  %6922 = vmatprep.mubr.msk.f32.mxu0 %vm11626_vm2, %v5995_v19  ;;  %v895_v2 = vpop.permute.xlu0 %894  ;;  %7087 = vmatpush3.bf16.msra.mxu1 %v7084_v28 }
 0x179   : > { %v986_v27 = vsel %vm489_vm3, %v11832_v24, %v892_v41  ;;  %v987_v47 = vsel %vm489_vm3, %v11833_v21, %v895_v2 }
 0x17a   : > { %vm1050_vm10 = vcmp.eq.s32.totalorder %v8271_v53, %v986_v27  ;;  %vm1051_vm11 = vcmp.eq.s32.totalorder %v8271_v53, %v987_v47  ;;  %6923 = vmatmul.mubr.msk.f32.gmra.mrb[46].mxu0 %vm11626_vm2, %v5996_v9 }
 0x17b   : > { %v5997_v14 = vsel %vm1050_vm10, 1.0, %v11570_v58  ;;  %v5998_v46 = vsel %vm1051_vm11, 1.0, %v11570_v58 }
 0x17c   : > { %v898_v4 = vpop.permute.xlu1 %897  ;;  %6925 = vmatprep.mubr.msk.f32.mxu0 %vm11626_vm2, %v5997_v14  ;;  %v901_v32 = vpop.permute.xlu0 %900 }
 0x17d   : > { %v988_v11 = vsel %vm489_vm3, %v11834_v26, %v898_v4  ;;  %v989_v36 = vsel %vm489_vm3, %v11835_v52, %v901_v32 }
 0x17e   : > { %vm1052_vm12 = vcmp.eq.s32.totalorder %v8271_v53, %v988_v11  ;;  %vm1053_vm13 = vcmp.eq.s32.totalorder %v8271_v53, %v989_v36  ;;  %6926 = vmatmul.mubr.msk.f32.gmra.mrb[48].mxu0 %vm11626_vm2, %v5998_v46 }
 0x17f   : > { %v5999_v23 = vsel %vm1052_vm12, 1.0, %v11570_v58  ;;  %v6000_v40 = vsel %vm1053_vm13, 1.0, %v11570_v58 }
 0x180   : > { %v904_v54 = vpop.permute.xlu1 %903  ;;  %6928 = vmatprep.mubr.msk.f32.mxu0 %vm11626_vm2, %v5999_v23  ;;  %v907_v6 = vpop.permute.xlu0 %906 }
 0x181   : > { %v990_v1 = vsel %vm489_vm3, %v11836_v16, %v904_v54  ;;  %v991_v45 = vsel %vm489_vm3, %v11837_v61, %v907_v6 }
 0x182   : > { %vm1054_vm14 = vcmp.eq.s32.totalorder %v8271_v53, %v990_v1  ;;  %vm1055_vm15 = vcmp.eq.s32.totalorder %v8271_v53, %v991_v45  ;;  %6929 = vmatmul.mubr.msk.f32.gmra.mrb[50].mxu0 %vm11626_vm2, %v6000_v40 }
 0x183   : > { %v6001_v59 = vsel %vm1054_vm14, 1.0, %v11570_v58  ;;  %v6002_v13 = vsel %vm1055_vm15, 1.0, %v11570_v58  ;;  %vm4481_vm14 = vcmask 130048  }
 0x184   : > { %v910_v5 = vpop.permute.xlu1 %909  ;;  %6931 = vmatprep.mubr.msk.f32.mxu0 %vm11626_vm2, %v6001_v59  ;;  %v913_v8 = vpop.permute.xlu0 %912 }
 0x185   : > { %v992_v50 = vsel %vm489_vm3, %v11838_v56, %v910_v5  ;;  %v993_v51 = vsel %vm489_vm3, %v11839_v44, %v913_v8 }
 0x186   : > { %vm1056_vm0 = vcmp.eq.s32.totalorder %v8271_v53, %v992_v50  ;;  %vm1057_vm1 = vcmp.eq.s32.totalorder %v8271_v53, %v993_v51  ;;  %6932 = vmatmul.mubr.msk.f32.gmra.mrb[52].mxu0 %vm11626_vm2, %v6002_v13 }
 0x187   : > { %v6003_v62 = vsel %vm1056_vm0, 1.0, %v11570_v58  ;;  %v6004_v18 = vsel %vm1057_vm1, 1.0, %v11570_v58 }
 0x188   : > { %v916_v10 = vpop.permute.xlu1 %915  ;;  %6934 = vmatprep.mubr.msk.f32.mxu0 %vm11626_vm2, %v6003_v62  ;;  %v919_v31 = vpop.permute.xlu0 %918  ;;  %v8752_v62 = vld [vmem:[%s11552_s5] ss:$0 sm:$0xff] }
 0x189   : > { %v994_v15 = vsel %vm489_vm3, %v11840_v49, %v916_v10  ;;  %v995_v63 = vsel %vm489_vm3, %v11841_v43, %v919_v31 }
 0x18a   : > { %vm1058_vm4 = vcmp.eq.s32.totalorder %v8271_v53, %v994_v15  ;;  %vm1059_vm5 = vcmp.eq.s32.totalorder %v8271_v53, %v995_v63  ;;  %6935 = vmatmul.mubr.msk.f32.gmra.mrb[54].mxu0 %vm11626_vm2, %v6004_v18 }
 0x18b   : > { %v6005_v7 = vsel %vm1058_vm4, 1.0, %v11570_v58  ;;  %v6006_v39 = vsel %vm1059_vm5, 1.0, %v11570_v58 }
 0x18c   : > { %v922_v55 = vpop.permute.xlu1 %921  ;;  %6937 = vmatprep.mubr.msk.f32.mxu0 %vm11626_vm2, %v6005_v7  ;;  %v925_v29 = vpop.permute.xlu0 %924 }
 0x18d   : > { %v996_v25 = vsel %vm489_vm3, %v8256_v30, %v922_v55  ;;  %v997_v0 = vsel %vm489_vm3, %v11842_v20, %v925_v29 }
 0x18e   : > { %vm1060_vm6 = vcmp.eq.s32.totalorder %v8271_v53, %v996_v25  ;;  %vm1061_vm7 = vcmp.eq.s32.totalorder %v8271_v53, %v997_v0  ;;  %6938 = vmatmul.mubr.msk.f32.gmra.mrb[56].mxu0 %vm11626_vm2, %v6006_v39 }
 0x18f   : > { %v6007_v17 = vsel %vm1060_vm6, 1.0, %v11570_v58  ;;  %v6008_v60 = vsel %vm1061_vm7, 1.0, %v11570_v58 }
 0x190   : > { %v928_v3 = vpop.permute.xlu1 %927  ;;  %6940 = vmatprep.mubr.msk.f32.mxu0 %vm11626_vm2, %v6007_v17  ;;  %v931_v33 = vpop.permute.xlu0 %930 }
 0x191   : > { %v998_v30 = vsel %vm489_vm3, %v8265_v42, %v928_v3  ;;  %v999_v12 = vsel %vm489_vm3, %v8263_v48, %v931_v33 }
 0x192   : > { %vm1062_vm8 = vcmp.eq.s32.totalorder %v8271_v53, %v998_v30  ;;  %vm1063_vm9 = vcmp.eq.s32.totalorder %v8271_v53, %v999_v12  ;;  %6941 = vmatmul.mubr.msk.f32.gmra.mrb[58].mxu0 %vm11626_vm2, %v6008_v60 }
 0x193   : > { %v6009_v37 = vsel %vm1062_vm8, 1.0, %v11570_v58  ;;  %v6010_v35 = vsel %vm1063_vm9, 1.0, %v11570_v58 }
 0x194   : > { %v934_v22 = vpop.permute.xlu1 %933  ;;  %6943 = vmatprep.mubr.msk.f32.mxu0 %vm11626_vm2, %v6009_v37  ;;  %v937_v28 = vpop.permute.xlu0 %936 }
 0x195   : > { %v1000_v42 = vsel %vm489_vm3, %v8277_v57, %v934_v22  ;;  %v1001_v48 = vsel %vm489_vm3, %v8275_v34, %v937_v28 }
 0x196   : > { %vm1064_vm10 = vcmp.eq.s32.totalorder %v8271_v53, %v1000_v42  ;;  %vm1065_vm11 = vcmp.eq.s32.totalorder %v8271_v53, %v1001_v48  ;;  %6944 = vmatmul.mubr.msk.f32.gmra.mrb[60].mxu0 %vm11626_vm2, %v6010_v35 }
 0x197   : > { %v6011_v19 = vsel %vm1064_vm10, 1.0, %v11570_v58  ;;  %v6012_v9 = vsel %vm1065_vm11, 1.0, %v11570_v58 }
 0x198   : > { %6946 = vmatprep.mubr.msk.f32.mxu0 %vm11626_vm2, %v6011_v19 }
 0x19a   : > { %6947 = vmatmul.mubr.msk.f32.gmra.mrb[62].mxu0 %vm11626_vm2, %v6012_v9 }
 0x1bd   : > { %v8709_v41 = vpop.f32.mrb[0].mxu1 }
 0x1be   : > { %v8711_v57 = vpop.f32.mrb[1].mxu1 }
 0x1c9   : > { %v8713_v2 = vpop.f32.mrb[2].mxu1 }
 0x1ca   : > { %v8715_v34 = vpop.f32.mrb[3].mxu1 }
 0x1cd   : > { %v8717_v24 = vpop.f32.mrb[4].mxu1 }
 0x1ce   : > { %v8719_v27 = vpop.f32.mrb[5].mxu1 }
 0x1d1   : > { %v8721_v21 = vpop.f32.mrb[6].mxu1 }
 0x1d2   : > { %v8723_v47 = vpop.f32.mrb[7].mxu1 }
 0x1d5   : > { %v8725_v14 = vpop.f32.mrb[8].mxu1 }
 0x1d6   : > { %v8727_v46 = vpop.f32.mrb[9].mxu1 }
 0x1d9   : > { %v8729_v4 = vpop.f32.mrb[10].mxu1 }
 0x1da   : > { %v8731_v32 = vpop.f32.mrb[11].mxu1 }
 0x1dd   : > { %v8733_v26 = vpop.f32.mrb[12].mxu1 }
 0x1de   : > { %v8735_v11 = vpop.f32.mrb[13].mxu1 }
 0x1e1   : > { %v8737_v52 = vpop.f32.mrb[14].mxu1 }
 0x1e2   : > { %v8739_v36 = vpop.f32.mrb[15].mxu1 }
 0x1e5   : > { %v8741_v23 = vpop.f32.mrb[16].mxu1 }
 0x1e6   : > { %v8743_v40 = vpop.f32.mrb[17].mxu1 }
 0x1e9   : > { %v8745_v54 = vpop.f32.mrb[18].mxu1 }
 0x1ea   : > { %v8747_v6 = vpop.f32.mrb[19].mxu1 }
 0x1f1   : > { %v6855_v16 = vpop.f32.mrb[0].mxu0 }
 0x1f2   : > { %v2486_v1 = vmul.f32 0.01, %v6855_v16  ;;  %v2166_v61 = vpop.f32.mrb[1].mxu0 }
 0x1f3   : > { %v2485_v45 = vmul.f32 0.01, %v2166_v61 }
 0x1f4   : > { %v2550_v59 = vmax.f32 %v6855_v16, %v2486_v1 }
 0x1f5   : > { %v2549_v13 = vmax.f32 %v2166_v61, %v2485_v45  ;;  %v6858_v5 = vpop.f32.mrb[2].mxu0 }
 0x1f6   : > { %v2614_v8 = vmul.f32 0.01, %v2550_v59  ;;  %v2488_v56 = vmul.f32 0.01, %v6858_v5  ;;  %v2176_v50 = vpop.f32.mrb[3].mxu0 }
 0x1f7   : > { %v2613_v44 = vmul.f32 0.01, %v2549_v13  ;;  %v2487_v51 = vmul.f32 0.01, %v2176_v50 }
 0x1f8   : > { %v2678_v18 = vmax.f32 %v2550_v59, %v2614_v8  ;;  %v2552_v10 = vmax.f32 %v6858_v5, %v2488_v56 }
 0x1f9   : > { %v2677_v31 = vmax.f32 %v2549_v13, %v2613_v44  ;;  %v2551_v49 = vmax.f32 %v2176_v50, %v2487_v51  ;;  %v6861_v15 = vpop.f32.mrb[4].mxu0 }
 0x1fa   : > { %2742 = vst.msk [vmem:[%s7711_s30 + $0x8] sm:$0xff] %vm11626_vm2, %v2678_v18  ;;  %v2616_v43 = vmul.f32 0.01, %v2552_v10  ;;  %v2490_v63 = vmul.f32 0.01, %v6861_v15  ;;  %v2186_v7 = vpop.f32.mrb[5].mxu0  ;;  %v2813_v39 = vmul.f32 %v8752_v62, %v2678_v18 }
 0x1fb   : > { %2741 = vst.msk [vmem:[%s7711_s30] sm:$0xff] %vm11626_vm2, %v2677_v31  ;;  %v2615_v55 = vmul.f32 0.01, %v2551_v49  ;;  %v2489_v29 = vmul.f32 0.01, %v2186_v7  ;;  %6957 = vmatprep.mubr.msk.f32.mxu1 %vm11626_vm2, %v2677_v31  ;;  %v2812_v25 = vmul.f32 %v8752_v62, %v2677_v31 }
 0x1fc   : > { %v2680_v20 = vmax.f32 %v2552_v10, %v2616_v43  ;;  %v2554_v0 = vmax.f32 %v6861_v15, %v2490_v63  ;;  %6958 = vmatmul.mubr.msk.f32.vlgmr.msra.gmra.mrb[20].mxu1 %vm11626_vm2, %v2678_v18  ;;  %v2879_v17 = vsel %vm11626_vm2, %v2813_v39, 0.0 }
 0x1fd   : > { %v2679_v60 = vmax.f32 %v2551_v49, %v2615_v55  ;;  %v2553_v3 = vmax.f32 %v2186_v7, %v2489_v29  ;;  %2880 = vadd.xlane.f32.xlu0 %v2879_v17  ;;  %v6864_v33 = vpop.f32.mrb[6].mxu0  ;;  %v2876_v30 = vsel %vm11626_vm2, %v2812_v25, 0.0 }
 0x1fe   : > { %2744 = vst.msk [vmem:[%s7711_s30 + $0x18] sm:$0xff] %vm11626_vm2, %v2680_v20  ;;  %v2618_v12 = vmul.f32 0.01, %v2554_v0  ;;  %v2492_v37 = vmul.f32 0.01, %v6864_v33  ;;  %2877 = vadd.xlane.f32.xlu1 %v2876_v30  ;;  %v2196_v35 = vpop.f32.mrb[7].mxu0  ;;  %v2815_v22 = vmul.f32 %v8752_v62, %v2680_v20 }
 0x1ff   : > { %2743 = vst.msk [vmem:[%s7711_s30 + $0x10] sm:$0xff] %vm11626_vm2, %v2679_v60  ;;  %v2617_v28 = vmul.f32 0.01, %v2553_v3  ;;  %v2491_v42 = vmul.f32 0.01, %v2196_v35  ;;  %6960 = vmatprep.mubr.msk.f32.mxu1 %vm11626_vm2, %v2679_v60  ;;  %v2814_v48 = vmul.f32 %v8752_v62, %v2679_v60 }
 0x200   : > { %v2682_v19 = vmax.f32 %v2554_v0, %v2618_v12  ;;  %v2556_v9 = vmax.f32 %v6864_v33, %v2492_v37  ;;  %6961 = vmatmul.mubr.msk.f32.gmra.mrb[22].mxu1 %vm11626_vm2, %v2680_v20  ;;  %v2885_v16 = vsel %vm11626_vm2, %v2815_v22, 0.0 }
 0x201   : > { %v2681_v1 = vmax.f32 %v2553_v3, %v2617_v28  ;;  %v2555_v61 = vmax.f32 %v2196_v35, %v2491_v42  ;;  %v6867_v45 = vpop.f32.mrb[8].mxu0  ;;  %v2882_v59 = vsel %vm11626_vm2, %v2814_v48, 0.0 }
 0x202   : > { %2746 = vst.msk [vmem:[%s7711_s30 + $0x28] sm:$0xff] %vm11626_vm2, %v2682_v19  ;;  %v2620_v13 = vmul.f32 0.01, %v2556_v9  ;;  %v2494_v5 = vmul.f32 0.01, %v6867_v45  ;;  %2886 = vadd.xlane.f32.xlu1 %v2885_v16  ;;  %2883 = vadd.xlane.f32.xlu0 %v2882_v59  ;;  %v2206_v8 = vpop.f32.mrb[9].mxu0  ;;  %v2817_v56 = vmul.f32 %v8752_v62, %v2682_v19 }
 0x203   : > { %2745 = vst.msk [vmem:[%s7711_s30 + $0x20] sm:$0xff] %vm11626_vm2, %v2681_v1  ;;  %v2619_v50 = vmul.f32 0.01, %v2555_v61  ;;  %v2493_v44 = vmul.f32 0.01, %v2206_v8  ;;  %6963 = vmatprep.mubr.msk.f32.mxu1 %vm11626_vm2, %v2681_v1  ;;  %v2816_v51 = vmul.f32 %v8752_v62, %v2681_v1 }
 0x204   : > { %v2684_v18 = vmax.f32 %v2556_v9, %v2620_v13  ;;  %v2558_v10 = vmax.f32 %v6867_v45, %v2494_v5  ;;  %6964 = vmatmul.mubr.msk.f32.gmra.mrb[24].mxu1 %vm11626_vm2, %v2682_v19  ;;  %v2891_v31 = vsel %vm11626_vm2, %v2817_v56, 0.0 }
 0x205   : > { %v2683_v49 = vmax.f32 %v2555_v61, %v2619_v50  ;;  %v2557_v15 = vmax.f32 %v2206_v8, %v2493_v44  ;;  %v6870_v43 = vpop.f32.mrb[10].mxu0  ;;  %v2888_v63 = vsel %vm11626_vm2, %v2816_v51, 0.0 }
 0x206   : > { %2748 = vst.msk [vmem:[%s7711_s30 + $0x38] sm:$0xff] %vm11626_vm2, %v2684_v18  ;;  %v2622_v7 = vmul.f32 0.01, %v2558_v10  ;;  %v2496_v39 = vmul.f32 0.01, %v6870_v43  ;;  %2892 = vadd.xlane.f32.xlu1 %v2891_v31  ;;  %2889 = vadd.xlane.f32.xlu0 %v2888_v63  ;;  %v2216_v55 = vpop.f32.mrb[11].mxu0  ;;  %v2819_v29 = vmul.f32 %v8752_v62, %v2684_v18 }
 0x207   : > { %2747 = vst.msk [vmem:[%s7711_s30 + $0x30] sm:$0xff] %vm11626_vm2, %v2683_v49  ;;  %v2621_v25 = vmul.f32 0.01, %v2557_v15  ;;  %v2495_v20 = vmul.f32 0.01, %v2216_v55  ;;  %6966 = vmatprep.mubr.msk.f32.mxu1 %vm11626_vm2, %v2683_v49  ;;  %v2818_v0 = vmul.f32 %v8752_v62, %v2683_v49 }
 0x208   : > { %v2686_v17 = vmax.f32 %v2558_v10, %v2622_v7  ;;  %v2560_v60 = vmax.f32 %v6870_v43, %v2496_v39  ;;  %6967 = vmatmul.mubr.msk.f32.gmra.mrb[26].mxu1 %vm11626_vm2, %v2684_v18  ;;  %v2897_v3 = vsel %vm11626_vm2, %v2819_v29, 0.0 }
 0x209   : > { %v2685_v33 = vmax.f32 %v2557_v15, %v2621_v25  ;;  %v2559_v30 = vmax.f32 %v2216_v55, %v2495_v20  ;;  %v6873_v12 = vpop.f32.mrb[12].mxu0  ;;  %v2894_v37 = vsel %vm11626_vm2, %v2818_v0, 0.0 }
 0x20a   : > { %2750 = vst.msk [vmem:[%s7711_s30 + $0x48] sm:$0xff] %vm11626_vm2, %v2686_v17  ;;  %v2624_v35 = vmul.f32 0.01, %v2560_v60  ;;  %v2498_v22 = vmul.f32 0.01, %v6873_v12  ;;  %2898 = vadd.xlane.f32.xlu1 %v2897_v3  ;;  %2895 = vadd.xlane.f32.xlu0 %v2894_v37  ;;  %v2226_v28 = vpop.f32.mrb[13].mxu0  ;;  %v2821_v42 = vmul.f32 %v8752_v62, %v2686_v17 }
 0x20b   : > { %2749 = vst.msk [vmem:[%s7711_s30 + $0x40] sm:$0xff] %vm11626_vm2, %v2685_v33  ;;  %v2623_v48 = vmul.f32 0.01, %v2559_v30  ;;  %v2497_v19 = vmul.f32 0.01, %v2226_v28  ;;  %6969 = vmatprep.mubr.msk.f32.mxu1 %vm11626_vm2, %v2685_v33  ;;  %v2820_v9 = vmul.f32 %v8752_v62, %v2685_v33 }
 0x20c   : > { %v2688_v16 = vmax.f32 %v2560_v60, %v2624_v35  ;;  %v2562_v1 = vmax.f32 %v6873_v12, %v2498_v22  ;;  %6970 = vmatmul.mubr.msk.f32.gmra.mrb[28].mxu1 %vm11626_vm2, %v2686_v17  ;;  %v2903_v61 = vsel %vm11626_vm2, %v2821_v42, 0.0 }
 0x20d   : > { %v2687_v45 = vmax.f32 %v2559_v30, %v2623_v48  ;;  %v2561_v59 = vmax.f32 %v2226_v28, %v2497_v19  ;;  %v6876_v13 = vpop.f32.mrb[14].mxu0  ;;  %v2900_v5 = vsel %vm11626_vm2, %v2820_v9, 0.0 }
 0x20e   : > { %2752 = vst.msk [vmem:[%s7711_s30 + $0x58] sm:$0xff] %vm11626_vm2, %v2688_v16  ;;  %v2626_v8 = vmul.f32 0.01, %v2562_v1  ;;  %v2500_v56 = vmul.f32 0.01, %v6876_v13  ;;  %2904 = vadd.xlane.f32.xlu1 %v2903_v61  ;;  %2901 = vadd.xlane.f32.xlu0 %v2900_v5  ;;  %v2236_v50 = vpop.f32.mrb[15].mxu0  ;;  %v2823_v44 = vmul.f32 %v8752_v62, %v2688_v16 }
 0x20f   : > { %2751 = vst.msk [vmem:[%s7711_s30 + $0x50] sm:$0xff] %vm11626_vm2, %v2687_v45  ;;  %v2625_v51 = vmul.f32 0.01, %v2561_v59  ;;  %v2499_v18 = vmul.f32 0.01, %v2236_v50  ;;  %6972 = vmatprep.mubr.msk.f32.mxu1 %vm11626_vm2, %v2687_v45  ;;  %v2822_v10 = vmul.f32 %v8752_v62, %v2687_v45 }
 0x210   : > { %v2690_v31 = vmax.f32 %v2562_v1, %v2626_v8  ;;  %v2564_v49 = vmax.f32 %v6876_v13, %v2500_v56  ;;  %6973 = vmatmul.mubr.msk.f32.gmra.mrb[30].mxu1 %vm11626_vm2, %v2688_v16  ;;  %v2909_v15 = vsel %vm11626_vm2, %v2823_v44, 0.0 }
 0x211   : > { %v2689_v43 = vmax.f32 %v2561_v59, %v2625_v51  ;;  %v2563_v63 = vmax.f32 %v2236_v50, %v2499_v18  ;;  %v6879_v7 = vpop.f32.mrb[16].mxu0  ;;  %v2906_v39 = vsel %vm11626_vm2, %v2822_v10, 0.0 }
 0x212   : > { %2754 = vst.msk [vmem:[%s7711_s30 + $0x68] sm:$0xff] %vm11626_vm2, %v2690_v31  ;;  %v2628_v55 = vmul.f32 0.01, %v2564_v49  ;;  %v2502_v29 = vmul.f32 0.01, %v6879_v7  ;;  %2910 = vadd.xlane.f32.xlu1 %v2909_v15  ;;  %2907 = vadd.xlane.f32.xlu0 %v2906_v39  ;;  %v2246_v25 = vpop.f32.mrb[17].mxu0  ;;  %v2825_v20 = vmul.f32 %v8752_v62, %v2690_v31 }
 0x213   : > { %2753 = vst.msk [vmem:[%s7711_s30 + $0x60] sm:$0xff] %vm11626_vm2, %v2689_v43  ;;  %v2627_v0 = vmul.f32 0.01, %v2563_v63  ;;  %v2501_v17 = vmul.f32 0.01, %v2246_v25  ;;  %6975 = vmatprep.mubr.msk.f32.mxu1 %vm11626_vm2, %v2689_v43  ;;  %v2824_v60 = vmul.f32 %v8752_v62, %v2689_v43 }
 0x214   : > { %v2692_v3 = vmax.f32 %v2564_v49, %v2628_v55  ;;  %v2566_v33 = vmax.f32 %v6879_v7, %v2502_v29  ;;  %6976 = vmatmul.mubr.msk.f32.gmra.mrb[32].mxu1 %vm11626_vm2, %v2690_v31  ;;  %v2915_v30 = vsel %vm11626_vm2, %v2825_v20, 0.0 }
 0x215   : > { %v2691_v12 = vmax.f32 %v2563_v63, %v2627_v0  ;;  %v2565_v37 = vmax.f32 %v2246_v25, %v2501_v17  ;;  %v6882_v35 = vpop.f32.mrb[18].mxu0  ;;  %v2912_v22 = vsel %vm11626_vm2, %v2824_v60, 0.0 }
 0x216   : > { %2756 = vst.msk [vmem:[%s7711_s30 + $0x78] sm:$0xff] %vm11626_vm2, %v2692_v3  ;;  %v2630_v28 = vmul.f32 0.01, %v2566_v33  ;;  %v2504_v42 = vmul.f32 0.01, %v6882_v35  ;;  %2916 = vadd.xlane.f32.xlu1 %v2915_v30  ;;  %2913 = vadd.xlane.f32.xlu0 %v2912_v22  ;;  %v2256_v48 = vpop.f32.mrb[19].mxu0  ;;  %v2827_v19 = vmul.f32 %v8752_v62, %v2692_v3 }
 0x217   : > { %2755 = vst.msk [vmem:[%s7711_s30 + $0x70] sm:$0xff] %vm11626_vm2, %v2691_v12  ;;  %v2629_v9 = vmul.f32 0.01, %v2565_v37  ;;  %v2503_v16 = vmul.f32 0.01, %v2256_v48  ;;  %6978 = vmatprep.mubr.msk.f32.mxu1 %vm11626_vm2, %v2691_v12  ;;  %v2826_v1 = vmul.f32 %v8752_v62, %v2691_v12 }
 0x218   : > { %v2694_v61 = vmax.f32 %v2566_v33, %v2630_v28  ;;  %v2568_v45 = vmax.f32 %v6882_v35, %v2504_v42  ;;  %6979 = vmatmul.mubr.msk.f32.gmra.mrb[34].mxu1 %vm11626_vm2, %v2692_v3  ;;  %v2921_v59 = vsel %vm11626_vm2, %v2827_v19, 0.0 }
 0x219   : > { %v2693_v13 = vmax.f32 %v2565_v37, %v2629_v9  ;;  %v2567_v5 = vmax.f32 %v2256_v48, %v2503_v16  ;;  %v6885_v8 = vpop.f32.mrb[20].mxu0  ;;  %v2918_v56 = vsel %vm11626_vm2, %v2826_v1, 0.0 }
 0x21a   : > { %2758 = vst.msk [vmem:[%s7711_s30 + $0x88] sm:$0xff] %vm11626_vm2, %v2694_v61  ;;  %v2632_v50 = vmul.f32 0.01, %v2568_v45  ;;  %v2506_v44 = vmul.f32 0.01, %v6885_v8  ;;  %2922 = vadd.xlane.f32.xlu1 %v2921_v59  ;;  %2919 = vadd.xlane.f32.xlu0 %v2918_v56  ;;  %v2266_v51 = vpop.f32.mrb[21].mxu0  ;;  %v2829_v18 = vmul.f32 %v8752_v62, %v2694_v61 }
 0x21b   : > { %2757 = vst.msk [vmem:[%s7711_s30 + $0x80] sm:$0xff] %vm11626_vm2, %v2693_v13  ;;  %v2631_v10 = vmul.f32 0.01, %v2567_v5  ;;  %v2505_v31 = vmul.f32 0.01, %v2266_v51  ;;  %6981 = vmatprep.mubr.msk.f32.mxu1 %vm11626_vm2, %v2693_v13  ;;  %v2828_v49 = vmul.f32 %v8752_v62, %v2693_v13 }
 0x21c   : > { %v2696_v15 = vmax.f32 %v2568_v45, %v2632_v50  ;;  %v2570_v43 = vmax.f32 %v6885_v8, %v2506_v44  ;;  %6982 = vmatmul.mubr.msk.f32.gmra.mrb[36].mxu1 %vm11626_vm2, %v2694_v61  ;;  %v2927_v63 = vsel %vm11626_vm2, %v2829_v18, 0.0 }
 0x21d   : > { %v2695_v7 = vmax.f32 %v2567_v5, %v2631_v10  ;;  %v2569_v39 = vmax.f32 %v2266_v51, %v2505_v31  ;;  %v6888_v55 = vpop.f32.mrb[22].mxu0  ;;  %v2924_v29 = vsel %vm11626_vm2, %v2828_v49, 0.0 }
 0x21e   : > { %2760 = vst.msk [vmem:[%s7711_s30 + $0x98] sm:$0xff] %vm11626_vm2, %v2696_v15  ;;  %v2634_v25 = vmul.f32 0.01, %v2570_v43  ;;  %v2508_v20 = vmul.f32 0.01, %v6888_v55  ;;  %2928 = vadd.xlane.f32.xlu1 %v2927_v63  ;;  %2925 = vadd.xlane.f32.xlu0 %v2924_v29  ;;  %v2276_v0 = vpop.f32.mrb[23].mxu0  ;;  %v2831_v17 = vmul.f32 %v8752_v62, %v2696_v15 }
 0x21f   : > { %2759 = vst.msk [vmem:[%s7711_s30 + $0x90] sm:$0xff] %vm11626_vm2, %v2695_v7  ;;  %v2633_v60 = vmul.f32 0.01, %v2569_v39  ;;  %v2507_v3 = vmul.f32 0.01, %v2276_v0  ;;  %6984 = vmatprep.mubr.msk.f32.mxu1 %vm11626_vm2, %v2695_v7  ;;  %v2830_v33 = vmul.f32 %v8752_v62, %v2695_v7 }
 0x220   : > { %v2698_v30 = vmax.f32 %v2570_v43, %v2634_v25  ;;  %v2572_v12 = vmax.f32 %v6888_v55, %v2508_v20  ;;  %6985 = vmatmul.mubr.msk.f32.gmra.mrb[38].mxu1 %vm11626_vm2, %v2696_v15  ;;  %v2933_v37 = vsel %vm11626_vm2, %v2831_v17, 0.0 }
 0x221   : > { %v2697_v35 = vmax.f32 %v2569_v39, %v2633_v60  ;;  %v2571_v22 = vmax.f32 %v2276_v0, %v2507_v3  ;;  %v6891_v28 = vpop.f32.mrb[24].mxu0  ;;  %v2930_v42 = vsel %vm11626_vm2, %v2830_v33, 0.0 }
 0x222   : > { %2762 = vst.msk [vmem:[%s7711_s30 + $0xa8] sm:$0xff] %vm11626_vm2, %v2698_v30  ;;  %v2636_v48 = vmul.f32 0.01, %v2572_v12  ;;  %v2510_v19 = vmul.f32 0.01, %v6891_v28  ;;  %2934 = vadd.xlane.f32.xlu1 %v2933_v37  ;;  %2931 = vadd.xlane.f32.xlu0 %v2930_v42  ;;  %v2286_v9 = vpop.f32.mrb[25].mxu0  ;;  %v2833_v16 = vmul.f32 %v8752_v62, %v2698_v30 }
 0x223   : > { %2761 = vst.msk [vmem:[%s7711_s30 + $0xa0] sm:$0xff] %vm11626_vm2, %v2697_v35  ;;  %v2635_v1 = vmul.f32 0.01, %v2571_v22  ;;  %v2509_v61 = vmul.f32 0.01, %v2286_v9  ;;  %6987 = vmatprep.mubr.msk.f32.mxu1 %vm11626_vm2, %v2697_v35  ;;  %v2832_v45 = vmul.f32 %v8752_v62, %v2697_v35 }
 0x224   : > { %v2700_v59 = vmax.f32 %v2572_v12, %v2636_v48  ;;  %v2574_v13 = vmax.f32 %v6891_v28, %v2510_v19  ;;  %6988 = vmatmul.mubr.msk.f32.gmra.mrb[40].mxu1 %vm11626_vm2, %v2698_v30  ;;  %v2939_v5 = vsel %vm11626_vm2, %v2833_v16, 0.0 }
 0x225   : > { %v2699_v8 = vmax.f32 %v2571_v22, %v2635_v1  ;;  %v2573_v56 = vmax.f32 %v2286_v9, %v2509_v61  ;;  %v6894_v50 = vpop.f32.mrb[26].mxu0  ;;  %v2936_v44 = vsel %vm11626_vm2, %v2832_v45, 0.0 }
 0x226   : > { %2764 = vst.msk [vmem:[%s7711_s30 + $0xb8] sm:$0xff] %vm11626_vm2, %v2700_v59  ;;  %v2638_v51 = vmul.f32 0.01, %v2574_v13  ;;  %v2512_v18 = vmul.f32 0.01, %v6894_v50  ;;  %2940 = vadd.xlane.f32.xlu1 %v2939_v5  ;;  %2937 = vadd.xlane.f32.xlu0 %v2936_v44  ;;  %v2296_v10 = vpop.f32.mrb[27].mxu0  ;;  %v2835_v31 = vmul.f32 %v8752_v62, %v2700_v59 }
 0x227   : > { %2763 = vst.msk [vmem:[%s7711_s30 + $0xb0] sm:$0xff] %vm11626_vm2, %v2699_v8  ;;  %v2637_v49 = vmul.f32 0.01, %v2573_v56  ;;  %v2511_v15 = vmul.f32 0.01, %v2296_v10  ;;  %6990 = vmatprep.mubr.msk.f32.mxu1 %vm11626_vm2, %v2699_v8  ;;  %v2834_v43 = vmul.f32 %v8752_v62, %v2699_v8 }
 0x228   : > { %v2702_v63 = vmax.f32 %v2574_v13, %v2638_v51  ;;  %v2576_v7 = vmax.f32 %v6894_v50, %v2512_v18  ;;  %6991 = vmatmul.mubr.msk.f32.gmra.mrb[42].mxu1 %vm11626_vm2, %v2700_v59  ;;  %v2945_v39 = vsel %vm11626_vm2, %v2835_v31, 0.0 }
 0x229   : > { %v2701_v55 = vmax.f32 %v2573_v56, %v2637_v49  ;;  %v2575_v29 = vmax.f32 %v2296_v10, %v2511_v15  ;;  %v6897_v25 = vpop.f32.mrb[28].mxu0  ;;  %v2942_v20 = vsel %vm11626_vm2, %v2834_v43, 0.0 }
 0x22a   : > { %2766 = vst.msk [vmem:[%s7711_s30 + $0xc8] sm:$0xff] %vm11626_vm2, %v2702_v63  ;;  %v2640_v0 = vmul.f32 0.01, %v2576_v7  ;;  %v2514_v17 = vmul.f32 0.01, %v6897_v25  ;;  %2946 = vadd.xlane.f32.xlu1 %v2945_v39  ;;  %2943 = vadd.xlane.f32.xlu0 %v2942_v20  ;;  %v2306_v60 = vpop.f32.mrb[29].mxu0  ;;  %v2837_v3 = vmul.f32 %v8752_v62, %v2702_v63 }
 0x22b   : > { %2765 = vst.msk [vmem:[%s7711_s30 + $0xc0] sm:$0xff] %vm11626_vm2, %v2701_v55  ;;  %v2639_v33 = vmul.f32 0.01, %v2575_v29  ;;  %v2513_v30 = vmul.f32 0.01, %v2306_v60  ;;  %6993 = vmatprep.mubr.msk.f32.mxu1 %vm11626_vm2, %v2701_v55  ;;  %v2836_v12 = vmul.f32 %v8752_v62, %v2701_v55 }
 0x22c   : > { %v2704_v37 = vmax.f32 %v2576_v7, %v2640_v0  ;;  %v2578_v35 = vmax.f32 %v6897_v25, %v2514_v17  ;;  %6994 = vmatmul.mubr.msk.f32.gmra.mrb[44].mxu1 %vm11626_vm2, %v2702_v63  ;;  %v2951_v22 = vsel %vm11626_vm2, %v2837_v3, 0.0 }
 0x22d   : > { %v2703_v28 = vmax.f32 %v2575_v29, %v2639_v33  ;;  %v2577_v42 = vmax.f32 %v2306_v60, %v2513_v30  ;;  %v6900_v48 = vpop.f32.mrb[30].mxu0  ;;  %v2948_v19 = vsel %vm11626_vm2, %v2836_v12, 0.0 }
 0x22e   : > { %2768 = vst.msk [vmem:[%s7711_s30 + $0xd8] sm:$0xff] %vm11626_vm2, %v2704_v37  ;;  %v2642_v9 = vmul.f32 0.01, %v2578_v35  ;;  %v2516_v16 = vmul.f32 0.01, %v6900_v48  ;;  %2952 = vadd.xlane.f32.xlu1 %v2951_v22  ;;  %2949 = vadd.xlane.f32.xlu0 %v2948_v19  ;;  %v2316_v1 = vpop.f32.mrb[31].mxu0  ;;  %v2839_v61 = vmul.f32 %v8752_v62, %v2704_v37 }
 0x22f   : > { %2767 = vst.msk [vmem:[%s7711_s30 + $0xd0] sm:$0xff] %vm11626_vm2, %v2703_v28  ;;  %v2641_v45 = vmul.f32 0.01, %v2577_v42  ;;  %v2515_v59 = vmul.f32 0.01, %v2316_v1  ;;  %6996 = vmatprep.mubr.msk.f32.mxu1 %vm11626_vm2, %v2703_v28  ;;  %v2838_v13 = vmul.f32 %v8752_v62, %v2703_v28 }
 0x230   : > { %v2706_v5 = vmax.f32 %v2578_v35, %v2642_v9  ;;  %v2580_v8 = vmax.f32 %v6900_v48, %v2516_v16  ;;  %6997 = vmatmul.mubr.msk.f32.gmra.mrb[46].mxu1 %vm11626_vm2, %v2704_v37  ;;  %v2957_v56 = vsel %vm11626_vm2, %v2839_v61, 0.0  ;;  %v8913_v48 = vpop.permute.xlu1 %4037 }
 0x231   : > { %v2705_v50 = vmax.f32 %v2577_v42, %v2641_v45  ;;  %v2579_v44 = vmax.f32 %v2316_v1, %v2515_v59  ;;  %v6903_v51 = vpop.f32.mrb[32].mxu0  ;;  %v2954_v18 = vsel %vm11626_vm2, %v2838_v13, 0.0  ;;  %11843 = vst [vmem:[#allocation16_spill] sm:$0xff] %v8913_v48  ;;  %vm4226_vm3 = vcmp.eq.s32.totalorder %v8913_v48, %v8271_v53 }
 0x232   : > { %2770 = vst.msk [vmem:[%s7711_s30 + $0xe8] sm:$0xff] %vm11626_vm2, %v2706_v5  ;;  %v2644_v10 = vmul.f32 0.01, %v2580_v8  ;;  %v2518_v31 = vmul.f32 0.01, %v6903_v51  ;;  %2958 = vadd.xlane.f32.xlu1 %v2957_v56  ;;  %2955 = vadd.xlane.f32.xlu0 %v2954_v18  ;;  %v2326_v49 = vpop.f32.mrb[33].mxu0  ;;  %v2841_v15 = vmul.f32 %v8752_v62, %v2706_v5 }
 0x233   : > { %2769 = vst.msk [vmem:[%s7711_s30 + $0xe0] sm:$0xff] %vm11626_vm2, %v2705_v50  ;;  %v2643_v43 = vmul.f32 0.01, %v2579_v44  ;;  %v2517_v63 = vmul.f32 0.01, %v2326_v49  ;;  %6999 = vmatprep.mubr.msk.f32.mxu1 %vm11626_vm2, %v2705_v50  ;;  %v2840_v7 = vmul.f32 %v8752_v62, %v2705_v50 }
 0x234   : > { %v2708_v39 = vmax.f32 %v2580_v8, %v2644_v10  ;;  %v2582_v55 = vmax.f32 %v6903_v51, %v2518_v31  ;;  %7000 = vmatmul.mubr.msk.f32.gmra.mrb[48].mxu1 %vm11626_vm2, %v2706_v5  ;;  %v2963_v29 = vsel %vm11626_vm2, %v2841_v15, 0.0 }
 0x235   : > { %v2707_v25 = vmax.f32 %v2579_v44, %v2643_v43  ;;  %v2581_v20 = vmax.f32 %v2326_v49, %v2517_v63  ;;  %v6906_v0 = vpop.f32.mrb[34].mxu0  ;;  %v2960_v17 = vsel %vm11626_vm2, %v2840_v7, 0.0 }
 0x236   : > { %2772 = vst.msk [vmem:[%s7711_s30 + $0xf8] sm:$0xff] %vm11626_vm2, %v2708_v39  ;;  %v2646_v60 = vmul.f32 0.01, %v2582_v55  ;;  %v2520_v3 = vmul.f32 0.01, %v6906_v0  ;;  %2964 = vadd.xlane.f32.xlu1 %v2963_v29  ;;  %2961 = vadd.xlane.f32.xlu0 %v2960_v17  ;;  %v2336_v33 = vpop.f32.mrb[35].mxu0  ;;  %v2843_v30 = vmul.f32 %v8752_v62, %v2708_v39 }
 0x237   : > { %2771 = vst.msk [vmem:[%s7711_s30 + $0xf0] sm:$0xff] %vm11626_vm2, %v2707_v25  ;;  %v2645_v12 = vmul.f32 0.01, %v2581_v20  ;;  %v2519_v37 = vmul.f32 0.01, %v2336_v33  ;;  %7002 = vmatprep.mubr.msk.f32.mxu1 %vm11626_vm2, %v2707_v25  ;;  %v2842_v35 = vmul.f32 %v8752_v62, %v2707_v25 }
 0x238   : > { %v2710_v22 = vmax.f32 %v2582_v55, %v2646_v60  ;;  %v2584_v28 = vmax.f32 %v6906_v0, %v2520_v3  ;;  %7003 = vmatmul.mubr.msk.f32.gmra.mrb[50].mxu1 %vm11626_vm2, %v2708_v39  ;;  %v2969_v42 = vsel %vm11626_vm2, %v2843_v30, 0.0  ;;  %v8929_v39 = vpop.permute.xlu1 %4040 }
 0x239   : > { %v2709_v19 = vmax.f32 %v2581_v20, %v2645_v12  ;;  %v2583_v9 = vmax.f32 %v2336_v33, %v2519_v37  ;;  %v6909_v16 = vpop.f32.mrb[36].mxu0  ;;  %v2966_v1 = vsel %vm11626_vm2, %v2842_v35, 0.0  ;;  %11844 = vst [vmem:[#allocation17_spill] sm:$0xff] %v8929_v39  ;;  %v8938_v12 = vpop.permute.xlu0 %4034  ;;  %vm4227_vm15 = vcmp.eq.s32.totalorder %v8929_v39, %v8271_v53 }
 0x23a   : > { %2774 = vst.msk [vmem:[%s7711_s30 + $0x108] sm:$0xff] %vm11626_vm2, %v2710_v22  ;;  %v2648_v61 = vmul.f32 0.01, %v2584_v28  ;;  %v2522_v45 = vmul.f32 0.01, %v6909_v16  ;;  %2970 = vadd.xlane.f32.xlu1 %v2969_v42  ;;  %2967 = vadd.xlane.f32.xlu0 %v2966_v1  ;;  %v2346_v59 = vpop.f32.mrb[37].mxu0  ;;  %v2845_v13 = vmul.f32 %v8752_v62, %v2710_v22  ;;  %vm4225_vm12 = vcmp.eq.s32.totalorder %v8938_v12, %v8271_v53 }
 0x23b   : > { %2773 = vst.msk [vmem:[%s7711_s30 + $0x100] sm:$0xff] %vm11626_vm2, %v2709_v19  ;;  %v2647_v5 = vmul.f32 0.01, %v2583_v9  ;;  %v2521_v8 = vmul.f32 0.01, %v2346_v59  ;;  %7005 = vmatprep.mubr.msk.f32.mxu1 %vm11626_vm2, %v2709_v19  ;;  %v2844_v56 = vmul.f32 %v8752_v62, %v2709_v19  ;;  %11845 = vst [vmem:[#allocation18_spill] sm:$0xff] %v8938_v12 }
 0x23c   : > { %v2712_v50 = vmax.f32 %v2584_v28, %v2648_v61  ;;  %v2586_v44 = vmax.f32 %v6909_v16, %v2522_v45  ;;  %7006 = vmatmul.mubr.msk.f32.gmra.mrb[52].mxu1 %vm11626_vm2, %v2710_v22  ;;  %v2975_v51 = vsel %vm11626_vm2, %v2845_v13, 0.0  ;;  %v8949_v45 = vpop.permute.xlu1 %4046 }
 0x23d   : > { %v2711_v18 = vmax.f32 %v2583_v9, %v2647_v5  ;;  %v2585_v10 = vmax.f32 %v2346_v59, %v2521_v8  ;;  %v6912_v31 = vpop.f32.mrb[38].mxu0  ;;  %v2972_v49 = vsel %vm11626_vm2, %v2844_v56, 0.0  ;;  %11846 = vst [vmem:[#allocation8_spill] sm:$0xff] %v8949_v45  ;;  %vm11662_vm0 = vcmp.eq.s32.totalorder %v8949_v45, %v8271_v53 }
 0x23e   : > { %2776 = vst.msk [vmem:[%s7711_s30 + $0x118] sm:$0xff] %vm11626_vm2, %v2712_v50  ;;  %v2650_v15 = vmul.f32 0.01, %v2586_v44  ;;  %v2524_v43 = vmul.f32 0.01, %v6912_v31  ;;  %2976 = vadd.xlane.f32.xlu1 %v2975_v51  ;;  %2973 = vadd.xlane.f32.xlu0 %v2972_v49  ;;  %v2356_v63 = vpop.f32.mrb[39].mxu0  ;;  %v2847_v7 = vmul.f32 %v8752_v62, %v2712_v50  ;;  %v8959_v49 = vpop.permute.xlu0 %4043 }
 0x23f   : > { %2775 = vst.msk [vmem:[%s7711_s30 + $0x110] sm:$0xff] %vm11626_vm2, %v2711_v18  ;;  %v2649_v55 = vmul.f32 0.01, %v2585_v10  ;;  %v2523_v29 = vmul.f32 0.01, %v2356_v63  ;;  %7008 = vmatprep.mubr.msk.f32.mxu1 %vm11626_vm2, %v2711_v18  ;;  %v2846_v25 = vmul.f32 %v8752_v62, %v2711_v18  ;;  %11847 = vst [vmem:[#allocation19_spill] sm:$0xff] %v8959_v49  ;;  %vm4228_vm13 = vcmp.eq.s32.totalorder %v8959_v49, %v8271_v53 }
 0x240   : > { %v2714_v20 = vmax.f32 %v2586_v44, %v2650_v15  ;;  %v2588_v0 = vmax.f32 %v6912_v31, %v2524_v43  ;;  %7009 = vmatmul.mubr.msk.f32.gmra.mrb[54].mxu1 %vm11626_vm2, %v2712_v50  ;;  %v2981_v17 = vsel %vm11626_vm2, %v2847_v7, 0.0 }
 0x241   : > { %v2713_v60 = vmax.f32 %v2585_v10, %v2649_v55  ;;  %v2587_v3 = vmax.f32 %v2356_v63, %v2523_v29  ;;  %v6915_v33 = vpop.f32.mrb[40].mxu0  ;;  %v2978_v30 = vsel %vm11626_vm2, %v2846_v25, 0.0 }
 0x242   : > { %2778 = vst.msk [vmem:[%s7711_s30 + $0x128] sm:$0xff] %vm11626_vm2, %v2714_v20  ;;  %v2652_v37 = vmul.f32 0.01, %v2588_v0  ;;  %v2526_v35 = vmul.f32 0.01, %v6915_v33  ;;  %2982 = vadd.xlane.f32.xlu1 %v2981_v17  ;;  %2979 = vadd.xlane.f32.xlu0 %v2978_v30  ;;  %v2366_v22 = vpop.f32.mrb[41].mxu0  ;;  %v2849_v28 = vmul.f32 %v8752_v62, %v2714_v20 }
 0x243   : > { %2777 = vst.msk [vmem:[%s7711_s30 + $0x120] sm:$0xff] %vm11626_vm2, %v2713_v60  ;;  %v2651_v42 = vmul.f32 0.01, %v2587_v3  ;;  %v2525_v19 = vmul.f32 0.01, %v2366_v22  ;;  %7011 = vmatprep.mubr.msk.f32.mxu1 %vm11626_vm2, %v2713_v60  ;;  %v2848_v9 = vmul.f32 %v8752_v62, %v2713_v60 }
 0x244   : > { %v2716_v16 = vmax.f32 %v2588_v0, %v2652_v37  ;;  %v2590_v1 = vmax.f32 %v6915_v33, %v2526_v35  ;;  %7012 = vmatmul.mubr.msk.f32.gmra.mrb[56].mxu1 %vm11626_vm2, %v2714_v20  ;;  %v2987_v61 = vsel %vm11626_vm2, %v2849_v28, 0.0 }
 0x245   : > { %v2715_v59 = vmax.f32 %v2587_v3, %v2651_v42  ;;  %v2589_v13 = vmax.f32 %v2366_v22, %v2525_v19  ;;  %v6918_v5 = vpop.f32.mrb[42].mxu0  ;;  %v2984_v8 = vsel %vm11626_vm2, %v2848_v9, 0.0  ;;  %v8968_v3 = vpop.permute.xlu1 %4052 }
 0x246   : > { %2780 = vst.msk [vmem:[%s7711_s30 + $0x138] sm:$0xff] %vm11626_vm2, %v2716_v16  ;;  %v2654_v56 = vmul.f32 0.01, %v2590_v1  ;;  %v2528_v50 = vmul.f32 0.01, %v6918_v5  ;;  %2988 = vadd.xlane.f32.xlu1 %v2987_v61  ;;  %2985 = vadd.xlane.f32.xlu0 %v2984_v8  ;;  %v2376_v44 = vpop.f32.mrb[43].mxu0  ;;  %v2851_v51 = vmul.f32 %v8752_v62, %v2716_v16  ;;  %vm11647_vm5 = vcmp.eq.s32.totalorder %v8968_v3, %v8271_v53 }
 0x247   : > { %2779 = vst.msk [vmem:[%s7711_s30 + $0x130] sm:$0xff] %vm11626_vm2, %v2715_v59  ;;  %v2653_v18 = vmul.f32 0.01, %v2589_v13  ;;  %v2527_v10 = vmul.f32 0.01, %v2376_v44  ;;  %7014 = vmatprep.mubr.msk.f32.mxu1 %vm11626_vm2, %v2715_v59  ;;  %v2850_v31 = vmul.f32 %v8752_v62, %v2715_v59  ;;  %11848 = vst [vmem:[#allocation20_spill] sm:$0xff] %v8968_v3 }
 0x248   : > { %v2718_v15 = vmax.f32 %v2590_v1, %v2654_v56  ;;  %v2592_v43 = vmax.f32 %v6918_v5, %v2528_v50  ;;  %7015 = vmatmul.mubr.msk.f32.gmra.mrb[58].mxu1 %vm11626_vm2, %v2716_v16  ;;  %v2993_v63 = vsel %vm11626_vm2, %v2851_v51, 0.0  ;;  %v8978_v16 = vpop.permute.xlu0 %4049 }
 0x249   : > { %v2717_v7 = vmax.f32 %v2589_v13, %v2653_v18  ;;  %v2591_v55 = vmax.f32 %v2376_v44, %v2527_v10  ;;  %v6921_v29 = vpop.f32.mrb[44].mxu0  ;;  %v2990_v25 = vsel %vm11626_vm2, %v2850_v31, 0.0  ;;  %11849 = vst [vmem:[#allocation22_spill] sm:$0xff] %v8978_v16  ;;  %v8991_v44 = vpop.permute.xlu1 %4058  ;;  %vm11648_vm1 = vcmp.eq.s32.totalorder %v8978_v16, %v8271_v53 }
 0x24a   : > { %2782 = vst.msk [vmem:[%s7711_s30 + $0x148] sm:$0xff] %vm11626_vm2, %v2718_v15  ;;  %v2656_v20 = vmul.f32 0.01, %v2592_v43  ;;  %v2392_v0 = vadd.f32 %v6921_v29, %v8709_v41  ;;  %2994 = vadd.xlane.f32.xlu1 %v2993_v63  ;;  %2991 = vadd.xlane.f32.xlu0 %v2990_v25  ;;  %v2386_v17 = vpop.f32.mrb[45].mxu0  ;;  %v2853_v60 = vmul.f32 %v8752_v62, %v2718_v15  ;;  %11850 = vst [vmem:[#allocation21_spill] sm:$0xff] %v8991_v44 }
 0x24b   : > { %2781 = vst.msk [vmem:[%s7711_s30 + $0x140] sm:$0xff] %vm11626_vm2, %v2717_v7  ;;  %v2655_v33 = vmul.f32 0.01, %v2591_v55  ;;  %v2387_v30 = vadd.f32 %v2386_v17, %v8711_v57  ;;  %7017 = vmatprep.mubr.msk.f32.mxu1 %vm11626_vm2, %v2717_v7  ;;  %v2852_v37 = vmul.f32 %v8752_v62, %v2717_v7  ;;  %vm11628_vm7 = vcmp.eq.s32.totalorder %v8991_v44, %v8271_v53 }
 0x24c   : > { %v2720_v35 = vmax.f32 %v2592_v43, %v2656_v20  ;;  %v2530_v41 = vmul.f32 0.01, %v2392_v0  ;;  %7018 = vmatmul.mubr.msk.f32.gmra.mrb[60].mxu1 %vm11626_vm2, %v2718_v15  ;;  %v2999_v22 = vsel %vm11626_vm2, %v2853_v60, 0.0  ;;  %v8998_v25 = vpop.permute.xlu0 %4055 }
 0x24d   : > { %v2719_v28 = vmax.f32 %v2591_v55, %v2655_v33  ;;  %v2529_v42 = vmul.f32 0.01, %v2387_v30  ;;  %v6924_v19 = vpop.f32.mrb[46].mxu0  ;;  %v2996_v9 = vsel %vm11626_vm2, %v2852_v37, 0.0  ;;  %11851 = vst [vmem:[#allocation24_spill] sm:$0xff] %v8998_v25  ;;  %vm11634_vm4 = vcmp.eq.s32.totalorder %v8998_v25, %v8271_v53 }
 0x24e   : > { %2784 = vst.msk [vmem:[%s7711_s30 + $0x158] sm:$0xff] %vm11626_vm2, %v2720_v35  ;;  %v2594_v57 = vmax.f32 %v2392_v0, %v2530_v41  ;;  %v2402_v1 = vadd.f32 %v6924_v19, %v8713_v2  ;;  %3000 = vadd.xlane.f32.xlu1 %v2999_v22  ;;  %2997 = vadd.xlane.f32.xlu0 %v2996_v9  ;;  %v2396_v61 = vpop.f32.mrb[47].mxu0  ;;  %v9011_v22 = vpop.permute.xlu1 %4064 }
 0x24f   : > { %v2855_v59 = vmul.f32 %v8752_v62, %v2720_v35  ;;  %2783 = vst.msk [vmem:[%s7711_s30 + $0x150] sm:$0xff] %vm11626_vm2, %v2719_v28  ;;  %v2593_v13 = vmax.f32 %v2387_v30, %v2529_v42  ;;  %v2397_v5 = vadd.f32 %v2396_v61, %v8715_v34  ;;  %7020 = vmatprep.mubr.msk.f32.mxu1 %vm11626_vm2, %v2719_v28  ;;  %11852 = vst [vmem:[#allocation23_spill] sm:$0xff] %v9011_v22 }
 0x250   : > { %v2854_v8 = vmul.f32 %v8752_v62, %v2719_v28  ;;  %v2658_v56 = vmul.f32 0.01, %v2594_v57  ;;  %v2532_v50 = vmul.f32 0.01, %v2402_v1  ;;  %7021 = vmatmul.mubr.msk.f32.gmra.mrb[62].mxu1 %vm11626_vm2, %v2720_v35  ;;  %vm11635_vm9 = vcmp.eq.s32.totalorder %v9011_v22, %v8271_v53 }
 0x251   : > { %v3005_v2 = vsel %vm11626_vm2, %v2855_v59, 0.0  ;;  %v2657_v51 = vmul.f32 0.01, %v2593_v13  ;;  %v2531_v18 = vmul.f32 0.01, %v2397_v5  ;;  %v6927_v10 = vpop.f32.mrb[48].mxu0 }
 0x252   : > { %v3002_v31 = vsel %vm11626_vm2, %v2854_v8, 0.0  ;;  %v2722_v34 = vmax.f32 %v2594_v57, %v2658_v56  ;;  %v2596_v15 = vmax.f32 %v2402_v1, %v2532_v50  ;;  %v2412_v43 = vadd.f32 %v6927_v10, %v8717_v24  ;;  %3006 = vadd.xlane.f32.xlu1 %v3005_v2  ;;  %v2406_v63 = vpop.f32.mrb[49].mxu0 }
 0x253   : > { %3003 = vadd.xlane.f32.xlu0 %v3002_v31  ;;  %v8995_v7 = vmax.f32 %v2593_v13, %v2657_v51  ;;  %v2595_v55 = vmax.f32 %v2397_v5, %v2531_v18  ;;  %v2407_v29 = vadd.f32 %v2406_v63, %v8719_v27  ;;  %v9024_v13 = vpop.permute.xlu0 %4061 }
 0x254   : > { %2786 = vst.msk [vmem:[%s7711_s30 + $0x168] sm:$0xff] %vm11626_vm2, %v2722_v34  ;;  %v2660_v20 = vmul.f32 0.01, %v2596_v15  ;;  %v2534_v0 = vmul.f32 0.01, %v2412_v43  ;;  %v2857_v17 = vmul.f32 %v8752_v62, %v2722_v34  ;;  %11853 = vst [vmem:[#allocation10_spill] sm:$0xff] %v9024_v13  ;;  %vm11627_vm6 = vcmp.eq.s32.totalorder %v9024_v13, %v8271_v53 }
 0x255   : > { %2785 = vst.msk [vmem:[%s7711_s30 + $0x160] sm:$0xff] %vm11626_vm2, %v8995_v7  ;;  %v2659_v24 = vmul.f32 0.01, %v2595_v55  ;;  %v2533_v60 = vmul.f32 0.01, %v2407_v29  ;;  %v6930_v33 = vpop.f32.mrb[50].mxu0  ;;  %7023 = vmatprep.mubr.msk.f32.mxu1 %vm11626_vm2, %v8995_v7 }
 0x256   : > { %v2724_v27 = vmax.f32 %v2596_v15, %v2660_v20  ;;  %v2598_v30 = vmax.f32 %v2412_v43, %v2534_v0  ;;  %v2422_v37 = vadd.f32 %v6930_v33, %v8721_v21  ;;  %v2416_v35 = vpop.f32.mrb[51].mxu0  ;;  %7024 = vmatmul.mubr.msk.f32.gmra.mrb[64].mxu1 %vm11626_vm2, %v2722_v34  ;;  %v3011_v41 = vsel %vm11626_vm2, %v2857_v17, 0.0  ;;  %v9035_v15 = vpop.permute.xlu1 %4070 }
 0x257   : > { %v9013_v28 = vmax.f32 %v2595_v55, %v2659_v24  ;;  %v2597_v42 = vmax.f32 %v2407_v29, %v2533_v60  ;;  %v2417_v19 = vadd.f32 %v2416_v35, %v8723_v47  ;;  %3012 = vadd.xlane.f32.xlu1 %v3011_v41  ;;  %11854 = vst [vmem:[#allocation9_spill] sm:$0xff] %v9035_v15  ;;  %v9048_v60 = vpop.permute.xlu0 %4067 }
 0x258   : > { %2788 = vst.msk [vmem:[%s7711_s30 + $0x178] sm:$0xff] %vm11626_vm2, %v2724_v27  ;;  %v2662_v9 = vmul.f32 0.01, %v2598_v30  ;;  %v2536_v57 = vmul.f32 0.01, %v2422_v37  ;;  %v2859_v1 = vmul.f32 %v8752_v62, %v2724_v27  ;;  %11855 = vst [vmem:[#allocation12_spill] sm:$0xff] %v9048_v60  ;;  %vm11633_vm8 = vcmp.eq.s32.totalorder %v9048_v60, %v8271_v53 }
 0x259   : > { %2787 = vst.msk [vmem:[%s7711_s30 + $0x170] sm:$0xff] %vm11626_vm2, %v9013_v28  ;;  %v2661_v21 = vmul.f32 0.01, %v2597_v42  ;;  %v2535_v61 = vmul.f32 0.01, %v2417_v19  ;;  %v6933_v59 = vpop.f32.mrb[52].mxu0  ;;  %7026 = vmatprep.mubr.msk.f32.mxu1 %vm11626_vm2, %v9013_v28  ;;  %vm11646_vm10 = vcmp.eq.s32.totalorder %v9035_v15, %v8271_v53 }
 0x25a   : > { %v2726_v47 = vmax.f32 %v2598_v30, %v2662_v9  ;;  %v2600_v5 = vmax.f32 %v2422_v37, %v2536_v57  ;;  %v2432_v8 = vadd.f32 %v6933_v59, %v8725_v14  ;;  %v2426_v56 = vpop.f32.mrb[53].mxu0  ;;  %7027 = vmatmul.mubr.msk.f32.gmra.mrb[66].mxu1 %vm11626_vm2, %v2724_v27  ;;  %v3017_v50 = vsel %vm11626_vm2, %v2859_v1, 0.0  ;;  %v9066_v1 = vpop.permute.xlu1 %4076 }
 0x25b   : > { %v9029_v2 = vmax.f32 %v2597_v42, %v2661_v21  ;;  %v2599_v51 = vmax.f32 %v2417_v19, %v2535_v61  ;;  %v2427_v18 = vadd.f32 %v2426_v56, %v8727_v46  ;;  %3018 = vadd.xlane.f32.xlu1 %v3017_v50  ;;  %11856 = vst [vmem:[#allocation11_spill] sm:$0xff] %v9066_v1 }
 0x25c   : > { %2790 = vst.msk [vmem:[%s7711_s30 + $0x188] sm:$0xff] %vm11626_vm2, %v2726_v47  ;;  %v2664_v10 = vmul.f32 0.01, %v2600_v5  ;;  %v2538_v31 = vmul.f32 0.01, %v2432_v8  ;;  %v2861_v34 = vmul.f32 %v8752_v62, %v2726_v47 }
 0x25d   : > { %2789 = vst.msk [vmem:[%s7711_s30 + $0x180] sm:$0xff] %vm11626_vm2, %v9029_v2  ;;  %v2663_v14 = vmul.f32 0.01, %v2599_v51  ;;  %v2537_v43 = vmul.f32 0.01, %v2427_v18  ;;  %v6936_v63 = vpop.f32.mrb[54].mxu0  ;;  %7029 = vmatprep.mubr.msk.f32.mxu1 %vm11626_vm2, %v9029_v2 }
 0x25e   : > { %v2728_v46 = vmax.f32 %v2600_v5, %v2664_v10  ;;  %v2602_v55 = vmax.f32 %v2432_v8, %v2538_v31  ;;  %v2442_v29 = vadd.f32 %v6936_v63, %v8729_v4  ;;  %v2436_v20 = vpop.f32.mrb[55].mxu0  ;;  %7030 = vmatmul.mubr.msk.f32.gmra.mrb[68].mxu1 %vm11626_vm2, %v2726_v47  ;;  %v3023_v62 = vsel %vm11626_vm2, %v2861_v34, 0.0  ;;  %v9055_v4 = vld [vmem:[%s11552_s5] ss:$0 sm:$0xff] }
 0x25f   : > { %v9045_v0 = vmax.f32 %v2599_v51, %v2663_v14  ;;  %v2601_v17 = vmax.f32 %v2427_v18, %v2537_v43  ;;  %v2437_v24 = vadd.f32 %v2436_v20, %v8731_v32  ;;  %3024 = vadd.xlane.f32.xlu1 %v3023_v62  ;;  %v9079_v51 = vpop.permute.xlu0 %4073 }
 0x260   : > { %2792 = vst.msk [vmem:[%s7711_s30 + $0x198] sm:$0xff] %vm11626_vm2, %v2728_v46  ;;  %v2666_v33 = vmul.f32 0.01, %v2602_v55  ;;  %v2540_v27 = vmul.f32 0.01, %v2442_v29  ;;  %v2863_v30 = vmul.f32 %v9055_v4, %v2728_v46  ;;  %11857 = vst [vmem:[#allocation14_spill] sm:$0xff] %v9079_v51  ;;  %vm11639_vm11 = vcmp.eq.s32.totalorder %v9079_v51, %v8271_v53 }
 0x261   : > { %2791 = vst.msk [vmem:[%s7711_s30 + $0x190] sm:$0xff] %vm11626_vm2, %v9045_v0  ;;  %v2665_v37 = vmul.f32 0.01, %v2601_v17  ;;  %v2539_v32 = vmul.f32 0.01, %v2437_v24  ;;  %v6939_v35 = vpop.f32.mrb[56].mxu0  ;;  %7032 = vmatprep.mubr.msk.f32.mxu1 %vm11626_vm2, %v9045_v0 }
 0x262   : > { %v2730_v41 = vmax.f32 %v2602_v55, %v2666_v33  ;;  %v2604_v42 = vmax.f32 %v2442_v29, %v2540_v27  ;;  %v2452_v19 = vadd.f32 %v6939_v35, %v8733_v26  ;;  %v2446_v9 = vpop.f32.mrb[57].mxu0  ;;  %7033 = vmatmul.mubr.msk.f32.gmra.mrb[70].mxu1 %vm11626_vm2, %v2728_v46  ;;  %v3029_v57 = vsel %vm11626_vm2, %v2863_v30, 0.0  ;;  %v7519_v29 = vld [vmem:[%s7701_s24 + $0xd8] sm:$0xff] }
 0x263   : > { %v9068_v21 = vmax.f32 %v2601_v17, %v2665_v37  ;;  %v2603_v61 = vmax.f32 %v2437_v24, %v2539_v32  ;;  %v2447_v59 = vadd.f32 %v2446_v9, %v8735_v11  ;;  %3030 = vadd.xlane.f32.xlu1 %v3029_v57 }
 0x264   : > { %2794 = vst.msk [vmem:[%s7711_s30 + $0x1a8] sm:$0xff] %vm11626_vm2, %v2730_v41  ;;  %v2668_v47 = vmul.f32 0.01, %v2604_v42  ;;  %v2542_v5 = vmul.f32 0.01, %v2452_v19  ;;  %v2865_v8 = vmul.f32 %v9055_v4, %v2730_v41 }
 0x265   : > { %2793 = vst.msk [vmem:[%s7711_s30 + $0x1a0] sm:$0xff] %vm11626_vm2, %v9068_v21  ;;  %v2667_v26 = vmul.f32 0.01, %v2603_v61  ;;  %v2541_v56 = vmul.f32 0.01, %v2447_v59  ;;  %v6942_v50 = vpop.f32.mrb[58].mxu0  ;;  %7035 = vmatprep.mubr.msk.f32.mxu1 %vm11626_vm2, %v9068_v21 }
 0x266   : > { %v2732_v11 = vmax.f32 %v2604_v42, %v2668_v47  ;;  %v2606_v18 = vmax.f32 %v2452_v19, %v2542_v5  ;;  %v2462_v10 = vadd.f32 %v6942_v50, %v8737_v52  ;;  %v2456_v31 = vpop.f32.mrb[59].mxu0  ;;  %7036 = vmatmul.mubr.msk.f32.gmra.mrb[72].mxu1 %vm11626_vm2, %v2730_v41  ;;  %v3035_v34 = vsel %vm11626_vm2, %v2865_v8, 0.0  ;;  %v9091_v52 = vpop.permute.xlu1 %4082 }
 0x267   : > { %v9084_v14 = vmax.f32 %v2603_v61, %v2667_v26  ;;  %v2605_v43 = vmax.f32 %v2447_v59, %v2541_v56  ;;  %v2457_v63 = vadd.f32 %v2456_v31, %v8739_v36  ;;  %3036 = vadd.xlane.f32.xlu1 %v3035_v34  ;;  %11858 = vst [vmem:[#allocation13_spill] sm:$0xff] %v9091_v52  ;;  %v9104_v42 = vpop.permute.xlu0 %4079 }
 0x268   : > { %2796 = vst.msk [vmem:[%s7711_s30 + $0x1b8] sm:$0xff] %vm11626_vm2, %v2732_v11  ;;  %v2670_v46 = vmul.f32 0.01, %v2606_v18  ;;  %v2544_v55 = vmul.f32 0.01, %v2462_v10  ;;  %v2867_v20 = vmul.f32 %v9055_v4, %v2732_v11  ;;  %11859 = vst [vmem:[#allocation15_spill] sm:$0xff] %v9104_v42 }
 0x269   : > { %4115 = vperm.xlu0 %7256, %v7519_v29   ;;  %2795 = vst.msk [vmem:[%s7711_s30 + $0x1b0] sm:$0xff] %vm11626_vm2, %v9084_v14  ;;  %v2669_v62 = vmul.f32 0.01, %v2605_v43  ;;  %v2543_v17 = vmul.f32 0.01, %v2457_v63  ;;  %v6945_v24 = vpop.f32.mrb[60].mxu0  ;;  %7038 = vmatprep.mubr.msk.f32.mxu1 %vm11626_vm2, %v9084_v14 }
 0x26a   : > { %v2734_v36 = vmax.f32 %v2606_v18, %v2670_v46  ;;  %v2608_v33 = vmax.f32 %v2462_v10, %v2544_v55  ;;  %v2472_v27 = vadd.f32 %v6945_v24, %v8741_v23  ;;  %v2466_v30 = vpop.f32.mrb[61].mxu0  ;;  %7039 = vmatmul.mubr.msk.f32.gmra.mrb[74].mxu1 %vm11626_vm2, %v2732_v11  ;;  %v3041_v37 = vsel %vm11626_vm2, %v2867_v20, 0.0  ;;  %v9117_v56 = vpop.permute.xlu1 %4088 }
 0x26b   : > { %v9101_v32 = vmax.f32 %v2605_v43, %v2669_v62  ;;  %v2607_v35 = vmax.f32 %v2457_v63, %v2543_v17  ;;  %v2467_v41 = vadd.f32 %v2466_v30, %v8743_v40  ;;  %3042 = vadd.xlane.f32.xlu1 %v3041_v37  ;;  %11860 = vst [vmem:[#allocation25_spill] sm:$0xff] %v9117_v56  ;;  %v9130_v63 = vpop.permute.xlu0 %4085 }
 0x26c   : > { %2798 = vst.msk [vmem:[%s7711_s30 + $0x1c8] sm:$0xff] %vm11626_vm2, %v2734_v36  ;;  %v2672_v19 = vmul.f32 0.01, %v2608_v33  ;;  %v2546_v9 = vmul.f32 0.01, %v2472_v27  ;;  %v2869_v57 = vmul.f32 %v9055_v4, %v2734_v36  ;;  %11861 = vst [vmem:[#allocation26_spill] sm:$0xff] %v9130_v63 }
 0x26d   : > { %2797 = vst.msk [vmem:[%s7711_s30 + $0x1c0] sm:$0xff] %vm11626_vm2, %v9101_v32  ;;  %v2671_v23 = vmul.f32 0.01, %v2607_v35  ;;  %v2545_v61 = vmul.f32 0.01, %v2467_v41  ;;  %v6948_v59 = vpop.f32.mrb[62].mxu0  ;;  %7041 = vmatprep.mubr.msk.f32.mxu1 %vm11626_vm2, %v9101_v32 }
 0x26e   : > { %v2736_v40 = vmax.f32 %v2608_v33, %v2672_v19  ;;  %v2610_v47 = vmax.f32 %v2472_v27, %v2546_v9  ;;  %v2482_v5 = vadd.f32 %v6948_v59, %v8745_v54  ;;  %v2476_v8 = vpop.f32.mrb[63].mxu0  ;;  %7042 = vmatmul.mubr.msk.f32.gmra.mrb[76].mxu1 %vm11626_vm2, %v2734_v36  ;;  %v3047_v26 = vsel %vm11626_vm2, %v2869_v57, 0.0  ;;  %v9139_v24 = vpop.permute.xlu1 %4094 }
 0x26f   : > { %v9119_v50 = vmax.f32 %v2607_v35, %v2671_v23  ;;  %v2609_v11 = vmax.f32 %v2467_v41, %v2545_v61  ;;  %v2477_v18 = vadd.f32 %v2476_v8, %v8747_v6  ;;  %3048 = vadd.xlane.f32.xlu1 %v3047_v26  ;;  %11862 = vst [vmem:[#allocation27_spill] sm:$0xff] %v9139_v24  ;;  %v9150_v37 = vpop.permute.xlu0 %4091 }
 0x270   : > { %2800 = vst.msk [vmem:[%s7711_s30 + $0x1d8] sm:$0xff] %vm11626_vm2, %v2736_v40  ;;  %v2674_v10 = vmul.f32 0.01, %v2610_v47  ;;  %v2548_v31 = vmul.f32 0.01, %v2482_v5  ;;  %v2871_v54 = vmul.f32 %v9055_v4, %v2736_v40  ;;  %11863 = vst [vmem:[#allocation28_spill] sm:$0xff] %v9150_v37  ;;  %v2856_v23 = vmul.f32 %v9055_v4, %v8995_v7 }
 0x271   : > { %2799 = vst.msk [vmem:[%s7711_s30 + $0x1d0] sm:$0xff] %vm11626_vm2, %v9119_v50  ;;  %v2673_v34 = vmul.f32 0.01, %v2609_v11  ;;  %v2547_v43 = vmul.f32 0.01, %v2477_v18  ;;  %7044 = vmatprep.mubr.msk.f32.mxu1 %vm11626_vm2, %v9119_v50  ;;  %v2860_v26 = vmul.f32 %v9055_v4, %v9029_v2  ;;  %v7520_v7 = vld [vmem:[%s7701_s24 + $0xe0] sm:$0xff] }
 0x272   : > { %v2738_v6 = vmax.f32 %v2610_v47, %v2674_v10  ;;  %v2612_v46 = vmax.f32 %v2482_v5, %v2548_v31  ;;  %7045 = vmatmul.mubr.msk.f32.gmra.mrb[78].mxu1 %vm11626_vm2, %v2736_v40  ;;  %v3053_v55 = vsel %vm11626_vm2, %v2871_v54, 0.0  ;;  %v9162_v19 = vpop.permute.xlu1 %4100  ;;  %v3008_v59 = vsel %vm11626_vm2, %v2856_v23, 0.0  ;;  %v7521_v54 = vld [vmem:[%s7701_s24 + $0xf0] sm:$0xff] }
 0x273   : > { %v9134_v29 = vmax.f32 %v2609_v11, %v2673_v34  ;;  %v2611_v20 = vmax.f32 %v2477_v18, %v2547_v43  ;;  %3054 = vadd.xlane.f32.xlu1 %v3053_v55  ;;  %11864 = vst [vmem:[#allocation29_spill] sm:$0xff] %v9162_v19  ;;  %v9164_v9 = vpop.permute.xlu0 %4097  ;;  %v2858_v40 = vmul.f32 %v9055_v4, %v9013_v28  ;;  %v3020_v28 = vsel %vm11626_vm2, %v2860_v26, 0.0  ;;  %v7526_v26 = vld [vmem:[%s7701_s24 + $0x140] sm:$0xff] }
 0x274   : > { %2802 = vst.msk [vmem:[%s7711_s30 + $0x1e8] sm:$0xff] %vm11626_vm2, %v2738_v6  ;;  %v2676_v62 = vmul.f32 0.01, %v2612_v46  ;;  %v2873_v17 = vmul.f32 %v9055_v4, %v2738_v6  ;;  %11865 = vst [vmem:[#allocation30_spill] sm:$0xff] %v9164_v9  ;;  %v2862_v10 = vmul.f32 %v9055_v4, %v9045_v0  ;;  %v2864_v34 = vmul.f32 %v9055_v4, %v9068_v21 }
 0x275   : > { %2801 = vst.msk [vmem:[%s7711_s30 + $0x1e0] sm:$0xff] %vm11626_vm2, %v9134_v29  ;;  %v2675_v36 = vmul.f32 0.01, %v2611_v20  ;;  %7047 = vmatprep.mubr.msk.f32.mxu1 %vm11626_vm2, %v9134_v29  ;;  %v3014_v8 = vsel %vm11626_vm2, %v2858_v40, 0.0  ;;  %v2866_v55 = vmul.f32 %v9055_v4, %v9084_v14  ;;  %v2872_v40 = vmul.f32 %v9055_v4, %v9134_v29 }
 0x276   : > { %v2740_v33 = vmax.f32 %v2612_v46, %v2676_v62  ;;  %7048 = vmatmul.mubr.msk.f32.gmra.mrb[80].mxu1 %vm11626_vm2, %v2738_v6  ;;  %v3059_v27 = vsel %vm11626_vm2, %v2873_v17, 0.0  ;;  %v9166_v57 = vpop.permute.xlu1 %4106  ;;  %v3026_v2 = vsel %vm11626_vm2, %v2862_v10, 0.0  ;;  %v7522_v46 = vld [vmem:[%s7701_s24 + $0x100] sm:$0xff]  ;;  %v3032_v0 = vsel %vm11626_vm2, %v2864_v34, 0.0  ;;  %v7523_v62 = vld [vmem:[%s7701_s24 + $0x110] sm:$0xff] }
 0x277   : > { %v9148_v30 = vmax.f32 %v2611_v20, %v2675_v36  ;;  %3060 = vadd.xlane.f32.xlu1 %v3059_v27  ;;  %11866 = vst [vmem:[#allocation31_spill] sm:$0xff] %v9166_v57  ;;  %v9170_v61 = vpop.permute.xlu0 %4103  ;;  %v3038_v17 = vsel %vm11626_vm2, %v2866_v55, 0.0  ;;  %v2868_v36 = vmul.f32 %v9055_v4, %v9101_v32  ;;  %v7524_v27 = vld [vmem:[%s7701_s24 + $0x120] sm:$0xff]  ;;  %v11945_v51 = vld [vmem:[#allocation27_spill] sm:$0xff] }
 0x278   : > { %2804 = vst.msk [vmem:[%s7711_s30 + $0x1f8] sm:$0xff] %vm11626_vm2, %v2740_v33  ;;  %v2875_v35 = vmul.f32 %v9055_v4, %v2740_v33  ;;  %11867 = vst [vmem:[#allocation32_spill] sm:$0xff] %v9170_v61 }
 0x279   : > { %2803 = vst.msk [vmem:[%s7711_s30 + $0x1f0] sm:$0xff] %vm11626_vm2, %v9148_v30  ;;  %7050 = vmatprep.mubr.msk.f32.mxu1 %vm11626_vm2, %v9148_v30  ;;  %v3044_v14 = vsel %vm11626_vm2, %v2868_v36, 0.0  ;;  %s7623_s30 = smov (!%p6270_p5), 32  }
 0x27a   : > { %7051 = vmatmul.mubr.msk.f32.gmra.mrb[82].mxu1 %vm11626_vm2, %v2740_v33  ;;  %v3065_v41 = vsel %vm11626_vm2, %v2875_v35, 0.0  ;;  %v9175_v47 = vpop.permute.xlu1 %4112  ;;  %v2870_v35 = vmul.f32 %v9055_v4, %v9119_v50 }
 0x27b   : > { %3066 = vadd.xlane.f32.xlu1 %v3065_v41  ;;  %11868 = vst [vmem:[#allocation33_spill] sm:$0xff] %v9175_v47  ;;  %v9177_v5 = vpop.permute.xlu0 %4109 }
 0x27c   : > { %11869 = vst [vmem:[#allocation34_spill] sm:$0xff] %v9177_v5  ;;  %v3050_v32 = vsel %vm11626_vm2, %v2870_v35, 0.0  ;;  %v7532_v35 = vld [vmem:[%s7701_s24 + $0x1a0] sm:$0xff] }
 0x288   : > { %3009 = vadd.xlane.f32.xlu0 %v3008_v59  ;;  %v7525_v59 = vld [vmem:[%s7701_s24 + $0x130] sm:$0xff] }
 0x28a   : > { %v9185_v18 = vpop.xlane.xlu0 %2880 }
 0x28b   : > { %v9182_v11 = vpop.xlane.xlu1 %2877 }
 0x28c   : > { %3015 = vadd.xlane.f32.xlu0 %v3014_v8  ;;  %4118 = vperm.xlu1 %7257, %v7520_v7   ;;  %v3056_v7 = vsel %vm11626_vm2, %v2872_v40, 0.0  ;;  %v7533_v40 = vld [vmem:[%s7701_s24 + $0x1b0] sm:$0xff]  ;;  %v3068_v5 = vmul.f32 0.01, %v9182_v11 }
 0x28f   : > { %v9190_v31 = vpop.xlane.xlu1 %2886  ;;  %v9198_v6 = vpop.xlane.xlu0 %2883 }
 0x290   : > { %3021 = vadd.xlane.f32.xlu0 %v3020_v28  ;;  %4124 = vperm.xlu1 %7257, %v7521_v54   ;;  %v2874_v28 = vmul.f32 %v9055_v4, %v9148_v30  ;;  %v7527_v54 = vld [vmem:[%s7701_s24 + $0x150] sm:$0xff]  ;;  %v3071_v61 = vmul.f32 0.01, %v9190_v31 }
 0x291   : > { %v7529_v4 = vld [vmem:[%s7701_s24 + $0x170] sm:$0xff] }
 0x292   : > { %v3062_v29 = vsel %vm11626_vm2, %v2874_v28, 0.0  ;;  %v3135_v56 = vmax.f32 %v9190_v31, %v3071_v61 }
 0x293   : > { %v9196_v43 = vpop.xlane.xlu1 %2892  ;;  %v9207_v21 = vpop.xlane.xlu0 %2889 }
 0x294   : > { %3027 = vadd.xlane.f32.xlu0 %v3026_v2  ;;  %4130 = vperm.xlu1 %7257, %v7522_v46   ;;  %v7528_v46 = vld [vmem:[%s7701_s24 + $0x160] sm:$0xff]  ;;  %v3073_v37 = vmul.f32 0.01, %v9196_v43  ;;  %v3072_v31 = vmul.f32 0.01, %v9207_v21 }
 0x296   : > { %v3137_v61 = vmax.f32 %v9196_v43, %v3073_v37  ;;  %v3136_v37 = vmax.f32 %v9207_v21, %v3072_v31 }
 0x297   : > { %v9204_v20 = vpop.xlane.xlu1 %2898  ;;  %v9220_v23 = vpop.xlane.xlu0 %2895 }
 0x298   : > { %3033 = vadd.xlane.f32.xlu0 %v3032_v0  ;;  %4136 = vperm.xlu1 %7257, %v7523_v62   ;;  %v7530_v62 = vld [vmem:[%s7701_s24 + $0x180] sm:$0xff]  ;;  %v3075_v43 = vmul.f32 0.01, %v9204_v20  ;;  %v3200_v48 = vmul.f32 0.01, %v3136_v37 }
 0x29a   : > { %v9425_v49 = vmax.f32 %v3136_v37, %v3200_v48 }
 0x29b   : > { %v9212_v33 = vpop.xlane.xlu1 %2904  ;;  %v9229_v50 = vpop.xlane.xlu0 %2901 }
 0x29c   : > { %3039 = vadd.xlane.f32.xlu0 %v3038_v17  ;;  %4142 = vperm.xlu1 %7257, %v7524_v27   ;;  %v7531_v27 = vld [vmem:[%s7701_s24 + $0x190] sm:$0xff]  ;;  %11899 = vst [vmem:[#allocation64_spill] sm:$0xff] %v9425_v49  ;;  %v3076_v45 = vmul.f32 0.01, %v9229_v50 }
 0x29f   : > { %v9218_v41 = vpop.xlane.xlu1 %2910  ;;  %v9240_v34 = vpop.xlane.xlu0 %2907 }
 0x2a0   : > { %3045 = vadd.xlane.f32.xlu0 %v3044_v14  ;;  %4148 = vperm.xlu1 %7257, %v7525_v59  }
 0x2a3   : > { %v9226_v8 = vpop.xlane.xlu1 %2916  ;;  %v9246_v30 = vpop.xlane.xlu0 %2913 }
 0x2a4   : > { %3051 = vadd.xlane.f32.xlu0 %v3050_v32  ;;  %4154 = vperm.xlu1 %7257, %v7526_v26   ;;  %v7534_v26 = vld [vmem:[%s7701_s24 + $0xe8] sm:$0xff] }
 0x2a7   : > { %v9234_v10 = vpop.xlane.xlu1 %2922  ;;  %v9253_v36 = vpop.xlane.xlu0 %2919 }
 0x2a8   : > { %3057 = vadd.xlane.f32.xlu0 %v3056_v7  ;;  %4160 = vperm.xlu1 %7257, %v7527_v54   ;;  %v7535_v54 = vld [vmem:[%s7701_s24 + $0x1c0] sm:$0xff] }
 0x2ab   : > { %v9238_v2 = vpop.xlane.xlu1 %2928  ;;  %v9259_v59 = vpop.xlane.xlu0 %2925 }
 0x2ac   : > { %3063 = vadd.xlane.f32.xlu0 %v3062_v29  ;;  %4166 = vperm.xlu1 %7257, %v7528_v46   ;;  %v7536_v29 = vld [vmem:[%s7701_s24 + $0xf8] sm:$0xff] }
 0x2af   : > { %v9243_v0 = vpop.xlane.xlu1 %2934  ;;  %v9267_v28 = vpop.xlane.xlu0 %2931 }
 0x2b0   : > { %4172 = vperm.xlu1 %7257, %v7529_v4   ;;  %11875 = vst [vmem:[#allocation40_spill] sm:$0xff] %v9267_v28  ;;  %v7537_v4 = vld [vmem:[%s7701_s24 + $0x1d0] sm:$0xff] }
 0x2b3   : > { %v9248_v55 = vpop.xlane.xlu1 %2940 }
 0x2b4   : > { %11870 = vst [vmem:[#allocation35_spill] sm:$0xff] %v9248_v55  ;;  %4178 = vperm.xlu1 %7257, %v7530_v62   ;;  %v7538_v62 = vld [vmem:[%s7701_s24 + $0x108] sm:$0xff] }
 0x2b7   : > { %v9251_v17 = vpop.xlane.xlu1 %2946 }
 0x2b8   : > { %11871 = vst [vmem:[#allocation36_spill] sm:$0xff] %v9251_v17  ;;  %4184 = vperm.xlu1 %7257, %v7531_v27   ;;  %v9275_v27 = vpop.xlane.xlu0 %2937  ;;  %v7547_v17 = vld [vmem:[%s7701_s24 + $0x178] sm:$0xff] }
 0x2b9   : > { %11877 = vst [vmem:[#allocation42_spill] sm:$0xff] %v9275_v27  ;;  %v3201_v27 = vmul.f32 0.01, %v3137_v61 }
 0x2bb   : > { %v9256_v14 = vpop.xlane.xlu1 %2952 }
 0x2bc   : > { %11872 = vst [vmem:[#allocation37_spill] sm:$0xff] %v9256_v14  ;;  %4190 = vperm.xlu1 %7257, %v7532_v35   ;;  %v9285_v58 = vpop.xlane.xlu0 %2943  ;;  %v3070_v14 = vmul.f32 0.01, %v9198_v6 }
 0x2bd   : > { %11880 = vst [vmem:[#allocation45_spill] sm:$0xff] %v9285_v58 }
 0x2bf   : > { %v9261_v32 = vpop.xlane.xlu1 %2958 }
 0x2c0   : > { %11873 = vst [vmem:[#allocation38_spill] sm:$0xff] %v9261_v32  ;;  %4196 = vperm.xlu1 %7257, %v7533_v40   ;;  %v7539_v40 = vld [vmem:[%s7701_s24 + $0x1e0] sm:$0xff] }
 0x2c2   : > { %4121 = vperm.xlu0 %7256, %v7534_v26   ;;  %v7540_v26 = vld [vmem:[%s7701_s24 + $0x118] sm:$0xff] }
 0x2c3   : > { %v9265_v7 = vpop.xlane.xlu1 %2964 }
 0x2c4   : > { %11874 = vst [vmem:[#allocation39_spill] sm:$0xff] %v9265_v7  ;;  %4202 = vperm.xlu1 %7257, %v7535_v54   ;;  %v9298_v7 = vpop.xlane.xlu0 %2949 }
 0x2c5   : > { %11882 = vst [vmem:[#allocation47_spill] sm:$0xff] %v9298_v7 }
 0x2c6   : > { %4127 = vperm.xlu0 %7256, %v7536_v29  }
 0x2c7   : > { %v9271_v46 = vpop.xlane.xlu1 %2970 }
 0x2c8   : > { %11876 = vst [vmem:[#allocation41_spill] sm:$0xff] %v9271_v46  ;;  %4208 = vperm.xlu1 %7257, %v7537_v4   ;;  %v7541_v4 = vld [vmem:[%s7701_s24 + $0x1f0] sm:$0xff]  ;;  %v9316_v19 = vpop.xlane.xlu0 %2955 }
 0x2c9   : > { %11885 = vst [vmem:[#allocation50_spill] sm:$0xff] %v9316_v19  ;;  %v7546_v19 = vld [vmem:[%s7701_s24 + $0x168] sm:$0xff] }
 0x2ca   : > { %4133 = vperm.xlu0 %7256, %v7538_v62   ;;  %v7542_v62 = vld [vmem:[%s7701_s24 + $0x128] sm:$0xff] }
 0x2cb   : > { %v9277_v35 = vpop.xlane.xlu1 %2976 }
 0x2cc   : > { %11878 = vst [vmem:[#allocation43_spill] sm:$0xff] %v9277_v35  ;;  %4214 = vperm.xlu1 %7257, %v7539_v40  }
 0x2ce   : > { %4139 = vperm.xlu0 %7256, %v7540_v26   ;;  %v7543_v26 = vld [vmem:[%s7701_s24 + $0x138] sm:$0xff] }
 0x2cf   : > { %v9281_v54 = vpop.f32.mrb[20].mxu1  ;;  %v9283_v29 = vpop.xlane.xlu1 %2982 }
 0x2d0   : > { %11879 = vst [vmem:[#allocation44_spill] sm:$0xff] %v9283_v29  ;;  %v9287_v38 = vpop.f32.mrb[21].mxu1  ;;  %4220 = vperm.xlu1 %7257, %v7541_v4   ;;  %v7544_v4 = vld [vmem:[%s7701_s24 + $0x148] sm:$0xff] }
 0x2d1   : > { %v11949_v25 = vld [vmem:[#allocation50_spill] sm:$0xff] }
 0x2d2   : > { %4145 = vperm.xlu0 %7256, %v7542_v62   ;;  %v3094_v3 = vmul.f32 0.01, %v11949_v25 }
 0x2d3   : > { %v9291_v46 = vpop.f32.mrb[22].mxu1  ;;  %v9293_v35 = vpop.xlane.xlu1 %2988 }
 0x2d4   : > { %11881 = vst [vmem:[#allocation46_spill] sm:$0xff] %v9293_v35  ;;  %v9295_v40 = vpop.f32.mrb[23].mxu1  ;;  %v3069_v35 = vmul.f32 0.01, %v9185_v18 }
 0x2d6   : > { %4151 = vperm.xlu0 %7256, %v7543_v26   ;;  %v3133_v7 = vmax.f32 %v9185_v18, %v3069_v35  ;;  %v3134_v18 = vmax.f32 %v9198_v6, %v3070_v14  ;;  %v3199_v35 = vmul.f32 0.01, %v3135_v56 }
 0x2d7   : > { %v9300_v29 = vpop.f32.mrb[24].mxu1  ;;  %v9302_v32 = vpop.xlane.xlu1 %2994 }
 0x2d8   : > { %11883 = vst [vmem:[#allocation48_spill] sm:$0xff] %v9302_v32  ;;  %v9304_v47 = vpop.f32.mrb[25].mxu1  ;;  %v7545_v32 = vld [vmem:[%s7701_s24 + $0x158] sm:$0xff]  ;;  %v3198_v63 = vmul.f32 0.01, %v3134_v18 }
 0x2da   : > { %4157 = vperm.xlu0 %7256, %v7544_v4  }
 0x2db   : > { %v9307_v62 = vpop.f32.mrb[26].mxu1  ;;  %v9309_v57 = vpop.xlane.xlu1 %3000 }
 0x2dc   : > { %11884 = vst [vmem:[#allocation49_spill] sm:$0xff] %v9309_v57  ;;  %v9313_v26 = vpop.f32.mrb[27].mxu1  ;;  %v3132_v57 = vmax.f32 %v9182_v11, %v3068_v5 }
 0x2de   : > { %4163 = vperm.xlu0 %7256, %v7545_v32   ;;  %v9331_v32 = vpop.xlane.xlu0 %2961  ;;  %v3196_v58 = vmul.f32 0.01, %v3132_v57 }
 0x2df   : > { %v9319_v9 = vpop.f32.mrb[28].mxu1  ;;  %v9321_v4 = vpop.xlane.xlu1 %3006  ;;  %11887 = vst [vmem:[#allocation52_spill] sm:$0xff] %v9331_v32 }
 0x2e0   : > { %11886 = vst [vmem:[#allocation51_spill] sm:$0xff] %v9321_v4  ;;  %v9326_v24 = vpop.f32.mrb[29].mxu1  ;;  %v3197_v4 = vmul.f32 0.01, %v3133_v7  ;;  %v9347_v55 = vmax.f32 %v3132_v57, %v3196_v58  ;;  %v3074_v58 = vmul.f32 0.01, %v9220_v23 }
 0x2e2   : > { %4169 = vperm.xlu0 %7256, %v7546_v19   ;;  %v9345_v32 = vmax.f32 %v3133_v7, %v3197_v4  ;;  %11890 = vst [vmem:[#allocation55_spill] sm:$0xff] %v9347_v55  ;;  %v9357_v42 = vpop.xlane.xlu0 %2967  ;;  %v4417_v21 = vsel %vm4225_vm12, %v9347_v55, -1e+30  ;;  %v9377_v7 = vmax.f32 %v3134_v18, %v3198_v63  ;;  %v3138_v63 = vmax.f32 %v9220_v23, %v3074_v58 }
 0x2e3   : > { %v9333_v52 = vpop.f32.mrb[30].mxu1  ;;  %11893 = vst [vmem:[#allocation58_spill] sm:$0xff] %v9357_v42  ;;  %v3906_v18 = vmul.f32 0.01, %v9281_v54 }
 0x2e4   : > { %v9336_v5 = vpop.f32.mrb[31].mxu1  ;;  %v9338_v11 = vpop.xlane.xlu1 %3012  ;;  %11889 = vst [vmem:[#allocation54_spill] sm:$0xff] %v9345_v32  ;;  %v4418_v57 = vsel %vm4226_vm3, %v9345_v32, -1e+30  ;;  %11894 = vst [vmem:[#allocation59_spill] sm:$0xff] %v9377_v7  ;;  %v3139_v32 = vmax.f32 %v9204_v20, %v3075_v43  ;;  %v9403_v20 = vsel %vm4481_vm14, %v4417_v21, -inf }
 0x2e5   : > { %11888 = vst [vmem:[#allocation53_spill] sm:$0xff] %v9338_v11  ;;  %v9353_v11 = vmax.f32 %v3135_v56, %v3199_v35  ;;  %v4419_v58 = vsel %vm4227_vm15, %v9377_v7, -1e+30  ;;  %v3202_v39 = vmul.f32 0.01, %v3138_v63  ;;  %v3970_v7 = vmax.f32 %v9281_v54, %v3906_v18 }
 0x2e6   : > { %4175 = vperm.xlu0 %7256, %v7547_v17   ;;  %v7548_v17 = vld [vmem:[%s7701_s24 + $0x188] sm:$0xff]  ;;  %v9431_v42 = vsel %vm4481_vm14, %v4419_v58, -inf  ;;  %v7551_v58 = vld [vmem:[%s7701_s24 + $0x1b8] sm:$0xff] }
 0x2e7   : > { %v9343_v19 = vpop.f32.mrb[32].mxu1  ;;  %11892 = vst [vmem:[#allocation57_spill] sm:$0xff] %v9353_v11  ;;  %v4420_v31 = vsel %vm4228_vm13, %v9353_v11, -1e+30 }
 0x2e8   : > { %v9349_v6 = vpop.f32.mrb[33].mxu1  ;;  %v9351_v14 = vpop.xlane.xlu1 %3018  ;;  %v9411_v23 = vsel %vm4481_vm14, %v4420_v31, -inf  ;;  %v3203_v31 = vmul.f32 0.01, %v3139_v32 }
 0x2e9   : > { %11891 = vst [vmem:[#allocation56_spill] sm:$0xff] %v9351_v14  ;;  %v7549_v14 = vld [vmem:[%s7701_s24 + $0x198] sm:$0xff] }
 0x2ea   : > { %4181 = vperm.xlu0 %7256, %v7548_v17   ;;  %v9387_v17 = vmax.f32 %v3137_v61, %v3201_v27  ;;  %v9400_v27 = vsel %vm4481_vm14, %v4418_v57, -inf  ;;  %v9405_v61 = vpop.xlane.xlu0 %2973 }
 0x2eb   : > { %v9367_v56 = vpop.f32.mrb[34].mxu1  ;;  %11897 = vst [vmem:[#allocation62_spill] sm:$0xff] %v9405_v61  ;;  %v3908_v61 = vmul.f32 0.01, %v9291_v46 }
 0x2ec   : > { %v9379_v4 = vpop.f32.mrb[35].mxu1  ;;  %v9381_v35 = vpop.xlane.xlu1 %3024  ;;  %11896 = vst [vmem:[#allocation61_spill] sm:$0xff] %v9387_v17  ;;  %v4422_v55 = vsel %vm11648_vm1, %v9387_v17, -1e+30  ;;  %v3907_v17 = vmul.f32 0.01, %v9295_v40 }
 0x2ed   : > { %11895 = vst [vmem:[#allocation60_spill] sm:$0xff] %v9381_v35  ;;  %v7550_v35 = vld [vmem:[%s7701_s24 + $0x1a8] sm:$0xff]  ;;  %v9436_v16 = vsel %vm4481_vm14, %v4422_v55, -inf }
 0x2ee   : > { %4187 = vperm.xlu0 %7256, %v7549_v14   ;;  %v3905_v14 = vmul.f32 0.01, %v9287_v38 }
 0x2ef   : > { %v6983_v43 = vpop.f32.mrb[36].mxu1 }
 0x2f0   : > { %v3922_v57 = vmul.f32 0.01, %v6983_v43  ;;  %v3666_v11 = vpop.f32.mrb[37].mxu1  ;;  %v9417_v21 = vpop.xlane.xlu1 %3030  ;;  %v3969_v1 = vmax.f32 %v9287_v38, %v3905_v14  ;;  %v4421_v38 = vsel %vm11662_vm0, %v9425_v49, -1e+30  ;;  %v9447_v14 = vmax.f32 %v3139_v32, %v3203_v31 }
 0x2f1   : > { %11898 = vst [vmem:[#allocation63_spill] sm:$0xff] %v9417_v21  ;;  %v3921_v12 = vmul.f32 0.01, %v3666_v11  ;;  %v3971_v32 = vmax.f32 %v9295_v40, %v3907_v17  ;;  %v3909_v31 = vmul.f32 0.01, %v9304_v47 }
 0x2f2   : > { %4193 = vperm.xlu0 %7256, %v7550_v35   ;;  %v3986_v21 = vmax.f32 %v6983_v43, %v3922_v57  ;;  %v3077_v35 = vmul.f32 0.01, %v9212_v33  ;;  %11901 = vst [vmem:[#allocation66_spill] sm:$0xff] %v9447_v14  ;;  %v3972_v57 = vmax.f32 %v9291_v46, %v3908_v61  ;;  %v4424_v40 = vsel %vm11634_vm4, %v9447_v14, -1e+30 }
 0x2f3   : > { %v3985_v48 = vmax.f32 %v3666_v11, %v3921_v12  ;;  %v6986_v37 = vpop.f32.mrb[38].mxu1  ;;  %v9449_v12 = vpop.xlane.xlu0 %2979 }
 0x2f4   : > { %v9439_v28 = vpack.i.bf16 %v3970_v7, %v3986_v21  ;;  %v3924_v54 = vmul.f32 0.01, %v6986_v37  ;;  %v3676_v18 = vpop.f32.mrb[39].mxu1  ;;  %v9441_v43 = vpop.xlane.xlu1 %3036  ;;  %v9454_v7 = vmax.f32 %v3138_v63, %v3202_v39  ;;  %v3910_v21 = vmul.f32 0.01, %v9300_v29 }
 0x2f5   : > { %v9451_v11 = vpack.i.bf16 %v3969_v1, %v3985_v48  ;;  %v3923_v55 = vmul.f32 0.01, %v3676_v18  ;;  %v9464_v39 = vsel %vm4481_vm14, %v4421_v38, -inf  ;;  %v3141_v17 = vmax.f32 %v9212_v33, %v3077_v35 }
 0x2f6   : > { %11900 = vst [vmem:[#allocation65_spill] sm:$0xff] %v9439_v28  ;;  %4199 = vperm.xlu0 %7256, %v7551_v58   ;;  %11903 = vst [vmem:[#allocation68_spill] sm:$0xff] %v9454_v7  ;;  %v3988_v28 = vmax.f32 %v6986_v37, %v3924_v54  ;;  %v3974_v38 = vmax.f32 %v9300_v29, %v3910_v21  ;;  %v3912_v58 = vmul.f32 0.01, %v9307_v62  ;;  %v3911_v33 = vmul.f32 0.01, %v9313_v26 }
 0x2f7   : > { %11902 = vst [vmem:[#allocation67_spill] sm:$0xff] %v9451_v11  ;;  %v3987_v49 = vmax.f32 %v3676_v18, %v3923_v55  ;;  %v6989_v1 = vpop.f32.mrb[40].mxu1  ;;  %v7552_v55 = vld [vmem:[%s7701_s24 + $0x1c8] sm:$0xff]  ;;  %v3140_v48 = vmax.f32 %v9229_v50, %v3076_v45  ;;  %v9497_v45 = vsel %vm4481_vm14, %v4424_v40, -inf }
 0x2f8   : > { %v9466_v63 = vpack.i.bf16 %v3972_v57, %v3988_v28  ;;  %v3926_v46 = vmul.f32 0.01, %v6989_v1  ;;  %v3686_v61 = vpop.f32.mrb[41].mxu1  ;;  %v9468_v37 = vpop.xlane.xlu1 %3042  ;;  %v4423_v28 = vsel %vm11647_vm5, %v9454_v7, -1e+30 }
 0x2f9   : > { %v9475_v54 = vpack.i.bf16 %v3971_v32, %v3987_v49  ;;  %v3925_v18 = vmul.f32 0.01, %v3686_v61  ;;  %v3973_v49 = vmax.f32 %v9304_v47, %v3909_v31  ;;  %v9500_v47 = vsel %vm4481_vm14, %v4423_v28, -inf }
 0x2fa   : > { %11904 = vst [vmem:[#allocation69_spill] sm:$0xff] %v9466_v63  ;;  %4205 = vperm.xlu0 %7256, %v7552_v55   ;;  %v3990_v57 = vmax.f32 %v6989_v1, %v3926_v46  ;;  %v9485_v63 = vpop.xlane.xlu0 %2985  ;;  %v7553_v46 = vld [vmem:[%s7701_s24 + $0x1d8] sm:$0xff]  ;;  %v3204_v40 = vmul.f32 0.01, %v3140_v48  ;;  %v3975_v28 = vmax.f32 %v9313_v26, %v3911_v33 }
 0x2fb   : > { %11905 = vst [vmem:[#allocation70_spill] sm:$0xff] %v9475_v54  ;;  %v3989_v35 = vmax.f32 %v3686_v61, %v3925_v18  ;;  %v6992_v32 = vpop.f32.mrb[42].mxu1  ;;  %v3079_v54 = vmul.f32 0.01, %v9218_v41  ;;  %v3205_v61 = vmul.f32 0.01, %v3141_v17  ;;  %v3976_v18 = vmax.f32 %v9307_v62, %v3912_v58 }
 0x2fc   : > { %v9492_v29 = vpack.i.bf16 %v3974_v38, %v3990_v57  ;;  %v3928_v21 = vmul.f32 0.01, %v6992_v32  ;;  %v3696_v1 = vpop.f32.mrb[43].mxu1  ;;  %v3914_v38 = vmul.f32 0.01, %v9319_v9  ;;  %v9509_v55 = vpop.xlane.xlu1 %3048 }
 0x2fd   : > { %v9502_v50 = vpack.i.bf16 %v3973_v49, %v3989_v35  ;;  %v3927_v31 = vmul.f32 0.01, %v3696_v1  ;;  %v3913_v49 = vmul.f32 0.01, %v9326_v24 }
 0x2fe   : > { %11906 = vst [vmem:[#allocation71_spill] sm:$0xff] %v9492_v29  ;;  %4211 = vperm.xlu0 %7256, %v7553_v46   ;;  %v3992_v57 = vmax.f32 %v6992_v32, %v3928_v21  ;;  %v3143_v21 = vmax.f32 %v9218_v41, %v3079_v54  ;;  %v9521_v14 = vpop.xlane.xlu0 %2991  ;;  %v3978_v46 = vmax.f32 %v9319_v9, %v3914_v38  ;;  %v3915_v41 = vmul.f32 0.01, %v9336_v5 }
 0x2ff   : > { %11907 = vst [vmem:[#allocation72_spill] sm:$0xff] %v9502_v50  ;;  %v3991_v35 = vmax.f32 %v3696_v1, %v3927_v31  ;;  %v6995_v29 = vpop.f32.mrb[44].mxu1  ;;  %v3078_v50 = vmul.f32 0.01, %v9240_v34  ;;  %v7554_v1 = vld [vmem:[%s7701_s24 + $0x1e8] sm:$0xff]  ;;  %v9526_v31 = vmax.f32 %v3141_v17, %v3205_v61  ;;  %v3977_v32 = vmax.f32 %v9326_v24, %v3913_v49  ;;  %v7555_v49 = vld [vmem:[%s7701_s24 + $0x1f8] sm:$0xff] }
 0x300   : > { %v9516_v7 = vpack.i.bf16 %v3976_v18, %v3992_v57  ;;  %v3930_v62 = vmul.f32 0.01, %v6995_v29  ;;  %v3706_v58 = vpop.f32.mrb[45].mxu1  ;;  %v3916_v18 = vmul.f32 0.01, %v9333_v52  ;;  %v9540_v9 = vpop.xlane.xlu1 %3054 }
 0x301   : > { %v9523_v26 = vpack.i.bf16 %v3975_v28, %v3991_v35  ;;  %v3929_v33 = vmul.f32 0.01, %v3706_v58  ;;  %11910 = vst [vmem:[#allocation75_spill] sm:$0xff] %v9526_v31  ;;  %v9535_v35 = vmax.f32 %v9240_v34, %v3078_v50  ;;  %v3081_v17 = vmul.f32 0.01, %v9226_v8 }
 0x302   : > { %11908 = vst [vmem:[#allocation73_spill] sm:$0xff] %v9516_v7  ;;  %4217 = vperm.xlu0 %7256, %v7554_v1   ;;  %v3994_v57 = vmax.f32 %v6995_v29, %v3930_v62  ;;  %v9530_v7 = vmax.f32 %v3140_v48, %v3204_v40  ;;  %v3207_v62 = vmul.f32 0.01, %v3143_v21  ;;  %v3080_v48 = vmul.f32 0.01, %v9246_v30 }
 0x303   : > { %11909 = vst [vmem:[#allocation74_spill] sm:$0xff] %v9523_v26  ;;  %v3993_v54 = vmax.f32 %v3706_v58, %v3929_v33  ;;  %v6998_v28 = vpop.f32.mrb[46].mxu1  ;;  %v4426_v34 = vsel %vm11627_vm6, %v9526_v31, -1e+30  ;;  %v3980_v50 = vmax.f32 %v9333_v52, %v3916_v18  ;;  %v3979_v1 = vmax.f32 %v9336_v5, %v3915_v41 }
 0x304   : > { %11911 = vst [vmem:[#allocation76_spill] sm:$0xff] %v9530_v7  ;;  %v9538_v61 = vpack.i.bf16 %v3978_v46, %v3994_v57  ;;  %v3932_v38 = vmul.f32 0.01, %v6998_v28  ;;  %v3716_v29 = vpop.f32.mrb[47].mxu1  ;;  %v3918_v46 = vmul.f32 0.01, %v9343_v19  ;;  %v3145_v18 = vmax.f32 %v9226_v8, %v3081_v17  ;;  %v9573_v31 = vpop.xlane.xlu1 %3060 }
 0x305   : > { %v9543_v40 = vpack.i.bf16 %v3977_v32, %v3993_v54  ;;  %v3931_v24 = vmul.f32 0.01, %v3716_v29  ;;  %v4425_v33 = vsel %vm11628_vm7, %v9530_v7, -1e+30  ;;  %v9556_v32 = vpop.xlane.xlu0 %2997  ;;  %v3917_v57 = vmul.f32 0.01, %v9349_v6 }
 0x306   : > { %11912 = vst [vmem:[#allocation77_spill] sm:$0xff] %v9538_v61  ;;  %4223 = vperm.xlu0 %7256, %v7555_v49   ;;  %v3996_v58 = vmax.f32 %v6998_v28, %v3932_v38  ;;  %v3206_v52 = vmul.f32 0.01, %v9535_v35  ;;  %v3083_v26 = vmul.f32 0.01, %v9234_v10  ;;  %11916 = vst [vmem:[#allocation81_spill] sm:$0xff] %v9573_v31 }
 0x307   : > { %11913 = vst [vmem:[#allocation78_spill] sm:$0xff] %v9543_v40  ;;  %v3995_v54 = vmax.f32 %v3716_v29, %v3931_v24  ;;  %v7001_v49 = vpop.f32.mrb[48].mxu1  ;;  %v3144_v40 = vmax.f32 %v9246_v30, %v3080_v48  ;;  %v3082_v29 = vmul.f32 0.01, %v9253_v36  ;;  %v3982_v24 = vmax.f32 %v9343_v19, %v3918_v46 }
 0x308   : > { %v9564_v28 = vpack.i.bf16 %v3980_v50, %v3996_v58  ;;  %v3934_v38 = vmul.f32 0.01, %v7001_v49  ;;  %v3726_v61 = vpop.f32.mrb[49].mxu1  ;;  %v3920_v7 = vmul.f32 0.01, %v9367_v56  ;;  %v3981_v50 = vmax.f32 %v9349_v6, %v3917_v57 }
 0x309   : > { %v9568_v5 = vpack.i.bf16 %v3979_v1, %v3995_v54  ;;  %v3933_v41 = vmul.f32 0.01, %v3726_v61  ;;  %v3085_v17 = vmul.f32 0.01, %v9238_v2  ;;  %v3919_v30 = vmul.f32 0.01, %v9379_v4  ;;  %v9589_v57 = vpop.xlane.xlu0 %3003 }
 0x30a   : > { %11914 = vst [vmem:[#allocation79_spill] sm:$0xff] %v9564_v28  ;;  %v3998_v8 = vmax.f32 %v7001_v49, %v3934_v38  ;;  %v9580_v1 = vmax.f32 %v3143_v21, %v3207_v62  ;;  %v3209_v54 = vmul.f32 0.01, %v3145_v18  ;;  %v3208_v6 = vmul.f32 0.01, %v3144_v40 }
 0x30b   : > { %11915 = vst [vmem:[#allocation80_spill] sm:$0xff] %v9568_v5  ;;  %v3997_v48 = vmax.f32 %v3726_v61, %v3933_v41  ;;  %v7004_v58 = vpop.f32.mrb[50].mxu1  ;;  %v3147_v61 = vmax.f32 %v9234_v10, %v3083_v26  ;;  %v3146_v62 = vmax.f32 %v9253_v36, %v3082_v29  ;;  %v3084_v38 = vmul.f32 0.01, %v9259_v59  ;;  %v9604_v29 = vpop.xlane.xlu1 %3066 }
 0x30c   : > { %11917 = vst [vmem:[#allocation82_spill] sm:$0xff] %v9580_v1  ;;  %v9582_v19 = vpack.i.bf16 %v3982_v24, %v3998_v8  ;;  %v3936_v46 = vmul.f32 0.01, %v7004_v58  ;;  %v3736_v28 = vpop.f32.mrb[51].mxu1  ;;  %v3984_v41 = vmax.f32 %v9367_v56, %v3920_v7  ;;  %v3149_v8 = vmax.f32 %v9238_v2, %v3085_v17  ;;  %v11923_v2 = vld [vmem:[#allocation11_spill] sm:$0xff] }
 0x30d   : > { %v9591_v49 = vpack.i.bf16 %v3981_v50, %v3997_v48  ;;  %v3935_v21 = vmul.f32 0.01, %v3736_v28  ;;  %v3983_v5 = vmax.f32 %v9379_v4, %v3919_v30  ;;  %v4496_v26 = vsel %vm4481_vm14, %v4426_v34, -inf  ;;  %v11920_v48 = vld [vmem:[#allocation40_spill] sm:$0xff]  ;;  %v11924_v4 = vld [vmem:[#allocation15_spill] sm:$0xff]  ;;  %v9622_v17 = vpop.permute.xlu0 %4115 }
 0x30e   : > { %11918 = vst [vmem:[#allocation83_spill] sm:$0xff] %v9582_v19  ;;  %v4000_v24 = vmax.f32 %v7004_v58, %v3936_v46  ;;  %v3087_v19 = vmul.f32 0.01, %v9243_v0  ;;  %v4494_v50 = vsel %vm4481_vm14, %v4425_v33, -inf  ;;  %v3086_v36 = vmul.f32 0.01, %v11920_v48 }
 0x30f   : > { %11919 = vst [vmem:[#allocation84_spill] sm:$0xff] %v9591_v49  ;;  %v3999_v11 = vmax.f32 %v3736_v28, %v3935_v21  ;;  %v9599_v10 = vpop.f32.mrb[52].mxu1  ;;  %11921 = vst [vmem:[#allocation40_spill] sm:$0xff] %v9604_v29  ;;  %vm11661_vm2 = vcmp.eq.s32.totalorder %v11923_v2, %v8271_v53  ;;  %vm11660_vm6 = vcmp.eq.s32.totalorder %v11924_v4, %v8271_v53  ;;  %v4428_v7 = vsel %vm11633_vm8, %v9580_v1, -1e+30  ;;  %v11926_v33 = vld [vmem:[#allocation42_spill] sm:$0xff] }
 0x310   : > { %v9606_v49 = vpack.i.bf16 %v3984_v41, %v4000_v24  ;;  %v9608_v56 = vpop.f32.mrb[53].mxu1  ;;  %v9619_v34 = vmax.f32 %v9535_v35, %v3206_v52  ;;  %v3088_v28 = vmul.f32 0.01, %v11926_v33  ;;  %11927 = vst [vmem:[#allocation42_spill] sm:$0xff] %v9622_v17  ;;  %v11929_v58 = vld [vmem:[#allocation26_spill] sm:$0xff]  ;;  %v9628_v46 = vmax.f32 %v3145_v18, %v3209_v54  ;;  %v11932_v52 = vld [vmem:[#allocation35_spill] sm:$0xff] }
 0x311   : > { %v9624_v30 = vpack.i.bf16 %v3983_v5, %v3999_v11  ;;  %vm4242_vm7 = vcmp.eq.s32.totalorder %v11929_v58, %v8271_v53  ;;  %v9630_v21 = vmax.f32 %v3144_v40, %v3208_v6  ;;  %v3211_v41 = vmul.f32 0.01, %v3147_v61  ;;  %v11934_v40 = vld [vmem:[#allocation36_spill] sm:$0xff]  ;;  %v11935_v6 = vld [vmem:[#allocation45_spill] sm:$0xff] }
 0x312   : > { %11922 = vst [vmem:[#allocation85_spill] sm:$0xff] %v9606_v49  ;;  %11925 = vst [vmem:[#allocation86_spill] sm:$0xff] %v9619_v34  ;;  %v3210_v24 = vmul.f32 0.01, %v3146_v62  ;;  %v3213_v49 = vmul.f32 0.01, %v3149_v8  ;;  %v3148_v1 = vmax.f32 %v9259_v59, %v3084_v38  ;;  %v3151_v35 = vmax.f32 %v9243_v0, %v3087_v19 }
 0x313   : > { %11928 = vst [vmem:[#allocation87_spill] sm:$0xff] %v9624_v30  ;;  %11930 = vst [vmem:[#allocation88_spill] sm:$0xff] %v9628_v46  ;;  %v3089_v60 = vmul.f32 0.01, %v11932_v52  ;;  %v9635_v13 = vpop.f32.mrb[54].mxu1  ;;  %v11933_v11 = vmax.f32 %v9400_v27, %v9436_v16  ;;  %v3150_v18 = vmax.f32 %v11920_v48, %v3086_v36  ;;  %v11936_v0 = vmax.f32 %v9403_v20, %v9464_v39  ;;  %v11939_v48 = vld [vmem:[#allocation28_spill] sm:$0xff] }
 0x314   : > { %11931 = vst [vmem:[#allocation89_spill] sm:$0xff] %v9630_v21  ;;  %v3091_v54 = vmul.f32 0.01, %v11934_v40  ;;  %v3090_v30 = vmul.f32 0.01, %v11935_v6  ;;  %v9645_v44 = vpop.f32.mrb[55].mxu1  ;;  %v3152_v27 = vmax.f32 %v11926_v33, %v3088_v28  ;;  %vm4244_vm4 = vcmp.eq.s32.totalorder %v11939_v48, %v8271_v53 }
 0x315   : > { %v9640_v5 = vmax.f32 %v11933_v11, %v4496_v26  ;;  %v9650_v59 = vmax.f32 %v11936_v0, %v4494_v50  ;;  %v4500_v19 = vsel %vm4481_vm14, %v4428_v7, -inf  ;;  %v4427_v16 = vsel %vm11635_vm9, %v9619_v34, -1e+30  ;;  %v9658_v38 = vpop.xlane.xlu0 %3009  ;;  %v11938_v26 = vld [vmem:[#allocation13_spill] sm:$0xff]  ;;  %v9676_v7 = vpop.permute.xlu1 %4118  ;;  %v11976_v48 = vld [vmem:[#allocation58_spill] sm:$0xff] }
 0x316   : > { %11937 = vst [vmem:[#allocation35_spill] sm:$0xff] %v9658_v38  ;;  %vm4241_vm8 = vcmp.eq.s32.totalorder %v11938_v26, %v8271_v53  ;;  %v4430_v20 = vsel %vm11639_vm11, %v9628_v46, -1e+30  ;;  %v4429_v39 = vsel %vm11646_vm10, %v9630_v21, -1e+30  ;;  %v9672_v50 = vmax.f32 %v3147_v61, %v3211_v41  ;;  %11942 = vst [vmem:[#allocation90_spill] sm:$0xff] %v9676_v7 }
 0x317   : > { %v9674_v36 = vmax.f32 %v3146_v62, %v3210_v24  ;;  %v11943_v33 = vld [vmem:[#allocation25_spill] sm:$0xff]  ;;  %v9680_v28 = vmax.f32 %v3149_v8, %v3213_v49  ;;  %v3212_v11 = vmul.f32 0.01, %v3148_v1  ;;  %v3215_v0 = vmul.f32 0.01, %v3151_v35  ;;  %v9683_v34 = vpop.f32.mrb[56].mxu1 }
 0x318   : > { %11940 = vst [vmem:[#allocation36_spill] sm:$0xff] %v9672_v50  ;;  %vm4243_vm9 = vcmp.eq.s32.totalorder %v11943_v33, %v8271_v53  ;;  %v3153_v46 = vmax.f32 %v11932_v52, %v3089_v60  ;;  %vm11742_vm11 = vcmp.eq.s32.totalorder %v11945_v51, %v8271_v53  ;;  %v3214_v61 = vmul.f32 0.01, %v3150_v18  ;;  %v11946_v24 = vld [vmem:[#allocation37_spill] sm:$0xff]  ;;  %v9690_v15 = vpop.f32.mrb[57].mxu1  ;;  %v11948_v52 = vld [vmem:[#allocation47_spill] sm:$0xff] }
 0x319   : > { %11941 = vst [vmem:[#allocation45_spill] sm:$0xff] %v9674_v36  ;;  %11944 = vst [vmem:[#allocation91_spill] sm:$0xff] %v9680_v28  ;;  %v3155_v62 = vmax.f32 %v11934_v40, %v3091_v54  ;;  %v3154_v41 = vmax.f32 %v11935_v6, %v3090_v30  ;;  %v3093_v21 = vmul.f32 0.01, %v11946_v24  ;;  %v11947_v49 = vmax.f32 %v9411_v23, %v9497_v45  ;;  %v9699_v29 = vpop.xlane.xlu0 %3015  ;;  %v11951_v40 = vld [vmem:[#allocation30_spill] sm:$0xff]  ;;  %v11952_v6 = vld [vmem:[#allocation29_spill] sm:$0xff]  ;;  %v9730_v7 = vpop.permute.xlu1 %4124 }
 0x31a   : > { %v3216_v60 = vmul.f32 0.01, %v3152_v27  ;;  %v3092_v22 = vmul.f32 0.01, %v11948_v52  ;;  %11950 = vst [vmem:[#allocation37_spill] sm:$0xff] %v9699_v29  ;;  %vm11737_vm10 = vcmp.eq.s32.totalorder %v11951_v40, %v8271_v53  ;;  %v4498_v30 = vsel %vm4481_vm14, %v4427_v16, -inf }
 0x31b   : > { %v9695_v8 = vmax.f32 %v11947_v49, %v4500_v19  ;;  %v4504_v54 = vsel %vm4481_vm14, %v4430_v20, -inf  ;;  %v4432_v23 = vsel %vm11660_vm6, %v9672_v50, -1e+30  ;;  %v4431_v45 = vsel %vm11661_vm2, %v9674_v36, -1e+30  ;;  %v11953_v19 = vld [vmem:[#allocation32_spill] sm:$0xff] }
 0x31c   : > { %vm11731_vm5 = vcmp.eq.s32.totalorder %v11952_v6, %v8271_v53  ;;  %vm11705_vm1 = vcmp.eq.s32.totalorder %v11953_v19, %v8271_v53  ;;  %v4434_v16 = vsel %vm4242_vm7, %v9680_v28, -1e+30  ;;  %v9721_v20 = vmax.f32 %v3148_v1, %v3212_v11  ;;  %v9725_v4 = vpop.f32.mrb[58].mxu1  ;;  %11957 = vst [vmem:[#allocation93_spill] sm:$0xff] %v9730_v7  ;;  %v11961_v7 = vld [vmem:[#allocation34_spill] sm:$0xff]  ;;  %v11975_v19 = vld [vmem:[#allocation41_spill] sm:$0xff] }
 0x31d   : > { %v9723_v49 = vmax.f32 %v3151_v35, %v3215_v0  ;;  %v3217_v50 = vmul.f32 0.01, %v3153_v46  ;;  %v9727_v2 = vmax.f32 %v3150_v18, %v3214_v61  ;;  %v3219_v36 = vmul.f32 0.01, %v3155_v62  ;;  %v9732_v31 = vpop.f32.mrb[59].mxu1  ;;  %v9741_v18 = vpop.xlane.xlu0 %3021 }
 0x31e   : > { %11954 = vst [vmem:[#allocation47_spill] sm:$0xff] %v9721_v20  ;;  %v3218_v29 = vmul.f32 0.01, %v3154_v41  ;;  %v3157_v38 = vmax.f32 %v11946_v24, %v3093_v21  ;;  %v11958_v28 = vmax.f32 %v9431_v42, %v9500_v47  ;;  %v9737_v11 = vmax.f32 %v3152_v27, %v3216_v60  ;;  %11960 = vst [vmem:[#allocation95_spill] sm:$0xff] %v9741_v18  ;;  %v11964_v27 = vld [vmem:[#allocation33_spill] sm:$0xff] }
 0x31f   : > { %11955 = vst [vmem:[#allocation50_spill] sm:$0xff] %v9723_v49  ;;  %11956 = vst [vmem:[#allocation92_spill] sm:$0xff] %v9727_v2  ;;  %v3156_v35 = vmax.f32 %v11948_v52, %v3092_v22  ;;  %v3158_v0 = vmax.f32 %v11949_v25, %v3094_v3  ;;  %v4505_v61 = vmax.f32 %v9640_v5, %v4504_v54  ;;  %v4502_v21 = vsel %vm4481_vm14, %v4429_v39, -inf  ;;  %v9760_v47 = vpop.f32.mrb[60].mxu1  ;;  %v11963_v5 = vld [vmem:[#allocation31_spill] sm:$0xff] }
 0x320   : > { %v4499_v1 = vmax.f32 %v11958_v28, %v4498_v30  ;;  %11959 = vst [vmem:[#allocation94_spill] sm:$0xff] %v9737_v11  ;;  %v4508_v24 = vsel %vm4481_vm14, %v4432_v23, -inf  ;;  %v4506_v58 = vsel %vm4481_vm14, %v4431_v45, -inf  ;;  %vm11703_vm6 = vcmp.eq.s32.totalorder %v11961_v7, %v8271_v53  ;;  %v11982_v7 = vld [vmem:[#allocation46_spill] sm:$0xff] }
 0x321   : > { %v4512_v42 = vsel %vm4481_vm14, %v4434_v16, -inf  ;;  %v4433_v3 = vsel %vm4241_vm8, %v9721_v20, -1e+30  ;;  %v4436_v25 = vsel %vm4244_vm4, %v9723_v49, -1e+30  ;;  %v9758_v22 = vmax.f32 %v3153_v46, %v3217_v50  ;;  %v9774_v46 = vpop.f32.mrb[61].mxu1  ;;  %v9781_v45 = vpop.xlane.xlu0 %3027 }
 0x322   : > { %vm11704_vm2 = vcmp.eq.s32.totalorder %v11963_v5, %v8271_v53  ;;  %vm11695_vm0 = vcmp.eq.s32.totalorder %v11964_v27, %v8271_v53  ;;  %v4435_v39 = vsel %vm4243_vm9, %v9727_v2, -1e+30  ;;  %v9770_v28 = vmax.f32 %v3155_v62, %v3219_v36  ;;  %11967 = vst [vmem:[#allocation99_spill] sm:$0xff] %v9781_v45 }
 0x323   : > { %11962 = vst [vmem:[#allocation96_spill] sm:$0xff] %v9758_v22  ;;  %v9772_v60 = vmax.f32 %v3154_v41, %v3218_v29  ;;  %v3221_v52 = vmul.f32 0.01, %v3157_v38  ;;  %v4503_v50 = vmax.f32 %v9650_v59, %v4502_v21  ;;  %v4437_v30 = vsel %vm11742_vm11, %v9737_v11, -1e+30  ;;  %v9786_v41 = vpop.permute.xlu1 %4130  ;;  %v11968_v11 = vld [vmem:[#allocation38_spill] sm:$0xff] }
 0x324   : > { %11965 = vst [vmem:[#allocation97_spill] sm:$0xff] %v9770_v28  ;;  %v3220_v54 = vmul.f32 0.01, %v3156_v35  ;;  %v3222_v23 = vmul.f32 0.01, %v3158_v0  ;;  %v4509_v16 = vmax.f32 %v9695_v8, %v4508_v24  ;;  %v4507_v36 = vmax.f32 %v4499_v1, %v4506_v58  ;;  %v9796_v20 = vpop.f32.mrb[62].mxu1 }
 0x325   : > { %11966 = vst [vmem:[#allocation98_spill] sm:$0xff] %v9772_v60  ;;  %v4510_v29 = vsel %vm4481_vm14, %v4433_v3, -inf  ;;  %v4516_v62 = vsel %vm4481_vm14, %v4436_v25, -inf  ;;  %v9788_v2 = vmax.f32 %v4505_v61, %v4512_v42  ;;  %v4514_v59 = vsel %vm4481_vm14, %v4435_v39, -inf  ;;  %v9809_v24 = vpop.f32.mrb[63].mxu1  ;;  %v11972_v25 = vld [vmem:[#allocation39_spill] sm:$0xff]  ;;  %v9817_v40 = vpop.xlane.xlu0 %3033 }
 0x326   : > { %v4438_v21 = vsel %vm11737_vm10, %v9758_v22, -1e+30  ;;  %v3095_v49 = vmul.f32 0.01, %v11968_v11  ;;  %v4518_v58 = vsel %vm4481_vm14, %v4437_v30, -inf  ;;  %v9807_v61 = vmax.f32 %v3157_v38, %v3221_v52  ;;  %v11973_v30 = vld [vmem:[#allocation52_spill] sm:$0xff] }
 0x327   : > { %v4440_v8 = vsel %vm11705_vm1, %v9770_v28, -1e+30  ;;  %v4439_v1 = vsel %vm11731_vm5, %v9772_v60, -1e+30  ;;  %v9811_v42 = vmax.f32 %v3156_v35, %v3220_v54  ;;  %v9813_v3 = vmax.f32 %v3158_v0, %v3222_v23  ;;  %11974 = vst [vmem:[#allocation39_spill] sm:$0xff] %v9817_v40  ;;  %v11977_v52 = vld [vmem:[#allocation62_spill] sm:$0xff] }
 0x328   : > { %11969 = vst [vmem:[#allocation38_spill] sm:$0xff] %v9807_v61  ;;  %v3097_v39 = vmul.f32 0.01, %v11972_v25  ;;  %v3096_v22 = vmul.f32 0.01, %v11973_v30  ;;  %v4511_v28 = vmax.f32 %v4503_v50, %v4510_v29  ;;  %v9821_v60 = vmax.f32 %v4509_v16, %v4516_v62  ;;  %v9834_v16 = vpop.permute.xlu1 %4136 }
 0x329   : > { %11970 = vst [vmem:[#allocation100_spill] sm:$0xff] %v9811_v42  ;;  %11971 = vst [vmem:[#allocation101_spill] sm:$0xff] %v9813_v3  ;;  %v3099_v51 = vmul.f32 0.01, %v11975_v19  ;;  %v3098_v6 = vmul.f32 0.01, %v11976_v48  ;;  %v3159_v35 = vmax.f32 %v11968_v11, %v3095_v49  ;;  %v4515_v54 = vmax.f32 %v4507_v36, %v4514_v59  ;;  %v9846_v59 = vpop.xlane.xlu0 %3039 }
 0x32a   : > { %v4520_v38 = vsel %vm4481_vm14, %v4438_v21, -inf  ;;  %v3100_v0 = vmul.f32 0.01, %v11977_v52  ;;  %v4442_v23 = vsel %vm11703_vm6, %v9807_v61, -1e+30  ;;  %v9831_v50 = vsel %vm4481_vm14, %v4440_v8, -inf }
 0x32b   : > { %v4519_v29 = vmax.f32 %v4511_v28, %v4518_v58  ;;  %v4522_v33 = vsel %vm4481_vm14, %v4439_v1, -inf  ;;  %11978 = vst [vmem:[#allocation52_spill] sm:$0xff] %v9834_v16  ;;  %v4441_v49 = vsel %vm11704_vm2, %v9811_v42, -1e+30  ;;  %v3161_v11 = vmax.f32 %v11972_v25, %v3097_v39  ;;  %11979 = vst [vmem:[#allocation41_spill] sm:$0xff] %v9846_v59  ;;  %v9848_v28 = vpop.f32.mrb[64].mxu1 }
 0x32c   : > { %v3160_v36 = vmax.f32 %v11973_v30, %v3096_v22  ;;  %v4443_v62 = vsel %vm11695_vm0, %v9813_v3, -1e+30  ;;  %v3163_v21 = vmax.f32 %v11975_v19, %v3099_v51  ;;  %v3162_v58 = vmax.f32 %v11976_v48, %v3098_v6  ;;  %v11980_v8 = vld [vmem:[#allocation43_spill] sm:$0xff]  ;;  %v9854_v25 = vpop.f32.mrb[65].mxu1  ;;  %v11981_v61 = vld [vmem:[#allocation44_spill] sm:$0xff]  ;;  %v9871_v30 = vpop.permute.xlu1 %4142 }
 0x32d   : > { %v3101_v1 = vmul.f32 0.01, %v11980_v8  ;;  %v3102_v42 = vmul.f32 0.01, %v9449_v12  ;;  %v3223_v22 = vmul.f32 0.01, %v3159_v35  ;;  %v3164_v39 = vmax.f32 %v11977_v52, %v3100_v0  ;;  %v9865_v40 = vpop.xlane.xlu0 %3045 }
 0x32e   : > { %v4521_v3 = vmax.f32 %v9788_v2, %v4520_v38  ;;  %v3103_v27 = vmul.f32 0.01, %v11981_v61  ;;  %v3105_v51 = vmul.f32 0.01, %v11982_v7  ;;  %v4526_v48 = vsel %vm4481_vm14, %v4441_v49, -inf  ;;  %11983 = vst [vmem:[#allocation58_spill] sm:$0xff] %v9865_v40 }
 0x32f   : > { %v4528_v6 = vsel %vm4481_vm14, %v4442_v23, -inf  ;;  %v3225_v19 = vmul.f32 0.01, %v3161_v11  ;;  %v3224_v5 = vmul.f32 0.01, %v3160_v36  ;;  %v4523_v26 = vmax.f32 %v4515_v54, %v4522_v33  ;;  %v9867_v52 = vpop.f32.mrb[66].mxu1 }
 0x330   : > { %v4530_v59 = vsel %vm4481_vm14, %v4443_v62, -inf  ;;  %v3165_v0 = vmax.f32 %v11980_v8, %v3101_v1  ;;  %v3166_v2 = vmax.f32 %v9449_v12, %v3102_v42  ;;  %v3226_v38 = vmul.f32 0.01, %v3162_v58  ;;  %11984 = vst [vmem:[#allocation62_spill] sm:$0xff] %v9871_v30  ;;  %v9873_v45 = vpop.f32.mrb[67].mxu1 }
 0x331   : > { %v3227_v49 = vmul.f32 0.01, %v3163_v21  ;;  %v3104_v23 = vmul.f32 0.01, %v9485_v63  ;;  %v9876_v18 = vmax.f32 %v3159_v35, %v3223_v22  ;;  %v9878_v33 = vmax.f32 %v4519_v29, %v4526_v48  ;;  %v9890_v16 = vpop.xlane.xlu0 %3051  ;;  %v7031_v35 = vpop.f32.mrb[68].mxu1 }
 0x332   : > { %v3228_v54 = vmul.f32 0.01, %v3164_v39  ;;  %v3167_v62 = vmax.f32 %v11981_v61, %v3103_v27  ;;  %v3169_v40 = vmax.f32 %v11982_v7, %v3105_v51  ;;  %v3938_v8 = vmul.f32 0.01, %v9599_v10  ;;  %11988 = vst [vmem:[#allocation102_spill] sm:$0xff] %v9890_v16  ;;  %v3826_v61 = vpop.f32.mrb[69].mxu1 }
 0x333   : > { %11985 = vst [vmem:[#allocation43_spill] sm:$0xff] %v9876_v18  ;;  %v9883_v12 = vmax.f32 %v4521_v3, %v4528_v6  ;;  %v9885_v42 = vmax.f32 %v3160_v36, %v3224_v5  ;;  %v3937_v1 = vmul.f32 0.01, %v9608_v56  ;;  %v9888_v30 = vmax.f32 %v4523_v26, %v4530_v59  ;;  %v11993_v59 = vld [vmem:[#allocation48_spill] sm:$0xff] }
 0x334   : > { %v9892_v29 = vmax.f32 %v3161_v11, %v3225_v19  ;;  %v9894_v22 = vmax.f32 %v3162_v58, %v3226_v38  ;;  %v3230_v27 = vmul.f32 0.01, %v3166_v2  ;;  %v9896_v7 = vmax.f32 %v3163_v21, %v3227_v49  ;;  %v9903_v11 = vpop.permute.xlu1 %4148 }
 0x335   : > { %11986 = vst [vmem:[#allocation44_spill] sm:$0xff] %v9883_v12  ;;  %11987 = vst [vmem:[#allocation46_spill] sm:$0xff] %v9885_v42  ;;  %v3229_v51 = vmul.f32 0.01, %v3165_v0  ;;  %v3168_v3 = vmax.f32 %v9485_v63, %v3104_v23  ;;  %v9899_v5 = vmax.f32 %v3164_v39, %v3228_v54  ;;  %v3954_v36 = vmul.f32 0.01, %v7031_v35  ;;  %v9911_v54 = vpop.xlane.xlu0 %3057 }
 0x336   : > { %11989 = vst [vmem:[#allocation103_spill] sm:$0xff] %v9892_v29  ;;  %11990 = vst [vmem:[#allocation104_spill] sm:$0xff] %v9894_v22  ;;  %v3953_v48 = vmul.f32 0.01, %v3826_v61  ;;  %v3233_v26 = vmul.f32 0.01, %v3169_v40  ;;  %v4002_v12 = vmax.f32 %v9599_v10, %v3938_v8  ;;  %v4001_v19 = vmax.f32 %v9608_v56, %v3937_v1 }
 0x337   : > { %11991 = vst [vmem:[#allocation105_spill] sm:$0xff] %v9896_v7  ;;  %11992 = vst [vmem:[#allocation106_spill] sm:$0xff] %v9899_v5  ;;  %v3107_v6 = vmul.f32 0.01, %v11993_v59  ;;  %v3231_v58 = vmul.f32 0.01, %v3167_v62  ;;  %v4018_v38 = vmax.f32 %v7031_v35, %v3954_v36  ;;  %v9909_v23 = vmax.f32 %v3166_v2, %v3230_v27 }
 0x338   : > { %v3940_v21 = vmul.f32 0.01, %v9635_v13  ;;  %v4017_v49 = vmax.f32 %v3826_v61, %v3953_v48  ;;  %v7034_v7 = vpop.f32.mrb[70].mxu1  ;;  %v3106_v63 = vmul.f32 0.01, %v9521_v14  ;;  %11995 = vst [vmem:[#allocation107_spill] sm:$0xff] %v9911_v54  ;;  %v9913_v10 = vmax.f32 %v3165_v0, %v3229_v51 }
 0x339   : > { %v3939_v39 = vmul.f32 0.01, %v9645_v44  ;;  %11994 = vst [vmem:[#allocation48_spill] sm:$0xff] %v9909_v23  ;;  %v3836_v29 = vpop.f32.mrb[71].mxu1  ;;  %v3232_v8 = vmul.f32 0.01, %v3168_v3  ;;  %v9915_v16 = vpack.i.bf16 %v4002_v12, %v4018_v38  ;;  %v9921_v48 = vmax.f32 %v3167_v62, %v3231_v58 }
 0x33a   : > { %11996 = vst [vmem:[#allocation108_spill] sm:$0xff] %v9913_v10  ;;  %v9917_v56 = vpack.i.bf16 %v4001_v19, %v4017_v49  ;;  %v3956_v1 = vmul.f32 0.01, %v7034_v7  ;;  %v3108_v35 = vmul.f32 0.01, %v9556_v32  ;;  %v3171_v2 = vmax.f32 %v11993_v59, %v3107_v6  ;;  %v7037_v10 = vpop.f32.mrb[72].mxu1 }
 0x33b   : > { %11997 = vst [vmem:[#allocation109_spill] sm:$0xff] %v9915_v16  ;;  %v3942_v61 = vmul.f32 0.01, %v9683_v34  ;;  %v3955_v36 = vmul.f32 0.01, %v3836_v29  ;;  %11999 = vst [vmem:[#allocation111_spill] sm:$0xff] %v9921_v48  ;;  %v4004_v27 = vmax.f32 %v9635_v13, %v3940_v21  ;;  %v3170_v12 = vmax.f32 %v9521_v14, %v3106_v63  ;;  %v9929_v16 = vpop.permute.xlu1 %4154  ;;  %v9940_v63 = vpop.xlane.xlu0 %3063 }
 0x33c   : > { %11998 = vst [vmem:[#allocation110_spill] sm:$0xff] %v9917_v56  ;;  %v3941_v0 = vmul.f32 0.01, %v9690_v15  ;;  %v4020_v51 = vmax.f32 %v7034_v7, %v3956_v1  ;;  %v12000_v19 = vld [vmem:[#allocation49_spill] sm:$0xff]  ;;  %v4003_v49 = vmax.f32 %v9645_v44, %v3939_v39  ;;  %v3846_v54 = vpop.f32.mrb[73].mxu1  ;;  %v9933_v6 = vmax.f32 %v3169_v40, %v3233_v26 }
 0x33d   : > { %v3109_v38 = vmul.f32 0.01, %v12000_v19  ;;  %v4019_v56 = vmax.f32 %v3836_v29, %v3955_v36  ;;  %v3958_v58 = vmul.f32 0.01, %v7037_v10  ;;  %v3957_v59 = vmul.f32 0.01, %v3846_v54 }
 0x33e   : > { %v9931_v62 = vpack.i.bf16 %v4004_v27, %v4020_v51  ;;  %12002 = vst [vmem:[#allocation112_spill] sm:$0xff] %v9933_v6  ;;  %v3172_v13 = vmax.f32 %v9556_v32, %v3108_v35  ;;  %v4006_v7 = vmax.f32 %v9683_v34, %v3942_v61  ;;  %v3944_v14 = vmul.f32 0.01, %v9725_v4  ;;  %v7040_v36 = vpop.f32.mrb[74].mxu1 }
 0x33f   : > { %v9938_v21 = vpack.i.bf16 %v4003_v49, %v4019_v56  ;;  %v4005_v44 = vmax.f32 %v9690_v15, %v3941_v0  ;;  %v3943_v29 = vmul.f32 0.01, %v9732_v31  ;;  %v4022_v39 = vmax.f32 %v7037_v10, %v3958_v58  ;;  %v3856_v34 = vpop.f32.mrb[75].mxu1  ;;  %v12007_v49 = vld [vmem:[#allocation51_spill] sm:$0xff]  ;;  %v9954_v10 = vpop.permute.xlu1 %4160 }
 0x340   : > { %12001 = vst [vmem:[#allocation49_spill] sm:$0xff] %v9931_v62  ;;  %v4021_v1 = vmax.f32 %v3846_v54, %v3957_v59  ;;  %v3173_v40 = vmax.f32 %v12000_v19, %v3109_v38  ;;  %v9945_v26 = vmax.f32 %v3168_v3, %v3232_v8  ;;  %v3234_v32 = vmul.f32 0.01, %v3170_v12  ;;  %12008 = vst [vmem:[#allocation51_spill] sm:$0xff] %v9954_v10 }
 0x341   : > { %12003 = vst [vmem:[#allocation113_spill] sm:$0xff] %v9938_v21  ;;  %v3960_v35 = vmul.f32 0.01, %v7040_v36  ;;  %v9947_v61 = vpack.i.bf16 %v4006_v7, %v4022_v39  ;;  %v3959_v27 = vmul.f32 0.01, %v3856_v34  ;;  %v4008_v54 = vmax.f32 %v9725_v4, %v3944_v14  ;;  %v9956_v3 = vpop.permute.xlu0 %4121  ;;  %v7043_v7 = vpop.f32.mrb[76].mxu1 }
 0x342   : > { %12004 = vst [vmem:[#allocation114_spill] sm:$0xff] %v9945_v26  ;;  %v9949_v56 = vpack.i.bf16 %v4005_v44, %v4021_v1  ;;  %v3235_v51 = vmul.f32 0.01, %v3171_v2  ;;  %v3111_v15 = vmul.f32 0.01, %v12007_v49  ;;  %v4007_v8 = vmax.f32 %v9732_v31, %v3943_v29  ;;  %v12011_v14 = vld [vmem:[#allocation53_spill] sm:$0xff] }
 0x343   : > { %12005 = vst [vmem:[#allocation115_spill] sm:$0xff] %v9947_v61  ;;  %v3110_v0 = vmul.f32 0.01, %v9589_v57  ;;  %v4024_v19 = vmax.f32 %v7040_v36, %v3960_v35  ;;  %v3946_v38 = vmul.f32 0.01, %v9760_v47  ;;  %v4023_v59 = vmax.f32 %v3856_v34, %v3959_v27  ;;  %v3866_v61 = vpop.f32.mrb[77].mxu1 }
 0x344   : > { %12006 = vst [vmem:[#allocation116_spill] sm:$0xff] %v9949_v56  ;;  %v3236_v58 = vmul.f32 0.01, %v3172_v13  ;;  %v3945_v44 = vmul.f32 0.01, %v9774_v46  ;;  %v9961_v39 = vmax.f32 %v3170_v12, %v3234_v32  ;;  %v9968_v62 = vmax.f32 %v3171_v2, %v3235_v51 }
 0x345   : > { %v9963_v1 = vpack.i.bf16 %v4008_v54, %v4024_v19  ;;  %v3237_v4 = vmul.f32 0.01, %v3173_v40  ;;  %v3113_v56 = vmul.f32 0.01, %v12011_v14  ;;  %v9966_v36 = vpack.i.bf16 %v4007_v8, %v4023_v59  ;;  %v9978_v32 = vpop.permute.xlu0 %4127  ;;  %v7046_v51 = vpop.f32.mrb[78].mxu1 }
 0x346   : > { %12009 = vst [vmem:[#allocation117_spill] sm:$0xff] %v9961_v39  ;;  %v3962_v35 = vmul.f32 0.01, %v7043_v7  ;;  %12013 = vst [vmem:[#allocation119_spill] sm:$0xff] %v9968_v62  ;;  %v9971_v31 = vmax.f32 %v12007_v49, %v3111_v15  ;;  %v9974_v29 = vmax.f32 %v9589_v57, %v3110_v0  ;;  %vm11702_vm0 = vcmp.eq.s32.totalorder %v9622_v17, %v8271_v53  ;;  %v9986_v57 = vpop.permute.xlu1 %4166  ;;  %v3876_v19 = vpop.f32.mrb[79].mxu1 }
 0x347   : > { %12010 = vst [vmem:[#allocation118_spill] sm:$0xff] %v9963_v1  ;;  %12012 = vst [vmem:[#allocation53_spill] sm:$0xff] %v9966_v36  ;;  %v3961_v12 = vmul.f32 0.01, %v3866_v61  ;;  %v4010_v34 = vmax.f32 %v9760_v47, %v3946_v38  ;;  %v3948_v27 = vmul.f32 0.01, %v9796_v20  ;;  %v9982_v54 = vmax.f32 %v3172_v13, %v3236_v58 }
 0x348   : > { %v4026_v2 = vmax.f32 %v7043_v7, %v3962_v35  ;;  %v4009_v49 = vmax.f32 %v9774_v46, %v3945_v44  ;;  %v3947_v15 = vmul.f32 0.01, %v9809_v24  ;;  %12015 = vst [vmem:[#allocation121_spill] sm:$0xff] %v9986_v57  ;;  %v9988_v8 = vmax.f32 %v3173_v40, %v3237_v4  ;;  %v12018_v46 = vld [vmem:[#allocation56_spill] sm:$0xff] }
 0x349   : > { %12014 = vst [vmem:[#allocation120_spill] sm:$0xff] %v9982_v54  ;;  %v4025_v0 = vmax.f32 %v3866_v61, %v3961_v12  ;;  %v9991_v59 = vmax.f32 %v12011_v14, %v3113_v56  ;;  %v4444_v47 = vsel %vm11702_vm0, %v9876_v18, -1e+30  ;;  %v3964_v38 = vmul.f32 0.01, %v7046_v51  ;;  %v10002_v61 = vpop.permute.xlu0 %4133  ;;  %v7049_v12 = vpop.f32.mrb[80].mxu1 }
 0x34a   : > { %12016 = vst [vmem:[#allocation122_spill] sm:$0xff] %v9988_v8  ;;  %v9997_v13 = vpack.i.bf16 %v4010_v34, %v4026_v2  ;;  %v3115_v58 = vmul.f32 0.01, %v12018_v46  ;;  %v3963_v44 = vmul.f32 0.01, %v3876_v19  ;;  %v4012_v56 = vmax.f32 %v9796_v20, %v3948_v27  ;;  %v12022_v18 = vld [vmem:[#allocation63_spill] sm:$0xff] }
 0x34b   : > { %v10000_v7 = vpack.i.bf16 %v4009_v49, %v4025_v0  ;;  %v3239_v40 = vmul.f32 0.01, %v9971_v31  ;;  %v3238_v4 = vmul.f32 0.01, %v9974_v29  ;;  %v3950_v14 = vmul.f32 0.01, %v9848_v28 }
 0x34c   : > { %12017 = vst [vmem:[#allocation123_spill] sm:$0xff] %v9997_v13  ;;  %v4028_v35 = vmax.f32 %v7046_v51, %v3964_v38  ;;  %v4532_v34 = vsel %vm4481_vm14, %v4444_v47, -inf  ;;  %v4011_v2 = vmax.f32 %v9809_v24, %v3947_v15  ;;  %v3949_v49 = vmul.f32 0.01, %v9854_v25  ;;  %v3886_v13 = vpop.f32.mrb[81].mxu1  ;;  %v10017_v38 = vpop.permute.xlu1 %4172 }
 0x34d   : > { %12019 = vst [vmem:[#allocation56_spill] sm:$0xff] %v10000_v7  ;;  %v4027_v0 = vmax.f32 %v3876_v19, %v3963_v44  ;;  %v12020_v7 = vld [vmem:[#allocation60_spill] sm:$0xff]  ;;  %v3966_v21 = vmul.f32 0.01, %v7049_v12  ;;  %v3241_v20 = vmul.f32 0.01, %v9991_v59  ;;  %v3179_v27 = vmax.f32 %v12018_v46, %v3115_v58  ;;  %v10021_v15 = vpop.permute.xlu0 %4139 }
 0x34e   : > { %v3117_v1 = vmul.f32 0.01, %v12020_v7  ;;  %v10012_v36 = vpack.i.bf16 %v4012_v56, %v4028_v35  ;;  %v3119_v51 = vmul.f32 0.01, %v12022_v18  ;;  %12023 = vst [vmem:[#allocation63_spill] sm:$0xff] %v10017_v38  ;;  %v4014_v44 = vmax.f32 %v9848_v28, %v3950_v14 }
 0x34f   : > { %v10019_v47 = vpack.i.bf16 %v4011_v2, %v4027_v0  ;;  %v3965_v24 = vmul.f32 0.01, %v3886_v13  ;;  %v3121_v19 = vmul.f32 0.01, %v9441_v43  ;;  %v3952_v56 = vmul.f32 0.01, %v9867_v52 }
 0x350   : > { %12021 = vst [vmem:[#allocation60_spill] sm:$0xff] %v10012_v36  ;;  %v4030_v35 = vmax.f32 %v7049_v12, %v3966_v21  ;;  %v7052_v36 = vpop.f32.mrb[82].mxu1  ;;  %v3123_v17 = vmul.f32 0.01, %v9468_v37  ;;  %v4013_v46 = vmax.f32 %v9854_v25, %v3949_v49  ;;  %v3951_v58 = vmul.f32 0.01, %v9873_v45 }
 0x351   : > { %12024 = vst [vmem:[#allocation124_spill] sm:$0xff] %v10019_v47  ;;  %v4029_v8 = vmax.f32 %v3886_v13, %v3965_v24  ;;  %v3896_v2 = vpop.f32.mrb[83].mxu1  ;;  %v3181_v0 = vmax.f32 %v12020_v7, %v3117_v1  ;;  %v3125_v47 = vmul.f32 0.01, %v9509_v55  ;;  %v3968_v6 = vmul.f32 0.01, %v7052_v36  ;;  %v10037_v48 = vpop.permute.xlu0 %4145 }
 0x352   : > { %v10031_v62 = vpack.i.bf16 %v4014_v44, %v4030_v35  ;;  %v3183_v28 = vmax.f32 %v12022_v18, %v3119_v51  ;;  %v3127_v21 = vmul.f32 0.01, %v9540_v9  ;;  %v3967_v12 = vmul.f32 0.01, %v3896_v2  ;;  %v12027_v25 = vld [vmem:[#allocation81_spill] sm:$0xff]  ;;  %v10044_v18 = vpop.permute.xlu1 %4178 }
 0x353   : > { %v10035_v14 = vpack.i.bf16 %v4013_v46, %v4029_v8  ;;  %v3129_v49 = vmul.f32 0.01, %v12027_v25  ;;  %v4016_v13 = vmax.f32 %v9867_v52, %v3952_v56  ;;  %v4032_v24 = vmax.f32 %v7052_v36, %v3968_v6  ;;  %v12037_v56 = vld [vmem:[#allocation40_spill] sm:$0xff] }
 0x354   : > { %12025 = vst [vmem:[#allocation125_spill] sm:$0xff] %v10031_v62  ;;  %v3243_v1 = vmul.f32 0.01, %v3179_v27  ;;  %v3185_v7 = vmax.f32 %v9441_v43, %v3121_v19  ;;  %v3187_v44 = vmax.f32 %v9468_v37, %v3123_v17  ;;  %v4015_v35 = vmax.f32 %v9873_v45, %v3951_v58 }
 0x355   : > { %12026 = vst [vmem:[#allocation126_spill] sm:$0xff] %v10035_v14  ;;  %v4031_v51 = vmax.f32 %v3896_v2, %v3967_v12  ;;  %v3189_v8 = vmax.f32 %v9509_v55, %v3125_v47  ;;  %v10047_v46 = vpack.i.bf16 %v4016_v13, %v4032_v24  ;;  %v10050_v62 = vmax.f32 %v9971_v31, %v3239_v40  ;;  %v10058_v37 = vpop.permute.xlu0 %4151 }
 0x356   : > { %v3245_v14 = vmul.f32 0.01, %v3181_v0  ;;  %v3191_v52 = vmax.f32 %v9540_v9, %v3127_v21  ;;  %v10054_v6 = vmax.f32 %v9974_v29, %v3238_v4  ;;  %v3247_v17 = vmul.f32 0.01, %v3183_v28  ;;  %v12035_v9 = vld [vmem:[#allocation90_spill] sm:$0xff]  ;;  %v12036_v29 = vld [vmem:[#allocation35_spill] sm:$0xff] }
 0x357   : > { %12028 = vst [vmem:[#allocation81_spill] sm:$0xff] %v10047_v46  ;;  %12029 = vst [vmem:[#allocation127_spill] sm:$0xff] %v10050_v62  ;;  %v10056_v43 = vpack.i.bf16 %v4015_v35, %v4031_v51  ;;  %v12032_v45 = vmax.f32 %v9821_v60, %v9831_v50  ;;  %v3193_v36 = vmax.f32 %v12027_v25, %v3129_v49  ;;  %v3112_v4 = vmul.f32 0.01, %v12036_v29  ;;  %v12038_v60 = vld [vmem:[#allocation93_spill] sm:$0xff] }
 0x358   : > { %12030 = vst [vmem:[#allocation128_spill] sm:$0xff] %v10054_v6  ;;  %v10067_v31 = vmax.f32 %v9991_v59, %v3241_v20  ;;  %v10069_v40 = vmax.f32 %v3179_v27, %v3243_v1  ;;  %vm11706_vm0 = vcmp.eq.s32.totalorder %v12035_v9, %v8271_v53  ;;  %v3249_v47 = vmul.f32 0.01, %v3185_v7  ;;  %v12040_v59 = vld [vmem:[#allocation37_spill] sm:$0xff]  ;;  %v10082_v27 = vpop.permute.xlu1 %4184 }
 0x359   : > { %12031 = vst [vmem:[#allocation129_spill] sm:$0xff] %v10056_v43  ;;  %v10063_v55 = vmax.f32 %v12032_v45, %v4532_v34  ;;  %v3251_v19 = vmul.f32 0.01, %v3187_v44  ;;  %v3131_v58 = vmul.f32 0.01, %v12037_v56  ;;  %vm11713_vm6 = vcmp.eq.s32.totalorder %v12038_v60, %v8271_v53  ;;  %v10084_v2 = vpop.permute.xlu0 %4157  ;;  %v12046_v45 = vld [vmem:[#allocation62_spill] sm:$0xff] }
 0x35a   : > { %12033 = vst [vmem:[#allocation130_spill] sm:$0xff] %v10067_v31  ;;  %12034 = vst [vmem:[#allocation131_spill] sm:$0xff] %v10069_v40  ;;  %v10077_v50 = vmax.f32 %v3181_v0, %v3245_v14  ;;  %v3253_v34 = vmul.f32 0.01, %v3189_v8  ;;  %vm11712_vm2 = vcmp.eq.s32.totalorder %v9786_v41, %v8271_v53  ;;  %v3114_v20 = vmul.f32 0.01, %v12040_v59 }
 0x35b   : > { %v10086_v21 = vmax.f32 %v3183_v28, %v3247_v17  ;;  %v3255_v12 = vmul.f32 0.01, %v3191_v52  ;;  %v4445_v25 = vsel %vm11706_vm0, %v9885_v42, -1e+30  ;;  %v12042_v0 = vld [vmem:[#allocation52_spill] sm:$0xff]  ;;  %v12043_v14 = vld [vmem:[#allocation95_spill] sm:$0xff]  ;;  %v3176_v28 = vmax.f32 %v12036_v29, %v3112_v4 }
 0x35c   : > { %12039 = vst [vmem:[#allocation90_spill] sm:$0xff] %v10077_v50  ;;  %vm11707_vm1 = vcmp.eq.s32.totalorder %v12042_v0, %v8271_v53  ;;  %v3116_v49 = vmul.f32 0.01, %v12043_v14  ;;  %v3257_v13 = vmul.f32 0.01, %v3193_v36  ;;  %v10100_v1 = vmax.f32 %v3185_v7, %v3249_v47  ;;  %v12048_v29 = vld [vmem:[#allocation99_spill] sm:$0xff] }
 0x35d   : > { %12041 = vst [vmem:[#allocation35_spill] sm:$0xff] %v10086_v21  ;;  %v4447_v24 = vsel %vm11713_vm6, %v9894_v22, -1e+30  ;;  %v10102_v35 = vmax.f32 %v3187_v44, %v3251_v19  ;;  %v10105_v51 = vmax.f32 %v12037_v56, %v3131_v58  ;;  %v4449_v17 = vsel %vm11712_vm2, %v9899_v5, -1e+30  ;;  %v10122_v47 = vpop.permute.xlu0 %4163 }
 0x35e   : > { %12044 = vst [vmem:[#allocation40_spill] sm:$0xff] %v10100_v1  ;;  %vm11708_vm0 = vcmp.eq.s32.totalorder %v12046_v45, %v8271_v53  ;;  %v10113_v46 = vmax.f32 %v3189_v8, %v3253_v34  ;;  %v4534_v43 = vsel %vm4481_vm14, %v4445_v25, -inf  ;;  %v4451_v7 = vsel %vm11707_vm1, %v9909_v23, -1e+30 }
 0x35f   : > { %12045 = vst [vmem:[#allocation93_spill] sm:$0xff] %v10102_v35  ;;  %v3178_v44 = vmax.f32 %v12040_v59, %v3114_v20  ;;  %v3118_v4 = vmul.f32 0.01, %v12048_v29  ;;  %v4538_v19 = vsel %vm4481_vm14, %v4447_v24, -inf  ;;  %v3180_v56 = vmax.f32 %v12043_v14, %v3116_v49  ;;  %v10137_v20 = vpop.permute.xlu1 %4190 }
 0x360   : > { %12047 = vst [vmem:[#allocation37_spill] sm:$0xff] %v10113_v46  ;;  %v10126_v58 = vmax.f32 %v3191_v52, %v3255_v12  ;;  %v10128_v8 = vmax.f32 %v3193_v36, %v3257_v13  ;;  %v4542_v34 = vsel %vm4481_vm14, %v4449_v17, -inf  ;;  %v4453_v25 = vsel %vm11708_vm0, %v9945_v26, -1e+30  ;;  %v12051_v12 = vld [vmem:[#allocation39_spill] sm:$0xff] }
 0x361   : > { %vm11721_vm1 = vcmp.eq.s32.totalorder %v9903_v11, %v8271_v53  ;;  %v3240_v59 = vmul.f32 0.01, %v3176_v28  ;;  %v4535_v24 = vmax.f32 %v9878_v33, %v4534_v43  ;;  %v4546_v52 = vsel %vm4481_vm14, %v4451_v7, -inf  ;;  %v10149_v26 = vpop.permute.xlu0 %4169 }
 0x362   : > { %12049 = vst [vmem:[#allocation52_spill] sm:$0xff] %v10126_v58  ;;  %12050 = vst [vmem:[#allocation95_spill] sm:$0xff] %v10128_v8  ;;  %v3120_v36 = vmul.f32 0.01, %v12051_v12  ;;  %v10143_v14 = vmul.f32 0.01, %v10105_v51  ;;  %v4539_v49 = vmax.f32 %v9888_v30, %v4538_v19  ;;  %v3182_v13 = vmax.f32 %v12048_v29, %v3118_v4 }
 0x363   : > { %vm11716_vm0 = vcmp.eq.s32.totalorder %v9929_v16, %v8271_v53  ;;  %v3242_v17 = vmul.f32 0.01, %v3178_v44  ;;  %v4543_v23 = vmax.f32 %v4535_v24, %v4542_v34  ;;  %v4550_v33 = vsel %vm4481_vm14, %v4453_v25, -inf  ;;  %v12052_v30 = vld [vmem:[#allocation41_spill] sm:$0xff]  ;;  %v12054_v25 = vld [vmem:[#allocation58_spill] sm:$0xff] }
 0x364   : > { %v4455_v43 = vsel %vm11721_vm1, %v9961_v39, -1e+30  ;;  %v3244_v7 = vmul.f32 0.01, %v3180_v56  ;;  %v4547_v5 = vmax.f32 %v4539_v49, %v4546_v52  ;;  %vm11720_vm2 = vcmp.eq.s32.totalorder %v9954_v10, %v8271_v53 }
 0x365   : > { %v3122_v29 = vmul.f32 0.01, %v12052_v30  ;;  %v10159_v4 = vmax.f32 %v3176_v28, %v3240_v59  ;;  %v4457_v19 = vsel %vm11716_vm0, %v9982_v54, -1e+30  ;;  %v3184_v34 = vmax.f32 %v12051_v12, %v3120_v36  ;;  %v10172_v28 = vpop.permute.xlu1 %4196  ;;  %v10174_v59 = vpop.permute.xlu0 %4175  ;;  %v12056_v36 = vld [vmem:[#allocation102_spill] sm:$0xff] }
 0x366   : > { %vm11728_vm6 = vcmp.eq.s32.totalorder %v9986_v57, %v8271_v53  ;;  %v3124_v24 = vmul.f32 0.01, %v12054_v25  ;;  %v4551_v52 = vmax.f32 %v4543_v23, %v4550_v33  ;;  %v4554_v49 = vsel %vm4481_vm14, %v4455_v43, -inf  ;;  %v12058_v43 = vld [vmem:[#allocation107_spill] sm:$0xff] }
 0x367   : > { %12053 = vst [vmem:[#allocation62_spill] sm:$0xff] %v10159_v4  ;;  %v10170_v39 = vmax.f32 %v3178_v44, %v3242_v17  ;;  %v3246_v22 = vmul.f32 0.01, %v3182_v13  ;;  %v4459_v12 = vsel %vm11720_vm2, %v10054_v6, -1e+30  ;;  %vm11727_vm0 = vcmp.eq.s32.totalorder %v10017_v38, %v8271_v53 }
 0x368   : > { %v3126_v54 = vmul.f32 0.01, %v12056_v36  ;;  %v10183_v23 = vmax.f32 %v3180_v56, %v3244_v7  ;;  %v4558_v44 = vsel %vm4481_vm14, %v4457_v19, -inf  ;;  %v3186_v17 = vmax.f32 %v12052_v30, %v3122_v29 }
 0x369   : > { %12055 = vst [vmem:[#allocation99_spill] sm:$0xff] %v10170_v39  ;;  %v4461_v33 = vsel %vm11728_vm6, %v10159_v4, -1e+30  ;;  %v3128_v42 = vmul.f32 0.01, %v12058_v43  ;;  %v3188_v6 = vmax.f32 %v12054_v25, %v3124_v24  ;;  %vm11730_vm2 = vcmp.eq.s32.totalorder %v10044_v18, %v8271_v53  ;;  %v10205_v4 = vpop.permute.xlu0 %4181 }
 0x36a   : > { %12057 = vst [vmem:[#allocation39_spill] sm:$0xff] %v10183_v23  ;;  %vm11729_vm1 = vcmp.eq.s32.totalorder %v10082_v27, %v8271_v53  ;;  %v3248_v56 = vmul.f32 0.01, %v3184_v34  ;;  %v4562_v7 = vsel %vm4481_vm14, %v4459_v12, -inf  ;;  %v4463_v30 = vsel %vm11727_vm0, %v10170_v39, -1e+30  ;;  %v10218_v39 = vpop.permute.xlu1 %4202 }
 0x36b   : > { %v10202_v29 = vmax.f32 %v3182_v13, %v3246_v22  ;;  %v3130_v19 = vmul.f32 0.01, %v9940_v63  ;;  %v4555_v25 = vmax.f32 %v4547_v5, %v4554_v49  ;;  %v4559_v24 = vmax.f32 %v4551_v52, %v4558_v44 }
 0x36c   : > { %v4566_v57 = vsel %vm4481_vm14, %v4461_v33, -inf  ;;  %v3190_v10 = vmax.f32 %v12056_v36, %v3126_v54  ;;  %v4465_v12 = vsel %vm11730_vm2, %v10183_v23, -1e+30  ;;  %v3192_v38 = vmax.f32 %v12058_v43, %v3128_v42 }
 0x36d   : > { %12059 = vst [vmem:[#allocation41_spill] sm:$0xff] %v10202_v29  ;;  %v4467_v22 = vsel %vm11729_vm1, %v10202_v29, -1e+30  ;;  %v3250_v13 = vmul.f32 0.01, %v3186_v17  ;;  %v4563_v5 = vmax.f32 %v4555_v25, %v4562_v7  ;;  %v4570_v52 = vsel %vm4481_vm14, %v4463_v30, -inf  ;;  %v10228_v42 = vpop.permute.xlu0 %4187 }
 0x36e   : > { %v10221_v49 = vmax.f32 %v3184_v34, %v3248_v56  ;;  %v3252_v54 = vmul.f32 0.01, %v3188_v6  ;;  %v4567_v36 = vmax.f32 %v4559_v24, %v4566_v57  ;;  %v3194_v44 = vmax.f32 %v9940_v63, %v3130_v19  ;;  %v12062_v30 = vld [vmem:[#allocation103_spill] sm:$0xff]  ;;  %v12071_v29 = vld [vmem:[#allocation44_spill] sm:$0xff] }
 0x36f   : > { %vm11732_vm0 = vcmp.eq.s32.totalorder %v10137_v20, %v8271_v53  ;;  %vm11733_vm6 = vcmp.eq.s32.totalorder %v9956_v3, %v8271_v53  ;;  %v4574_v33 = vsel %vm4481_vm14, %v4465_v12, -inf  ;;  %v4578_v43 = vsel %vm4481_vm14, %v4467_v22, -inf  ;;  %v12064_v12 = vld [vmem:[#allocation105_spill] sm:$0xff] }
 0x370   : > { %12060 = vst [vmem:[#allocation58_spill] sm:$0xff] %v10221_v49  ;;  %vm11736_vm1 = vcmp.eq.s32.totalorder %v9978_v32, %v8271_v53  ;;  %v3254_v34 = vmul.f32 0.01, %v3190_v10  ;;  %v4571_v56 = vmax.f32 %v4563_v5, %v4570_v52  ;;  %v10234_v57 = vmax.f32 %v3186_v17, %v3250_v13  ;;  %v10258_v13 = vpop.permute.xlu1 %4208 }
 0x371   : > { %vm11735_vm2 = vcmp.eq.s32.totalorder %v10172_v28, %v8271_v53  ;;  %v3256_v63 = vmul.f32 0.01, %v3192_v38  ;;  %v4469_v7 = vsel %vm11732_vm0, %v10221_v49, -1e+30  ;;  %v4446_v19 = vsel %vm11733_vm6, %v12062_v30, -1e+30  ;;  %v10260_v52 = vpop.permute.xlu0 %4193 }
 0x372   : > { %12061 = vst [vmem:[#allocation102_spill] sm:$0xff] %v10234_v57  ;;  %v10246_v25 = vmax.f32 %v3188_v6, %v3252_v54  ;;  %vm11741_vm5 = vcmp.eq.s32.totalorder %v10002_v61, %v8271_v53  ;;  %v10250_v17 = vmax.f32 %v4567_v36, %v4574_v33  ;;  %v10252_v24 = vmax.f32 %v4571_v56, %v4578_v43  ;;  %v12066_v43 = vld [vmem:[#allocation108_spill] sm:$0xff] }
 0x373   : > { %v4448_v22 = vsel %vm11736_vm1, %v12064_v12, -1e+30  ;;  %v3258_v5 = vmul.f32 0.01, %v3194_v44  ;;  %v4471_v6 = vsel %vm11735_vm2, %v10234_v57, -1e+30  ;;  %v10266_v54 = vmax.f32 %v3190_v10, %v3254_v34 }
 0x374   : > { %12063 = vst [vmem:[#allocation107_spill] sm:$0xff] %v10246_v25  ;;  %vm11745_vm0 = vcmp.eq.s32.totalorder %v10021_v15, %v8271_v53  ;;  %vm11744_vm6 = vcmp.eq.s32.totalorder %v10037_v48, %v8271_v53  ;;  %v10273_v36 = vsel %vm4481_vm14, %v4469_v7, -inf  ;;  %v4536_v33 = vsel %vm4481_vm14, %v4446_v19, -inf  ;;  %v12068_v7 = vld [vmem:[#allocation111_spill] sm:$0xff]  ;;  %v12070_v19 = vld [vmem:[#allocation112_spill] sm:$0xff] }
 0x375   : > { %12065 = vst [vmem:[#allocation132_spill] sm:$0xff] %v10266_v54  ;;  %v4450_v56 = vsel %vm11741_vm5, %v12066_v43, -1e+30  ;;  %v10280_v49 = vmax.f32 %v3192_v38, %v3256_v63  ;;  %vm11743_vm2 = vcmp.eq.s32.totalorder %v10218_v39, %v8271_v53  ;;  %v4540_v10 = vsel %vm4481_vm14, %v4448_v22, -inf  ;;  %v10302_v57 = vpop.permute.xlu0 %4199 }
 0x376   : > { %vm11748_vm1 = vcmp.eq.s32.totalorder %v10058_v37, %v8271_v53  ;;  %vm11747_vm10 = vcmp.eq.s32.totalorder %v10084_v2, %v8271_v53  ;;  %v10290_v34 = vsel %vm4481_vm14, %v4471_v6, -inf  ;;  %v4452_v38 = vsel %vm11745_vm0, %v12068_v7, -1e+30  ;;  %v10315_v6 = vpop.permute.xlu1 %4214 }
 0x377   : > { %12067 = vst [vmem:[#allocation133_spill] sm:$0xff] %v10280_v49  ;;  %v10296_v63 = vmax.f32 %v3194_v44, %v3258_v5  ;;  %v4454_v22 = vsel %vm11744_vm6, %v12070_v19, -1e+30  ;;  %v4537_v43 = vmax.f32 %v12071_v29, %v4536_v33  ;;  %v4544_v23 = vsel %vm4481_vm14, %v4450_v56, -inf  ;;  %v12072_v19 = vld [vmem:[#allocation119_spill] sm:$0xff]  ;;  %v12073_v33 = vld [vmem:[#allocation122_spill] sm:$0xff] }
 0x378   : > { %vm11752_vm5 = vcmp.eq.s32.totalorder %v10122_v47, %v8271_v53  ;;  %vm11751_vm11 = vcmp.eq.s32.totalorder %v10149_v26, %v8271_v53  ;;  %v4473_v44 = vsel %vm11743_vm2, %v10246_v25, -1e+30  ;;  %v4541_v5 = vmax.f32 %v10063_v55, %v4540_v10 }
 0x379   : > { %12069 = vst [vmem:[#allocation134_spill] sm:$0xff] %v10296_v63  ;;  %v4456_v29 = vsel %vm11748_vm1, %v12072_v19, -1e+30  ;;  %v4458_v56 = vsel %vm11747_vm10, %v12073_v33, -1e+30  ;;  %v4548_v7 = vsel %vm4481_vm14, %v4452_v38, -inf  ;;  %vm11753_vm2 = vcmp.eq.s32.totalorder %v10174_v59, %v8271_v53 }
 0x37a   : > { %v4552_v12 = vsel %vm4481_vm14, %v4454_v22, -inf  ;;  %vm11755_vm6 = vcmp.eq.s32.totalorder %v10205_v4, %v8271_v53  ;;  %vm11760_vm0 = vcmp.eq.s32.totalorder %v10258_v13, %v8271_v53  ;;  %v4545_v55 = vmax.f32 %v4537_v43, %v4544_v23  ;;  %v10341_v22 = vpop.permute.xlu0 %4205 }
 0x37b   : > { %v4460_v10 = vsel %vm11752_vm5, %v10050_v62, -1e+30  ;;  %v4462_v38 = vsel %vm11751_vm11, %v10067_v31, -1e+30  ;;  %v4556_v25 = vsel %vm4481_vm14, %v4456_v29, -inf  ;;  %v4560_v33 = vsel %vm4481_vm14, %v4458_v56, -inf }
 0x37c   : > { %vm4276_vm10 = vcmp.eq.s32.totalorder %v10228_v42, %v8271_v53  ;;  %vm11758_vm1 = vcmp.eq.s32.totalorder %v10260_v52, %v8271_v53  ;;  %v4549_v23 = vmax.f32 %v4541_v5, %v4548_v7  ;;  %v4553_v43 = vmax.f32 %v4545_v55, %v4552_v12  ;;  %v10363_v12 = vpop.permute.xlu1 %4220 }
 0x37d   : > { %v4464_v62 = vsel %vm11753_vm2, %v10069_v40, -1e+30  ;;  %v4466_v29 = vsel %vm11755_vm6, %v10077_v50, -1e+30  ;;  %v4564_v56 = vsel %vm4481_vm14, %v4460_v10, -inf  ;;  %v4568_v31 = vsel %vm4481_vm14, %v4462_v38, -inf }
 0x37e   : > { %vm4280_vm11 = vcmp.eq.s32.totalorder %v10302_v57, %v8271_v53  ;;  %vm4282_vm5 = vcmp.eq.s32.totalorder %v10341_v22, %v8271_v53  ;;  %v4557_v7 = vmax.f32 %v4549_v23, %v4556_v25  ;;  %v4561_v5 = vmax.f32 %v4553_v43, %v4560_v33  ;;  %v10373_v38 = vpop.permute.xlu0 %4211 }
 0x37f   : > { %v4468_v55 = vsel %vm4276_vm10, %v10086_v21, -1e+30  ;;  %v4470_v10 = vsel %vm11758_vm1, %v10100_v1, -1e+30  ;;  %vm4285_vm2 = vcmp.eq.s32.totalorder %v10315_v6, %v8271_v53  ;;  %v4572_v40 = vsel %vm4481_vm14, %v4464_v62, -inf  ;;  %v12173_v6 = vld [vmem:[#allocation121_spill] sm:$0xff] }
 0x380   : > { %v4576_v25 = vsel %vm4481_vm14, %v4466_v29, -inf  ;;  %vm4284_vm6 = vcmp.eq.s32.totalorder %v10373_v38, %v8271_v53  ;;  %v4565_v33 = vmax.f32 %v4557_v7, %v4564_v56  ;;  %v4569_v23 = vmax.f32 %v4561_v5, %v4568_v31 }
 0x381   : > { %v4472_v43 = vsel %vm4280_vm11, %v10102_v35, -1e+30  ;;  %v4474_v1 = vsel %vm4282_vm5, %v10113_v46, -1e+30  ;;  %v4590_v21 = vsel %vm4481_vm14, %v4473_v44, -inf  ;;  %vm11765_vm1 = vcmp.eq.s32.totalorder %v10363_v12, %v8271_v53 }
 0x382   : > { %v4580_v62 = vsel %vm4481_vm14, %v4468_v55, -inf  ;;  %v4584_v29 = vsel %vm4481_vm14, %v4470_v10, -inf  ;;  %v4475_v31 = vsel %vm11760_vm0, %v10266_v54, -1e+30  ;;  %v4573_v56 = vmax.f32 %v4565_v33, %v4572_v40  ;;  %v10402_v44 = vpop.permute.xlu0 %4217 }
 0x383   : > { %v4577_v7 = vmax.f32 %v4569_v23, %v4576_v25  ;;  %v4476_v5 = vsel %vm4284_vm6, %v10126_v58, -1e+30  ;;  %v4477_v55 = vsel %vm4285_vm2, %v10280_v49, -1e+30  ;;  %v4588_v10 = vsel %vm4481_vm14, %v4472_v43, -inf }
 0x384   : > { %v4592_v46 = vsel %vm4481_vm14, %v4474_v1, -inf  ;;  %vm11766_vm0 = vcmp.eq.s32.totalorder %v10402_v44, %v8271_v53  ;;  %v4479_v40 = vsel %vm11765_vm1, %v10296_v63, -1e+30  ;;  %v4581_v25 = vmax.f32 %v4573_v56, %v4580_v62 }
 0x385   : > { %v4585_v33 = vmax.f32 %v4577_v7, %v4584_v29  ;;  %v4478_v23 = vsel %vm11766_vm0, %v10128_v8, -1e+30  ;;  %v4583_v43 = vmax.f32 %v10250_v17, %v10273_v36  ;;  %v4594_v1 = vsel %vm4481_vm14, %v4475_v31, -inf }
 0x386   : > { %v4596_v49 = vsel %vm4481_vm14, %v4476_v5, -inf  ;;  %v4600_v58 = vsel %vm4481_vm14, %v4478_v23, -inf  ;;  %v4587_v54 = vmax.f32 %v10252_v24, %v10290_v34  ;;  %v4589_v63 = vmax.f32 %v4581_v25, %v4588_v10  ;;  %v10431_v56 = vpop.permute.xlu0 %4223 }
 0x387   : > { %v4593_v62 = vmax.f32 %v4585_v33, %v4592_v46  ;;  %v10429_v29 = vmax.f32 %v10105_v51, %v10143_v14  ;;  %v4591_v7 = vmax.f32 %v4583_v43, %v4590_v21  ;;  %v4598_v17 = vsel %vm4481_vm14, %v4477_v55, -inf }
 0x388   : > { %v4602_v36 = vsel %vm4481_vm14, %v4479_v40, -inf  ;;  %vm4288_vm1 = vcmp.eq.s32.totalorder %v10431_v56, %v8271_v53  ;;  %v4595_v31 = vmax.f32 %v4587_v54, %v4594_v1  ;;  %v4597_v5 = vmax.f32 %v4589_v63, %v4596_v49  ;;  %v4615_v49 = vld [vmem:[#allocation2] sm:$0x1] }
 0x389   : > { %12074 = vst [vmem:[#allocation44_spill] sm:$0xff] %v10429_v29  ;;  %v4601_v23 = vmax.f32 %v4593_v62, %v4600_v58  ;;  %v4480_v46 = vsel %vm4288_vm1, %v10429_v29, -1e+30  ;;  %v4599_v14 = vmax.f32 %v4591_v7, %v4598_v17  ;;  %vm5138_vm0 = vcmask 122880  }
 0x38a   : > { %v4604_v51 = vsel %vm4481_vm14, %v4480_v46, -inf  ;;  %v4603_v24 = vmax.f32 %v4595_v31, %v4602_v36  ;;  %v12075_v63 = vlaneseq  ;;  %v12077_v36 = vmov 0.0  }
 0x38b   : > { %v4605_v21 = vmax.f32 %v4597_v5, %v4604_v51  ;;  %v4606_v34 = vmax.f32 %v4599_v14, %v4601_v23  ;;  %v10453_v5 = vsel %vm4241_vm8, 1.0, %v12077_v36  ;;  %v10459_v46 = vsel %vm4242_vm7, 1.0, %v12077_v36 }
 0x38c   : > { %v4622_v1 = vshrl.u32 %v12075_v63, 7 }
 0x38d   : > { %v4607_v55 = vmax.f32 %v4603_v24, %v4605_v21  ;;  %v10469_v21 = vsel %vm4226_vm3, 1.0, %v12077_v36 }
 0x38e   : > { %v10444_v7 = vsub.s32 0, %v4622_v1 }
 0x38f   : > { %v4608_v10 = vmax.f32 %v4606_v34, %v4607_v55  ;;  %v10475_v55 = vsel %vm4225_vm12, 1.0, %v12077_v36  ;;  %v10511_v34 = vsel %vm4228_vm13, 1.0, %v12077_v36 }
 0x390   : > { %12076 = vst [vmem:[#allocation135_spill] sm:$0xff] %v10444_v7 }
 0x391   : > { %v4609_v40 = vrot.slane %v4608_v10, 4 }
 0x393   : > { %v4610_v25 = vmax.f32 %v4608_v10, %v4609_v40 }
 0x395   : > { %v4611_v33 = vrot.slane %v4610_v25, 2 }
 0x397   : > { %v4612_v43 = vmax.f32 %v4610_v25, %v4611_v33 }
 0x399   : > { %v4613_v54 = vrot.slane %v4612_v43, 1 }
 0x39b   : > { %v4614_v58 = vmax.f32 %v4612_v43, %v4613_v54  ;;  %v10487_v54 = vsel %vm4243_vm9, 1.0, %v12077_v36 }
 0x39d   : > { %v4616_v62 = vmax.f32 %v4615_v49, %v4614_v58  ;;  %v10493_v58 = vsel %vm4244_vm4, 1.0, %v12077_v36 }
 0x39f   : > { %v4617_v29 = vsub.f32 %v4615_v49, %v4616_v62  ;;  %5139 = vst.msk [vmem:[#allocation2] sm:$0x1] %vm5138_vm0, %v4616_v62  ;;  %v10447_v17 = vrot.slane %v4616_v62, %v10444_v7  ;;  %v12088_v49 = vld [vmem:[#allocation30_spill] sm:$0xff] }
 0x3a0   : > { %vm12089_vm12 = vcmp.eq.s32.totalorder %v12088_v49, %v8271_v53 }
 0x3a1   : > { %v4643_v51 = vmul.f32 %v10459_v46, %v10447_v17  ;;  %v4642_v14 = vmul.f32 %v10453_v5, %v10447_v17  ;;  %v4627_v25 = vmul.f32 %v10469_v21, %v10447_v17  ;;  %v4626_v33 = vmul.f32 %v10475_v55, %v10447_v17 }
 0x3a2   : > { %v4645_v62 = vmul.f32 %v10493_v58, %v10447_v17  ;;  %v4644_v31 = vmul.f32 %v10487_v54, %v10447_v17  ;;  %v4618_v23 = vmul.f32 1.442695, %v4617_v29  ;;  %v4629_v29 = vmul.f32 %v10511_v34, %v10447_v17 }
 0x3a3   : > { %v4741_v10 = vsel %vm4481_vm14, %v4643_v51, 0.0  ;;  %v4738_v40 = vsel %vm4481_vm14, %v4642_v14, 0.0  ;;  %v4693_v63 = vsel %vm4481_vm14, %v4627_v25, 0.0  ;;  %v4690_v1 = vsel %vm4481_vm14, %v4626_v33, 0.0  ;;  %v12086_v33 = vld [vmem:[#allocation27_spill] sm:$0xff]  ;;  %v12090_v51 = vld [vmem:[#allocation8_spill] sm:$0xff] }
 0x3a4   : > { %4742 = vadd.xlane.f32.xlu0 %v4741_v10  ;;  %4739 = vadd.xlane.f32.xlu1 %v4738_v40  ;;  %v10505_v14 = vsel %vm4227_vm15, 1.0, %v12077_v36  ;;  %v4747_v10 = vsel %vm4481_vm14, %v4645_v62, 0.0  ;;  %v4744_v40 = vsel %vm4481_vm14, %v4644_v31, 0.0  ;;  %7362 = vpow2.f32 %v4618_v23 }
 0x3a5   : > { %v4628_v25 = vmul.f32 %v10505_v14, %v10447_v17  ;;  %vm12087_vm3 = vcmp.eq.s32.totalorder %v12086_v33, %v8271_v53  ;;  %vm12091_vm13 = vcmp.eq.s32.totalorder %v12090_v51, %v8271_v53 }
 0x3a6   : > { %v10523_v43 = vsel %vm12087_vm3, 1.0, %v12077_v36  ;;  %v10541_v24 = vsel %vm12091_vm13, 1.0, %v12077_v36 }
 0x3a7   : > { %v4696_v62 = vsel %vm4481_vm14, %v4628_v25, 0.0  ;;  %v4646_v23 = vmul.f32 %v10523_v43, %v10447_v17  ;;  %v4630_v49 = vmul.f32 %v10541_v24, %v10447_v17 }
 0x3a8   : > { %4694 = vadd.xlane.f32.xlu1 %v4693_v63  ;;  %4691 = vadd.xlane.f32.xlu0 %v4690_v1  ;;  %v10529_v63 = vsel %vm12089_vm12, 1.0, %v12077_v36  ;;  %v4699_v1 = vsel %vm4481_vm14, %v4629_v29, 0.0 }
 0x3a9   : > { %v4647_v31 = vmul.f32 %v10529_v63, %v10447_v17  ;;  %v4750_v25 = vsel %vm4481_vm14, %v4646_v23, 0.0  ;;  %v4702_v8 = vsel %vm4481_vm14, %v4630_v49, 0.0 }
 0x3ab   : > { %v4753_v29 = vsel %vm4481_vm14, %v4647_v31, 0.0  ;;  %v12097_v31 = vld [vmem:[#allocation32_spill] sm:$0xff] }
 0x3ac   : > { %4748 = vadd.xlane.f32.xlu1 %v4747_v10  ;;  %4745 = vadd.xlane.f32.xlu0 %v4744_v40  ;;  %v12092_v10 = vld [vmem:[#allocation22_spill] sm:$0xff]  ;;  %vm12098_vm7 = vcmp.eq.s32.totalorder %v12097_v31, %v8271_v53  ;;  %v12100_v31 = vld [vmem:[#allocation20_spill] sm:$0xff] }
 0x3ad   : > { %vm12093_vm15 = vcmp.eq.s32.totalorder %v12092_v10, %v8271_v53  ;;  %v10567_v23 = vsel %vm12098_vm7, 1.0, %v12077_v36  ;;  %vm12101_vm8 = vcmp.eq.s32.totalorder %v12100_v31, %v8271_v53  ;;  %v12104_v31 = vld [vmem:[#allocation31_spill] sm:$0xff] }
 0x3ae   : > { %v10547_v40 = vsel %vm12093_vm15, 1.0, %v12077_v36  ;;  %v10583_v35 = vsel %vm12101_vm8, 1.0, %v12077_v36  ;;  %vm12105_vm3 = vcmp.eq.s32.totalorder %v12104_v31, %v8271_v53  ;;  %v12109_v31 = vld [vmem:[#allocation21_spill] sm:$0xff] }
 0x3af   : > { %v4631_v33 = vmul.f32 %v10547_v40, %v10447_v17  ;;  %vm12110_vm13 = vcmp.eq.s32.totalorder %v12109_v31, %v8271_v53  ;;  %v12115_v31 = vld [vmem:[#allocation33_spill] sm:$0xff] }
 0x3b0   : > { %4700 = vadd.xlane.f32.xlu1 %v4699_v1  ;;  %4697 = vadd.xlane.f32.xlu0 %v4696_v62  ;;  %v10555_v1 = vpop.eup %7362  ;;  %v12095_v62 = vld [vmem:[#allocation29_spill] sm:$0xff]  ;;  %v10619_v50 = vsel %vm12110_vm13, 1.0, %v12077_v36 }
 0x3b1   : > { %12094 = vst [vmem:[#allocation13_spill] sm:$0xff] %v10555_v1  ;;  %vm12096_vm4 = vcmp.eq.s32.totalorder %v12095_v62, %v8271_v53  ;;  %v4705_v10 = vsel %vm4481_vm14, %v4631_v33, 0.0  ;;  %v10577_v62 = vrot.slane %v10555_v1, %v10444_v7  ;;  %v12102_v33 = vld [vmem:[#allocation24_spill] sm:$0xff]  ;;  %v4632_v7 = vmul.f32 %v10583_v35, %v10447_v17  ;;  %12111 = vst [vmem:[#allocation18_spill] sm:$0xff] %v10619_v50 }
 0x3b2   : > { %v10561_v51 = vsel %vm12096_vm4, 1.0, %v12077_v36  ;;  %vm12103_vm9 = vcmp.eq.s32.totalorder %v12102_v33, %v8271_v53  ;;  %v12107_v33 = vld [vmem:[#allocation34_spill] sm:$0xff]  ;;  %vm12116_vm4 = vcmp.eq.s32.totalorder %v12115_v31, %v8271_v53  ;;  %v12120_v31 = vld [vmem:[#allocation23_spill] sm:$0xff] }
 0x3b3   : > { %12099 = vst [vmem:[#allocation26_spill] sm:$0xff] %v10577_v62  ;;  %v10589_v49 = vsel %vm12103_vm9, 1.0, %v12077_v36  ;;  %v10601_v62 = vsel %vm12105_vm3, 1.0, %v12077_v36  ;;  %vm12108_vm12 = vcmp.eq.s32.totalorder %v12107_v33, %v8271_v53  ;;  %v4708_v1 = vsel %vm4481_vm14, %v4632_v7, 0.0  ;;  %v12112_v33 = vld [vmem:[#allocation10_spill] sm:$0xff] }
 0x3b4   : > { %4754 = vadd.xlane.f32.xlu1 %v4753_v29  ;;  %4751 = vadd.xlane.f32.xlu0 %v4750_v25  ;;  %v4649_v29 = vmul.f32 %v10567_v23, %v10447_v17  ;;  %v4648_v25 = vmul.f32 %v10561_v51, %v10447_v17  ;;  %12106 = vst [vmem:[#allocation16_spill] sm:$0xff] %v10601_v62 }
 0x3b5   : > { %vm12113_vm15 = vcmp.eq.s32.totalorder %v12112_v33, %v8271_v53  ;;  %v12117_v33 = vld [vmem:[#allocation42_spill] sm:$0xff]  ;;  %vm12121_vm8 = vcmp.eq.s32.totalorder %v12120_v31, %v8271_v53  ;;  %vm12125_vm3 = vcmp.eq.s32.totalorder %v12035_v9, %v8271_v53  ;;  %v12128_v9 = vld [vmem:[#allocation9_spill] sm:$0xff] }
 0x3b6   : > { %v4759_v19 = vsel %vm4481_vm14, %v4649_v29, 0.0  ;;  %v10607_v29 = vsel %vm12108_vm12, 1.0, %v12077_v36  ;;  %vm12118_vm7 = vcmp.eq.s32.totalorder %v12117_v33, %v8271_v53  ;;  %v12123_v33 = vld [vmem:[#allocation12_spill] sm:$0xff]  ;;  %v10673_v31 = vsel %vm12125_vm3, 1.0, %v12077_v36 }
 0x3b7   : > { %vm12124_vm9 = vcmp.eq.s32.totalorder %v12123_v33, %v8271_v53  ;;  %vm12126_vm12 = vcmp.eq.s32.totalorder %v9956_v3, %v8271_v53  ;;  %vm12129_vm13 = vcmp.eq.s32.totalorder %v12128_v9, %v8271_v53  ;;  %v12131_v3 = vld [vmem:[#allocation14_spill] sm:$0xff]  ;;  %vm12141_vm3 = vcmp.eq.s32.totalorder %v10044_v18, %v8271_v53 }
 0x3b8   : > { %4706 = vadd.xlane.f32.xlu1 %v4705_v10  ;;  %4703 = vadd.xlane.f32.xlu0 %v4702_v8  ;;  %v4756_v8 = vsel %vm4481_vm14, %v4648_v25, 0.0  ;;  %v4633_v10 = vmul.f32 %v10589_v49, %v10447_v17 }
 0x3ba   : > { %v4711_v25 = vsel %vm4481_vm14, %v4633_v10, 0.0  ;;  %v10625_v10 = vsel %vm12113_vm15, 1.0, %v12077_v36  ;;  %vm12132_vm15 = vcmp.eq.s32.totalorder %v12131_v3, %v8271_v53 }
 0x3bb   : > { %12114 = vst [vmem:[#allocation25_spill] sm:$0xff] %v10625_v10 }
 0x3bc   : > { %4760 = vadd.xlane.f32.xlu1 %v4759_v19  ;;  %4757 = vadd.xlane.f32.xlu0 %v4756_v8  ;;  %v4651_v19 = vmul.f32 %v10607_v29, %v10447_v17  ;;  %v4650_v8 = vmul.f32 %v10601_v62, %v10447_v17  ;;  %v10637_v62 = vsel %vm12116_vm4, 1.0, %v12077_v36  ;;  %vm12133_vm4 = vcmp.eq.s32.totalorder %v12038_v60, %v8271_v53  ;;  %v12137_v60 = vld [vmem:[#allocation11_spill] sm:$0xff] }
 0x3bd   : > { %v10709_v9 = vsel %vm12133_vm4, 1.0, %v12077_v36  ;;  %vm12145_vm4 = vcmp.eq.s32.totalorder %v10082_v27, %v8271_v53 }
 0x3be   : > { %v4765_v7 = vsel %vm4481_vm14, %v4651_v19, 0.0  ;;  %v4762_v30 = vsel %vm4481_vm14, %v4650_v8, 0.0  ;;  %v10643_v19 = vsel %vm12118_vm7, 1.0, %v12077_v36  ;;  %12134 = vst [vmem:[#allocation30_spill] sm:$0xff] %v10709_v9  ;;  %vm12135_vm7 = vcmp.eq.s32.totalorder %v9978_v32, %v8271_v53  ;;  %v12139_v32 = vld [vmem:[#allocation15_spill] sm:$0xff] }
 0x3bf   : > { %12119 = vst [vmem:[#allocation28_spill] sm:$0xff] %v10643_v19 }
 0x3c0   : > { %4712 = vadd.xlane.f32.xlu1 %v4711_v25  ;;  %4709 = vadd.xlane.f32.xlu0 %v4708_v1  ;;  %v4635_v25 = vmul.f32 %v10625_v10, %v10447_v17  ;;  %v4634_v1 = vmul.f32 %v10619_v50, %v10447_v17  ;;  %v10655_v50 = vsel %vm12121_vm8, 1.0, %v12077_v36  ;;  %vm12138_vm8 = vcmp.eq.s32.totalorder %v12137_v60, %v8271_v53 }
 0x3c1   : > { %12122 = vst [vmem:[#allocation17_spill] sm:$0xff] %v10655_v50 }
 0x3c2   : > { %v4717_v8 = vsel %vm4481_vm14, %v4635_v25, 0.0  ;;  %v4714_v10 = vsel %vm4481_vm14, %v4634_v1, 0.0  ;;  %v10661_v25 = vsel %vm12124_vm9, 1.0, %v12077_v36  ;;  %vm12140_vm9 = vcmp.eq.s32.totalorder %v12139_v32, %v8271_v53 }
 0x3c4   : > { %4766 = vadd.xlane.f32.xlu1 %v4765_v7  ;;  %4763 = vadd.xlane.f32.xlu0 %v4762_v30  ;;  %v4653_v7 = vmul.f32 %v10643_v19, %v10447_v17  ;;  %v4652_v30 = vmul.f32 %v10637_v62, %v10447_v17 }
 0x3c6   : > { %v4771_v1 = vsel %vm4481_vm14, %v4653_v7, 0.0  ;;  %v4768_v19 = vsel %vm4481_vm14, %v4652_v30, 0.0  ;;  %v10679_v7 = vsel %vm12126_vm12, 1.0, %v12077_v36  ;;  %vm12142_vm12 = vcmp.eq.s32.totalorder %v10205_v4, %v8271_v53 }
 0x3c7   : > { %12127 = vst [vmem:[#allocation19_spill] sm:$0xff] %v10679_v7 }
 0x3c8   : > { %4718 = vadd.xlane.f32.xlu1 %v4717_v8  ;;  %4715 = vadd.xlane.f32.xlu0 %v4714_v10  ;;  %v4637_v8 = vmul.f32 %v10661_v25, %v10447_v17  ;;  %v4636_v10 = vmul.f32 %v10655_v50, %v10447_v17  ;;  %v10691_v50 = vsel %vm12129_vm13, 1.0, %v12077_v36  ;;  %vm12143_vm13 = vcmp.eq.s32.totalorder %v9786_v41, %v8271_v53 }
 0x3c9   : > { %12130 = vst [vmem:[#allocation27_spill] sm:$0xff] %v10691_v50  ;;  %v10763_v18 = vsel %vm12143_vm13, 1.0, %v12077_v36  ;;  %v10781_v41 = vsel %vm12145_vm4, 1.0, %v12077_v36  ;;  %vm12154_vm13 = vcmp.eq.s32.totalorder %v10172_v28, %v8271_v53  ;;  %vm12159_vm4 = vcmp.eq.s32.totalorder %v10218_v39, %v8271_v53 }
 0x3ca   : > { %v4723_v30 = vsel %vm4481_vm14, %v4637_v8, 0.0  ;;  %v4720_v33 = vsel %vm4481_vm14, %v4636_v10, 0.0  ;;  %v10697_v8 = vsel %vm12132_vm15, 1.0, %v12077_v36  ;;  %vm12144_vm15 = vcmp.eq.s32.totalorder %v10002_v61, %v8271_v53 }
 0x3cb   : > { %v10769_v4 = vsel %vm12144_vm15, 1.0, %v12077_v36  ;;  %v10787_v61 = vsel %vm4276_vm10, 1.0, %v12077_v36  ;;  %vm12147_vm10 = vcmp.eq.s32.totalorder %v10021_v15, %v8271_v53  ;;  %vm12157_vm15 = vcmp.eq.s32.totalorder %v9903_v11, %v8271_v53 }
 0x3cc   : > { %4772 = vadd.xlane.f32.xlu1 %v4771_v1  ;;  %4769 = vadd.xlane.f32.xlu0 %v4768_v19  ;;  %v4655_v1 = vmul.f32 %v10679_v7, %v10447_v17  ;;  %v4654_v19 = vmul.f32 %v10673_v31, %v10447_v17  ;;  %v10805_v42 = vsel %vm12147_vm10, 1.0, %v12077_v36  ;;  %v10871_v28 = vsel %vm12157_vm15, 1.0, %v12077_v36 }
 0x3cd   : > { %v10889_v11 = vsel %vm12159_vm4, 1.0, %v12077_v36  ;;  %vm12164_vm10 = vcmp.eq.s32.totalorder %v10258_v13, %v8271_v53  ;;  %v12167_v13 = vld [vmem:[#allocation51_spill] sm:$0xff] }
 0x3ce   : > { %v4777_v10 = vsel %vm4481_vm14, %v4655_v1, 0.0  ;;  %v4774_v7 = vsel %vm4481_vm14, %v4654_v19, 0.0  ;;  %v10715_v1 = vsel %vm12135_vm7, 1.0, %v12077_v36  ;;  %v4656_v19 = vmul.f32 %v10709_v9, %v10447_v17  ;;  %12160 = vst [vmem:[#allocation24_spill] sm:$0xff] %v10889_v11 }
 0x3cf   : > { %12136 = vst [vmem:[#allocation8_spill] sm:$0xff] %v10715_v1  ;;  %v4657_v3 = vmul.f32 %v10715_v1, %v10447_v17  ;;  %v10733_v9 = vsel %vm12140_vm9, 1.0, %v12077_v36  ;;  %vm12146_vm7 = vcmp.eq.s32.totalorder %v12042_v0, %v8271_v53  ;;  %vm12150_vm9 = vcmp.eq.s32.totalorder %v10260_v52, %v8271_v53 }
 0x3d0   : > { %4724 = vadd.xlane.f32.xlu1 %v4723_v30  ;;  %4721 = vadd.xlane.f32.xlu0 %v4720_v33  ;;  %v4639_v30 = vmul.f32 %v10697_v8, %v10447_v17  ;;  %v4638_v33 = vmul.f32 %v10691_v50, %v10447_v17  ;;  %v10727_v50 = vsel %vm12138_vm8, 1.0, %v12077_v36  ;;  %v10799_v27 = vsel %vm12146_vm7, 1.0, %v12077_v36 }
 0x3d1   : > { %v4783_v1 = vsel %vm4481_vm14, %v4657_v3, 0.0  ;;  %v10751_v3 = vsel %vm12142_vm12, 1.0, %v12077_v36  ;;  %vm12148_vm8 = vcmp.eq.s32.totalorder %v10137_v20, %v8271_v53  ;;  %v10823_v15 = vsel %vm12150_vm9, 1.0, %v12077_v36 }
 0x3d2   : > { %v4675_v60 = vmul.f32 %v10751_v3, %v10447_v17  ;;  %v10817_v0 = vsel %vm12148_vm8, 1.0, %v12077_v36  ;;  %12151 = vst [vmem:[#allocation29_spill] sm:$0xff] %v10823_v15  ;;  %vm12153_vm12 = vcmp.eq.s32.totalorder %v10037_v48, %v8271_v53  ;;  %v10859_v48 = vsel %vm4280_vm11, 1.0, %v12077_v36 }
 0x3d3   : > { %12149 = vst [vmem:[#allocation22_spill] sm:$0xff] %v10817_v0  ;;  %v10841_v52 = vsel %vm12153_vm12, 1.0, %v12077_v36  ;;  %12156 = vst [vmem:[#allocation20_spill] sm:$0xff] %v10859_v48  ;;  %vm12158_vm11 = vcmp.eq.s32.totalorder %v10058_v37, %v8271_v53  ;;  %v10895_v37 = vsel %vm4282_vm5, 1.0, %v12077_v36  ;;  %vm12162_vm7 = vcmp.eq.s32.totalorder %v9929_v16, %v8271_v53 }
 0x3d4   : > { %4778 = vadd.xlane.f32.xlu1 %v4777_v10  ;;  %4775 = vadd.xlane.f32.xlu0 %v4774_v7  ;;  %v4729_v7 = vsel %vm4481_vm14, %v4639_v30, 0.0  ;;  %v4726_v10 = vsel %vm4481_vm14, %v4638_v33, 0.0  ;;  %v4780_v30 = vsel %vm4481_vm14, %v4656_v19, 0.0  ;;  %v4641_v33 = vmul.f32 %v10733_v9, %v10447_v17  ;;  %12161 = vst [vmem:[#allocation31_spill] sm:$0xff] %v10895_v37 }
 0x3d5   : > { %v10877_v57 = vsel %vm12158_vm11, 1.0, %v12077_v36  ;;  %v10907_v39 = vsel %vm12162_vm7, 1.0, %v12077_v36  ;;  %vm12163_vm5 = vcmp.eq.s32.totalorder %v10084_v2, %v8271_v53  ;;  %v10925_v16 = vsel %vm12164_vm10, 1.0, %v12077_v36 }
 0x3d6   : > { %v10913_v22 = vsel %vm12163_vm5, 1.0, %v12077_v36  ;;  %12165 = vst [vmem:[#allocation34_spill] sm:$0xff] %v10925_v16  ;;  %v10931_v2 = vsel %vm4284_vm6, 1.0, %v12077_v36  ;;  %vm12168_vm8 = vcmp.eq.s32.totalorder %v12167_v13, %v8271_v53  ;;  %vm12169_vm6 = vcmp.eq.s32.totalorder %v10122_v47, %v8271_v53 }
 0x3d7   : > { %12166 = vst [vmem:[#allocation21_spill] sm:$0xff] %v10931_v2  ;;  %v10949_v38 = vsel %vm12169_vm6, 1.0, %v12077_v36  ;;  %vm12171_vm9 = vcmp.eq.s32.totalorder %v10402_v44, %v8271_v53  ;;  %vm12176_vm12 = vcmp.eq.s32.totalorder %v10363_v12, %v8271_v53  ;;  %v12179_v12 = vld [vmem:[#allocation63_spill] sm:$0xff]  ;;  %vm12302_vm7 = vcmask (!%p6270_p5), 261120  }
 0x3d8   : > { %4730 = vadd.xlane.f32.xlu1 %v4729_v7  ;;  %4727 = vadd.xlane.f32.xlu0 %v4726_v10  ;;  %v4640_v7 = vmul.f32 %v10727_v50, %v10447_v17  ;;  %v10745_v10 = vsel %vm12141_vm3, 1.0, %v12077_v36  ;;  %vm12152_vm3 = vcmp.eq.s32.totalorder %v12046_v45, %v8271_v53  ;;  %v10853_v45 = vsel %vm12154_vm13, 1.0, %v12077_v36  ;;  %vm12303_vm5 = vmmov (!%p6270_p5), %vm12302_vm7 }
 0x3d9   : > { %v4674_v19 = vmul.f32 %v10745_v10, %v10447_v17  ;;  %v10835_v20 = vsel %vm12152_vm3, 1.0, %v12077_v36  ;;  %12155 = vst [vmem:[#allocation32_spill] sm:$0xff] %v10853_v45  ;;  %v10967_v47 = vsel %vm12171_vm9, 1.0, %v12077_v36  ;;  %vm12175_vm3 = vcmp.eq.s32.totalorder %v10149_v26, %v8271_v53  ;;  %vm12304_vm10 = vmmov (!%p6270_p5), %vm12303_vm5 }
 0x3da   : > { %v4732_v32 = vsel %vm4481_vm14, %v4640_v7, 0.0  ;;  %v4837_v7 = vsel %vm4481_vm14, %v4675_v60, 0.0  ;;  %12172 = vst [vmem:[#allocation33_spill] sm:$0xff] %v10967_v47  ;;  %v10985_v44 = vsel %vm12175_vm3, 1.0, %v12077_v36  ;;  %v11003_v26 = vsel %vm4288_vm1, 1.0, %v12077_v36 }
 0x3db   : > { %12178 = vst [vmem:[#allocation23_spill] sm:$0xff] %v11003_v26  ;;  %vm12180_vm13 = vcmp.eq.s32.totalorder %v12179_v12, %v8271_v53  ;;  %vm12181_vm1 = vcmp.eq.s32.totalorder %v10174_v59, %v8271_v53 }
 0x3dc   : > { %4784 = vadd.xlane.f32.xlu1 %v4783_v1  ;;  %4781 = vadd.xlane.f32.xlu0 %v4780_v30  ;;  %v4735_v1 = vsel %vm4481_vm14, %v4641_v33, 0.0  ;;  %v4658_v30 = vmul.f32 %v10763_v18, %v10447_v17  ;;  %v4659_v33 = vmul.f32 %v10769_v4, %v10447_v17  ;;  %v11021_v56 = vsel %vm12181_vm1, 1.0, %v12077_v36 }
 0x3de   : > { %v4789_v60 = vsel %vm4481_vm14, %v4659_v33, 0.0 }
 0x3e0   : > { %4736 = vadd.xlane.f32.xlu1 %v4735_v1  ;;  %4733 = vadd.xlane.f32.xlu0 %v4732_v32  ;;  %v4834_v1 = vsel %vm4481_vm14, %v4674_v19, 0.0  ;;  %v4676_v32 = vmul.f32 %v10781_v41, %v10447_v17  ;;  %v4677_v19 = vmul.f32 %v10787_v61, %v10447_v17 }
 0x3e2   : > { %v4843_v33 = vsel %vm4481_vm14, %v4677_v19, 0.0 }
 0x3e4   : > { %4838 = vadd.xlane.f32.xlu1 %v4837_v7  ;;  %4835 = vadd.xlane.f32.xlu0 %v4834_v1  ;;  %v4786_v7 = vsel %vm4481_vm14, %v4658_v30, 0.0  ;;  %v4660_v1 = vmul.f32 %v10799_v27, %v10447_v17  ;;  %v4661_v30 = vmul.f32 %v10805_v42, %v10447_v17 }
 0x3e6   : > { %v4795_v19 = vsel %vm4481_vm14, %v4661_v30, 0.0 }
 0x3e8   : > { %4790 = vadd.xlane.f32.xlu1 %v4789_v60  ;;  %4787 = vadd.xlane.f32.xlu0 %v4786_v7  ;;  %v4840_v60 = vsel %vm4481_vm14, %v4676_v32, 0.0  ;;  %v4678_v7 = vmul.f32 %v10817_v0, %v10447_v17  ;;  %v4679_v32 = vmul.f32 %v10823_v15, %v10447_v17 }
 0x3ea   : > { %v4846_v30 = vsel %vm4481_vm14, %v4678_v7, 0.0  ;;  %v4680_v7 = vmul.f32 %v10853_v45, %v10447_v17  ;;  %v12186_v45 = vld [vmem:[#allocation50_spill] sm:$0xff] }
 0x3ec   : > { %4844 = vadd.xlane.f32.xlu1 %v4843_v33  ;;  %4841 = vadd.xlane.f32.xlu0 %v4840_v60  ;;  %v4792_v33 = vsel %vm4481_vm14, %v4660_v1, 0.0  ;;  %v4849_v60 = vsel %vm4481_vm14, %v4679_v32, 0.0  ;;  %v4663_v1 = vmul.f32 %v10841_v52, %v10447_v17  ;;  %v4681_v32 = vmul.f32 %v10859_v48, %v10447_v17 }
 0x3f0   : > { %4796 = vadd.xlane.f32.xlu1 %v4795_v19  ;;  %4793 = vadd.xlane.f32.xlu0 %v4792_v33  ;;  %v4662_v19 = vmul.f32 %v10835_v20, %v10447_v17  ;;  %v4801_v33 = vsel %vm4481_vm14, %v4663_v1, 0.0  ;;  %v4665_v1 = vmul.f32 %v10877_v57, %v10447_v17 }
 0x3f4   : > { %4850 = vadd.xlane.f32.xlu1 %v4849_v60  ;;  %4847 = vadd.xlane.f32.xlu0 %v4846_v30  ;;  %v4798_v60 = vsel %vm4481_vm14, %v4662_v19, 0.0  ;;  %v4664_v30 = vmul.f32 %v10871_v28, %v10447_v17  ;;  %v4855_v19 = vsel %vm4481_vm14, %v4681_v32, 0.0  ;;  %v4807_v32 = vsel %vm4481_vm14, %v4665_v1, 0.0 }
 0x3f8   : > { %4802 = vadd.xlane.f32.xlu1 %v4801_v33  ;;  %4799 = vadd.xlane.f32.xlu0 %v4798_v60  ;;  %v4852_v33 = vsel %vm4481_vm14, %v4680_v7, 0.0  ;;  %v4682_v60 = vmul.f32 %v10889_v11, %v10447_v17  ;;  %v4683_v7 = vmul.f32 %v10895_v37, %v10447_v17 }
 0x3fa   : > { %v4861_v1 = vsel %vm4481_vm14, %v4683_v7, 0.0 }
 0x3fc   : > { %4856 = vadd.xlane.f32.xlu1 %v4855_v19  ;;  %4853 = vadd.xlane.f32.xlu0 %v4852_v33  ;;  %v4804_v19 = vsel %vm4481_vm14, %v4664_v30, 0.0  ;;  %v4666_v33 = vmul.f32 %v10907_v39, %v10447_v17  ;;  %v4667_v30 = vmul.f32 %v10913_v22, %v10447_v17 }
 0x3fe   : > { %v4813_v7 = vsel %vm4481_vm14, %v4667_v30, 0.0 }
 0x400   : > { %4808 = vadd.xlane.f32.xlu1 %v4807_v32  ;;  %4805 = vadd.xlane.f32.xlu0 %v4804_v19  ;;  %v4858_v32 = vsel %vm4481_vm14, %v4682_v60, 0.0  ;;  %v4684_v19 = vmul.f32 %v10925_v16, %v10447_v17  ;;  %v4685_v60 = vmul.f32 %v10931_v2, %v10447_v17 }
 0x402   : > { %v4867_v30 = vsel %vm4481_vm14, %v4685_v60, 0.0 }
 0x404   : > { %4862 = vadd.xlane.f32.xlu1 %v4861_v1  ;;  %4859 = vadd.xlane.f32.xlu0 %v4858_v32  ;;  %v4810_v1 = vsel %vm4481_vm14, %v4666_v33, 0.0  ;;  %v10943_v32 = vsel %vm12168_vm8, 1.0, %v12077_v36  ;;  %v4669_v33 = vmul.f32 %v10949_v38, %v10447_v17  ;;  %vm12305_vm8 = vmmov (!%p6270_p5), %vm12303_vm5 }
 0x405   : > { %v4668_v2 = vmul.f32 %v10943_v32, %v10447_v17 }
 0x406   : > { %v4819_v60 = vsel %vm4481_vm14, %v4669_v33, 0.0 }
 0x408   : > { %4814 = vadd.xlane.f32.xlu1 %v4813_v7  ;;  %4811 = vadd.xlane.f32.xlu0 %v4810_v1  ;;  %v4864_v7 = vsel %vm4481_vm14, %v4684_v19, 0.0  ;;  %v10961_v1 = vsel %vm4285_vm2, 1.0, %v12077_v36  ;;  %v4687_v19 = vmul.f32 %v10967_v47, %v10447_v17  ;;  %vm12174_vm2 = vcmp.eq.s32.totalorder %v12173_v6, %v8271_v53 }
 0x409   : > { %12170 = vst [vmem:[#allocation10_spill] sm:$0xff] %v10961_v1  ;;  %v4686_v13 = vmul.f32 %v10961_v1, %v10447_v17  ;;  %v4689_v6 = vmul.f32 %v11003_v26, %v10447_v17  ;;  %v12183_v1 = vld [vmem:[#allocation47_spill] sm:$0xff] }
 0x40a   : > { %v4873_v33 = vsel %vm4481_vm14, %v4687_v19, 0.0 }
 0x40c   : > { %4868 = vadd.xlane.f32.xlu1 %v4867_v30  ;;  %4865 = vadd.xlane.f32.xlu0 %v4864_v7  ;;  %v4816_v30 = vsel %vm4481_vm14, %v4668_v2, 0.0  ;;  %v10979_v7 = vsel %vm12174_vm2, 1.0, %v12077_v36  ;;  %v4671_v2 = vmul.f32 %v10985_v44, %v10447_v17 }
 0x40d   : > { %v4670_v47 = vmul.f32 %v10979_v7, %v10447_v17 }
 0x40e   : > { %v4825_v19 = vsel %vm4481_vm14, %v4671_v2, 0.0 }
 0x410   : > { %4820 = vadd.xlane.f32.xlu1 %v4819_v60  ;;  %4817 = vadd.xlane.f32.xlu0 %v4816_v30  ;;  %v4870_v60 = vsel %vm4481_vm14, %v4686_v13, 0.0  ;;  %v10997_v30 = vsel %vm12176_vm12, 1.0, %v12077_v36 }
 0x411   : > { %12177 = vst [vmem:[#allocation42_spill] sm:$0xff] %v10997_v30  ;;  %v4688_v13 = vmul.f32 %v10997_v30, %v10447_v17 }
 0x413   : > { %v4876_v2 = vsel %vm4481_vm14, %v4688_v13, 0.0 }
 0x414   : > { %4874 = vadd.xlane.f32.xlu1 %v4873_v33  ;;  %4871 = vadd.xlane.f32.xlu0 %v4870_v60  ;;  %v4822_v33 = vsel %vm4481_vm14, %v4670_v47, 0.0  ;;  %v11015_v60 = vsel %vm12180_vm13, 1.0, %v12077_v36  ;;  %v4673_v47 = vmul.f32 %v11021_v56, %v10447_v17  ;;  %v12182_v36 = vld [vmem:[#allocation91_spill] sm:$0xff] }
 0x415   : > { %v4672_v26 = vmul.f32 %v11015_v60, %v10447_v17 }
 0x416   : > { %v4831_v12 = vsel %vm4481_vm14, %v4673_v47, 0.0 }
 0x418   : > { %4826 = vadd.xlane.f32.xlu1 %v4825_v19  ;;  %4823 = vadd.xlane.f32.xlu0 %v4822_v33  ;;  %v4879_v19 = vsel %vm4481_vm14, %v4689_v6, 0.0  ;;  %v4828_v33 = vsel %vm4481_vm14, %v4672_v26, 0.0  ;;  %v12184_v6 = vld [vmem:[#allocation54_spill] sm:$0xff] }
 0x41c   : > { %4877 = vadd.xlane.f32.xlu0 %v4876_v2  ;;  %4880 = vadd.xlane.f32.xlu1 %v4879_v19  ;;  %v12185_v19 = vld [vmem:[#allocation55_spill] sm:$0xff] }
 0x420   : > { %4829 = vadd.xlane.f32.xlu0 %v4828_v33  ;;  %4832 = vadd.xlane.f32.xlu1 %v4831_v12 }
 0x431   : > { %v4743_v53 = vpop.xlane.xlu0 %4742  ;;  %v4740_v59 = vpop.xlane.xlu1 %4739 }
 0x432   : > { %v4899_v30 = vsub.f32 %v12182_v36, %v4743_v53  ;;  %v4898_v16 = vsub.f32 %v12183_v1, %v4740_v59  ;;  %v12187_v53 = vld [vmem:[#allocation92_spill] sm:$0xff] }
 0x434   : > { %v4980_v37 = vmul.f32 1.442695, %v4899_v30  ;;  %v4978_v17 = vmul.f32 1.442695, %v4898_v16 }
 0x435   : > { %v4695_v11 = vpop.xlane.xlu1 %4694  ;;  %v4692_v13 = vpop.xlane.xlu0 %4691 }
 0x436   : > { %7364 = vpow2.f32 %v4980_v37  ;;  %v4883_v2 = vsub.f32 %v12184_v6, %v4695_v11  ;;  %v4882_v48 = vsub.f32 %v12185_v19, %v4692_v13  ;;  %v12188_v37 = vld [vmem:[#allocation57_spill] sm:$0xff]  ;;  %v12189_v6 = vld [vmem:[#allocation59_spill] sm:$0xff] }
 0x437   : > { %7366 = vpow2.f32 %v4978_v17 }
 0x438   : > { %v4948_v26 = vmul.f32 1.442695, %v4883_v2  ;;  %v4946_v47 = vmul.f32 1.442695, %v4882_v48 }
 0x439   : > { %v4749_v33 = vpop.xlane.xlu1 %4748  ;;  %v4746_v12 = vpop.xlane.xlu0 %4745 }
 0x43a   : > { %7368 = vpow2.f32 %v4948_v26  ;;  %v4901_v15 = vsub.f32 %v12186_v45, %v4749_v33  ;;  %v4900_v36 = vsub.f32 %v12187_v53, %v4746_v12  ;;  %v12191_v33 = vld [vmem:[#allocation94_spill] sm:$0xff] }
 0x43b   : > { %7370 = vpow2.f32 %v4946_v47 }
 0x43c   : > { %v4984_v1 = vmul.f32 1.442695, %v4901_v15  ;;  %v4982_v16 = vmul.f32 1.442695, %v4900_v36  ;;  %v12190_v15 = vld [vmem:[#allocation96_spill] sm:$0xff] }
 0x43d   : > { %v4701_v30 = vpop.xlane.xlu1 %4700  ;;  %v4698_v59 = vpop.xlane.xlu0 %4697 }
 0x43e   : > { %7372 = vpow2.f32 %v4984_v1  ;;  %v4885_v11 = vsub.f32 %v12188_v37, %v4701_v30  ;;  %v4884_v13 = vsub.f32 %v12189_v6, %v4698_v59  ;;  %v12192_v6 = vld [vmem:[#allocation61_spill] sm:$0xff] }
 0x43f   : > { %7374 = vpow2.f32 %v4982_v16 }
 0x440   : > { %v7365_v17 = vpop.eup %7364  ;;  %v4952_v48 = vmul.f32 1.442695, %v4885_v11  ;;  %v4950_v2 = vmul.f32 1.442695, %v4884_v13  ;;  %v12193_v13 = vld [vmem:[#allocation64_spill] sm:$0xff] }
 0x441   : > { %v7367_v19 = vpop.eup %7366  ;;  %v4755_v26 = vpop.xlane.xlu1 %4754  ;;  %v11040_v45 = vmul.f32 %v7365_v17, %v10459_v46 }
 0x442   : > { %v4752_v0 = vpop.xlane.xlu0 %4751  ;;  %7376 = vpow2.f32 %v4952_v48  ;;  %v4903_v47 = vsub.f32 %v12190_v15, %v4755_v26  ;;  %v11045_v53 = vmul.f32 %v7367_v19, %v10453_v5 }
 0x443   : > { %v4902_v12 = vsub.f32 %v12191_v33, %v4752_v0  ;;  %7378 = vpow2.f32 %v4950_v2 }
 0x444   : > { %v7369_v36 = vpop.eup %7368  ;;  %v4988_v1 = vmul.f32 1.442695, %v4903_v47  ;;  %v7088_v30 = vpack.c.bf16 %v11040_v45, %v11045_v53 }
 0x445   : > { %v4986_v16 = vmul.f32 1.442695, %v4902_v12  ;;  %v7371_v59 = vpop.eup %7370  ;;  %v4707_v37 = vpop.xlane.xlu1 %4706  ;;  %v11050_v46 = vmul.f32 %v7369_v36, %v10469_v21  ;;  %v12194_v12 = vld [vmem:[#allocation97_spill] sm:$0xff] }
 0x446   : > { %v4704_v11 = vpop.xlane.xlu0 %4703  ;;  %7380 = vpow2.f32 %v4988_v1  ;;  %7089 = vmatprep.subr.bf16.mxu1 %v7088_v30  ;;  %v4887_v0 = vsub.f32 %v12192_v6, %v4707_v37  ;;  %v11055_v17 = vmul.f32 %v7371_v59, %v10475_v55  ;;  %v12195_v1 = vld [vmem:[#allocation98_spill] sm:$0xff] }
 0x447   : > { %v4886_v5 = vsub.f32 %v12193_v13, %v4704_v11  ;;  %7382 = vpow2.f32 %v4986_v16 }
 0x448   : > { %v7373_v48 = vpop.eup %7372  ;;  %v4956_v2 = vmul.f32 1.442695, %v4887_v0  ;;  %v7090_v26 = vpack.c.bf16 %v11050_v46, %v11055_v17 }
 0x449   : > { %v4954_v19 = vmul.f32 1.442695, %v4886_v5  ;;  %v7375_v15 = vpop.eup %7374  ;;  %v4761_v47 = vpop.xlane.xlu1 %4760  ;;  %v11060_v33 = vmul.f32 %v7373_v48, %v10493_v58  ;;  %v12196_v58 = vld [vmem:[#allocation67_spill] sm:$0xff]  ;;  %v12197_v48 = vld [vmem:[#allocation66_spill] sm:$0xff] }
 0x44a   : > { %v4758_v21 = vpop.xlane.xlu0 %4757  ;;  %7384 = vpow2.f32 %v4956_v2  ;;  %v4905_v36 = vsub.f32 %v12194_v12, %v4761_v47  ;;  %7091 = vmatpush3.bf16.msra.mxu1 %v7090_v26  ;;  %v11065_v16 = vmul.f32 %v7375_v15, %v10487_v54  ;;  %v12198_v54 = vld [vmem:[#allocation68_spill] sm:$0xff] }
 0x44b   : > { %v4904_v55 = vsub.f32 %v12195_v1, %v4758_v21  ;;  %7386 = vpow2.f32 %v4954_v19 }
 0x44c   : > { %v7377_v30 = vpop.eup %7376  ;;  %v4992_v59 = vmul.f32 1.442695, %v4905_v36  ;;  %v7092_v11 = vpack.c.bf16 %v11060_v33, %v11065_v16 }
 0x44d   : > { %v4990_v37 = vmul.f32 1.442695, %v4904_v55  ;;  %v7379_v6 = vpop.eup %7378  ;;  %v4713_v0 = vpop.xlane.xlu1 %4712  ;;  %7259 = vxpose.xlu0.b32.start [1/16] (narrow) %v12196_v58, 32  ;;  %v11071_v5 = vmul.f32 %v7377_v30, %v10511_v34  ;;  %v12199_v55 = vld [vmem:[#allocation65_spill] sm:$0xff] }
 0x44e   : > { %v4710_v13 = vpop.xlane.xlu0 %4709  ;;  %7388 = vpow2.f32 %v4992_v59  ;;  %v4889_v2 = vsub.f32 %v12197_v48, %v4713_v0  ;;  %7093 = vmatprep.subr.bf16.mxu1 %v7092_v11  ;;  %v5076_v26 = vmul.f32 %v7379_v6, %v10505_v14  ;;  %v12200_v59 = vld [vmem:[#allocation38_spill] sm:$0xff]  ;;  %v12201_v0 = vld [vmem:[#allocation100_spill] sm:$0xff] }
 0x44f   : > { %v4888_v19 = vsub.f32 %v12198_v54, %v4710_v13  ;;  %7390 = vpow2.f32 %v4990_v37  ;;  %v12202_v6 = vld [vmem:[#allocation110_spill] sm:$0xff] }
 0x450   : > { %v7381_v15 = vpop.eup %7380  ;;  %v4960_v47 = vmul.f32 1.442695, %v4889_v2  ;;  %v7094_v12 = vpack.c.bf16 %v11071_v5, %v5076_v26 }
 0x451   : > { %v4958_v21 = vmul.f32 1.442695, %v4888_v19  ;;  %v7383_v36 = vpop.eup %7382  ;;  %v4767_v1 = vpop.xlane.xlu1 %4766  ;;  %7261 = vxpose.xlu0.b32.cont [2/16] (narrow) %v12199_v55, 32  ;;  %v11079_v30 = vmul.f32 %v7381_v15, %v10529_v63  ;;  %v12203_v19 = vld [vmem:[#allocation70_spill] sm:$0xff]  ;;  %v5143_v55 = vsel %vm4481_vm14, %v11050_v46, 0.0 }
 0x452   : > { %v4764_v34 = vpop.xlane.xlu0 %4763  ;;  %7392 = vpow2.f32 %v4960_v47  ;;  %v4907_v11 = vsub.f32 %v12200_v59, %v4767_v1  ;;  %7095 = vmatpush3.bf16.msra.mxu1 %v7094_v12  ;;  %v11084_v37 = vmul.f32 %v7383_v36, %v10523_v43  ;;  %v12204_v43 = vld [vmem:[#allocation75_spill] sm:$0xff] }
 0x453   : > { %v4906_v14 = vsub.f32 %v12201_v0, %v4764_v34  ;;  %7394 = vpow2.f32 %v4958_v21  ;;  %7311 = vxpose.xlu1.b32.start [1/16] (narrow) %v12202_v6, 32  ;;  %v12205_v21 = vld [vmem:[#allocation76_spill] sm:$0xff]  ;;  %v12206_v34 = vld [vmem:[#allocation109_spill] sm:$0xff] }
 0x454   : > { %v7385_v58 = vpop.eup %7384  ;;  %v4996_v13 = vmul.f32 1.442695, %v4907_v11  ;;  %v7096_v2 = vpack.c.bf16 %v11079_v30, %v11084_v37  ;;  %v5142_v11 = vsel %vm4481_vm14, %v11055_v17, 0.0 }
 0x455   : > { %v4994_v48 = vmul.f32 1.442695, %v4906_v14  ;;  %v7387_v63 = vpop.eup %7386  ;;  %v4719_v54 = vpop.xlane.xlu1 %4718  ;;  %7263 = vxpose.xlu0.b32.cont [3/16] (narrow) %v12203_v19, 32  ;;  %v11091_v47 = vmul.f32 %v7385_v58, %v10547_v40  ;;  %v5145_v58 = vsel %vm4481_vm14, %v5076_v26, 0.0 }
 0x456   : > { %v4716_v15 = vpop.xlane.xlu0 %4715  ;;  %7396 = vpow2.f32 %v4996_v13  ;;  %v4891_v12 = vsub.f32 %v12204_v43, %v4719_v54  ;;  %7097 = vmatprep.subr.bf16.mxu1 %v7096_v2  ;;  %v5078_v1 = vmul.f32 %v7387_v63, %v10541_v24  ;;  %v12207_v2 = vld [vmem:[#allocation69_spill] sm:$0xff] }
 0x457   : > { %v4890_v36 = vsub.f32 %v12205_v21, %v4716_v15  ;;  %7398 = vpow2.f32 %v4994_v48  ;;  %7313 = vxpose.xlu1.b32.cont [2/16] (narrow) %v12206_v34, 32  ;;  %v12208_v48 = vld [vmem:[#allocation43_spill] sm:$0xff]  ;;  %v12209_v54 = vld [vmem:[#allocation101_spill] sm:$0xff]  ;;  %v5144_v15 = vadd.f32 %v5143_v55, %v5142_v11  ;;  %v12213_v11 = vld [vmem:[#allocation86_spill] sm:$0xff] }
 0x458   : > { %v7389_v59 = vpop.eup %7388  ;;  %v4964_v40 = vmul.f32 1.442695, %v4891_v12  ;;  %v7098_v14 = vpack.c.bf16 %v11091_v47, %v5078_v1  ;;  %v12210_v43 = vld [vmem:[#allocation113_spill] sm:$0xff] }
 0x459   : > { %v4962_v0 = vmul.f32 1.442695, %v4890_v36  ;;  %v7391_v6 = vpop.eup %7390  ;;  %v4773_v13 = vpop.xlane.xlu1 %4772  ;;  %7265 = vxpose.xlu0.b32.cont [4/16] (narrow) %v12207_v2, 32  ;;  %v11105_v46 = vmul.f32 %v7389_v59, %v10567_v23  ;;  %v5146_v34 = vadd.f32 %v5145_v58, %v5144_v15  ;;  %v5147_v2 = vsel %vm4481_vm14, %v11071_v5, 0.0  ;;  %v12216_v5 = vld [vmem:[#allocation103_spill] sm:$0xff] }
 0x45a   : > { %v4770_v24 = vpop.xlane.xlu0 %4769  ;;  %7400 = vpow2.f32 %v4964_v40  ;;  %v4909_v63 = vsub.f32 %v12208_v48, %v4773_v13  ;;  %7099 = vmatpush3.bf16.msra.mxu1 %v7098_v14  ;;  %v11110_v19 = vmul.f32 %v7391_v6, %v10561_v51  ;;  %v12211_v40 = vld [vmem:[#allocation72_spill] sm:$0xff]  ;;  %v12212_v51 = vld [vmem:[#allocation82_spill] sm:$0xff]  ;;  %v5149_v48 = vsel %vm4481_vm14, %v5078_v1, 0.0 }
 0x45b   : > { %v4908_v17 = vsub.f32 %v12209_v54, %v4770_v24  ;;  %7402 = vpow2.f32 %v4962_v0  ;;  %7315 = vxpose.xlu1.b32.cont [3/16] (narrow) %v12210_v43, 32  ;;  %v12214_v24 = vld [vmem:[#allocation49_spill] sm:$0xff]  ;;  %v5148_v15 = vadd.f32 %v5147_v2, %v5146_v34 }
 0x45c   : > { %v7393_v26 = vpop.eup %7392  ;;  %v5000_v12 = vmul.f32 1.442695, %v4909_v63  ;;  %v7100_v23 = vpack.c.bf16 %v11105_v46, %v11110_v19 }
 0x45d   : > { %v4998_v21 = vmul.f32 1.442695, %v4908_v17  ;;  %v7395_v36 = vpop.eup %7394  ;;  %v4725_v59 = vpop.xlane.xlu1 %4724  ;;  %7267 = vxpose.xlu0.b32.cont [5/16] (narrow) %v12211_v40, 32  ;;  %v5081_v13 = vmul.f32 %v7393_v26, %v10589_v49  ;;  %v12215_v26 = vld [vmem:[#allocation71_spill] sm:$0xff]  ;;  %v5150_v40 = vadd.f32 %v5149_v48, %v5148_v15  ;;  %v12221_v48 = vld [vmem:[#allocation25_spill] sm:$0xff] }
 0x45e   : > { %v4722_v14 = vpop.xlane.xlu0 %4721  ;;  %7404 = vpow2.f32 %v5000_v12  ;;  %v4893_v55 = vsub.f32 %v12212_v51, %v4725_v59  ;;  %7101 = vmatprep.subr.bf16.mxu1 %v7100_v23  ;;  %v5080_v6 = vmul.f32 %v7395_v36, %v10583_v35  ;;  %v12217_v23 = vld [vmem:[#allocation46_spill] sm:$0xff]  ;;  %v12218_v59 = vld [vmem:[#allocation16_spill] sm:$0xff]  ;;  %v12223_v15 = vld [vmem:[#allocation89_spill] sm:$0xff] }
 0x45f   : > { %v4892_v0 = vsub.f32 %v12213_v11, %v4722_v14  ;;  %7406 = vpow2.f32 %v4998_v21  ;;  %7317 = vxpose.xlu1.b32.cont [4/16] (narrow) %v12214_v24, 32  ;;  %v12219_v14 = vld [vmem:[#allocation116_spill] sm:$0xff] }
 0x460   : > { %v7397_v58 = vpop.eup %7396  ;;  %v4968_v63 = vmul.f32 1.442695, %v4893_v55  ;;  %v7102_v49 = vpack.c.bf16 %v5081_v13, %v5080_v6  ;;  %v5153_v2 = vsel %vm4481_vm14, %v5080_v6, 0.0 }
 0x461   : > { %v4966_v54 = vmul.f32 1.442695, %v4892_v0  ;;  %v7399_v17 = vpop.eup %7398  ;;  %v4779_v43 = vpop.xlane.xlu1 %4778  ;;  %7269 = vxpose.xlu0.b32.cont [6/16] (narrow) %v12215_v26, 32  ;;  %v11126_v35 = vmul.f32 %v7397_v58, %v10607_v29  ;;  %v5151_v0 = vsel %vm4481_vm14, %v11091_v47, 0.0  ;;  %v12220_v58 = vld [vmem:[#allocation74_spill] sm:$0xff] }
 0x462   : > { %v4776_v12 = vpop.xlane.xlu0 %4775  ;;  %7408 = vpow2.f32 %v4968_v63  ;;  %v4911_v21 = vsub.f32 %v12216_v5, %v4779_v43  ;;  %7103 = vmatpush3.bf16.msra.mxu1 %v7102_v49  ;;  %v11131_v1 = vmul.f32 %v7399_v17, %v12218_v59  ;;  %v12222_v49 = vld [vmem:[#allocation88_spill] sm:$0xff]  ;;  %v12224_v26 = vld [vmem:[#allocation18_spill] sm:$0xff]  ;;  %v5152_v5 = vadd.f32 %v5151_v0, %v5150_v40 }
 0x463   : > { %v4910_v36 = vsub.f32 %v12217_v23, %v4776_v12  ;;  %7410 = vpow2.f32 %v4966_v54  ;;  %7319 = vxpose.xlu1.b32.cont [5/16] (narrow) %v12219_v14, 32  ;;  %v12229_v40 = vld [vmem:[#allocation104_spill] sm:$0xff] }
 0x464   : > { %v7401_v34 = vpop.eup %7400  ;;  %v5004_v51 = vmul.f32 1.442695, %v4911_v21  ;;  %v7104_v29 = vpack.c.bf16 %v11126_v35, %v11131_v1  ;;  %v12225_v21 = vld [vmem:[#allocation115_spill] sm:$0xff]  ;;  %v5154_v14 = vadd.f32 %v5153_v2, %v5152_v5  ;;  %v12230_v2 = vld [vmem:[#allocation53_spill] sm:$0xff] }
 0x465   : > { %v5002_v55 = vmul.f32 1.442695, %v4910_v36  ;;  %v7403_v11 = vpop.eup %7402  ;;  %v4731_v24 = vpop.xlane.xlu1 %4730  ;;  %7271 = vxpose.xlu0.b32.cont [7/16] (narrow) %v12220_v58, 32  ;;  %v5083_v54 = vmul.f32 %v7401_v34, %v12221_v48  ;;  %v12226_v34 = vld [vmem:[#allocation73_spill] sm:$0xff]  ;;  %v5155_v48 = vsel %vm4481_vm14, %v5081_v13, 0.0  ;;  %v12232_v13 = vld [vmem:[#allocation36_spill] sm:$0xff] }
 0x466   : > { %v4728_v63 = vpop.xlane.xlu0 %4727  ;;  %7412 = vpow2.f32 %v5004_v51  ;;  %v4895_v17 = vsub.f32 %v12222_v49, %v4731_v24  ;;  %7105 = vmatprep.subr.bf16.mxu1 %v7104_v29  ;;  %v5082_v12 = vmul.f32 %v7403_v11, %v12224_v26  ;;  %v12227_v24 = vld [vmem:[#allocation28_spill] sm:$0xff] }
 0x467   : > { %v4894_v43 = vsub.f32 %v12223_v15, %v4728_v63  ;;  %7414 = vpow2.f32 %v5002_v55  ;;  %7321 = vxpose.xlu1.b32.cont [6/16] (narrow) %v12225_v21, 32  ;;  %v12228_v63 = vld [vmem:[#allocation105_spill] sm:$0xff]  ;;  %v5156_v21 = vadd.f32 %v5155_v48, %v5154_v14  ;;  %v5159_v48 = vsel %vm4481_vm14, %v5083_v54, 0.0 }
 0x468   : > { %v7405_v47 = vpop.eup %7404  ;;  %v4972_v6 = vmul.f32 1.442695, %v4895_v17  ;;  %v7106_v36 = vpack.c.bf16 %v5083_v54, %v5082_v12  ;;  %v5157_v15 = vsel %vm4481_vm14, %v5082_v12, 0.0  ;;  %v12240_v54 = vld [vmem:[#allocation56_spill] sm:$0xff] }
 0x469   : > { %v4970_v23 = vmul.f32 1.442695, %v4894_v43  ;;  %v7407_v59 = vpop.eup %7406  ;;  %v4785_v58 = vpop.xlane.xlu1 %4784  ;;  %7273 = vxpose.xlu0.b32.cont [8/16] (narrow) %v12226_v34, 32  ;;  %v11147_v29 = vmul.f32 %v7405_v47, %v12227_v24  ;;  %v12234_v34 = vld [vmem:[#allocation17_spill] sm:$0xff]  ;;  %v12235_v24 = vld [vmem:[#allocation118_spill] sm:$0xff] }
 0x46a   : > { %v4782_v51 = vpop.xlane.xlu0 %4781  ;;  %7416 = vpow2.f32 %v4972_v6  ;;  %v4913_v11 = vsub.f32 %v12228_v63, %v4785_v58  ;;  %7107 = vmatpush3.bf16.msra.mxu1 %v7106_v36  ;;  %v11152_v0 = vmul.f32 %v7407_v59, %v10637_v62  ;;  %v12231_v6 = vld [vmem:[#allocation78_spill] sm:$0xff]  ;;  %v12233_v59 = vld [vmem:[#allocation45_spill] sm:$0xff] }
 0x46b   : > { %v4912_v55 = vsub.f32 %v12229_v40, %v4782_v51  ;;  %7418 = vpow2.f32 %v4970_v23  ;;  %7323 = vxpose.xlu1.b32.cont [7/16] (narrow) %v12230_v2, 32  ;;  %v5158_v51 = vadd.f32 %v5157_v15, %v5156_v21  ;;  %v12236_v2 = vld [vmem:[#allocation77_spill] sm:$0xff]  ;;  %v12238_v15 = vld [vmem:[#allocation90_spill] sm:$0xff] }
 0x46c   : > { %v7409_v49 = vpop.eup %7408  ;;  %v5008_v17 = vmul.f32 1.442695, %v4913_v11  ;;  %v7108_v26 = vpack.c.bf16 %v11147_v29, %v11152_v0 }
 0x46d   : > { %v5006_v43 = vmul.f32 1.442695, %v4912_v55  ;;  %v7411_v5 = vpop.eup %7410  ;;  %v4737_v47 = vpop.xlane.xlu1 %4736  ;;  %7275 = vxpose.xlu0.b32.cont [9/16] (narrow) %v12231_v6, 32  ;;  %v5085_v36 = vmul.f32 %v7409_v49, %v10661_v25 }
 0x46e   : > { %v4734_v62 = vpop.xlane.xlu0 %4733  ;;  %7420 = vpow2.f32 %v5008_v17  ;;  %v4897_v23 = vsub.f32 %v12232_v13, %v4737_v47  ;;  %7109 = vmatprep.subr.bf16.mxu1 %v7108_v26  ;;  %v5084_v12 = vmul.f32 %v7411_v5, %v12234_v34  ;;  %v12237_v26 = vld [vmem:[#allocation19_spill] sm:$0xff] }
 0x46f   : > { %v4896_v58 = vsub.f32 %v12233_v59, %v4734_v62  ;;  %7422 = vpow2.f32 %v5006_v43  ;;  %7325 = vxpose.xlu1.b32.cont [8/16] (narrow) %v12235_v24, 32  ;;  %v12239_v5 = vld [vmem:[#allocation39_spill] sm:$0xff]  ;;  %v5160_v62 = vadd.f32 %v5159_v48, %v5158_v51 }
 0x470   : > { %v7413_v63 = vpop.eup %7412  ;;  %v4976_v14 = vmul.f32 1.442695, %v4897_v23  ;;  %v7110_v40 = vpack.c.bf16 %v5085_v36, %v5084_v12  ;;  %v5161_v49 = vsel %vm4481_vm14, %v5084_v12, 0.0  ;;  %v12242_v51 = vld [vmem:[#allocation27_spill] sm:$0xff] }
 0x471   : > { %v4974_v11 = vmul.f32 1.442695, %v4896_v58  ;;  %v7415_v55 = vpop.eup %7414  ;;  %v4839_v25 = vpop.xlane.xlu1 %4838  ;;  %7277 = vxpose.xlu0.b32.cont [10/16] (narrow) %v12236_v2, 32  ;;  %v11169_v47 = vmul.f32 %v7413_v63, %v12237_v26  ;;  %v5162_v24 = vadd.f32 %v5161_v49, %v5160_v62  ;;  %v12244_v26 = vld [vmem:[#allocation79_spill] sm:$0xff] }
 0x472   : > { %v4836_v17 = vpop.xlane.xlu0 %4835  ;;  %7424 = vpow2.f32 %v4976_v14  ;;  %v4931_v43 = vsub.f32 %v12238_v15, %v4839_v25  ;;  %7111 = vmatpush3.bf16.msra.mxu1 %v7110_v40  ;;  %v11174_v6 = vmul.f32 %v7415_v55, %v10673_v31  ;;  %v12241_v14 = vld [vmem:[#allocation80_spill] sm:$0xff]  ;;  %v12243_v40 = vld [vmem:[#allocation123_spill] sm:$0xff]  ;;  %v5163_v25 = vsel %vm4481_vm14, %v5085_v36, 0.0 }
 0x473   : > { %v4930_v21 = vsub.f32 %v12239_v5, %v4836_v17  ;;  %7426 = vpow2.f32 %v4974_v11  ;;  %7327 = vxpose.xlu1.b32.cont [9/16] (narrow) %v12240_v54, 32  ;;  %v5164_v49 = vadd.f32 %v5163_v25, %v5162_v24  ;;  %v12248_v24 = vld [vmem:[#allocation84_spill] sm:$0xff] }
 0x474   : > { %v7417_v13 = vpop.eup %7416  ;;  %v5044_v23 = vmul.f32 1.442695, %v4931_v43  ;;  %v7112_v58 = vpack.c.bf16 %v11169_v47, %v11174_v6  ;;  %v12245_v43 = vld [vmem:[#allocation8_spill] sm:$0xff] }
 0x475   : > { %v5042_v59 = vmul.f32 1.442695, %v4930_v21  ;;  %v7419_v34 = vpop.eup %7418  ;;  %v5087_v12 = vmul.f32 %v7417_v13, %v10697_v8  ;;  %v11180_v63 = vpop.xlane.xlu1 %4790  ;;  %7279 = vxpose.xlu0.b32.cont [11/16] (narrow) %v12241_v14, 32  ;;  %v12246_v21 = vld [vmem:[#allocation30_spill] sm:$0xff]  ;;  %v12247_v13 = vld [vmem:[#allocation124_spill] sm:$0xff] }
 0x476   : > { %v11183_v31 = vpop.xlane.xlu0 %4787  ;;  %v5086_v11 = vmul.f32 %v7419_v34, %v12242_v51  ;;  %7428 = vpow2.f32 %v5044_v23  ;;  %7113 = vmatprep.subr.bf16.mxu1 %v7112_v58 }
 0x477   : > { %7430 = vpow2.f32 %v5042_v59  ;;  %7329 = vxpose.xlu1.b32.cont [10/16] (narrow) %v12243_v40, 32  ;;  %v5167_v51 = vsel %vm4481_vm14, %v5087_v12, 0.0 }
 0x478   : > { %v7421_v55 = vpop.eup %7420  ;;  %v5165_v48 = vsel %vm4481_vm14, %v5086_v11, 0.0  ;;  %v7114_v8 = vpack.c.bf16 %v5087_v12, %v5086_v11 }
 0x479   : > { %v7423_v2 = vpop.eup %7422  ;;  %v11189_v17 = vpop.xlane.xlu1 %4844  ;;  %7281 = vxpose.xlu0.b32.cont [12/16] (narrow) %v12244_v26, 32  ;;  %v11195_v5 = vmul.f32 %v7421_v55, %v12245_v43  ;;  %v5166_v54 = vadd.f32 %v5165_v48, %v5164_v49  ;;  %v12249_v55 = vld [vmem:[#allocation60_spill] sm:$0xff]  ;;  %v12250_v26 = vld [vmem:[#allocation83_spill] sm:$0xff] }
 0x47a   : > { %v11192_v15 = vpop.xlane.xlu0 %4841  ;;  %7115 = vmatpush3.bf16.msra.mxu1 %v7114_v8  ;;  %v11198_v62 = vmul.f32 %v7423_v2, %v12246_v21 }
 0x47b   : > { %7331 = vxpose.xlu1.b32.cont [11/16] (narrow) %v12247_v13, 32  ;;  %v5168_v40 = vadd.f32 %v5167_v51, %v5166_v54  ;;  %v12251_v13 = vld [vmem:[#allocation126_spill] sm:$0xff]  ;;  %v12252_v51 = vld [vmem:[#allocation87_spill] sm:$0xff] }
 0x47c   : > { %v7425_v36 = vpop.eup %7424  ;;  %v7116_v23 = vpack.c.bf16 %v11195_v5, %v11198_v62 }
 0x47d   : > { %v7427_v59 = vpop.eup %7426  ;;  %v5089_v58 = vmul.f32 %v7425_v36, %v10733_v9  ;;  %v11204_v34 = vpop.xlane.xlu1 %4796  ;;  %7283 = vxpose.xlu0.b32.cont [13/16] (narrow) %v12248_v24, 32  ;;  %v5173_v36 = vsel %vm4481_vm14, %v11045_v53, 0.0 }
 0x47e   : > { %v4794_v14 = vpop.xlane.xlu0 %4793  ;;  %v5088_v11 = vmul.f32 %v7427_v59, %v10727_v50  ;;  %7117 = vmatprep.subr.bf16.mxu1 %v7116_v23 }
 0x47f   : > { %7333 = vxpose.xlu1.b32.cont [12/16] (narrow) %v12249_v55, 32  ;;  %v5171_v50 = vsel %vm4481_vm14, %v5089_v58, 0.0 }
 0x480   : > { %v7429_v48 = vpop.eup %7428  ;;  %v5169_v25 = vsel %vm4481_vm14, %v5088_v11, 0.0  ;;  %v7118_v8 = vpack.c.bf16 %v5089_v58, %v5088_v11  ;;  %v5175_v58 = vsel %vm4481_vm14, %v11040_v45, 0.0  ;;  %v12253_v11 = vld [vmem:[#allocation125_spill] sm:$0xff]  ;;  %v12255_v45 = vld [vmem:[#allocation106_spill] sm:$0xff] }
 0x481   : > { %v7431_v2 = vpop.eup %7430  ;;  %v5170_v49 = vadd.f32 %v5169_v25, %v5168_v40  ;;  %v11211_v9 = vpop.xlane.xlu1 %4850  ;;  %7285 = vxpose.xlu0.b32.cont [14/16] (narrow) %v12250_v26, 32  ;;  %v11217_v12 = vmul.f32 %v7429_v48, %v10751_v3  ;;  %v5177_v40 = vsel %vm4481_vm14, %v11065_v16, 0.0  ;;  %v12254_v48 = vld [vmem:[#allocation85_spill] sm:$0xff]  ;;  %v12257_v16 = vld [vmem:[#allocation108_spill] sm:$0xff] }
 0x482   : > { %v11214_v43 = vpop.xlane.xlu0 %4847  ;;  %7119 = vmatpush3.bf16.msra.mxu1 %v7118_v8  ;;  %v11221_v21 = vmul.f32 %v7431_v2, %v10745_v10  ;;  %v5179_v8 = vsel %vm4481_vm14, %v11060_v33, 0.0  ;;  %v12256_v26 = vld [vmem:[#allocation129_spill] sm:$0xff] }
 0x483   : > { %v5172_v54 = vadd.f32 %v5171_v50, %v5170_v49  ;;  %7335 = vxpose.xlu1.b32.cont [13/16] (narrow) %v12251_v13, 32  ;;  %v4914_v49 = vsub.f32 %v12255_v45, %v11183_v31  ;;  %v5181_v50 = vsel %vm4481_vm14, %v11084_v37, 0.0  ;;  %v5185_v31 = vsel %vm4481_vm14, %v11110_v19, 0.0  ;;  %v12261_v45 = vld [vmem:[#allocation114_spill] sm:$0xff] }
 0x484   : > { %v7120_v23 = vpack.c.bf16 %v11217_v12, %v11221_v21  ;;  %v5189_v19 = vsel %vm4481_vm14, %v11131_v1, 0.0 }
 0x485   : > { %v5174_v59 = vadd.f32 %v5173_v36, %v5172_v54  ;;  %v4803_v24 = vpop.xlane.xlu1 %4802  ;;  %7287 = vxpose.xlu0.b32.cont [15/16] (narrow) %v12252_v51, 32  ;;  %v4915_v54 = vsub.f32 %v12257_v16, %v11180_v63  ;;  %v5010_v33 = vmul.f32 1.442695, %v4914_v49  ;;  %v12262_v16 = vld [vmem:[#allocation112_spill] sm:$0xff] }
 0x486   : > { %v4800_v3 = vpop.xlane.xlu0 %4799  ;;  %7121 = vmatprep.subr.bf16.mxu1 %v7120_v23 }
 0x487   : > { %v5176_v10 = vadd.f32 %v5175_v58, %v5174_v59  ;;  %7337 = vxpose.xlu1.b32.cont [14/16] (narrow) %v12253_v11, 32  ;;  %v5183_v59 = vsel %vm4481_vm14, %v11079_v30, 0.0  ;;  %v12258_v58 = vld [vmem:[#allocation48_spill] sm:$0xff]  ;;  %v12259_v11 = vld [vmem:[#allocation81_spill] sm:$0xff]  ;;  %v5187_v30 = vsel %vm4481_vm14, %v11105_v46, 0.0  ;;  %7432 = vpow2.f32 %v5010_v33 }
 0x488   : > { %v4918_v49 = vsub.f32 %v12261_v45, %v4800_v3  ;;  %v12263_v33 = vld [vmem:[#allocation117_spill] sm:$0xff]  ;;  %v5193_v3 = vsel %vm4481_vm14, %v11152_v0, 0.0  ;;  %v5197_v0 = vsel %vm4481_vm14, %v11174_v6, 0.0  ;;  %v5201_v6 = vsel %vm4481_vm14, %v11198_v62, 0.0 }
 0x489   : > { %v5178_v55 = vadd.f32 %v5177_v40, %v5176_v10  ;;  %v11234_v53 = vpop.xlane.xlu1 %4856  ;;  %7289 = vxpose.xlu0.b32.end [16/16] (narrow) %v12254_v48, 32  ;;  %v4916_v10 = vsub.f32 %v12258_v58, %v4794_v14  ;;  %v5012_v40 = vmul.f32 1.442695, %v4915_v54 }
 0x48a   : > { %v11237_v25 = vpop.xlane.xlu0 %4853  ;;  %v5018_v46 = vmul.f32 1.442695, %v4918_v49 }
 0x48b   : > { %v5180_v2 = vadd.f32 %v5179_v8, %v5178_v55  ;;  %7339 = vxpose.xlu1.b32.cont [15/16] (narrow) %v12256_v26, 32  ;;  %v12260_v55 = vld [vmem:[#allocation111_spill] sm:$0xff]  ;;  %v5014_v14 = vmul.f32 1.442695, %v4916_v10  ;;  %7434 = vpow2.f32 %v5012_v40 }
 0x48c   : > { %v4917_v63 = vsub.f32 %v12260_v55, %v11204_v34  ;;  %v4919_v34 = vsub.f32 %v12262_v16, %v4803_v24 }
 0x48d   : > { %v5182_v13 = vadd.f32 %v5181_v50, %v5180_v2  ;;  %v4809_v36 = vpop.xlane.xlu1 %4808  ;;  %7436 = vpow2.f32 %v5014_v14 }
 0x48e   : > { %v4806_v23 = vpop.xlane.xlu0 %4805  ;;  %v5016_v50 = vmul.f32 1.442695, %v4917_v63  ;;  %v5020_v1 = vmul.f32 1.442695, %v4919_v34  ;;  %v12265_v63 = vld [vmem:[#allocation120_spill] sm:$0xff] }
 0x48f   : > { %v5184_v51 = vadd.f32 %v5183_v59, %v5182_v13  ;;  %7341 = vxpose.xlu1.b32.end [16/16] (narrow) %v12259_v11, 32  ;;  %v5191_v59 = vsel %vm4481_vm14, %v11126_v35, 0.0  ;;  %v4920_v58 = vsub.f32 %v12263_v33, %v4806_v23  ;;  %v12264_v11 = vld [vmem:[#allocation119_spill] sm:$0xff]  ;;  %v5195_v35 = vsel %vm4481_vm14, %v11147_v29, 0.0  ;;  %v12267_v34 = vld [vmem:[#allocation128_spill] sm:$0xff] }
 0x490   : > { %7438 = vpow2.f32 %v5016_v50  ;;  %v12268_v33 = vld [vmem:[#allocation127_spill] sm:$0xff] }
 0x491   : > { %v5186_v37 = vadd.f32 %v5185_v31, %v5184_v51  ;;  %v11256_v48 = vpop.xlane.xlu1 %4862  ;;  %v4921_v31 = vsub.f32 %v12264_v11, %v4809_v36  ;;  %7440 = vpow2.f32 %v5018_v46  ;;  %v5022_v55 = vmul.f32 1.442695, %v4920_v58  ;;  %v12266_v36 = vld [vmem:[#allocation122_spill] sm:$0xff] }
 0x492   : > { %v11258_v8 = vpop.xlane.xlu0 %4859  ;;  %7442 = vpow2.f32 %v5020_v1 }
 0x493   : > { %v5188_v2 = vadd.f32 %v5187_v30, %v5186_v37  ;;  %v7433_v30 = vpop.eup %7432  ;;  %v5024_v14 = vmul.f32 1.442695, %v4921_v31  ;;  %7444 = vpow2.f32 %v5022_v55 }
 0x495   : > { %v5190_v26 = vadd.f32 %v5189_v19, %v5188_v2  ;;  %v4815_v54 = vpop.xlane.xlu1 %4814  ;;  %v7435_v29 = vpop.eup %7434  ;;  %7446 = vpow2.f32 %v5024_v14 }
 0x496   : > { %v4812_v13 = vpop.xlane.xlu0 %4811  ;;  %v4923_v45 = vsub.f32 %v12266_v36, %v4815_v54  ;;  %v11298_v1 = vmul.f32 %v7435_v29, %v10769_v4  ;;  %v12269_v4 = vld [vmem:[#allocation130_spill] sm:$0xff] }
 0x497   : > { %v5192_v51 = vadd.f32 %v5191_v59, %v5190_v26  ;;  %v4922_v23 = vsub.f32 %v12265_v63, %v4812_v13  ;;  %v5199_v26 = vsel %vm4481_vm14, %v11169_v47, 0.0  ;;  %v11288_v59 = vmul.f32 %v7433_v30, %v10763_v18 }
 0x498   : > { %v5028_v54 = vmul.f32 1.442695, %v4923_v45 }
 0x499   : > { %v5194_v10 = vadd.f32 %v5193_v3, %v5192_v51  ;;  %v11272_v40 = vpop.xlane.xlu1 %4868  ;;  %v5026_v16 = vmul.f32 1.442695, %v4922_v23  ;;  %v7437_v51 = vpop.eup %7436 }
 0x49a   : > { %v11274_v24 = vpop.xlane.xlu0 %4865  ;;  %v7439_v62 = vpop.eup %7438  ;;  %v11301_v31 = vmul.f32 %v7437_v51, %v10799_v27  ;;  %v5207_v27 = vsel %vm4481_vm14, %v11298_v1, 0.0 }
 0x49b   : > { %v5196_v37 = vadd.f32 %v5195_v35, %v5194_v10  ;;  %v5203_v10 = vsel %vm4481_vm14, %v11195_v5, 0.0  ;;  %7448 = vpow2.f32 %v5026_v16  ;;  %v5205_v35 = vsel %vm4481_vm14, %v11288_v59, 0.0 }
 0x49c   : > { %7450 = vpow2.f32 %v5028_v54  ;;  %v11306_v5 = vmul.f32 %v7439_v62, %v10805_v42 }
 0x49d   : > { %v5198_v2 = vadd.f32 %v5197_v0, %v5196_v37  ;;  %v4821_v49 = vpop.xlane.xlu1 %4820  ;;  %v7441_v37 = vpop.eup %7440 }
 0x49e   : > { %v4818_v19 = vpop.xlane.xlu0 %4817  ;;  %v4925_v58 = vsub.f32 %v12268_v33, %v4821_v49  ;;  %v7443_v36 = vpop.eup %7442  ;;  %v5209_v49 = vsel %vm4481_vm14, %v11301_v31, 0.0 }
 0x49f   : > { %v5200_v50 = vadd.f32 %v5199_v26, %v5198_v2  ;;  %v4924_v13 = vsub.f32 %v12267_v34, %v4818_v19  ;;  %v12270_v2 = vld [vmem:[#allocation62_spill] sm:$0xff]  ;;  %v11315_v19 = vmul.f32 %v7441_v37, %v10835_v20  ;;  %v7445_v29 = vpop.eup %7444  ;;  %v12272_v37 = vld [vmem:[#allocation131_spill] sm:$0xff] }
 0x4a0   : > { %v5032_v55 = vmul.f32 1.442695, %v4925_v58  ;;  %v7447_v51 = vpop.eup %7446  ;;  %v11329_v54 = vmul.f32 %v7445_v29, %v10871_v28 }
 0x4a1   : > { %v5202_v46 = vadd.f32 %v5201_v6, %v5200_v50  ;;  %v11291_v3 = vpop.xlane.xlu1 %4874  ;;  %v5030_v18 = vmul.f32 1.442695, %v4924_v13  ;;  %v5211_v13 = vsel %vm4481_vm14, %v11306_v5, 0.0  ;;  %v11324_v6 = vmul.f32 %v7443_v36, %v10841_v52 }
 0x4a2   : > { %v11293_v47 = vpop.xlane.xlu0 %4871  ;;  %v5213_v20 = vsel %vm4481_vm14, %v11315_v19, 0.0  ;;  %v11334_v52 = vmul.f32 %v7447_v51, %v10877_v57  ;;  %v12274_v57 = vld [vmem:[#allocation35_spill] sm:$0xff] }
 0x4a3   : > { %v5204_v11 = vadd.f32 %v5203_v10, %v5202_v46  ;;  %7452 = vpow2.f32 %v5030_v18  ;;  %v12271_v18 = vld [vmem:[#allocation99_spill] sm:$0xff]  ;;  %v4933_v36 = vsub.f32 %v12274_v57, %v11189_v17 }
 0x4a4   : > { %7454 = vpow2.f32 %v5032_v55 }
 0x4a5   : > { %v4827_v63 = vpop.xlane.xlu1 %4826  ;;  %v5206_v0 = vadd.f32 %v5205_v35, %v5204_v11  ;;  %v7449_v33 = vpop.eup %7448  ;;  %v5215_v11 = vsel %vm4481_vm14, %v11324_v6, 0.0 }
 0x4a6   : > { %v4824_v23 = vpop.xlane.xlu0 %4823  ;;  %v4927_v30 = vsub.f32 %v12269_v4, %v4827_v63  ;;  %v7451_v63 = vpop.eup %7450  ;;  %v5217_v4 = vsel %vm4481_vm14, %v11329_v54, 0.0 }
 0x4a7   : > { %v4926_v14 = vsub.f32 %v12270_v2, %v4824_v23  ;;  %v5208_v45 = vadd.f32 %v5207_v27, %v5206_v0  ;;  %v12273_v23 = vld [vmem:[#allocation41_spill] sm:$0xff] }
 0x4a8   : > { %v5036_v42 = vmul.f32 1.442695, %v4927_v30  ;;  %v4932_v28 = vsub.f32 %v12273_v23, %v11192_v15  ;;  %v11343_v30 = vmul.f32 %v7449_v33, %v10907_v39 }
 0x4a9   : > { %v5034_v26 = vmul.f32 1.442695, %v4926_v14  ;;  %v11319_v16 = vpop.xlane.xlu1 %4880  ;;  %v5210_v34 = vadd.f32 %v5209_v49, %v5208_v45  ;;  %v5219_v49 = vsel %vm4481_vm14, %v11334_v52, 0.0 }
 0x4aa   : > { %v11317_v50 = vpop.xlane.xlu0 %4877  ;;  %v5046_v29 = vmul.f32 1.442695, %v4932_v28  ;;  %v5221_v17 = vsel %vm4481_vm14, %v11343_v30, 0.0 }
 0x4ab   : > { %7456 = vpow2.f32 %v5034_v26  ;;  %v5212_v46 = vadd.f32 %v5211_v13, %v5210_v34  ;;  %v11350_v26 = vmul.f32 %v7451_v63, %v10913_v22  ;;  %v12276_v13 = vld [vmem:[#allocation40_spill] sm:$0xff]  ;;  %v5048_v22 = vmul.f32 1.442695, %v4933_v36 }
 0x4ac   : > { %7458 = vpow2.f32 %v5036_v42  ;;  %v12275_v42 = vld [vmem:[#allocation58_spill] sm:$0xff]  ;;  %v4935_v51 = vsub.f32 %v12276_v13, %v11211_v9 }
 0x4ad   : > { %v4833_v10 = vpop.xlane.xlu1 %4832  ;;  %v5214_v62 = vadd.f32 %v5213_v20, %v5212_v46  ;;  %v7453_v27 = vpop.eup %7452  ;;  %v4934_v39 = vsub.f32 %v12275_v42, %v11214_v43  ;;  %v5223_v43 = vsel %vm4481_vm14, %v11350_v26, 0.0 }
 0x4ae   : > { %v4830_v58 = vpop.xlane.xlu0 %4829  ;;  %v4929_v55 = vsub.f32 %v12272_v37, %v4833_v10  ;;  %v7455_v15 = vpop.eup %7454  ;;  %v11359_v46 = vmul.f32 %v7453_v27, %v10943_v32  ;;  %v12278_v32 = vld [vmem:[#allocation93_spill] sm:$0xff] }
 0x4af   : > { %v4928_v35 = vsub.f32 %v12271_v18, %v4830_v58  ;;  %v5216_v0 = vadd.f32 %v5215_v11, %v5214_v62  ;;  %v12277_v58 = vld [vmem:[#allocation102_spill] sm:$0xff]  ;;  %v11366_v62 = vmul.f32 %v7455_v15, %v10949_v38  ;;  %v5050_v9 = vmul.f32 1.442695, %v4934_v39 }
 0x4b0   : > { %v5040_v14 = vmul.f32 1.442695, %v4929_v55  ;;  %v4936_v10 = vsub.f32 %v12277_v58, %v11237_v25  ;;  %v4937_v37 = vsub.f32 %v12278_v32, %v11234_v53  ;;  %v5225_v55 = vsel %vm4481_vm14, %v11359_v46, 0.0 }
 0x4b1   : > { %v5038_v2 = vmul.f32 1.442695, %v4928_v35  ;;  %v5218_v45 = vadd.f32 %v5217_v4, %v5216_v0  ;;  %v5052_v35 = vmul.f32 1.442695, %v4935_v51  ;;  %v5227_v38 = vsel %vm4481_vm14, %v11366_v62, 0.0  ;;  %v12279_v0 = vld [vmem:[#allocation107_spill] sm:$0xff] }
 0x4b2   : > { %v5054_v23 = vmul.f32 1.442695, %v4936_v10  ;;  %v4938_v4 = vsub.f32 %v12279_v0, %v11258_v8  ;;  %v5239_v32 = vsel %vm4481_vm14, %v11217_v12, 0.0  ;;  %v12288_v12 = vld [vmem:[#allocation29_spill] sm:$0xff] }
 0x4b3   : > { %7460 = vpow2.f32 %v5038_v2  ;;  %v5220_v34 = vadd.f32 %v5219_v49, %v5218_v45 }
 0x4b4   : > { %7462 = vpow2.f32 %v5040_v14  ;;  %v5056_v14 = vmul.f32 1.442695, %v4937_v37  ;;  %v5058_v15 = vmul.f32 1.442695, %v4938_v4 }
 0x4b5   : > { %v7457_v20 = vpop.eup %7456  ;;  %v5222_v33 = vadd.f32 %v5221_v17, %v5220_v34  ;;  %7464 = vpow2.f32 %v5046_v29  ;;  %v12281_v29 = vld [vmem:[#allocation132_spill] sm:$0xff] }
 0x4b6   : > { %v7459_v11 = vpop.eup %7458  ;;  %v11373_v63 = vmul.f32 %v7457_v20, %v10979_v7  ;;  %7466 = vpow2.f32 %v5048_v22  ;;  %v12280_v7 = vld [vmem:[#allocation37_spill] sm:$0xff]  ;;  %v4940_v42 = vsub.f32 %v12281_v29, %v11274_v24  ;;  %v5237_v20 = vsel %vm4481_vm14, %v11221_v21, 0.0 }
 0x4b7   : > { %v5224_v18 = vadd.f32 %v5223_v43, %v5222_v33  ;;  %v11378_v28 = vmul.f32 %v7459_v11, %v10985_v44  ;;  %7468 = vpow2.f32 %v5050_v9  ;;  %v4939_v27 = vsub.f32 %v12280_v7, %v11256_v48  ;;  %v12283_v33 = vld [vmem:[#allocation133_spill] sm:$0xff]  ;;  %v12284_v11 = vld [vmem:[#allocation95_spill] sm:$0xff] }
 0x4b8   : > { %7470 = vpow2.f32 %v5052_v35  ;;  %v5229_v57 = vsel %vm4481_vm14, %v11373_v63, 0.0  ;;  %v5062_v24 = vmul.f32 1.442695, %v4940_v42  ;;  %v4942_v58 = vsub.f32 %v12283_v33, %v11293_v47  ;;  %v12285_v47 = vld [vmem:[#allocation134_spill] sm:$0xff] }
 0x4b9   : > { %v5226_v25 = vadd.f32 %v5225_v55, %v5224_v18  ;;  %7472 = vpow2.f32 %v5054_v23  ;;  %v5231_v49 = vsel %vm4481_vm14, %v11378_v28, 0.0  ;;  %v5060_v34 = vmul.f32 1.442695, %v4939_v27 }
 0x4ba   : > { %7474 = vpow2.f32 %v5056_v14  ;;  %v5066_v55 = vmul.f32 1.442695, %v4942_v58 }
 0x4bb   : > { %v5228_v53 = vadd.f32 %v5227_v38, %v5226_v25  ;;  %7476 = vpow2.f32 %v5058_v15  ;;  %v4944_v25 = vsub.f32 %v12285_v47, %v11317_v50 }
 0x4bc   : > { %7478 = vpow2.f32 %v5060_v34 }
 0x4bd   : > { %v7461_v2 = vpop.eup %7460  ;;  %v5230_v44 = vadd.f32 %v5229_v57, %v5228_v53  ;;  %7480 = vpow2.f32 %v5062_v24  ;;  %v12287_v53 = vld [vmem:[#allocation44_spill] sm:$0xff]  ;;  %v5070_v57 = vmul.f32 1.442695, %v4944_v25 }
 0x4be   : > { %v7463_v36 = vpop.eup %7462  ;;  %v11387_v45 = vmul.f32 %v7461_v2, %v11015_v60  ;;  %v12282_v60 = vld [vmem:[#allocation52_spill] sm:$0xff]  ;;  %v4945_v2 = vsub.f32 %v12287_v53, %v11319_v16 }
 0x4bf   : > { %v11392_v8 = vmul.f32 %v7463_v36, %v11021_v56  ;;  %v5232_v39 = vadd.f32 %v5231_v49, %v5230_v44  ;;  %v4941_v13 = vsub.f32 %v12282_v60, %v11272_v40  ;;  %v7465_v51 = vpop.eup %7464  ;;  %v4943_v40 = vsub.f32 %v12284_v11, %v11291_v3  ;;  %v12289_v44 = vld [vmem:[#allocation32_spill] sm:$0xff] }
 0x4c0   : > { %v5233_v48 = vsel %vm4481_vm14, %v11387_v45, 0.0  ;;  %v7467_v22 = vpop.eup %7466  ;;  %v5124_v9 = vmul.f32 %v7465_v51, %v10781_v41  ;;  %v12286_v41 = vld [vmem:[#allocation22_spill] sm:$0xff]  ;;  %v5072_v29 = vmul.f32 1.442695, %v4945_v2  ;;  %v12291_v24 = vld [vmem:[#allocation24_spill] sm:$0xff] }
 0x4c1   : > { %v5234_v17 = vadd.f32 %v5233_v48, %v5232_v39  ;;  %v5235_v56 = vsel %vm4481_vm14, %v11392_v8, 0.0  ;;  %v5064_v43 = vmul.f32 1.442695, %v4941_v13  ;;  %v7469_v18 = vpop.eup %7468  ;;  %v5125_v37 = vmul.f32 %v7467_v22, %v10787_v61  ;;  %v12290_v39 = vld [vmem:[#allocation20_spill] sm:$0xff] }
 0x4c2   : > { %v7471_v21 = vpop.eup %7470  ;;  %v5068_v0 = vmul.f32 1.442695, %v4943_v40  ;;  %v5241_v3 = vsel %vm4481_vm14, %v5124_v9, 0.0  ;;  %v5126_v4 = vmul.f32 %v7469_v18, %v12286_v41  ;;  %v12292_v40 = vld [vmem:[#allocation31_spill] sm:$0xff]  ;;  %v12294_v41 = vld [vmem:[#allocation21_spill] sm:$0xff] }
 0x4c3   : > { %v5236_v10 = vadd.f32 %v5235_v56, %v5234_v17  ;;  %v7473_v38 = vpop.eup %7472  ;;  %7482 = vpow2.f32 %v5064_v43  ;;  %v5127_v7 = vmul.f32 %v7471_v21, %v12288_v12  ;;  %v5243_v27 = vsel %vm4481_vm14, %v5125_v37, 0.0 }
 0x4c4   : > { %v7475_v61 = vpop.eup %7474  ;;  %7484 = vpow2.f32 %v5066_v55  ;;  %v5245_v36 = vsel %vm4481_vm14, %v5126_v4, 0.0  ;;  %v11422_v49 = vmul.f32 %v7473_v38, %v12289_v44  ;;  %v7124_v56 = vpack.c.bf16 %v5125_v37, %v5124_v9  ;;  %v12293_v55 = vld [vmem:[#allocation34_spill] sm:$0xff] }
 0x4c5   : > { %v5238_v35 = vadd.f32 %v5237_v20, %v5236_v10  ;;  %7486 = vpow2.f32 %v5068_v0  ;;  %v7477_v15 = vpop.eup %7476  ;;  %v5247_v16 = vsel %vm4481_vm14, %v5127_v7, 0.0  ;;  %v5129_v34 = vmul.f32 %v7475_v61, %v12290_v39 }
 0x4c6   : > { %v7479_v60 = vpop.eup %7478  ;;  %7488 = vpow2.f32 %v5070_v57  ;;  %v7122_v20 = vpack.c.bf16 %v11298_v1, %v11288_v59  ;;  %v5249_v22 = vsel %vm4481_vm14, %v11422_v49, 0.0  ;;  %v11431_v33 = vmul.f32 %v7477_v15, %v12291_v24 }
 0x4c7   : > { %v5240_v23 = vadd.f32 %v5239_v32, %v5238_v35  ;;  %v7481_v58 = vpop.eup %7480  ;;  %7490 = vpow2.f32 %v5072_v29  ;;  %v5251_v43 = vsel %vm4481_vm14, %v5129_v34, 0.0  ;;  %v5131_v18 = vmul.f32 %v7479_v60, %v12292_v40  ;;  %v12296_v29 = vld [vmem:[#allocation33_spill] sm:$0xff] }
 0x4c8   : > { %v7126_v1 = vpack.c.bf16 %v11306_v5, %v11301_v31  ;;  %v5253_v37 = vsel %vm4481_vm14, %v11431_v33, 0.0  ;;  %v5132_v47 = vmul.f32 %v7481_v58, %v12293_v55  ;;  %v7132_v12 = vpack.c.bf16 %v5129_v34, %v11422_v49 }
 0x4c9   : > { %v5242_v14 = vadd.f32 %v5241_v3, %v5240_v23  ;;  %v7128_v23 = vpack.c.bf16 %v5127_v7, %v5126_v4  ;;  %v5255_v0 = vsel %vm4481_vm14, %v5131_v18, 0.0  ;;  %v12295_v7 = vld [vmem:[#allocation10_spill] sm:$0xff]  ;;  %v7150_v55 = vpack.c.bf16 %v11392_v8, %v11387_v45 }
 0x4ca   : > { %v5257_v4 = vsel %vm4481_vm14, %v5132_v47, 0.0 }
 0x4cb   : > { %v5244_v50 = vadd.f32 %v5243_v27, %v5242_v14  ;;  %v7130_v14 = vpack.c.bf16 %v11324_v6, %v11315_v19 }
 0x4cd   : > { %v7290_v42 = vpop.trf.xlu0  ;;  %v5246_v48 = vadd.f32 %v5245_v36, %v5244_v50  ;;  %v7483_v35 = vpop.eup %7482 }
 0x4ce   : > { %v7294_v13 = vunpack.i.h.bf16 %v7290_v42  ;;  %v7291_v51 = vunpack.i.l.bf16 %v7290_v42  ;;  %v7485_v25 = vpop.eup %7484  ;;  %v5133_v53 = vmul.f32 %v7483_v35, %v12294_v41 }
 0x4cf   : > { %v5248_v17 = vadd.f32 %v5247_v16, %v5246_v48  ;;  %v7487_v2 = vpop.eup %7486  ;;  %v5134_v57 = vmul.f32 %v7485_v25, %v12295_v7  ;;  %v7134_v16 = vpack.c.bf16 %v11334_v52, %v11329_v54  ;;  %v7138_v52 = vpack.c.bf16 %v11350_v26, %v11343_v30  ;;  %v12299_v25 = vld [vmem:[#allocation13_spill] sm:$0xff] }
 0x4d0   : > { %5469 = vmatprep.mubr.f32.mxu1 %v7291_v51  ;;  %v7489_v50 = vpop.eup %7488  ;;  %v5259_v44 = vsel %vm4481_vm14, %v5133_v53, 0.0  ;;  %v5135_v42 = vmul.f32 %v7487_v2, %v12296_v29  ;;  %v7146_v30 = vpack.c.bf16 %v11378_v28, %v11373_v63  ;;  %v12300_v29 = vld [vmem:[#allocation26_spill] sm:$0xff] }
 0x4d1   : > { %5470 = vmatmul.mubr.f32.vlgmr.msra.gmra.mrb[84].mxu1 %v7294_v13  ;;  %v5250_v10 = vadd.f32 %v5249_v22, %v5248_v17  ;;  %v7295_v11 = vpop.trf.xlu0  ;;  %v7491_v48 = vpop.eup %7490  ;;  %v5261_v60 = vsel %vm4481_vm14, %v5134_v57, 0.0  ;;  %v12297_v13 = vld [vmem:[#allocation42_spill] sm:$0xff]  ;;  %v7136_v17 = vpack.c.bf16 %v5131_v18, %v11431_v33  ;;  %v12298_v22 = vld [vmem:[#allocation23_spill] sm:$0xff]  ;;  %v7142_v18 = vpack.c.bf16 %v11366_v62, %v11359_v46 }
 0x4d2   : > { %7123 = vmatpush3.bf16.msra.mxu1 %v7122_v20  ;;  %v7296_v21 = vunpack.i.l.bf16 %v7295_v11  ;;  %v7299_v59 = vunpack.i.h.bf16 %v7295_v11  ;;  %v5136_v51 = vmul.f32 %v7489_v50, %v12297_v13  ;;  %v5137_v24 = vmul.f32 %v7491_v48, %v12298_v22 }
 0x4d3   : > { %7125 = vmatprep.subr.bf16.mxu1 %v7124_v56  ;;  %v5252_v9 = vadd.f32 %v5251_v43, %v5250_v10  ;;  %v11437_v32 = vpop.trf.xlu1  ;;  %v5263_v56 = vsel %vm4481_vm14, %v5135_v42, 0.0  ;;  %v7140_v43 = vpack.c.bf16 %v5133_v53, %v5132_v47  ;;  %v7144_v35 = vpack.c.bf16 %v5135_v42, %v5134_v57 }
 0x4d4   : > { %5474 = vmatprep.mubr.f32.mxu1 %v7296_v21  ;;  %v7343_v19 = vunpack.i.l.bf16 %v11437_v32  ;;  %v5265_v10 = vsel %vm4481_vm14, %v5136_v51, 0.0  ;;  %v5267_v33 = vsel %vm4481_vm14, %v5137_v24, 0.0  ;;  %v7346_v46 = vunpack.i.h.bf16 %v11437_v32 }
 0x4d5   : > { %v5254_v38 = vadd.f32 %v5253_v37, %v5252_v9  ;;  %v7300_v3 = vpop.trf.xlu0  ;;  %5475 = vmatmul.mubr.f32.gmra.mrb[86].mxu1 %v7299_v59  ;;  %v5140_v37 = vld [vmem:[#allocation3] sm:$0x1] }
 0x4d6   : > { %7127 = vmatpush3.bf16.msra.mxu1 %v7126_v1  ;;  %v7301_v31 = vunpack.i.l.bf16 %v7300_v3  ;;  %v7304_v5 = vunpack.i.h.bf16 %v7300_v3  ;;  %v7148_v1 = vpack.c.bf16 %v5137_v24, %v5136_v51  ;;  %v5577_v51 = vld [vmem:[#allocation4 + $0x10] sm:$0xff] }
 0x4d7   : > { %7129 = vmatprep.subr.bf16.mxu1 %v7128_v23  ;;  %v5256_v61 = vadd.f32 %v5255_v0, %v5254_v38  ;;  %v11447_v27 = vpop.trf.xlu1  ;;  %v5141_v23 = vmul.f32 %v12299_v25, %v5140_v37  ;;  %v5587_v22 = vmul.f32 %v12300_v29, %v5577_v51 }
 0x4d8   : > { %5479 = vmatprep.mubr.f32.mxu1 %v7301_v31  ;;  %v7348_v62 = vunpack.i.l.bf16 %v11447_v27  ;;  %v7351_v63 = vunpack.i.h.bf16 %v11447_v27 }
 0x4d9   : > { %v5258_v36 = vadd.f32 %v5257_v4, %v5256_v61  ;;  %v7305_v15 = vpop.trf.xlu0  ;;  %5480 = vmatmul.mubr.f32.gmra.mrb[88].mxu1 %v7304_v5 }
 0x4da   : > { %7131 = vmatpush3.bf16.msra.mxu1 %v7130_v14  ;;  %v7309_v6 = vunpack.i.h.bf16 %v7305_v15  ;;  %v7306_v49 = vunpack.i.l.bf16 %v7305_v15 }
 0x4db   : > { %7133 = vmatprep.subr.bf16.mxu1 %v7132_v12  ;;  %v5260_v39 = vadd.f32 %v5259_v44, %v5258_v36  ;;  %v7352_v34 = vpop.trf.xlu1  ;;  %v5575_v36 = vld [vmem:[#allocation4] sm:$0xff] }
 0x4dc   : > { %5484 = vmatprep.mubr.f32.mxu1 %v7306_v49  ;;  %v7353_v28 = vunpack.i.l.bf16 %v7352_v34  ;;  %v7356_v3 = vunpack.i.h.bf16 %v7352_v34  ;;  %v5585_v42 = vmul.f32 %v12300_v29, %v5575_v36  ;;  %v5576_v49 = vld [vmem:[#allocation4 + $0x8] sm:$0xff] }
 0x4dd   : > { %v5262_v20 = vadd.f32 %v5261_v60, %v5260_v39  ;;  %5485 = vmatmul.mubr.f32.gmra.mrb[90].mxu1 %v7309_v6  ;;  %v5586_v34 = vmul.f32 %v12300_v29, %v5576_v49 }
 0x4de   : > { %7135 = vmatpush3.bf16.msra.mxu1 %v7134_v16  ;;  %5554 = vmatprep.mubr.f32.mxu1 %v7343_v19 }
 0x4df   : > { %7137 = vmatprep.subr.bf16.mxu1 %v7136_v17  ;;  %v5264_v58 = vadd.f32 %v5263_v56, %v5262_v20  ;;  %v7357_v54 = vpop.trf.xlu1 }
 0x4e0   : > { %v7358_v45 = vunpack.i.l.bf16 %v7357_v54  ;;  %v7361_v8 = vunpack.i.h.bf16 %v7357_v54  ;;  %v5578_v54 = vld [vmem:[#allocation4 + $0x18] sm:$0xff] }
 0x4e1   : > { %v5266_v11 = vadd.f32 %v5265_v10, %v5264_v58 }
 0x4e2   : > { %7139 = vmatpush3.bf16.msra.mxu1 %v7138_v52 }
 0x4e3   : > { %7141 = vmatprep.subr.bf16.mxu1 %v7140_v43  ;;  %v5268_v40 = vadd.f32 %v5267_v33, %v5266_v11  ;;  %v5588_v11 = vmul.f32 %v12300_v29, %v5578_v54 }
 0x4e5   : > { %v5269_v21 = vrot.slane %v5268_v40, 4 }
 0x4e6   : > { %7143 = vmatpush3.bf16.msra.mxu1 %v7142_v18  ;;  %v5643_v18 = vld [vmem:[%s11554_s7] sm:$0xff] (!%p6270_p5) }
 0x4e7   : > { %7145 = vmatprep.subr.bf16.mxu1 %v7144_v35  ;;  %v5270_v59 = vadd.f32 %v5269_v21, %v5268_v40  ;;  %v5644_v35 = vld [vmem:[%s11554_s7 + $0x8] sm:$0xff] (!%p6270_p5) }
 0x4e8   : > { %v7152_v21 = vpack.c.bf16 (!%p6270_p5), %v5644_v35, %v5643_v18 }
 0x4e9   : > { %v5271_v26 = vrot.slane %v5270_v59, 2 }
 0x4ea   : > { %7147 = vmatpush3.bf16.msra.mxu1 %v7146_v30  ;;  %7153 = vmatprep.subr.bf16.mxu0 (!%p6270_p5), %v7152_v21 }
 0x4eb   : > { %v5272_v9 = vadd.f32 %v5271_v26, %v5270_v59  ;;  %7149 = vmatprep.subr.bf16.mxu1 %v7148_v1  ;;  %7155 = vmatpush3.bf16.msra.mxu0 (!%p6270_p5), %v7152_v21 }
 0x4ed   : > { %v5273_v47 = vrot.slane %v5272_v9, 1 }
 0x4ee   : > { %7151 = vmatpush3.bf16.msra.mxu1 %v7150_v55  ;;  %v12301_v55 = vld [vmem:[#allocation135_spill] sm:$0xff] (!%p6270_p5) }
 0x4ef   : > { %v5274_v38 = vadd.f32 %v5273_v47, %v5272_v9 }
 0x4f1   : > { %v5275_v0 = vadd.f32 %v5274_v38, %v5141_v23  ;;  %5555 = vmatmul.mubr.f32.vlgmr.msra.gmra.mrb[92].mxu1 %v7346_v46 }
 0x4f2   : > { %5559 = vmatprep.mubr.f32.mxu1 %v7348_v62 }
 0x4f3   : > { %5276 = vst.msk [vmem:[#allocation3] sm:$0x1] %vm5138_vm0, %v5275_v0 }
 0x4f5   : > { %5560 = vmatmul.mubr.f32.gmra.mrb[94].mxu1 %v7351_v63 }
 0x4f6   : > { %5564 = vmatprep.mubr.f32.mxu1 %v7353_v28 }
 0x4f9   : > { %5565 = vmatmul.mubr.f32.gmra.mrb[96].mxu1 %v7356_v3 }
 0x4fa   : > { %5569 = vmatprep.mubr.f32.mxu1 %v7358_v45  ;;  %v5601_v40 = vld [vmem:[#allocation3] sm:$0x1] (!%p6270_p5) }
 0x4fb   : > { %7556 = vrcp.f32 (!%p6270_p5), %v5601_v40  ;;  %vm5602_vm0 = vcmp.gt.f32.partialorder (!%p6270_p5), %v5601_v40, 0.0 }
 0x4fd   : > { %5570 = vmatmul.mubr.f32.gmra.mrb[98].mxu1 %v7361_v8 }
 0x505   : > { %v7557_v59 = vpop.eup (!%p6270_p5), %7556 }
 0x506   : > { %v5604_v26 = vsel (!%p6270_p5), %vm5602_vm0, %v7557_v59, 0.0  ;;  %v5805_v59 = vld [vmem:[%s11549_s2] sm:$0xff] (!%p6270_p5) }
 0x507   : > { %v5613_v47 = vrot.slane (!%p6270_p5), %v5604_v26, %v12301_v55 }
 0x5a4   : > { %v6679_v32 = vpop.f32.mrb[84].mxu1 }
 0x5a5   : > { %v6680_v41 = vpop.f32.mrb[85].mxu1 }
 0x5a6   : > { %v6681_v53 = vadd.f32 %v6680_v41, %v6679_v32 }
 0x5a8   : > { %v6682_v2 = vpop.f32.mrb[86].mxu1 }
 0x5a9   : > { %v6683_v31 = vpop.f32.mrb[87].mxu1 }
 0x5aa   : > { %v6684_v5 = vadd.f32 %v6683_v31, %v6682_v2 }
 0x5ac   : > { %v6685_v14 = vpop.f32.mrb[88].mxu1 }
 0x5ad   : > { %v6686_v12 = vpop.f32.mrb[89].mxu1 }
 0x5ae   : > { %v6687_v61 = vadd.f32 %v6686_v12, %v6685_v14  ;;  %v5645_v14 = vld [vmem:[%s11554_s7 + $0x10] sm:$0xff] (!%p6270_p5)  ;;  %v5646_v12 = vld [vmem:[%s11554_s7 + $0x18] sm:$0xff] (!%p6270_p5) }
 0x5b0   : > { %v6688_v27 = vpop.f32.mrb[90].mxu1 }
 0x5b1   : > { %v6689_v4 = vpop.f32.mrb[91].mxu1 }
 0x5b2   : > { %v6690_v7 = vadd.f32 %v6689_v4, %v6688_v27  ;;  %v7156_v27 = vpack.c.bf16 (!%p6270_p5), %v5646_v12, %v5645_v14 }
 0x5b4   : > { %7157 = vmatprep.subr.bf16.mxu0 (!%p6270_p5), %v7156_v27 }
 0x5b5   : > { %7159 = vmatpush3.bf16.msra.mxu0 (!%p6270_p5), %v7156_v27 }
 0x5c4   : > { %v6723_v57 = vpop.f32.mrb[92].mxu1 }
 0x5c5   : > { %v6724_v50 = vpop.f32.mrb[93].mxu1 }
 0x5c6   : > { %v6725_v44 = vadd.f32 %v6724_v50, %v6723_v57 }
 0x5c8   : > { %v5557_v15 = vadd.f32 %v6725_v44, %v6681_v53  ;;  %v6726_v19 = vpop.f32.mrb[94].mxu1  ;;  %v5767_v44 = vld [vmem:[%s11556_s9] sm:$0xff] (!%p6270_p5) }
 0x5c9   : > { %v6727_v6 = vpop.f32.mrb[95].mxu1  ;;  %5785 = vrot.lane.b32.xlu1 (!%p6270_p5), %v5767_v44, %s7621_s20 }
 0x5ca   : > { %v5589_v48 = vadd.f32 %v5585_v42, %v5557_v15  ;;  %v6728_v16 = vadd.f32 %v6727_v6, %v6726_v19  ;;  %v5768_v15 = vld [vmem:[%s11556_s9 + $0x8] sm:$0xff] (!%p6270_p5)  ;;  %v6275_v6 = vld [vmem:[%s11555_s8] ss:$0 sm:$0xff] (!%p6270_p5) }
 0x5cc   : > { %5593 = vst.msk [vmem:[#allocation4] sm:$0xff] %vm4481_vm14, %v5589_v48  ;;  %v5562_v39 = vadd.f32 %v6728_v16, %v6684_v5  ;;  %v6729_v60 = vpop.f32.mrb[96].mxu1 }
 0x5cd   : > { %v6730_v13 = vpop.f32.mrb[97].mxu1  ;;  %5787 = vrot.lane.b32.xlu1 (!%p6270_p5), %v5768_v15, %s7621_s20 }
 0x5ce   : > { %v5590_v17 = vadd.f32 %v5586_v34, %v5562_v39  ;;  %v6731_v20 = vadd.f32 %v6730_v13, %v6729_v60 }
 0x5d0   : > { %5594 = vst.msk [vmem:[#allocation4 + $0x8] sm:$0xff] %vm4481_vm14, %v5590_v17  ;;  %v5567_v56 = vadd.f32 %v6731_v20, %v6687_v61  ;;  %v6732_v24 = vpop.f32.mrb[98].mxu1 }
 0x5d1   : > { %v6733_v58 = vpop.f32.mrb[99].mxu1 }
 0x5d2   : > { %v5591_v52 = vadd.f32 %v5587_v22, %v5567_v56  ;;  %v6734_v10 = vadd.f32 %v6733_v58, %v6732_v24  ;;  %5600 = sbr.rel (%p6270_p5) target bundleno = 2267 (0x8db), region = 68 }
 0x5d3   : > { %v5605_v30 = vld [vmem:[#allocation4] sm:$0xff] (!%p6270_p5) }
 0x5d4   : > { %5595 = vst.msk [vmem:[#allocation4 + $0x10] sm:$0xff] %vm4481_vm14, %v5591_v52  ;;  %v5572_v43 = vadd.f32 %v6734_v10, %v6690_v7  ;;  %v5615_v46 = vmul.f32 (!%p6270_p5), %v5613_v47, %v5605_v30  ;;  %v5806_v30 = vld [vmem:[%s11549_s2 + $0x8] sm:$0xff] (!%p6270_p5) }
 0x5d6   : > { %v5592_v33 = vadd.f32 %v5588_v11, %v5572_v43  ;;  %v5623_v38 = vmin.f32 (!%p6270_p5), %v5615_v46, 0.0 }
 0x5d7   : > { %v5606_v1 = vld [vmem:[#allocation4 + $0x8] sm:$0xff] (!%p6270_p5) }
 0x5d8   : > { %5596 = vst.msk [vmem:[#allocation4 + $0x18] sm:$0xff] %vm4481_vm14, %v5592_v33  ;;  %v5616_v62 = vmul.f32 (!%p6270_p5), %v5613_v47, %v5606_v1  ;;  %v5627_v28 = vmul.f32 (!%p6270_p5), 1.442695, %v5623_v38  ;;  %vm5619_vm14 = vcmp.gt.f32.partialorder (!%p6270_p5), %v5615_v46, 0.0 }
 0x5da   : > { %v5624_v0 = vmin.f32 %v5616_v62, 0.0  ;;  %7558 = vpow2.f32 %v5627_v28  ;;  %vm5620_vm15 = vcmp.gt.f32.partialorder %v5616_v62, 0.0 }
 0x5db   : > { %v5607_v9 = vld [vmem:[#allocation4 + $0x10] sm:$0xff] }
 0x5dc   : > { %v5617_v25 = vmul.f32 %v5613_v47, %v5607_v9  ;;  %v5629_v3 = vmul.f32 1.442695, %v5624_v0 }
 0x5de   : > { %v5625_v63 = vmin.f32 %v5617_v25, 0.0  ;;  %7560 = vpow2.f32 %v5629_v3  ;;  %vm5621_vm11 = vcmp.gt.f32.partialorder %v5617_v25, 0.0 }
 0x5df   : > { %v5608_v37 = vld [vmem:[#allocation4 + $0x18] sm:$0xff] }
 0x5e0   : > { %v5618_v23 = vmul.f32 %v5613_v47, %v5608_v37  ;;  %v5631_v8 = vmul.f32 1.442695, %v5625_v63 }
 0x5e2   : > { %v5626_v45 = vmin.f32 %v5618_v23, 0.0  ;;  %7562 = vpow2.f32 %v5631_v8  ;;  %vm5622_vm4 = vcmp.gt.f32.partialorder %v5618_v23, 0.0 }
 0x5e4   : > { %v5633_v32 = vmul.f32 1.442695, %v5626_v45  ;;  %v7559_v41 = vpop.eup %7558 }
 0x5e5   : > { %v6271_v2 = vadd.f32 -1.0, %v7559_v41 }
 0x5e6   : > { %7564 = vpow2.f32 %v5633_v32 }
 0x5e7   : > { %v5639_v61 = vsel %vm5619_vm14, %v5615_v46, %v6271_v2 }
 0x5e8   : > { %v7561_v53 = vpop.eup %7560  ;;  %5654 = vxpose.xlu0.b32.start [1/4] (short) (narrow) %v5639_v61, 16 }
 0x5e9   : > { %v6272_v5 = vadd.f32 -1.0, %v7561_v53 }
 0x5eb   : > { %v5640_v4 = vsel %vm5620_vm15, %v5616_v62, %v6272_v5 }
 0x5ec   : > { %v7563_v31 = vpop.eup %7562  ;;  %5655 = vxpose.xlu0.b32.cont [2/4] (short) (narrow) %v5640_v4, 16 }
 0x5ed   : > { %v6273_v7 = vadd.f32 -1.0, %v7563_v31 }
 0x5ef   : > { %v5641_v50 = vsel %vm5621_vm11, %v5617_v25, %v6273_v7 }
 0x5f0   : > { %v7565_v57 = vpop.eup %7564  ;;  %5656 = vxpose.xlu0.b32.cont [3/4] (short) (narrow) %v5641_v50, 16 }
 0x5f1   : > { %v6274_v36 = vadd.f32 -1.0, %v7565_v57 }
 0x5f3   : > { %v5642_v29 = vsel %vm5622_vm4, %v5618_v23, %v6274_v36 }
 0x5f4   : > { %5657 = vxpose.xlu0.b32.end [4/4] (short) (narrow) %v5642_v29, 16 }
 0x63b   : > { %v5786_v24 = vpop.permute.xlu1 %5785 }
 0x63f   : > { %v5788_v10 = vpop.permute.xlu1 %5787 }
 0x668   : > { %v5670_v42 = vpop.trf.xlu0 }
 0x669   : > { %7061 = vmatprep.mubr.msk.f32.mxu0 %vm12302_vm7, %v5670_v42 }
 0x66c   : > { %v5671_v19 = vpop.trf.xlu0 }
 0x66d   : > { %7062 = vmatmul.mubr.msk.f32.vlgmr.msra.gmra.mrb[0].mxu0 %vm12303_vm5, %v5671_v19 }
 0x740   : > { %v7063_v49 = vpop.f32.mrb[0].mxu0 }
 0x741   : > { %v5764_v48 = vadd.f32 %v7063_v49, %v6275_v6  ;;  %v5758_v16 = vpop.f32.mrb[1].mxu0 }
 0x742   : > { %v5759_v39 = vadd.f32 %v6275_v6, %v5758_v16 }
 0x743   : > { %v5770_v34 = vadd.f32 %v5768_v15, %v5764_v48 }
 0x744   : > { %v5769_v60 = vadd.f32 %v5767_v44, %v5759_v39 }
 0x745   : > { %v6279_v13 = vmul.f32 -1.442695, %v5770_v34 }
 0x746   : > { %v6278_v51 = vmul.f32 -1.442695, %v5769_v60 }
 0x747   : > { %7566 = vpow2.f32 %v6279_v13 }
 0x748   : > { %7568 = vpow2.f32 %v6278_v51 }
 0x751   : > { %v7567_v17 = vpop.eup %7566 }
 0x752   : > { %v7569_v20 = vpop.eup %7568  ;;  %v5778_v56 = vadd.f32 1.0, %v7567_v17 }
 0x753   : > { %v5777_v22 = vadd.f32 1.0, %v7569_v20 }
 0x755   : > { %7570 = vrcp.f32 %v5777_v22 }
 0x756   : > { %7572 = vrcp.f32 %v5778_v56 }
 0x75f   : > { %v7571_v58 = vpop.eup %7570 }
 0x760   : > { %v5791_v54 = vmul.f32 %v7571_v58, %v5786_v24  ;;  %v7573_v52 = vpop.eup %7572  ;;  %v5807_v9 = vsub.f32 1.0, %v7571_v58 }
 0x761   : > { %v5792_v43 = vmul.f32 %v7573_v52, %v5788_v10  ;;  %v5808_v46 = vsub.f32 1.0, %v7573_v52 }
 0x762   : > { %5795 = vrot.lane.b32.xlu1 %v5791_v54, %s7621_s20 }
 0x766   : > { %5797 = vrot.lane.b32.xlu1 %v5792_v43, %s7621_s20 }
 0x7d4   : > { %v5796_v11 = vpop.permute.xlu1 %5795 }
 0x7d5   : > { %v5801_v33 = vadd.f32 %v5796_v11, %v5759_v39 }
 0x7d7   : > { %7574 = vtanh.f32 %v5801_v33 }
 0x7d8   : > { %v5798_v40 = vpop.permute.xlu1 %5797 }
 0x7d9   : > { %v5802_v18 = vadd.f32 %v5798_v40, %v5764_v48 }
 0x7db   : > { %7576 = vtanh.f32 %v5802_v18 }
 0x7e1   : > { %v7575_v35 = vpop.eup %7574 }
 0x7e2   : > { %5811 = vrot.lane.b32.xlu0 %v7575_v35, %s7622_s26 }
 0x7e5   : > { %v7577_v21 = vpop.eup %7576 }
 0x7e6   : > { %5813 = vrot.lane.b32.xlu1 %v7577_v21, %s7622_s26 }
 0x7ea   : > { %5821 = vrot.lane.b32.xlu1 %v5805_v59, %s7623_s30 }
 0x7ee   : > { %5823 = vrot.lane.b32.xlu1 %v5806_v30, %s7623_s30 }
 0x854   : > { %v5812_v1 = vpop.permute.xlu0 %5811 }
 0x855   : > { %v5817_v55 = vmul.f32 %v5812_v1, %v5807_v9 }
 0x858   : > { %v5814_v26 = vpop.permute.xlu1 %5813 }
 0x859   : > { %v5818_v23 = vmul.f32 %v5814_v26, %v5808_v46 }
 0x85c   : > { %v5822_v37 = vpop.permute.xlu1 %5821 }
 0x85d   : > { %v5827_v47 = vmul.f32 %v7571_v58, %v5822_v37 }
 0x85f   : > { %v5829_v62 = vadd.f32 %v5827_v47, %v5817_v55 }
 0x860   : > { %v5824_v25 = vpop.permute.xlu1 %5823 }
 0x861   : > { %v5831_v38 = vmax.f32 %v5829_v62, 0.0  ;;  %v5828_v0 = vmul.f32 %v7573_v52, %v5824_v25 }
 0x863   : > { %v5830_v63 = vadd.f32 %v5828_v0, %v5818_v23  ;;  %5835 = vrot.lane.b32.xlu1 %v5831_v38, %s7622_s26 }
 0x865   : > { %v5832_v28 = vmax.f32 %v5830_v63, 0.0 }
 0x867   : > { %5837 = vrot.lane.b32.xlu1 %v5832_v28, %s7622_s26 }
 0x8d5   : > { %v5836_v3 = vpop.permute.xlu1 %5835 }
 0x8d6   : > { %5841 = vst.msk [vmem:[#allocation5] sm:$0xff] %vm12304_vm10, %v5836_v3 }
 0x8d9   : > { %v5838_v45 = vpop.permute.xlu1 %5837 }
 0x8da   : > { %5842 = vst.msk [vmem:[#allocation5 + $0x8] sm:$0xff] %vm12305_vm8, %v5838_v45 }
 0x8db PF: > { %p7232_p6 = scmp.eq.s32.totalorder %s7693_s18, 3  ;;  %s7624_s13 = smov [#allocation5]  }
 0x8dc   : > { %s5854_s27 = sshll.u32 %s7624_s13, 4  ;;  %s5855_s27 = int_to_ptr.vmem [resolvable:$true] %s5854_s27 }
 0x8dd   : > { %s7578_s14 = scalar_lea.vmem %s5855_s27, 256  ;;  %p7585_p10 = scmp.lt.s32.totalorder %s5855_s27, %s5855_s27 }
 0x8de   : > { %p7579_p7 = scmp.ne.s32.totalorder %s5855_s27, %s7578_s14  ;;  %p7586_p11 = scmp.lt.s32.totalorder %s7578_s14, %s7578_s14 }
 0x8e0   : > { %p7580_p8 = pnand %p7579_p7, %p7232_p6  ;;  %p7587_p12 = por %p7586_p11, %p7585_p10 }
 0x8e2   : > { %p7581_p9 = pneg %p7580_p8 }
 0x8e4   : > { %p7588_p13 = pnand %p7587_p12, %p7581_p9 }
 0x8e6   : > { %7591 = shalt.err (!%p7588_p13)
}
 0x8e7   : > { %s7592_s19 = scalar_lea.hbm %s11557_s10, 256 }
 0x8e8   : > { %p7593_p0 = scmp.ne.s32.totalorder %s11557_s10, %s7592_s19  ;;  %p7598_p3 = scmp.lt.u32.totalorder %s7592_s19, %s11557_s10 }
 0x8ea   : > { %p7594_p1 = pnand %p7593_p0, %p7232_p6 }
 0x8ec   : > { %p7595_p2 = pneg %p7594_p1 }
 0x8ee   : > { %p7600_p4 = pnand %p7598_p3, %p7595_p2 }
 0x8f0   : > { %7603 = shalt.err (!%p7600_p4)
}
 0x8f1   : > { %s7625_s25 = smov 128   ;;  %s7626_s26 = smov 8  }
 0x8f2   : > { %7229 = dma.vmem_to_hbm [thread:$0]  (%p7232_p6), %s5855_s27, 256, %s11557_s10, [#allocation6], %s7625_s25, %s7625_s25, %s7626_s26  }
 0x8f3   : > { %7609 = dma.done.wait (%p7232_p6), [#allocation6], 256  }
 0x8f4   : > { %7611 = vsyncadd (%p7232_p6), [#allocation6], 4294967040 }
 0x8f5 PF: > { %s23_s17 = sadd.s32 1, %s7614_s17  }
 0x8f6   : > { %p20_p5 = scmp.ge.s32.totalorder %s23_s17, 6  }
 0x8f8   :  { %22 = sbr.rel (!%p20_p5) target bundleno = 1 (0x1), region = 110 }
 0x8ff   :  { %5882 = vsyncpa [#allocation6], 1 }
 0x900   :  { %5884 = vsyncpa [#allocation6 + $0x1], 1 }

</bundles_post_ra>
